<compile_context>
chip_gen: v6e
topology: v6e:2x2x1
jax: 0.10.0
libtpu: 0.0.40
codegen_flags: <defaults>
</compile_context>

<pallas_src>
import functools

import jax
import jax.numpy as jnp
from jax.experimental import pallas as pl
from jax.experimental.pallas import tpu as pltpu


def _round_up(a: int, b: int) -> int:
    return ((a + b - 1) // b) * b


def _embedding_kernel(x_ref, o_ref, *, freq_bands, in_channels):
    # x_ref: (C, TILE_N) VMEM tile (channels-first, lane-dense along N).
    # o_ref: (C * (2*F + 1), TILE_N) VMEM tile.
    # Channel order matches torch.cat([x, sin(f0*x), cos(f0*x), ...], dim=-1).
    C = in_channels
    x = x_ref[...].astype(jnp.float32)
    o_ref[0:C, :] = x.astype(o_ref.dtype)
    for k, f in enumerate(freq_bands):  # static Python floats -> fully unrolled
        fx = f * x
        base = (2 * k + 1) * C
        o_ref[base:base + C, :] = jnp.sin(fx).astype(o_ref.dtype)
        o_ref[base + C:base + 2 * C, :] = jnp.cos(fx).astype(o_ref.dtype)


def make_embedding(in_channels: int, N_freqs: int, logscale: bool = True):
    """Returns (embedding_fn, out_channels); embedding_fn: (N, C) -> (N, C*(2F+1))."""
    if logscale:
        freq_bands = 2.0 ** jnp.linspace(0.0, N_freqs - 1, N_freqs)
    else:
        freq_bands = jnp.linspace(1.0, 2.0 ** (N_freqs - 1), N_freqs)
    freq_list = tuple(float(f) for f in freq_bands)  # static scalars, baked in
    out_channels = in_channels * (2 * N_freqs + 1)

    kernel = functools.partial(
        _embedding_kernel, freq_bands=freq_list, in_channels=in_channels)

    def embedding(x, *, tile_n: int = 1024, out_dtype=None,
                  channels_first_out: bool = False):
        N, C = x.shape
        assert C == in_channels, (C, in_channels)
        out_dtype = x.dtype if out_dtype is None else out_dtype

        # Lane-dense tiling along N (multiple of 128); don't over-pad tiny inputs.
        tile = max(128, min(_round_up(int(tile_n), 128), _round_up(N, 128)))
        n_pad = _round_up(N, tile)

        # Channels-first so N fills the 128 lanes; cheap transpose/pad in XLA.
        xt = jnp.transpose(x)                            # (C, N)
        if n_pad != N:
            xt = jnp.pad(xt, ((0, 0), (0, n_pad - N)))   # zero-pad, sliced off below

        out_cf = pl.pallas_call(
            kernel,
            out_shape=jax.ShapeDtypeStruct((out_channels, n_pad), out_dtype),
            grid_spec=pltpu.PrefetchScalarGridSpec(
                num_scalar_prefetch=0,
                grid=(n_pad // tile,),
                in_specs=[pl.BlockSpec((in_channels, tile), lambda i: (0, i))],
                out_specs=pl.BlockSpec((out_channels, tile), lambda i: (0, i)),
            ),
            compiler_params=pltpu.CompilerParams(
                dimension_semantics=("parallel",)),  # shards grid across v7x's 2 TCs
        )(xt)

        out_cf = out_cf[:, :N]
        if channels_first_out:
            return out_cf                 # (out_channels, N), no extra transpose pass
        return jnp.transpose(out_cf)      # (N, out_channels), torch layout

    return embedding, out_channels


def _reference(x, N_freqs, logscale=True):
    if logscale:
        freq_bands = 2.0 ** jnp.linspace(0.0, N_freqs - 1, N_freqs)
    else:
        freq_bands = jnp.linspace(1.0, 2.0 ** (N_freqs - 1), N_freqs)
    out = [x]
    for f in freq_bands:
        out.append(jnp.sin(f * x))
        out.append(jnp.cos(f * x))
    return jnp.concatenate(out, axis=-1)


if __name__ == "__main__":
    in_channels = 3
    N_freqs = 10
    N = 2177  # not a multiple of the tile -> exercises the cdiv + padding path

    key = jax.random.PRNGKey(0)
    x = jax.random.normal(key, (N, in_channels), dtype=jnp.float32)

    for logscale in (True, False):
        embedding, out_channels = make_embedding(in_channels, N_freqs, logscale)
        y = jax.block_until_ready(embedding(x, tile_n=1024))
        assert y.shape == (N, out_channels), y.shape
        y_ref = _reference(x, N_freqs, logscale)
        assert jnp.allclose(y, y_ref, atol=1e-5, rtol=1e-5), (
            "max abs err:", float(jnp.max(jnp.abs(y - y_ref))))

    print("KERNEL_OK")
</pallas_src>

<mosaic_0001>
module attributes {stable_mosaic.version = 11 : i64} {
  func.func @_embedding_kernel(%arg0: i32, %arg1: memref<3x1024xf32, #tpu.memory_space<vmem>>, %arg2: memref<63x1024xf32, #tpu.memory_space<vmem>>) attributes {dimension_semantics = [#tpu.dimension_semantics<parallel>], iteration_bounds = array<i64: 3>, scalar_prefetch = 0 : i64, scratch_operands = 0 : i64, tpu.core_type = #tpu.core_type<tc>, window_params = [{transform_indices = @transform_0, window_bounds = array<i64: 3, 1024>}, {transform_indices = @transform_1, window_bounds = array<i64: 63, 1024>}]} {
    %c0 = arith.constant 0 : index
    %c0_0 = arith.constant 0 : index
    %0 = vector.load %arg1[%c0, %c0_0] : memref<3x1024xf32, #tpu.memory_space<vmem>>, vector<3x1024xf32>
    %c0_1 = arith.constant 0 : index
    %c0_2 = arith.constant 0 : index
    %1 = vector.load %arg2[%c0_1, %c0_2] : memref<63x1024xf32, #tpu.memory_space<vmem>>, vector<3x1024xf32>
    tpu.vector_store %arg2[%c0_1, %c0_2], %0 {strides = array<i32>} : memref<63x1024xf32, #tpu.memory_space<vmem>>, vector<3x1024xf32>,
    %cst = arith.constant 1.000000e+00 : f32
    %2 = vector.broadcast %cst : f32 to vector<3x1024xf32>
    %3 = arith.mulf %2, %0 : vector<3x1024xf32>
    %4 = math.sin %3 : vector<3x1024xf32>
    %c3 = arith.constant 3 : index
    %c0_3 = arith.constant 0 : index
    %5 = vector.load %arg2[%c3, %c0_3] : memref<63x1024xf32, #tpu.memory_space<vmem>>, vector<3x1024xf32>
    tpu.vector_store %arg2[%c3, %c0_3], %4 {strides = array<i32>} : memref<63x1024xf32, #tpu.memory_space<vmem>>, vector<3x1024xf32>,
    %6 = math.cos %3 : vector<3x1024xf32>
    %c6 = arith.constant 6 : index
    %c0_4 = arith.constant 0 : index
    %7 = vector.load %arg2[%c6, %c0_4] : memref<63x1024xf32, #tpu.memory_space<vmem>>, vector<3x1024xf32>
    tpu.vector_store %arg2[%c6, %c0_4], %6 {strides = array<i32>} : memref<63x1024xf32, #tpu.memory_space<vmem>>, vector<3x1024xf32>,
    %cst_5 = arith.constant 2.000000e+00 : f32
    %8 = vector.broadcast %cst_5 : f32 to vector<3x1024xf32>
    %9 = arith.mulf %8, %0 : vector<3x1024xf32>
    %10 = math.sin %9 : vector<3x1024xf32>
    %c9 = arith.constant 9 : index
    %c0_6 = arith.constant 0 : index
    %11 = vector.load %arg2[%c9, %c0_6] : memref<63x1024xf32, #tpu.memory_space<vmem>>, vector<3x1024xf32>
    tpu.vector_store %arg2[%c9, %c0_6], %10 {strides = array<i32>} : memref<63x1024xf32, #tpu.memory_space<vmem>>, vector<3x1024xf32>,
    %12 = math.cos %9 : vector<3x1024xf32>
    %c12 = arith.constant 12 : index
    %c0_7 = arith.constant 0 : index
    %13 = vector.load %arg2[%c12, %c0_7] : memref<63x1024xf32, #tpu.memory_space<vmem>>, vector<3x1024xf32>
    tpu.vector_store %arg2[%c12, %c0_7], %12 {strides = array<i32>} : memref<63x1024xf32, #tpu.memory_space<vmem>>, vector<3x1024xf32>,
    %cst_8 = arith.constant 4.000000e+00 : f32
    %14 = vector.broadcast %cst_8 : f32 to vector<3x1024xf32>
    %15 = arith.mulf %14, %0 : vector<3x1024xf32>
    %16 = math.sin %15 : vector<3x1024xf32>
    %c15 = arith.constant 15 : index
    %c0_9 = arith.constant 0 : index
    %17 = vector.load %arg2[%c15, %c0_9] : memref<63x1024xf32, #tpu.memory_space<vmem>>, vector<3x1024xf32>
    tpu.vector_store %arg2[%c15, %c0_9], %16 {strides = array<i32>} : memref<63x1024xf32, #tpu.memory_space<vmem>>, vector<3x1024xf32>,
    %18 = math.cos %15 : vector<3x1024xf32>
    %c18 = arith.constant 18 : index
    %c0_10 = arith.constant 0 : index
    %19 = vector.load %arg2[%c18, %c0_10] : memref<63x1024xf32, #tpu.memory_space<vmem>>, vector<3x1024xf32>
    tpu.vector_store %arg2[%c18, %c0_10], %18 {strides = array<i32>} : memref<63x1024xf32, #tpu.memory_space<vmem>>, vector<3x1024xf32>,
    %cst_11 = arith.constant 8.000000e+00 : f32
    %20 = vector.broadcast %cst_11 : f32 to vector<3x1024xf32>
    %21 = arith.mulf %20, %0 : vector<3x1024xf32>
    %22 = math.sin %21 : vector<3x1024xf32>
    %c21 = arith.constant 21 : index
    %c0_12 = arith.constant 0 : index
    %23 = vector.load %arg2[%c21, %c0_12] : memref<63x1024xf32, #tpu.memory_space<vmem>>, vector<3x1024xf32>
    tpu.vector_store %arg2[%c21, %c0_12], %22 {strides = array<i32>} : memref<63x1024xf32, #tpu.memory_space<vmem>>, vector<3x1024xf32>,
    %24 = math.cos %21 : vector<3x1024xf32>
    %c24 = arith.constant 24 : index
    %c0_13 = arith.constant 0 : index
    %25 = vector.load %arg2[%c24, %c0_13] : memref<63x1024xf32, #tpu.memory_space<vmem>>, vector<3x1024xf32>
    tpu.vector_store %arg2[%c24, %c0_13], %24 {strides = array<i32>} : memref<63x1024xf32, #tpu.memory_space<vmem>>, vector<3x1024xf32>,
    %cst_14 = arith.constant 1.600000e+01 : f32
    %26 = vector.broadcast %cst_14 : f32 to vector<3x1024xf32>
    %27 = arith.mulf %26, %0 : vector<3x1024xf32>
    %28 = math.sin %27 : vector<3x1024xf32>
    %c27 = arith.constant 27 : index
    %c0_15 = arith.constant 0 : index
    %29 = vector.load %arg2[%c27, %c0_15] : memref<63x1024xf32, #tpu.memory_space<vmem>>, vector<3x1024xf32>
    tpu.vector_store %arg2[%c27, %c0_15], %28 {strides = array<i32>} : memref<63x1024xf32, #tpu.memory_space<vmem>>, vector<3x1024xf32>,
    %30 = math.cos %27 : vector<3x1024xf32>
    %c30 = arith.constant 30 : index
    %c0_16 = arith.constant 0 : index
    %31 = vector.load %arg2[%c30, %c0_16] : memref<63x1024xf32, #tpu.memory_space<vmem>>, vector<3x1024xf32>
    tpu.vector_store %arg2[%c30, %c0_16], %30 {strides = array<i32>} : memref<63x1024xf32, #tpu.memory_space<vmem>>, vector<3x1024xf32>,
    %cst_17 = arith.constant 3.200000e+01 : f32
    %32 = vector.broadcast %cst_17 : f32 to vector<3x1024xf32>
    %33 = arith.mulf %32, %0 : vector<3x1024xf32>
    %34 = math.sin %33 : vector<3x1024xf32>
    %c33 = arith.constant 33 : index
    %c0_18 = arith.constant 0 : index
    %35 = vector.load %arg2[%c33, %c0_18] : memref<63x1024xf32, #tpu.memory_space<vmem>>, vector<3x1024xf32>
    tpu.vector_store %arg2[%c33, %c0_18], %34 {strides = array<i32>} : memref<63x1024xf32, #tpu.memory_space<vmem>>, vector<3x1024xf32>,
    %36 = math.cos %33 : vector<3x1024xf32>
    %c36 = arith.constant 36 : index
    %c0_19 = arith.constant 0 : index
    %37 = vector.load %arg2[%c36, %c0_19] : memref<63x1024xf32, #tpu.memory_space<vmem>>, vector<3x1024xf32>
    tpu.vector_store %arg2[%c36, %c0_19], %36 {strides = array<i32>} : memref<63x1024xf32, #tpu.memory_space<vmem>>, vector<3x1024xf32>,
    %cst_20 = arith.constant 6.400000e+01 : f32
    %38 = vector.broadcast %cst_20 : f32 to vector<3x1024xf32>
    %39 = arith.mulf %38, %0 : vector<3x1024xf32>
    %40 = math.sin %39 : vector<3x1024xf32>
    %c39 = arith.constant 39 : index
    %c0_21 = arith.constant 0 : index
    %41 = vector.load %arg2[%c39, %c0_21] : memref<63x1024xf32, #tpu.memory_space<vmem>>, vector<3x1024xf32>
    tpu.vector_store %arg2[%c39, %c0_21], %40 {strides = array<i32>} : memref<63x1024xf32, #tpu.memory_space<vmem>>, vector<3x1024xf32>,
    %42 = math.cos %39 : vector<3x1024xf32>
    %c42 = arith.constant 42 : index
    %c0_22 = arith.constant 0 : index
    %43 = vector.load %arg2[%c42, %c0_22] : memref<63x1024xf32, #tpu.memory_space<vmem>>, vector<3x1024xf32>
    tpu.vector_store %arg2[%c42, %c0_22], %42 {strides = array<i32>} : memref<63x1024xf32, #tpu.memory_space<vmem>>, vector<3x1024xf32>,
    %cst_23 = arith.constant 1.280000e+02 : f32
    %44 = vector.broadcast %cst_23 : f32 to vector<3x1024xf32>
    %45 = arith.mulf %44, %0 : vector<3x1024xf32>
    %46 = math.sin %45 : vector<3x1024xf32>
    %c45 = arith.constant 45 : index
    %c0_24 = arith.constant 0 : index
    %47 = vector.load %arg2[%c45, %c0_24] : memref<63x1024xf32, #tpu.memory_space<vmem>>, vector<3x1024xf32>
    tpu.vector_store %arg2[%c45, %c0_24], %46 {strides = array<i32>} : memref<63x1024xf32, #tpu.memory_space<vmem>>, vector<3x1024xf32>,
    %48 = math.cos %45 : vector<3x1024xf32>
    %c48 = arith.constant 48 : index
    %c0_25 = arith.constant 0 : index
    %49 = vector.load %arg2[%c48, %c0_25] : memref<63x1024xf32, #tpu.memory_space<vmem>>, vector<3x1024xf32>
    tpu.vector_store %arg2[%c48, %c0_25], %48 {strides = array<i32>} : memref<63x1024xf32, #tpu.memory_space<vmem>>, vector<3x1024xf32>,
    %cst_26 = arith.constant 2.560000e+02 : f32
    %50 = vector.broadcast %cst_26 : f32 to vector<3x1024xf32>
    %51 = arith.mulf %50, %0 : vector<3x1024xf32>
    %52 = math.sin %51 : vector<3x1024xf32>
    %c51 = arith.constant 51 : index
    %c0_27 = arith.constant 0 : index
    %53 = vector.load %arg2[%c51, %c0_27] : memref<63x1024xf32, #tpu.memory_space<vmem>>, vector<3x1024xf32>
    tpu.vector_store %arg2[%c51, %c0_27], %52 {strides = array<i32>} : memref<63x1024xf32, #tpu.memory_space<vmem>>, vector<3x1024xf32>,
    %54 = math.cos %51 : vector<3x1024xf32>
    %c54 = arith.constant 54 : index
    %c0_28 = arith.constant 0 : index
    %55 = vector.load %arg2[%c54, %c0_28] : memref<63x1024xf32, #tpu.memory_space<vmem>>, vector<3x1024xf32>
    tpu.vector_store %arg2[%c54, %c0_28], %54 {strides = array<i32>} : memref<63x1024xf32, #tpu.memory_space<vmem>>, vector<3x1024xf32>,
    %cst_29 = arith.constant 5.120000e+02 : f32
    %56 = vector.broadcast %cst_29 : f32 to vector<3x1024xf32>
    %57 = arith.mulf %56, %0 : vector<3x1024xf32>
    %58 = math.sin %57 : vector<3x1024xf32>
    %c57 = arith.constant 57 : index
    %c0_30 = arith.constant 0 : index
    %59 = vector.load %arg2[%c57, %c0_30] : memref<63x1024xf32, #tpu.memory_space<vmem>>, vector<3x1024xf32>
    tpu.vector_store %arg2[%c57, %c0_30], %58 {strides = array<i32>} : memref<63x1024xf32, #tpu.memory_space<vmem>>, vector<3x1024xf32>,
    %60 = math.cos %57 : vector<3x1024xf32>
    %c60 = arith.constant 60 : index
    %c0_31 = arith.constant 0 : index
    %61 = vector.load %arg2[%c60, %c0_31] : memref<63x1024xf32, #tpu.memory_space<vmem>>, vector<3x1024xf32>
    tpu.vector_store %arg2[%c60, %c0_31], %60 {strides = array<i32>} : memref<63x1024xf32, #tpu.memory_space<vmem>>, vector<3x1024xf32>,
    return
  }
  func.func @transform_0(%arg0: i32) -> (i32, i32) {
    %c0_i32 = arith.constant 0 : i32
    %c0_i32_0 = arith.constant 0 : i32
    return %c0_i32, %arg0 : i32, i32
  }
  func.func @transform_1(%arg0: i32) -> (i32, i32) {
    %c0_i32 = arith.constant 0 : i32
    %c0_i32_0 = arith.constant 0 : i32
    return %c0_i32, %arg0 : i32, i32
  }
}

</mosaic_0001>

<bundles_post_ra>
// kernel: tpu_custom_call.1
= control target key start
LH: loop header
LB: loop body
LE: loop exit
PB: predicated region body
PF: predicated region fallthrough
CT: control target
= control target key end

     0   :  { %6 = vsyncpa [#allocation3], 0  ;;  %s14589_s0 = inlined_call_operand.hbm [shape: f32[3,3072], index: 0, kind: input, shape index: {}]   ;;  %s14590_s1 = inlined_call_operand.hbm [shape: f32[63,3072], index: 1, kind: output, shape index: {}]  }
   0x1   :  { %8 = vsyncpa [#allocation3 + $0x1], 0 }
   0x2   :  { %9 = vsyncpa [#allocation4], 0 }
   0x3   :  { %11 = vsyncpa [#allocation4 + $0x1], 0  ;;  %s10012_s6 = smov 0   ;;  %s10014_s7 = smov 0  }
   0x4   :  { %s10016_s8 = smov 0   ;;  %s10018_s9 = smov 0  }
   0x5 LB: > { %s10033_s10 = sadd.s32 4294967295, %s9989_s9   ;;  %s9182_s11 = sadd.s32 4294967294, %s9989_s9   ;;  %s9989_s9 = sphi %s10018_s9, %s14684_s9   ;;  %s9985_s8 = sphi %s10016_s8, %s14683_s8   ;;  %s9981_s7 = sphi %s10014_s7, %s14682_s7   ;;  %s9977_s6 = sphi %s10012_s6, %s14681_s6  }
   0x6   : > { %s10037_s12 = sadd.s32 1, %s9989_s9   ;;  %s24_s13 = sadd.s32 1, %s9985_s8 }
   0x7   : > { %s21_s14 = ssub.s32 %s9989_s9, %s10037_s12  ;;  %p31_p0 = scmp.ne.s32.totalorder %s9985_s8, %s9981_s7 }
   0x8   : > { %p22_p1 = scmp.eq.s32.totalorder %s21_s14, 0  ;;  %p32_p2 = scmp.eq.s32.totalorder %s9989_s9, 0 }
   0x9   : > { %p37_p3 = scmp.ne.s32.totalorder %s9981_s7, %s9977_s6  ;;  %p38_p4 = scmp.eq.s32.totalorder %s10033_s10, 0 }
   0xa   : > { %s10049_s15 = scalar_select %p22_p1, %s9985_s8, %s24_s13  }
   0xb   : > { %p10051_p5 = por %p32_p2, %p31_p0  ;;  %p10055_p6 = por %p38_p4, %p37_p3 }
   0xc   : > { %p61_p7 = scmp.eq.s32.totalorder %s10033_s10, 2  ;;  %p67_p8 = scmp.eq.s32.totalorder %s9182_s11, 2 }
   0xd   : > { %s14594_s17 = scalar_select %p10055_p6, 1, 0 }
   0xe   : > { %p9690_p9 = scmp.lt.s32.totalorder %s9989_s9, 3  ;;  %p10061_p10 = por %p61_p7, %p31_p0 }
   0xf   : > { %p10065_p11 = por %p67_p8, %p37_p3  ;;  %s87_s20 = sand.u32 1, %s9985_s8  }
  0x10   : > { %s14595_s18 = scalar_select %p10061_p10, 1, 0 }
  0x11   : > { %s14596_s19 = scalar_select %p10065_p11, 1, 0 }
  0x12   : > { %s9516_s21 = sshll.u32 %s9989_s9, 9  ;;  %s9185_s22 = sshll.u32 %s87_s20, 5 }
  0x13   : > { %s10074_s25 = scalar_lea.hbm %s14589_s0, %s9516_s21  ;;  %s91_s26 = scalar_lea.vmem [#allocation2], %s9185_s22 }
  0x14   : > { %s99_s27 = sshll.u32 %s91_s26, 4  ;;  %p10078_p12 = pnand %p9690_p9, %p10051_p5  ;;  %s10082_s27 = int_to_ptr.vmem [resolvable:$true] %s99_s27 }
  0x15   : > { %s88_s29 = scalar_lea.sflag [#allocation3], %s87_s20  ;;  %s9897_s30 = scalar_lea.hbm %s10074_s25, 512 }
  0x16   : > { %p9898_p1 = scmp.ne.s32.totalorder %s10074_s25, %s9897_s30  ;;  %p9899_p2 = pneg %p10078_p12 }
  0x17   : > { %s9902_s4 = scalar_lea.hbm %s14589_s0, 1536  ;;  %p9903_p5 = scmp.lt.s32.totalorder %s10074_s25, %s14589_s0 }
  0x18   : > { %p9900_p3 = pnand %p9899_p2, %p9898_p1  ;;  %p9904_p7 = scmp.lt.s32.totalorder %s9902_s4, %s9897_s30 }
  0x1a   : > { %p9901_p4 = pneg %p9900_p3  ;;  %p9905_p8 = por %p9904_p7, %p9903_p5 }
  0x1c   : > { %p9906_p9 = pnand %p9905_p8, %p9901_p4 }
  0x1e   : > { %9909 = shalt.err (!%p9906_p9)
}
  0x1f   : > { %s9910_s13 = scalar_lea.vmem %s10082_s27, 512  ;;  %s9991_s14 = smov [#allocation2]  }
  0x20   : > { %p9911_p13 = scmp.ne.s32.totalorder %s10082_s27, %s9910_s13  ;;  %s9915_s16 = sshll.u32 %s9991_s14, 4  ;;  %s9916_s16 = int_to_ptr.vmem [resolvable:$false] %s9915_s16 }
  0x21   : > { %s9917_s20 = scalar_lea.vmem %s9916_s16, 1024  ;;  %p9918_p3 = scmp.lt.s32.totalorder %s10082_s27, %s9916_s16 }
  0x22   : > { %p9913_p0 = pnand %p9911_p13, %p9899_p2  ;;  %p9919_p11 = scmp.lt.s32.totalorder %s9917_s20, %s9910_s13 }
  0x24   : > { %p9914_p1 = pneg %p9913_p0  ;;  %p9920_p10 = por %p9919_p11, %p9918_p3 }
  0x26   : > { %p9921_p6 = pnand %p9920_p10, %p9914_p1 }
  0x28   : > { %9924 = shalt.err (!%p9921_p6)
}
  0x29   : > { %9685 = dma.hbm_to_vmem [thread:$0]  (!%p10078_p12), %s10074_s25, 512, %s10082_s27, %s88_s29  }
  0x2a   : > { %p14598_p4 = scmp.lt.s32.totalorder %s9989_s9, 4  ;;  %p14599_p5 = scmp.ge.s32.totalorder %s9989_s9, 1 }
  0x2c   : > { %p105_p13 = pnand %p14599_p5, %p14598_p4 }
  0x2d   : > { %s10109_s21 = sand.u32 (!%p105_p13), 1, %s9981_s7   ;;  %p14600_p6 = scmp.ne.s32.totalorder (!%p105_p13), %s14594_s17, 0 }
  0x2e   : > { %108 = sbr.rel (%p105_p13) target bundleno = 1227 (0x4cb), region = 24  ;;  %s9189_s22 = sshll.u32 (!%p105_p13), %s10109_s21, 5 }
  0x2f   : > { %s111_s23 = scalar_lea.sflag (!%p105_p13), [#allocation3], %s10109_s21  ;;  %s114_s24 = scalar_lea.vmem (!%p105_p13), [#allocation2], %s9189_s22 }
  0x33   : > { %9968 = dma.done.wait (%p14600_p6), %s111_s23, 512  }
  0x34   : > { %9970 = vsyncadd (%p14600_p6), %s111_s23, 4294966784  ;;  %s9190_s25 = sshll.u32 %s10109_s21, 9  ;;  %v10118_v0 = vld [vmem:[%s114_s24] sm:$0x77]  ;;  %v10120_v1 = vld [vmem:[%s114_s24 + $0x8] sm:$0x77] }
  0x35   : > { %v10122_v2 = vld [vmem:[%s114_s24 + $0x10] sm:$0x77]  ;;  %s10124_s26 = scalar_lea.vmem [#allocation5], %s9190_s25  ;;  %v143_v3 = vcombine.high %v10118_v0, %v10118_v0  ;;  %v144_v4 = vcombine.high %v10120_v1, %v10120_v1  ;;  %v10138_v6 = vld [vmem:[%s114_s24 + $0x18] sm:$0x77]  ;;  %v162_v9 = vand.u32 2139095040, %v10118_v0 }
  0x36   : > { %151 = vst [vmem:[%s10124_s26] sm:$0x7] %v10118_v0  ;;  %153 = vst [vmem:[%s10124_s26 + $0x10] sm:$0x7] %v10120_v1  ;;  %v145_v5 = vcombine.high %v10122_v2, %v10122_v2  ;;  %v159_v7 = vand.u32 2147483647, %v10118_v0  ;;  %v146_v8 = vcombine.high %v10138_v6, %v10138_v6  ;;  %v266_v12 = vand.u32 2139095040, %v10120_v1 }
  0x37   : > { %155 = vst [vmem:[%s10124_s26 + $0x20] sm:$0x7] %v10122_v2  ;;  %157 = vst [vmem:[%s10124_s26 + $0x30] sm:$0x7] %v10138_v6  ;;  %v263_v10 = vand.u32 2147483647, %v10120_v1 }
  0x38   : > { %152 = vst [vmem:[%s10124_s26 + $0x8] sm:$0x7] %v143_v3  ;;  %154 = vst [vmem:[%s10124_s26 + $0x18] sm:$0x7] %v144_v4  ;;  %v163_v11 = vshrl.u32 %v162_v9, 23  ;;  %v267_v16 = vshrl.u32 %v266_v12, 23 }
  0x39   : > { %156 = vst [vmem:[%s10124_s26 + $0x28] sm:$0x7] %v145_v5  ;;  %158 = vst [vmem:[%s10124_s26 + $0x38] sm:$0x7] %v146_v8  ;;  %v166_v13 = vand.u32 8388607, %v159_v7 }
  0x3a   : > { %v270_v14 = vand.u32 8388607, %v263_v10  ;;  %v9191_v15 = vadd.s32 4294967169, %v163_v11  ;;  %v370_v17 = vand.u32 2139095040, %v10122_v2  ;;  %v9195_v19 = vadd.s32 4294967169, %v267_v16  ;;  %s9517_s17 = sshll.u32 %s10033_s10, 10 }
  0x3b   : > { %v167_v21 = vor.u32 8388608, %v166_v13  ;;  %v367_v23 = vand.u32 2147483647, %v10122_v2  ;;  %v9992_v34 = vmov 683565275   ;;  %vm161_vm13 = vcmp.lt.s32.totalorder %v10118_v0, 0  ;;  %s14542_s30 = scalar_lea.hbm %s14590_s1, %s9517_s17 }
  0x3c   : > { %v169_v18 = vadd.s32 1, %v9191_v15  ;;  %v371_v20 = vshrl.u32 %v370_v17, 23  ;;  %v271_v22 = vor.u32 8388608, %v270_v14  ;;  %v273_v24 = vadd.s32 1, %v9195_v19  ;;  %s9109_s27 = sshll.u32 %s10124_s26, 4  ;;  %s9096_s10 = scalar_lea.sflag [#allocation4], %s10109_s21  ;;  %s14544_s27 = int_to_ptr.vmem [resolvable:$true] %s9109_s27 }
  0x3d   : > { %v10158_v29 = vshll.u32 %v167_v21, 8  ;;  %v10164_v31 = vand.u32 8388607, %v367_v23  ;;  %v9993_v36 = vmov 2475754826   ;;  %s9925_s2 = scalar_lea.vmem %s14544_s27, 8192 }
  0x3e   : > { %vm170_vm0 = vcmp.gt.s32.totalorder %v169_v18, 0  ;;  %v9199_v25 = vadd.s32 4294967169, %v371_v20  ;;  %vm274_vm1 = vcmp.gt.s32.totalorder %v273_v24, 0  ;;  %v10160_v30 = vshll.u32 %v271_v22, 8  ;;  %p9926_p10 = scmp.ne.s32.totalorder %s14544_s27, %s9925_s2  ;;  %p14679_p11 = scmp.ne.s32.totalorder %s14595_s18, 0 }
  0x3f   : > { %v171_v26 = vsel %vm170_vm0, %v169_v18, 0  ;;  %v9994_v38 = vmov 2131351028   ;;  %v9995_v40 = vmov 2102212464   ;;  %v275_v44 = vsel %vm274_vm1, %v273_v24, 0 }
  0x40   : > { %v172_v27 = vshrl.u32 %v171_v26, 5  ;;  %v173_v28 = vand.u32 31, %v171_v26  ;;  %v10166_v32 = vadd.s32 1, %v9199_v25  ;;  %v9996_v42 = vmov 920167782   ;;  %p9927_p12 = pnand %p9926_p10, %p14679_p11  ;;  %s9998_s3 = smov [#allocation5]  }
  0x41   : > { %v9997_v50 = vmov 1326507024   ;;  %v276_v57 = vshrl.u32 %v275_v44, 5  ;;  %v277_v58 = vand.u32 31, %v275_v44  ;;  %vm10267_vm15 = vcmp.le.f32.partialorder %v159_v7, 0.7853982 }
  0x42   : > { %v174_v33 = vsub.s32 32, %v173_v28  ;;  %v176_v35 = vshll.u32 %v9992_v34, %v173_v28  ;;  %v179_v37 = vshll.u32 %v9993_v36, %v173_v28  ;;  %v182_v39 = vshll.u32 %v9994_v38, %v173_v28  ;;  %p9928_p0 = pneg %p9927_p12  ;;  %s9929_s4 = sshll.u32 %s9998_s3, 4  ;;  %s9930_s4 = int_to_ptr.vmem [resolvable:$false] %s9929_s4 }
  0x43   : > { %v185_v41 = vshll.u32 %v9995_v40, %v173_v28  ;;  %v188_v43 = vshll.u32 %v9996_v42, %v173_v28  ;;  %vm191_vm2 = vcmp.lt.s32.totalorder %v172_v27, 1  ;;  %vm192_vm3 = vcmp.lt.s32.totalorder %v172_v27, 2  ;;  %s9931_s5 = scalar_lea.vmem %s9930_s4, 16384  ;;  %p9932_p2 = scmp.lt.s32.totalorder %s14544_s27, %s9930_s4 }
  0x44   : > { %v175_v45 = vshrl.u32 %v9992_v34, %v174_v33  ;;  %v177_v46 = vshrl.u32 %v9993_v36, %v174_v33  ;;  %v180_v47 = vshrl.u32 %v9994_v38, %v174_v33  ;;  %v183_v48 = vshrl.u32 %v9995_v40, %v174_v33  ;;  %p9933_p7 = scmp.lt.s32.totalorder %s9931_s5, %s9925_s2 }
  0x45   : > { %v186_v49 = vshrl.u32 %v9996_v42, %v174_v33  ;;  %v189_v51 = vshrl.u32 %v9997_v50, %v174_v33  ;;  %vm193_vm4 = vcmp.lt.s32.totalorder %v172_v27, 3  ;;  %vm194_vm5 = vcmp.lt.s32.totalorder %v172_v27, 4 }
  0x46   : > { %v178_v52 = vor.u32 %v177_v46, %v176_v35  ;;  %v181_v53 = vor.u32 %v180_v47, %v179_v37  ;;  %v184_v54 = vor.u32 %v183_v48, %v182_v39  ;;  %v278_v5 = vsub.s32 32, %v277_v58  ;;  %p9934_p8 = por %p9933_p7, %p9932_p2 }
  0x47   : > { %v187_v55 = vor.u32 %v186_v49, %v185_v41  ;;  %v190_v56 = vor.u32 %v189_v51, %v188_v43  ;;  %v280_v12 = vshll.u32 %v9992_v34, %v277_v58  ;;  %v283_v22 = vshll.u32 %v9993_v36, %v277_v58 }
  0x48   : > { %v195_v59 = vsel %vm191_vm2, %v175_v45, %v178_v52  ;;  %v196_v60 = vsel %vm194_vm5, %v184_v54, 2102212464  ;;  %v199_v61 = vsel %vm191_vm2, %v178_v52, %v181_v53  ;;  %v203_v62 = vsel %vm191_vm2, %v181_v53, %v184_v54  ;;  %p9935_p9 = pnand %p9934_p8, %p9928_p0 }
  0x49   : > { %v197_v63 = vsel %vm193_vm4, %v181_v53, %v196_v60  ;;  %v200_v3 = vsel %vm194_vm5, %v187_v55, 920167782  ;;  %v204_v4 = vsel %vm194_vm5, %v190_v56, 1326507024  ;;  %v279_v16 = vshrl.u32 %v9992_v34, %v278_v5 }
  0x4a   : > { %v198_v8 = vsel %vm192_vm3, %v195_v59, %v197_v63  ;;  %v201_v9 = vsel %vm193_vm4, %v184_v54, %v200_v3  ;;  %v205_v11 = vsel %vm193_vm4, %v187_v55, %v204_v4  ;;  %v281_v21 = vshrl.u32 %v9993_v36, %v278_v5 }
  0x4b   : > { %v202_v13 = vsel %vm192_vm3, %v199_v61, %v201_v9  ;;  %v206_v14 = vsel %vm192_vm3, %v203_v62, %v205_v11  ;;  %v214_v15 = vmul.u32 %v10158_v29, %v198_v8  ;;  %v284_v24 = vshrl.u32 %v9994_v38, %v278_v5 }
  0x4c   : > { %v10193_v17 = vmul.u32.u64.low %v10158_v29, %v206_v14  ;;  %v10194_v18 = vmul.u32.u64.high %v10158_v29, %v206_v14, %v10193_v17  ;;  %v10197_v19 = vmul.u32.u64.low %v10158_v29, %v202_v13  ;;  %v10198_v20 = vmul.u32.u64.high %v10158_v29, %v202_v13, %v10197_v19 }
  0x4d   : > { %v286_v25 = vshll.u32 %v9994_v38, %v277_v58  ;;  %v287_v26 = vshrl.u32 %v9995_v40, %v278_v5  ;;  %v289_v27 = vshll.u32 %v9995_v40, %v277_v58  ;;  %v290_v28 = vshrl.u32 %v9996_v42, %v278_v5 }
  0x4e   : > { %v292_v33 = vshll.u32 %v9996_v42, %v277_v58  ;;  %v282_v35 = vor.u32 %v281_v21, %v280_v12  ;;  %v285_v29 = vor.u32 %v284_v24, %v283_v22  ;;  %v293_v37 = vshrl.u32 %v9997_v50, %v278_v5 }
  0x4f   : > { %vm295_vm6 = vcmp.lt.s32.totalorder %v276_v57, 1  ;;  %vm216_vm7 = vc.u32 %v10194_v18, %v10197_v19  ;;  %v217_v39 = vadd.s32 1, %v10198_v20  ;;  %v288_v41 = vor.u32 %v287_v26, %v286_v25 }
  0x50   : > { %vm378_vm8 = vcmp.gt.s32.totalorder %v10166_v32, 0  ;;  %v291_v43 = vor.u32 %v290_v28, %v289_v27  ;;  %v294_v44 = vor.u32 %v293_v37, %v292_v33  ;;  %vm296_vm9 = vcmp.lt.s32.totalorder %v276_v57, 2 }
  0x51   : > { %vm297_vm10 = vcmp.lt.s32.totalorder %v276_v57, 3  ;;  %v218_v45 = vsel %vm216_vm7, %v217_v39, %v10198_v20  ;;  %vm298_vm11 = vcmp.lt.s32.totalorder %v276_v57, 4  ;;  %v299_v46 = vsel %vm295_vm6, %v279_v16, %v282_v35 }
  0x52   : > { %v303_v47 = vsel %vm295_vm6, %v282_v35, %v285_v29  ;;  %v219_v48 = vadd.s32 %v218_v45, %v214_v15  ;;  %v300_v49 = vsel %vm298_vm11, %v288_v41, 2102212464  ;;  %v304_v51 = vsel %vm298_vm11, %v291_v43, 920167782 }
  0x53   : > { %v307_v52 = vsel %vm295_vm6, %v285_v29, %v288_v41  ;;  %v301_v53 = vsel %vm297_vm10, %v285_v29, %v300_v49  ;;  %v305_v54 = vsel %vm297_vm10, %v288_v41, %v304_v51  ;;  %v308_v55 = vsel %vm298_vm11, %v294_v44, 1326507024 }
  0x54   : > { %v471_v56 = vand.u32 2147483647, %v10138_v6  ;;  %v220_v58 = vadd.s32 536870912, %v219_v48  ;;  %v306_v59 = vsel %vm296_vm9, %v303_v47, %v305_v54  ;;  %v309_v60 = vsel %vm297_vm10, %v291_v43, %v308_v55 }
  0x55   : > { %v379_v61 = vsel %vm378_vm8, %v10166_v32, 0  ;;  %v302_v62 = vsel %vm296_vm9, %v299_v46, %v301_v53  ;;  %v310_v63 = vsel %vm296_vm9, %v307_v52, %v309_v60  ;;  %v474_v11 = vand.u32 2139095040, %v10138_v6 }
  0x56   : > { %v10226_v3 = vmul.u32.u64.low %v10160_v30, %v306_v59  ;;  %v10227_v4 = vmul.u32.u64.high %v10160_v30, %v306_v59, %v10226_v3  ;;  %v221_v5 = vshrl.u32 %v220_v58, 30  ;;  %v375_v12 = vor.u32 8388608, %v10164_v31 }
  0x57   : > { %v10231_v8 = vmul.u32.u64.low %v10160_v30, %v310_v63  ;;  %v10232_v9 = vmul.u32.u64.high %v10160_v30, %v310_v63, %v10231_v8  ;;  %v381_v13 = vand.u32 31, %v379_v61  ;;  %v318_v14 = vmul.u32 %v10160_v30, %v302_v62 }
  0x58   : > { %v222_v32 = vshll.u32 %v221_v5, 30  ;;  %v321_v57 = vadd.s32 1, %v10227_v4  ;;  %v475_v17 = vshrl.u32 %v474_v11, 23  ;;  %v10244_v20 = vand.u32 8388607, %v471_v56 }
  0x59   : > { %v382_v15 = vsub.s32 32, %v381_v13  ;;  %vm320_vm12 = vc.u32 %v10232_v9, %v10226_v3  ;;  %v384_v21 = vshll.u32 %v9992_v34, %v381_v13  ;;  %v387_v30 = vshll.u32 %v9993_v36, %v381_v13 }
  0x5a   : > { %v10238_v16 = vsub.s32 %v219_v48, %v222_v32  ;;  %v322_v31 = vsel %vm320_vm12, %v321_v57, %v10227_v4  ;;  %v10250_v22 = vshll.u32 %v375_v12, 8  ;;  %v380_v28 = vshrl.u32 %v379_v61, 5 }
  0x5b   : > { %v323_v25 = vadd.s32 %v322_v31, %v318_v14  ;;  %v385_v26 = vshrl.u32 %v9993_v36, %v382_v15  ;;  %v388_v27 = vshrl.u32 %v9994_v38, %v382_v15  ;;  %v390_v33 = vshll.u32 %v9994_v38, %v381_v13 }
  0x5c   : > { %v225_v24 = vsub.s32 0, %v10238_v16  ;;  %v391_v35 = vshrl.u32 %v9995_v40, %v382_v15  ;;  %v393_v29 = vshll.u32 %v9995_v40, %v381_v13  ;;  %v9203_v41 = vadd.s32 4294967169, %v475_v17 }
  0x5d   : > { %v324_v39 = vadd.s32 536870912, %v323_v25  ;;  %v479_v43 = vor.u32 8388608, %v10244_v20  ;;  %v215_v44 = vadd.s32 %v10197_v19, %v10194_v18  ;;  %v394_v45 = vshrl.u32 %v9996_v42, %v382_v15 }
  0x5e   : > { %v9192_v37 = vmin.u32 %v225_v24, %v10238_v16  ;;  %v396_v46 = vshll.u32 %v9996_v42, %v381_v13  ;;  %v397_v47 = vshrl.u32 %v9997_v50, %v382_v15  ;;  %v245_v49 = vsub.s32 4, %v221_v5 }
  0x5f   : > { %v386_v51 = vor.u32 %v385_v26, %v384_v21  ;;  %v389_v52 = vor.u32 %v388_v27, %v387_v30  ;;  %v325_v53 = vshrl.u32 %v324_v39, 30  ;;  %v392_v54 = vor.u32 %v391_v35, %v390_v33 }
  0x60   : > { %v227_v48 = vclz %v9192_v37  ;;  %v395_v55 = vor.u32 %v394_v45, %v393_v29  ;;  %vm399_vm14 = vcmp.lt.s32.totalorder %v380_v28, 1  ;;  %vm401_vm0 = vcmp.lt.s32.totalorder %v380_v28, 3 }
  0x61   : > { %vm402_vm1 = vcmp.lt.s32.totalorder %v380_v28, 4  ;;  %v481_v19 = vadd.s32 1, %v9203_v41  ;;  %v326_v59 = vshll.u32 %v325_v53, 30  ;;  %v383_v60 = vshrl.u32 %v9992_v34, %v382_v15 }
  0x62   : > { %v9193_v18 = vadd.s32 4294967294, %v227_v48  ;;  %v398_v61 = vor.u32 %v397_v47, %v396_v46  ;;  %v408_v62 = vsel %vm402_vm1, %v395_v55, 920167782  ;;  %v246_v63 = vsel %vm161_vm13, %v245_v49, %v221_v5 }
  0x63   : > { %vm400_vm3 = vcmp.lt.s32.totalorder %v380_v28, 2  ;;  %v407_v7 = vsel %vm399_vm14, %v386_v51, %v389_v52  ;;  %v10276_v8 = vsub.s32 %v323_v25, %v326_v59  ;;  %v404_v11 = vsel %vm402_vm1, %v392_v54, 2102212464 }
  0x64   : > { %vm9194_vm2 = vcmp.lt.s32.totalorder %v9193_v18, 0  ;;  %v409_v12 = vsel %vm401_vm0, %v392_v54, %v408_v62  ;;  %v411_v57 = vsel %vm399_vm14, %v389_v52, %v392_v54  ;;  %v349_v17 = vsub.s32 4, %v325_v53 }
  0x65   : > { %v230_v4 = vsel %vm9194_vm2, 0, %v9193_v18  ;;  %v329_v15 = vsub.s32 0, %v10276_v8  ;;  %v403_v5 = vsel %vm399_vm14, %v383_v60, %v386_v51  ;;  %v412_v20 = vsel %vm402_vm1, %v398_v61, 1326507024 }
  0x66   : > { %v231_v13 = vsub.s32 32, %v230_v4  ;;  %v232_v32 = vshll.u32 %v10238_v16, %v230_v4  ;;  %v235_v14 = vsub.s32 4294967266, %v230_v4  ;;  %v405_v30 = vsel %vm401_vm0, %v389_v52, %v404_v11 }
  0x67   : > { %v413_v24 = vsel %vm401_vm0, %v395_v55, %v412_v20  ;;  %v9196_v25 = vmin.u32 %v329_v15, %v10276_v8  ;;  %v410_v16 = vsel %vm400_vm3, %v407_v7, %v409_v12  ;;  %vm482_vm4 = vcmp.gt.s32.totalorder %v481_v19, 0 }
  0x68   : > { %v233_v31 = vshrl.u32 %v215_v44, %v231_v13  ;;  %v236_v21 = vadd.s32 127, %v235_v14  ;;  %v414_v26 = vsel %vm400_vm3, %v411_v57, %v413_v24  ;;  %v10296_v37 = vsel %vm10267_vm15, 0, %v246_v63 }
  0x69   : > { %v10291_v35 = vmul.u32.u64.low %v10250_v22, %v414_v26  ;;  %v10292_v29 = vmul.u32.u64.high %v10250_v22, %v414_v26, %v10291_v35  ;;  %vm265_vm5 = vcmp.lt.s32.totalorder %v10120_v1, 0  ;;  %v331_v39 = vclz %v9196_v25 }
  0x6a   : > { %v234_v27 = vor.u32 %v233_v31, %v232_v32  ;;  %v237_v33 = vshll.u32 %v236_v21, 23  ;;  %v406_v41 = vsel %vm400_vm3, %v403_v5, %v405_v30  ;;  %vm10307_vm6 = vcmp.le.f32.partialorder %v263_v10, 0.7853982 }
  0x6b   : > { %v10301_v46 = vmul.u32.u64.low %v10250_v22, %v410_v16  ;;  %v10302_v47 = vmul.u32.u64.high %v10250_v22, %v410_v16, %v10301_v46  ;;  %v9197_v49 = vadd.s32 4294967294, %v331_v39  ;;  %v483_v51 = vsel %vm482_vm4, %v481_v19, 0 }
  0x6c   : > { %v238_v44 = vor.u32 4788187, %v237_v33  ;;  %v241_v45 = vcvt.s32.f32 %v234_v27  ;;  %v10311_v52 = vshll.u32 %v479_v43, 8  ;;  %v252_v28 = vadd.s32 3, %v10296_v37 }
  0x6d   : > { %v319_v55 = vadd.s32 %v10226_v3, %v10232_v9  ;;  %v350_v18 = vsel %vm265_vm5, %v349_v17, %v325_v53  ;;  %vm9198_vm7 = vcmp.lt.s32.totalorder %v9197_v49, 0  ;;  %v422_v59 = vmul.u32 %v10250_v22, %v406_v41 }
  0x6e   : > { %v239_v54 = vand.u32 2147483647, %v238_v44  ;;  %vm424_vm8 = vc.u32 %v10292_v29, %v10301_v46  ;;  %v485_v10 = vand.u32 31, %v483_v51  ;;  %v334_v19 = vsel %vm9198_vm7, 0, %v9197_v49 }
  0x6f   : > { %v425_v43 = vadd.s32 1, %v10302_v47  ;;  %v10323_v61 = vmul.f32 2.0, %v10118_v0  ;;  %v335_v62 = vsub.s32 32, %v334_v19  ;;  %v336_v3 = vshll.u32 %v10276_v8, %v334_v19 }
  0x70   : > { %v242_v60 = vmul.f32 %v241_v45, %v239_v54  ;;  %v339_v9 = vsub.s32 4294967266, %v334_v19  ;;  %v486_v63 = vsub.s32 32, %v485_v10  ;;  %v10326_v7 = vand.u32 3, %v252_v28 }
  0x71   : > { %v10330_v22 = vsel %vm10307_vm6, 0, %v350_v18  ;;  %v426_v4 = vsel %vm424_vm8, %v425_v43, %v10302_v47  ;;  %v337_v11 = vshrl.u32 %v319_v55, %v335_v62  ;;  %v10333_v32 = vshrl.u32 %v483_v51, 5 }
  0x72   : > { %v243_v53 = vxor.u32 2147483648, %v242_v60  ;;  %v340_v12 = vadd.s32 127, %v339_v9  ;;  %v427_v13 = vadd.s32 %v426_v4, %v422_v59  ;;  %v488_v8 = vshll.u32 %v9992_v34, %v485_v10 }
  0x73   : > { %v489_v57 = vshrl.u32 %v9993_v36, %v486_v63  ;;  %v491_v15 = vshll.u32 %v9993_v36, %v485_v10  ;;  %v338_v5 = vor.u32 %v337_v11, %v336_v3  ;;  %v492_v21 = vshrl.u32 %v9994_v38, %v486_v63 }
  0x74   : > { %v244_v14 = vsel %vm161_vm13, %v243_v53, %v242_v60  ;;  %v341_v20 = vshll.u32 %v340_v12, 23  ;;  %v428_v31 = vadd.s32 536870912, %v427_v13  ;;  %v494_v30 = vshll.u32 %v9994_v38, %v485_v10 }
  0x75   : > { %v247_v17 = vsel %vm10267_vm15, %v10118_v0, %v244_v14  ;;  %v495_v24 = vshrl.u32 %v9995_v40, %v486_v63  ;;  %v345_v16 = vcvt.s32.f32 %v338_v5  ;;  %v497_v27 = vshll.u32 %v9995_v40, %v485_v10 }
  0x76   : > { %9737 = vcosq.f32 %v247_v17  ;;  %v342_v25 = vor.u32 4788187, %v341_v20  ;;  %v10346_v26 = vshrl.u32 %v428_v31, 30  ;;  %v498_v58 = vshrl.u32 %v9996_v42, %v486_v63 }
  0x77   : > { %9739 = vsinq.f32 %v247_v17  ;;  %v500_v33 = vshll.u32 %v9996_v42, %v485_v10  ;;  %vm503_vm9 = vcmp.lt.s32.totalorder %v10333_v32, 1  ;;  %v487_v41 = vshrl.u32 %v9992_v34, %v486_v63 }
  0x78   : > { %v343_v35 = vand.u32 2147483647, %v342_v25  ;;  %v430_v39 = vshll.u32 %v10346_v26, 30  ;;  %v501_v44 = vshrl.u32 %v9997_v50, %v486_v63  ;;  %v490_v45 = vor.u32 %v489_v57, %v488_v8 }
  0x79   : > { %v493_v47 = vor.u32 %v492_v21, %v491_v15  ;;  %v496_v49 = vor.u32 %v495_v24, %v494_v30  ;;  %v499_v51 = vor.u32 %v498_v58, %v497_v27  ;;  %vm506_vm10 = vcmp.lt.s32.totalorder %v10333_v32, 4 }
  0x7a   : > { %v346_v54 = vmul.f32 %v345_v16, %v343_v35  ;;  %v10355_v28 = vsub.s32 %v427_v13, %v430_v39  ;;  %v502_v55 = vor.u32 %v501_v44, %v500_v33  ;;  %vm255_vm11 = vcmp.eq.s32.totalorder %v10326_v7, 0 }
  0x7b   : > { %v356_v18 = vadd.s32 3, %v10330_v22  ;;  %vm505_vm12 = vcmp.lt.s32.totalorder %v10333_v32, 3  ;;  %v508_v59 = vsel %vm506_vm10, %v496_v49, 2102212464  ;;  %v10362_v10 = vand.u32 3, %v10296_v37 }
  0x7c   : > { %vm254_vm13 = vcmp.lt.s32.totalorder %v10326_v7, 2  ;;  %v347_v60 = vxor.u32 2147483648, %v346_v54  ;;  %v433_v19 = vsub.s32 0, %v10355_v28  ;;  %vm504_vm14 = vcmp.lt.s32.totalorder %v10333_v32, 2 }
  0x7d   : > { %v507_v43 = vsel %vm503_vm9, %v487_v41, %v490_v45  ;;  %vm251_vm15 = vweird.f32 %v10118_v0  ;;  %v509_v62 = vsel %vm505_vm12, %v493_v47, %v508_v59  ;;  %v511_v3 = vsel %vm503_vm9, %v490_v45, %v493_v47 }
  0x7e   : > { %v512_v37 = vsel %vm506_vm10, %v499_v51, 920167782  ;;  %v516_v9 = vsel %vm506_vm10, %v502_v55, 1326507024  ;;  %v348_v63 = vsel %vm265_vm5, %v347_v60, %v346_v54  ;;  %vm369_vm0 = vcmp.lt.s32.totalorder %v10122_v2, 0 }
  0x7f   : > { %v9200_v53 = vmin.u32 %v433_v19, %v10355_v28  ;;  %v513_v4 = vsel %vm505_vm12, %v496_v49, %v512_v37  ;;  %v515_v11 = vsel %vm503_vm9, %v493_v47, %v496_v49  ;;  %vm258_vm1 = vcmp.eq.s32.totalorder %v10326_v7, 2 }
  0x80   : > { %v351_v12 = vsel %vm10307_vm6, %v10120_v1, %v348_v63  ;;  %v10386_v13 = vand.u32 3, %v356_v18  ;;  %v517_v14 = vsel %vm505_vm12, %v499_v51, %v516_v9  ;;  %v514_v57 = vsel %vm504_vm14, %v511_v3, %v513_v4 }
  0x81   : > { %9741 = vcosq.f32 %v351_v12  ;;  %v435_v8 = vclz %v9200_v53  ;;  %v10393_v15 = vand.u32 3, %v10330_v22  ;;  %v423_v17 = vadd.s32 %v10301_v46, %v10292_v29 }
  0x82   : > { %9743 = vsinq.f32 %v351_v12  ;;  %v510_v48 = vsel %vm504_vm14, %v507_v43, %v509_v62  ;;  %v518_v5 = vsel %vm504_vm14, %v515_v11, %v517_v14  ;;  %vm705_vm2 = vcmp.eq.s32.totalorder %v10362_v10, 2 }
  0x83   : > { %v9738_v20 = vpop.eup %9737  ;;  %v9201_v31 = vadd.s32 4294967294, %v435_v8  ;;  %v10402_v21 = vmul.u32.u64.low %v10311_v52, %v518_v5  ;;  %v10403_v30 = vmul.u32.u64.high %v10311_v52, %v518_v5, %v10402_v21  ;;  %vm10408_vm3 = vcmp.le.f32.partialorder %v367_v23, 0.7853982 }
  0x84   : > { %v9740_v22 = vpop.eup %9739  ;;  %v259_v24 = vxor.u32 2147483648, %v9738_v20  ;;  %v453_v46 = vsub.s32 4, %v10346_v26  ;;  %v10414_v32 = vmul.u32.u64.low %v10311_v52, %v514_v57  ;;  %v10415_v25 = vmul.u32.u64.high %v10311_v52, %v514_v57, %v10414_v32 }
  0x85   : > { %v256_v16 = vxor.u32 2147483648, %v9740_v22  ;;  %vm9202_vm4 = vcmp.lt.s32.totalorder %v9201_v31, 0  ;;  %vm701_vm5 = vcmp.lt.s32.totalorder %v10362_v10, 2  ;;  %vm702_vm6 = vcmp.eq.s32.totalorder %v10362_v10, 0 }
  0x86   : > { %v260_v27 = vsel %vm258_vm1, %v259_v24, %v9740_v22  ;;  %v438_v23 = vsel %vm9202_vm4, 0, %v9201_v31  ;;  %v526_v58 = vmul.u32 %v10311_v52, %v510_v48  ;;  %v707_v33 = vsel %vm705_vm2, %v259_v24, %v9740_v22 }
  0x87   : > { %v257_v35 = vsel %vm255_vm11, %v9738_v20, %v256_v16  ;;  %v439_v39 = vsub.s32 32, %v438_v23  ;;  %v440_v41 = vshll.u32 %v10355_v28, %v438_v23  ;;  %v443_v44 = vsub.s32 4294967266, %v438_v23 }
  0x88   : > { %v261_v45 = vsel %vm254_vm13, %v257_v35, %v260_v27  ;;  %v454_v47 = vsel %vm369_vm0, %v453_v46, %v10346_v26  ;;  %vm528_vm7 = vc.u32 %v10403_v30, %v10414_v32  ;;  %v529_v52 = vadd.s32 1, %v10415_v25 }
  0x89   : > { %v262_v49 = vsel %vm251_vm15, nan, %v261_v45  ;;  %v441_v51 = vshrl.u32 %v423_v17, %v439_v39  ;;  %v444_v54 = vadd.s32 127, %v443_v44  ;;  %v704_v28 = vsel %vm702_vm6, %v9738_v20, %v256_v16 }
  0x8a   : > { %v583_v7 = vrot.slane %v262_v49, 5  ;;  %v579_v55 = vcombine.high %v262_v49, %v262_v49  ;;  %v530_v18 = vsel %vm528_vm7, %v529_v52, %v10415_v25  ;;  %v708_v26 = vsel %vm701_vm5, %v704_v28, %v707_v33 }
  0x8b   : > { %v442_v59 = vor.u32 %v441_v51, %v440_v41  ;;  %v445_v60 = vshll.u32 %v444_v54, 23  ;;  %v531_v19 = vadd.s32 %v530_v18, %v526_v58  ;;  %v709_v43 = vsel %vm251_vm15, nan, %v708_v26 }
  0x8c   : > { %599 = vst [vmem:[%s10124_s26] sm:$0x38] %v583_v7  ;;  %v584_v62 = vrot.slane %v579_v55, 5  ;;  %vm359_vm8 = vcmp.eq.s32.totalorder %v10386_v13, 0  ;;  %v1027_v3 = vrot.slane %v709_v43, 2  ;;  %v1023_v37 = vcombine.high %v709_v43, %v709_v43 }
  0x8d   : > { %v446_v9 = vor.u32 4788187, %v445_v60  ;;  %v449_v63 = vcvt.s32.f32 %v442_v59  ;;  %v456_v10 = vsel %vm10408_vm3, 0, %v454_v47  ;;  %v532_v53 = vadd.s32 536870912, %v531_v19 }
  0x8e   : > { %v9742_v4 = vpop.eup %9741  ;;  %600 = vst [vmem:[%s10124_s26 + $0x8] sm:$0x38] %v584_v62  ;;  %vm362_vm9 = vcmp.eq.s32.totalorder %v10386_v13, 2  ;;  %1043 = vst [vmem:[%s10124_s26 + $0x40] ss:$-60 sps:$4 sm:$0xc1] %v1027_v3   ;;  %vm355_vm12 = vweird.f32 %v10120_v1 }
  0x8f   : > { %v1028_v11 = vrot.slane %v1023_v37, 2  ;;  %vm805_vm10 = vcmp.eq.s32.totalorder %v10393_v15, 0  ;;  %vm808_vm11 = vcmp.eq.s32.totalorder %v10393_v15, 2  ;;  %v9744_v12 = vpop.eup %9743  ;;  %v363_v14 = vxor.u32 2147483648, %v9742_v4 }
  0x90   : > { %v447_v8 = vand.u32 2147483647, %v446_v9  ;;  %v533_v57 = vshrl.u32 %v532_v53, 30  ;;  %v1066_v17 = vand.u32 2139095040, %v10323_v61  ;;  %vm358_vm13 = vcmp.lt.s32.totalorder %v10386_v13, 2 }
  0x91   : > { %v360_v48 = vxor.u32 2147483648, %v9744_v12  ;;  %v460_v5 = vadd.s32 3, %v456_v10  ;;  %1044 = vst [vmem:[%s10124_s26 + $0x48] ss:$-60 sps:$4 sm:$0xc1] %v1028_v11   ;;  %v364_v20 = vsel %vm362_vm9, %v363_v14, %v9744_v12  ;;  %vm804_vm14 = vcmp.lt.s32.totalorder %v10393_v15, 2 }
  0x92   : > { %v450_v31 = vmul.f32 %v449_v63, %v447_v8  ;;  %v534_v21 = vshll.u32 %v533_v57, 30  ;;  %v810_v46 = vsel %vm808_vm11, %v363_v14, %v9744_v12  ;;  %v1067_v25 = vshrl.u32 %v1066_v17, 23 }
  0x93   : > { %v361_v22 = vsel %vm359_vm8, %v9742_v4, %v360_v48  ;;  %v807_v24 = vsel %vm805_vm10, %v9742_v4, %v360_v48  ;;  %v10467_v33 = vand.u32 3, %v460_v5  ;;  %v1063_v13 = vand.u32 2147483647, %v10323_v61 }
  0x94   : > { %v365_v16 = vsel %vm358_vm13, %v361_v22, %v364_v20  ;;  %v451_v27 = vxor.u32 2147483648, %v450_v31  ;;  %v10463_v23 = vsub.s32 %v531_v19, %v534_v21  ;;  %v811_v35 = vsel %vm804_vm14, %v807_v24, %v810_v46 }
  0x95   : > { %v366_v58 = vsel %vm355_vm12, nan, %v365_v16  ;;  %v557_v47 = vsub.s32 4, %v533_v57  ;;  %v812_v52 = vsel %vm355_vm12, nan, %v811_v35  ;;  %v9223_v49 = vadd.s32 4294967169, %v1067_v25 }
  0x96   : > { %v585_v39 = vrot.slane %v366_v58, 5  ;;  %v580_v41 = vcombine.high %v366_v58, %v366_v58  ;;  %v452_v15 = vsel %vm369_vm0, %v451_v27, %v450_v31  ;;  %v537_v44 = vsub.s32 0, %v10463_v23 }
  0x97   : > { %v455_v45 = vsel %vm10408_vm3, %v10122_v2, %v452_v15  ;;  %v1029_v28 = vrot.slane %v812_v52, 2  ;;  %v1024_v7 = vcombine.high %v812_v52, %v812_v52  ;;  %v1070_v55 = vand.u32 8388607, %v1063_v13 }
  0x98   : > { %601 = vst [vmem:[%s10124_s26 + $0x10] sm:$0x38] %v585_v39  ;;  %v586_v51 = vrot.slane %v580_v41, 5  ;;  %9745 = vcosq.f32 %v455_v45  ;;  %v9204_v54 = vmin.u32 %v537_v44, %v10463_v23  ;;  %v10483_v29 = vmul.f32 2.0, %v10120_v1 }
  0x99   : > { %9747 = vsinq.f32 %v455_v45  ;;  %vm473_vm15 = vcmp.lt.s32.totalorder %v10138_v6, 0  ;;  %1045 = vst [vmem:[%s10124_s26 + $0x50] ss:$-60 sps:$4 sm:$0xc1] %v1029_v28   ;;  %v1030_v59 = vrot.slane %v1024_v7, 2  ;;  %v10490_v60 = vand.u32 3, %v456_v10 }
  0x9a   : > { %602 = vst [vmem:[%s10124_s26 + $0x18] sm:$0x38] %v586_v51  ;;  %v539_v18 = vclz %v9204_v54  ;;  %v558_v26 = vsel %vm473_vm15, %v557_v47, %v533_v57  ;;  %v1073_v43 = vadd.s32 1, %v9223_v49  ;;  %vm466_vm0 = vcmp.eq.s32.totalorder %v10467_v33, 2 }
  0x9b   : > { %vm10495_vm1 = vcmp.le.f32.partialorder %v471_v56, 0.7853982  ;;  %1046 = vst [vmem:[%s10124_s26 + $0x58] ss:$-60 sps:$4 sm:$0xc1] %v1030_v59   ;;  %v1071_v3 = vor.u32 8388608, %v1070_v55  ;;  %v527_v9 = vadd.s32 %v10414_v32, %v10403_v30  ;;  %vm459_vm8 = vweird.f32 %v10122_v2 }
  0x9c   : > { %v9205_v19 = vadd.s32 4294967294, %v539_v18  ;;  %v1170_v37 = vand.u32 2139095040, %v10483_v29  ;;  %vm463_vm2 = vcmp.eq.s32.totalorder %v10467_v33, 0  ;;  %v10506_v63 = vsel %vm10495_vm1, 0, %v558_v26 }
  0x9d   : > { %vm1074_vm4 = vcmp.gt.s32.totalorder %v1073_v43, 0  ;;  %vm462_vm5 = vcmp.lt.s32.totalorder %v10467_v33, 2  ;;  %vm907_vm6 = vcmp.lt.s32.totalorder %v10490_v60, 2  ;;  %vm908_vm7 = vcmp.eq.s32.totalorder %v10490_v60, 0 }
  0x9e   : > { %vm9206_vm3 = vcmp.lt.s32.totalorder %v9205_v19, 0  ;;  %v1075_v10 = vsel %vm1074_vm4, %v1073_v43, 0  ;;  %v1171_v53 = vshrl.u32 %v1170_v37, 23  ;;  %v10516_v12 = vadd.s32 3, %v10506_v63 }
  0x9f   : > { %v542_v56 = vsel %vm9206_vm3, 0, %v9205_v19  ;;  %v10513_v11 = vshrl.u32 %v1075_v10, 5  ;;  %vm911_vm9 = vcmp.eq.s32.totalorder %v10490_v60, 2  ;;  %v1077_v14 = vand.u32 31, %v1075_v10 }
  0xa0   : > { %v543_v4 = vsub.s32 32, %v542_v56  ;;  %v544_v30 = vshll.u32 %v10463_v23, %v542_v56  ;;  %v547_v32 = vsub.s32 4294967266, %v542_v56  ;;  %v10519_v8 = vshll.u32 %v1071_v3, 8 }
  0xa1   : > { %v1167_v48 = vand.u32 2147483647, %v10483_v29  ;;  %v10522_v5 = vadd.s32 4294967169, %v1171_v53  ;;  %v1078_v20 = vsub.s32 32, %v1077_v14  ;;  %v1080_v31 = vshll.u32 %v9992_v34, %v1077_v14 }
  0xa2   : > { %v545_v57 = vshrl.u32 %v527_v9, %v543_v4  ;;  %v548_v17 = vadd.s32 127, %v547_v32  ;;  %v1083_v21 = vshll.u32 %v9993_v36, %v1077_v14  ;;  %vm1095_vm10 = vcmp.lt.s32.totalorder %v10513_v11, 1 }
  0xa3   : > { %v1086_v46 = vshll.u32 %v9994_v38, %v1077_v14  ;;  %v1089_v25 = vshll.u32 %v9995_v40, %v1077_v14  ;;  %vm1096_vm11 = vcmp.lt.s32.totalorder %v10513_v11, 2  ;;  %v1081_v27 = vshrl.u32 %v9993_v36, %v1078_v20 }
  0xa4   : > { %v546_v22 = vor.u32 %v545_v57, %v544_v30  ;;  %v549_v24 = vshll.u32 %v548_v17, 23  ;;  %v1084_v23 = vshrl.u32 %v9994_v38, %v1078_v20  ;;  %v1087_v58 = vshrl.u32 %v9995_v40, %v1078_v20 }
  0xa5   : > { %v9746_v16 = vpop.eup %9745  ;;  %v1092_v35 = vshll.u32 %v9996_v42, %v1077_v14  ;;  %v1090_v45 = vshrl.u32 %v9996_v42, %v1078_v20  ;;  %v1079_v52 = vshrl.u32 %v9992_v34, %v1078_v20  ;;  %v1082_v49 = vor.u32 %v1081_v27, %v1080_v31 }
  0xa6   : > { %v9748_v39 = vpop.eup %9747  ;;  %v467_v41 = vxor.u32 2147483648, %v9746_v16  ;;  %v550_v15 = vor.u32 4788187, %v549_v24  ;;  %v553_v44 = vcvt.s32.f32 %v546_v22  ;;  %v1085_v51 = vor.u32 %v1084_v23, %v1083_v21 }
  0xa7   : > { %v464_v47 = vxor.u32 2147483648, %v9748_v39  ;;  %v1088_v55 = vor.u32 %v1087_v58, %v1086_v46  ;;  %v1091_v59 = vor.u32 %v1090_v45, %v1089_v25  ;;  %v1093_v19 = vshrl.u32 %v9997_v50, %v1078_v20 }
  0xa8   : > { %v468_v54 = vsel %vm466_vm0, %v467_v41, %v9748_v39  ;;  %v551_v28 = vand.u32 2147483647, %v550_v15  ;;  %v913_v7 = vsel %vm911_vm9, %v467_v41, %v9748_v39  ;;  %vm1098_vm12 = vcmp.lt.s32.totalorder %v10513_v11, 4 }
  0xa9   : > { %v465_v18 = vsel %vm463_vm2, %v9746_v16, %v464_v47  ;;  %v910_v26 = vsel %vm908_vm7, %v9746_v16, %v464_v47  ;;  %v1094_v10 = vor.u32 %v1093_v19, %v1092_v35  ;;  %vm1097_vm13 = vcmp.lt.s32.totalorder %v10513_v11, 3 }
  0xaa   : > { %v469_v43 = vsel %vm462_vm5, %v465_v18, %v468_v54  ;;  %v554_v3 = vmul.f32 %v553_v44, %v551_v28  ;;  %v914_v37 = vsel %vm907_vm6, %v910_v26, %v913_v7  ;;  %v1100_v60 = vsel %vm1098_vm12, %v1088_v55, 2102212464 }
  0xab   : > { %v470_v9 = vsel %vm459_vm8, nan, %v469_v43  ;;  %v915_v56 = vsel %vm459_vm8, nan, %v914_v37  ;;  %v1103_v14 = vsel %vm1095_vm10, %v1082_v49, %v1085_v51  ;;  %v1104_v57 = vsel %vm1098_vm12, %v1091_v59, 920167782 }
  0xac   : > { %v587_v53 = vrot.slane %v470_v9, 5  ;;  %v581_v33 = vcombine.high %v470_v9, %v470_v9  ;;  %v555_v4 = vxor.u32 2147483648, %v554_v3  ;;  %v1031_v30 = vrot.slane %v915_v56, 2 }
  0xad   : > { %v1025_v32 = vcombine.high %v915_v56, %v915_v56  ;;  %v1099_v31 = vsel %vm1095_vm10, %v1079_v52, %v1082_v49  ;;  %v1105_v21 = vsel %vm1097_vm13, %v1088_v55, %v1104_v57  ;;  %v1101_v46 = vsel %vm1097_vm13, %v1085_v51, %v1100_v60 }
  0xae   : > { %603 = vst [vmem:[%s10124_s26 + $0x20] sm:$0x38] %v587_v53  ;;  %v588_v17 = vrot.slane %v581_v33, 5  ;;  %v556_v20 = vsel %vm473_vm15, %v555_v4, %v554_v3  ;;  %1047 = vst [vmem:[%s10124_s26 + $0x60] ss:$-60 sps:$4 sm:$0xc1] %v1031_v30   ;;  %v1106_v25 = vsel %vm1096_vm11, %v1103_v14, %v1105_v21  ;;  %v1107_v16 = vsel %vm1095_vm10, %v1085_v51, %v1088_v55 }
  0xaf   : > { %v559_v22 = vsel %vm10495_vm1, %v10138_v6, %v556_v20  ;;  %v1032_v24 = vrot.slane %v1025_v32, 2  ;;  %v1108_v27 = vsel %vm1098_vm12, %v1094_v10, 1326507024  ;;  %v10582_v23 = vmul.f32 2.0, %v10122_v2 }
  0xb0   : > { %604 = vst [vmem:[%s10124_s26 + $0x28] sm:$0x38] %v588_v17  ;;  %9749 = vcosq.f32 %v559_v22  ;;  %v1109_v62 = vsel %vm1097_vm13, %v1091_v59, %v1108_v27  ;;  %v10588_v58 = vmul.u32.u64.low %v10519_v8, %v1106_v25  ;;  %v10589_v35 = vmul.u32.u64.high %v10519_v8, %v1106_v25, %v10588_v58 }
  0xb1   : > { %9751 = vsinq.f32 %v559_v22  ;;  %1048 = vst [vmem:[%s10124_s26 + $0x68] ss:$-60 sps:$4 sm:$0xc1] %v1032_v24   ;;  %v10593_v39 = vand.u32 3, %v10506_v63  ;;  %v1102_v41 = vsel %vm1096_vm11, %v1099_v31, %v1101_v46  ;;  %v1110_v15 = vsel %vm1096_vm11, %v1107_v16, %v1109_v62 }
  0xb2   : > { %v1177_v44 = vadd.s32 1, %v10522_v5  ;;  %v10601_v45 = vand.u32 3, %v10516_v12  ;;  %v10604_v47 = vmul.u32.u64.low %v10519_v8, %v1110_v15  ;;  %v10605_v52 = vmul.u32.u64.high %v10519_v8, %v1110_v15, %v10604_v47 }
  0xb3   : > { %v1174_v49 = vand.u32 8388607, %v1167_v48  ;;  %v1274_v63 = vand.u32 2139095040, %v10582_v23  ;;  %v1118_v51 = vmul.u32 %v10519_v8, %v1102_v41  ;;  %v1121_v11 = vadd.s32 1, %v10589_v35 }
  0xb4   : > { %vm1178_vm14 = vcmp.gt.s32.totalorder %v1177_v44, 0  ;;  %vm1011_vm15 = vcmp.eq.s32.totalorder %v10593_v39, 0  ;;  %vm1014_vm0 = vcmp.eq.s32.totalorder %v10593_v39, 2  ;;  %vm566_vm1 = vcmp.lt.s32.totalorder %v10601_v45, 2 }
  0xb5   : > { %v1179_v54 = vsel %vm1178_vm14, %v1177_v44, 0  ;;  %vm567_vm2 = vcmp.eq.s32.totalorder %v10601_v45, 0  ;;  %vm1010_vm3 = vcmp.lt.s32.totalorder %v10593_v39, 2  ;;  %vm1120_vm4 = vc.u32 %v10605_v52, %v10588_v58 }
  0xb6   : > { %v1181_v12 = vand.u32 31, %v1179_v54  ;;  %v1175_v5 = vor.u32 8388608, %v1174_v49  ;;  %vm563_vm5 = vweird.f32 %v10138_v6  ;;  %v1122_v8 = vsel %vm1120_vm4, %v1121_v11, %v10589_v35 }
  0xb7   : > { %v10621_v28 = vshrl.u32 %v1179_v54, 5  ;;  %v1275_v55 = vshrl.u32 %v1274_v63, 23  ;;  %v1123_v18 = vadd.s32 %v1122_v8, %v1118_v51  ;;  %vm570_vm6 = vcmp.eq.s32.totalorder %v10601_v45, 2 }
  0xb8   : > { %v1182_v7 = vsub.s32 32, %v1181_v12  ;;  %v1184_v26 = vshll.u32 %v9992_v34, %v1181_v12  ;;  %v1187_v59 = vshll.u32 %v9993_v36, %v1181_v12  ;;  %v1190_v19 = vshll.u32 %v9994_v38, %v1181_v12 }
  0xb9   : > { %v1193_v9 = vshll.u32 %v9995_v40, %v1181_v12  ;;  %v1124_v56 = vadd.s32 536870912, %v1123_v18  ;;  %v1271_v53 = vand.u32 2147483647, %v10582_v23  ;;  %v1196_v33 = vshll.u32 %v9996_v42, %v1181_v12 }
  0xba   : > { %v1185_v43 = vshrl.u32 %v9993_v36, %v1182_v7  ;;  %v1188_v3 = vshrl.u32 %v9994_v38, %v1182_v7  ;;  %v1191_v37 = vshrl.u32 %v9995_v40, %v1182_v7  ;;  %v1194_v10 = vshrl.u32 %v9996_v42, %v1182_v7 }
  0xbb   : > { %v1197_v4 = vshrl.u32 %v9997_v50, %v1182_v7  ;;  %v10635_v30 = vshll.u32 %v1175_v5, 8  ;;  %v9231_v32 = vadd.s32 4294967169, %v1275_v55  ;;  %v10637_v14 = vshrl.u32 %v1124_v56, 30 }
  0xbc   : > { %v1183_v57 = vshrl.u32 %v9992_v34, %v1182_v7  ;;  %v1186_v17 = vor.u32 %v1185_v43, %v1184_v26  ;;  %vm1199_vm7 = vcmp.lt.s32.totalorder %v10621_v28, 1  ;;  %v1189_v21 = vor.u32 %v1188_v3, %v1187_v59 }
  0xbd   : > { %v9750_v60 = vpop.eup %9749  ;;  %v1192_v22 = vor.u32 %v1191_v37, %v1190_v19  ;;  %v1195_v24 = vor.u32 %v1194_v10, %v1193_v9  ;;  %v1126_v25 = vshll.u32 %v10637_v14, 30  ;;  %vm1200_vm8 = vcmp.lt.s32.totalorder %v10621_v28, 2 }
  0xbe   : > { %v9752_v20 = vpop.eup %9751  ;;  %v571_v31 = vxor.u32 2147483648, %v9750_v60  ;;  %vm1202_vm9 = vcmp.lt.s32.totalorder %v10621_v28, 4  ;;  %v1198_v62 = vor.u32 %v1197_v4, %v1196_v33  ;;  %vm1201_vm10 = vcmp.lt.s32.totalorder %v10621_v28, 3 }
  0xbf   : > { %v568_v46 = vxor.u32 2147483648, %v9752_v20  ;;  %v10653_v15 = vsub.s32 %v1123_v18, %v1126_v25  ;;  %v1203_v44 = vsel %vm1199_vm7, %v1183_v57, %v1186_v17  ;;  %v1204_v63 = vsel %vm1202_vm9, %v1192_v22, 2102212464 }
  0xc0   : > { %v572_v16 = vsel %vm570_vm6, %v571_v31, %v9752_v20  ;;  %v1016_v27 = vsel %vm1014_vm0, %v571_v31, %v9752_v20  ;;  %v1208_v51 = vsel %vm1202_vm9, %v1195_v24, 920167782  ;;  %v1207_v39 = vsel %vm1199_vm7, %v1186_v17, %v1189_v21 }
  0xc1   : > { %v569_v35 = vsel %vm567_vm2, %v9750_v60, %v568_v46  ;;  %v1013_v41 = vsel %vm1011_vm15, %v9750_v60, %v568_v46  ;;  %v1129_v45 = vsub.s32 0, %v10653_v15  ;;  %v1205_v18 = vsel %vm1201_vm10, %v1189_v21, %v1204_v63 }
  0xc2   : > { %v573_v47 = vsel %vm566_vm1, %v569_v35, %v572_v16  ;;  %v1017_v49 = vsel %vm1010_vm3, %v1013_v41, %v1016_v27  ;;  %v1209_v26 = vsel %vm1201_vm10, %v1192_v22, %v1208_v51  ;;  %v1211_v59 = vsel %vm1199_vm7, %v1189_v21, %v1192_v22 }
  0xc3   : > { %v574_v11 = vsel %vm563_vm5, nan, %v573_v47  ;;  %v1018_v54 = vsel %vm563_vm5, nan, %v1017_v49  ;;  %v9224_v55 = vmin.u32 %v1129_v45, %v10653_v15  ;;  %v1210_v3 = vsel %vm1200_vm8, %v1207_v39, %v1209_v26 }
  0xc4   : > { %v589_v12 = vrot.slane %v574_v11, 5  ;;  %v582_v5 = vcombine.high %v574_v11, %v574_v11  ;;  %v1033_v8 = vrot.slane %v1018_v54, 2  ;;  %v1026_v7 = vcombine.high %v1018_v54, %v1018_v54 }
  0xc5   : > { %v1212_v37 = vsel %vm1202_vm9, %v1198_v62, 1326507024  ;;  %v1131_v9 = vclz %v9224_v55  ;;  %v10690_v10 = vmul.u32.u64.low %v10635_v30, %v1210_v3  ;;  %v10691_v33 = vmul.u32.u64.high %v10635_v30, %v1210_v3, %v10690_v10 }
  0xc6   : > { %605 = vst [vmem:[%s10124_s26 + $0x30] sm:$0x38] %v589_v12  ;;  %v590_v19 = vrot.slane %v582_v5, 5  ;;  %1049 = vst [vmem:[%s10124_s26 + $0x70] ss:$-60 sps:$4 sm:$0xc1] %v1033_v8   ;;  %v1213_v56 = vsel %vm1201_vm10, %v1195_v24, %v1212_v37  ;;  %v1206_v57 = vsel %vm1200_vm8, %v1203_v44, %v1205_v18  ;;  %v1119_v24 = vadd.s32 %v10588_v58, %v10605_v52 }
  0xc7   : > { %v1034_v43 = vrot.slane %v1026_v7, 2  ;;  %v10696_v4 = vand.u32 8388607, %v1271_v53  ;;  %v9225_v60 = vadd.s32 4294967294, %v1131_v9  ;;  %v1214_v17 = vsel %vm1200_vm8, %v1211_v59, %v1213_v56 }
  0xc8   : > { %606 = vst [vmem:[%s10124_s26 + $0x38] sm:$0x38] %v590_v19  ;;  %v1281_v20 = vadd.s32 1, %v9231_v32  ;;  %vm1065_vm11 = vcmp.lt.s32.totalorder %v10323_v61, 0  ;;  %v1149_v31 = vsub.s32 4, %v10637_v14  ;;  %v10711_v46 = vmul.f32 2.0, %v10138_v6 }
  0xc9   : > { %1050 = vst [vmem:[%s10124_s26 + $0x78] ss:$-60 sps:$4 sm:$0xc1] %v1034_v43   ;;  %v10705_v21 = vmul.u32.u64.low %v10635_v30, %v1214_v17  ;;  %v10706_v22 = vmul.u32.u64.high %v10635_v30, %v1214_v17, %v10705_v21  ;;  %vm9226_vm12 = vcmp.lt.s32.totalorder %v9225_v60, 0  ;;  %v1222_v28 = vmul.u32 %v10635_v30, %v1206_v57 }
  0xca   : > { %vm1282_vm13 = vcmp.gt.s32.totalorder %v1281_v20, 0  ;;  %v1134_v25 = vsel %vm9226_vm12, 0, %v9225_v60  ;;  %v1225_v32 = vadd.s32 1, %v10691_v33  ;;  %v1279_v41 = vor.u32 8388608, %v10696_v4 }
  0xcb   : > { %v1283_v16 = vsel %vm1282_vm13, %v1281_v20, 0  ;;  %v1135_v27 = vsub.s32 32, %v1134_v25  ;;  %v1136_v62 = vshll.u32 %v10653_v15, %v1134_v25  ;;  %v1139_v35 = vsub.s32 4294967266, %v1134_v25 }
  0xcc   : > { %v1150_v58 = vsel %vm1065_vm11, %v1149_v31, %v10637_v14  ;;  %vm1224_vm14 = vc.u32 %v10706_v22, %v10690_v10  ;;  %v1285_v52 = vand.u32 31, %v1283_v16  ;;  %v1375_v44 = vand.u32 2147483647, %v10711_v46 }
  0xcd   : > { %v1137_v30 = vshrl.u32 %v1119_v24, %v1135_v27  ;;  %v1140_v47 = vadd.s32 127, %v1139_v35  ;;  %v1226_v49 = vsel %vm1224_vm14, %v1225_v32, %v10691_v33  ;;  %v1378_v63 = vand.u32 2139095040, %v10711_v46 }
  0xce   : > { %vm10727_vm15 = vcmp.le.f32.partialorder %v1063_v13, 0.7853982  ;;  %v1227_v51 = vadd.s32 %v1226_v49, %v1222_v28  ;;  %v1286_v14 = vsub.s32 32, %v1285_v52  ;;  %v1288_v11 = vshll.u32 %v9992_v34, %v1285_v52 }
  0xcf   : > { %v1291_v54 = vshll.u32 %v9993_v36, %v1285_v52  ;;  %v1138_v45 = vor.u32 %v1137_v30, %v1136_v62  ;;  %v1141_v39 = vshll.u32 %v1140_v47, 23  ;;  %v1284_v12 = vshrl.u32 %v1283_v16, 5 }
  0xd0   : > { %v1297_v5 = vshll.u32 %v9995_v40, %v1285_v52  ;;  %v1228_v8 = vadd.s32 536870912, %v1227_v51  ;;  %v1289_v7 = vshrl.u32 %v9993_v36, %v1286_v14  ;;  %v1292_v55 = vshrl.u32 %v9994_v38, %v1286_v14 }
  0xd1   : > { %v1294_v13 = vshll.u32 %v9994_v38, %v1285_v52  ;;  %v1142_v18 = vor.u32 4788187, %v1141_v39  ;;  %v1145_v26 = vcvt.s32.f32 %v1138_v45  ;;  %v1295_v59 = vshrl.u32 %v9995_v40, %v1286_v14 }
  0xd2   : > { %v1298_v19 = vshrl.u32 %v9996_v42, %v1286_v14  ;;  %v1229_v43 = vshrl.u32 %v1228_v8, 30  ;;  %v1290_v3 = vor.u32 %v1289_v7, %v1288_v11  ;;  %v1293_v37 = vor.u32 %v1292_v55, %v1291_v54 }
  0xd3   : > { %v1300_v9 = vshll.u32 %v9996_v42, %v1285_v52  ;;  %v1143_v56 = vand.u32 2147483647, %v1142_v18  ;;  %v1301_v4 = vshrl.u32 %v9997_v50, %v1286_v14  ;;  %vm1303_vm0 = vcmp.lt.s32.totalorder %v1284_v12, 1 }
  0xd4   : > { %v1299_v33 = vor.u32 %v1298_v19, %v1297_v5  ;;  %v1230_v60 = vshll.u32 %v1229_v43, 30  ;;  %v1287_v57 = vshrl.u32 %v9992_v34, %v1286_v14  ;;  %v1296_v17 = vor.u32 %v1295_v59, %v1294_v13 }
  0xd5   : > { %v1379_v20 = vshrl.u32 %v1378_v63, 23  ;;  %v1146_v31 = vmul.f32 %v1145_v26, %v1143_v56  ;;  %v1302_v21 = vor.u32 %v1301_v4, %v1300_v9  ;;  %vm1305_vm1 = vcmp.lt.s32.totalorder %v1284_v12, 3 }
  0xd6   : > { %vm1306_vm2 = vcmp.lt.s32.totalorder %v1284_v12, 4  ;;  %v10742_v24 = vsub.s32 %v1227_v51, %v1230_v60  ;;  %vm1304_vm3 = vcmp.lt.s32.totalorder %v1284_v12, 2  ;;  %v1311_v28 = vsel %vm1303_vm0, %v1290_v3, %v1293_v37 }
  0xd7   : > { %v1308_v25 = vsel %vm1306_vm2, %v1296_v17, 2102212464  ;;  %v1147_v32 = vxor.u32 2147483648, %v1146_v31  ;;  %v1152_v16 = vsel %vm10727_vm15, 0, %v1150_v58  ;;  %v1312_v27 = vsel %vm1306_vm2, %v1299_v33, 920167782 }
  0xd8   : > { %v1319_v62 = vshll.u32 %v1279_v41, 8  ;;  %v1233_v35 = vsub.s32 0, %v10742_v24  ;;  %v1307_v52 = vsel %vm1303_vm0, %v1287_v57, %v1290_v3  ;;  %v1309_v30 = vsel %vm1305_vm1, %v1293_v37, %v1308_v25 }
  0xd9   : > { %v1313_v47 = vsel %vm1305_vm1, %v1296_v17, %v1312_v27  ;;  %v1148_v49 = vsel %vm1065_vm11, %v1147_v32, %v1146_v31  ;;  %v1315_v51 = vsel %vm1303_vm0, %v1293_v37, %v1296_v17  ;;  %v1316_v58 = vsel %vm1306_vm2, %v1302_v21, 1326507024 }
  0xda   : > { %v1314_v63 = vsel %vm1304_vm3, %v1311_v28, %v1313_v47  ;;  %v1151_v41 = vsel %vm10727_vm15, %v10323_v61, %v1148_v49  ;;  %v9228_v14 = vmin.u32 %v1233_v35, %v10742_v24  ;;  %v1317_v11 = vsel %vm1305_vm1, %v1299_v33, %v1316_v58 }
  0xdb   : > { %v9235_v54 = vadd.s32 4294967169, %v1379_v20  ;;  %9753 = vcosq.f32 %v1151_v41  ;;  %v1318_v45 = vsel %vm1304_vm3, %v1315_v51, %v1317_v11  ;;  %v1156_v8 = vadd.s32 3, %v1152_v16 }
  0xdc   : > { %v10764_v39 = vmul.u32.u64.low %v1319_v62, %v1314_v63  ;;  %v10765_v5 = vmul.u32.u64.high %v1319_v62, %v1314_v63, %v10764_v39  ;;  %9755 = vsinq.f32 %v1151_v41  ;;  %v1235_v7 = vclz %v9228_v14 }
  0xdd   : > { %v1310_v55 = vsel %vm1304_vm3, %v1307_v52, %v1309_v30  ;;  %v1253_v13 = vsub.s32 4, %v1229_v43  ;;  %v10768_v18 = vmul.u32.u64.low %v1319_v62, %v1318_v45  ;;  %v10769_v15 = vmul.u32.u64.high %v1319_v62, %v1318_v45, %v10768_v18 }
  0xde   : > { %v9229_v26 = vadd.s32 4294967294, %v1235_v7  ;;  %v1385_v59 = vadd.s32 1, %v9235_v54  ;;  %vm1169_vm4 = vcmp.lt.s32.totalorder %v10483_v29, 0  ;;  %v1326_v19 = vmul.u32 %v1319_v62, %v1310_v55 }
  0xdf   : > { %v1329_v3 = vadd.s32 1, %v10765_v5  ;;  %v1382_v37 = vand.u32 8388607, %v1375_v44  ;;  %v1157_v9 = vand.u32 3, %v1156_v8  ;;  %v1223_v56 = vadd.s32 %v10690_v10, %v10706_v22 }
  0xe0   : > { %vm9230_vm5 = vcmp.lt.s32.totalorder %v9229_v26, 0  ;;  %vm1386_vm6 = vcmp.gt.s32.totalorder %v1385_v59, 0  ;;  %v1254_v33 = vsel %vm1169_vm4, %v1253_v13, %v1229_v43  ;;  %vm1328_vm7 = vc.u32 %v10769_v15, %v10764_v39 }
  0xe1   : > { %v1238_v12 = vsel %vm9230_vm5, 0, %v9229_v26  ;;  %v1387_v4 = vsel %vm1386_vm6, %v1385_v59, 0  ;;  %v1330_v20 = vsel %vm1328_vm7, %v1329_v3, %v10765_v5  ;;  %vm1155_vm8 = vweird.f32 %v10323_v61 }
  0xe2   : > { %v1239_v60 = vsub.s32 32, %v1238_v12  ;;  %v1240_v57 = vshll.u32 %v10742_v24, %v1238_v12  ;;  %v1243_v17 = vsub.s32 4294967266, %v1238_v12  ;;  %vm10785_vm9 = vcmp.le.f32.partialorder %v1167_v48, 0.7853982 }
  0xe3   : > { %v1331_v22 = vadd.s32 %v1330_v20, %v1326_v19  ;;  %v1383_v31 = vor.u32 8388608, %v1382_v37  ;;  %v1389_v43 = vand.u32 31, %v1387_v4  ;;  %v10791_v28 = vsel %vm10785_vm9, 0, %v1254_v33 }
  0xe4   : > { %v1241_v21 = vshrl.u32 %v1223_v56, %v1239_v60  ;;  %v1244_v25 = vadd.s32 127, %v1243_v17  ;;  %v10794_v24 = vmul.f32 4.0, %v10118_v0  ;;  %vm1158_vm10 = vcmp.lt.s32.totalorder %v1157_v9, 2 }
  0xe5   : > { %vm1159_vm11 = vcmp.eq.s32.totalorder %v1157_v9, 0  ;;  %vm1162_vm12 = vcmp.eq.s32.totalorder %v1157_v9, 2  ;;  %v1332_v32 = vadd.s32 536870912, %v1331_v22  ;;  %v1390_v62 = vsub.s32 32, %v1389_v43 }
  0xe6   : > { %v1242_v48 = vor.u32 %v1241_v21, %v1240_v57  ;;  %v1245_v27 = vshll.u32 %v1244_v25, 23  ;;  %v10796_v35 = vand.u32 3, %v1152_v16  ;;  %v10799_v52 = vadd.s32 3, %v10791_v28 }
  0xe7   : > { %v10802_v30 = vadd.s32 %v10764_v39, %v10769_v15  ;;  %v10804_v47 = vshrl.u32 %v1332_v32, 30  ;;  %v10806_v49 = vshll.u32 %v1383_v31, 8  ;;  %v10810_v41 = vshrl.u32 %v1387_v4, 5 }
  0xe8   : > { %v10808_v63 = vpop.eup %9753  ;;  %v1246_v51 = vor.u32 4788187, %v1245_v27  ;;  %v1249_v58 = vcvt.s32.f32 %v1242_v48  ;;  %v1392_v14 = vshll.u32 %v9992_v34, %v1389_v43  ;;  %v1395_v45 = vshll.u32 %v9993_v36, %v1389_v43 }
  0xe9   : > { %v10813_v16 = vpop.eup %9755  ;;  %v1163_v11 = vxor.u32 2147483648, %v10808_v63  ;;  %v1334_v54 = vshll.u32 %v10804_v47, 30  ;;  %v1398_v39 = vshll.u32 %v9994_v38, %v1389_v43  ;;  %v1393_v7 = vshrl.u32 %v9993_v36, %v1390_v62 }
  0xea   : > { %v1160_v5 = vxor.u32 2147483648, %v10813_v16  ;;  %v1247_v8 = vand.u32 2147483647, %v1246_v51  ;;  %v1396_v55 = vshrl.u32 %v9994_v38, %v1390_v62  ;;  %v1399_v15 = vshrl.u32 %v9995_v40, %v1390_v62 }
  0xeb   : > { %v1164_v13 = vsel %vm1162_vm12, %v1163_v11, %v10813_v16  ;;  %v10826_v18 = vsub.s32 %v1331_v22, %v1334_v54  ;;  %v1401_v26 = vshll.u32 %v9995_v40, %v1389_v43  ;;  %v1402_v3 = vshrl.u32 %v9996_v42, %v1390_v62 }
  0xec   : > { %v1161_v59 = vsel %vm1159_vm11, %v10808_v63, %v1160_v5  ;;  %v1250_v19 = vmul.f32 %v1249_v58, %v1247_v8  ;;  %v1404_v37 = vshll.u32 %v9996_v42, %v1389_v43  ;;  %vm1606_vm13 = vcmp.eq.s32.totalorder %v10796_v35, 0 }
  0xed   : > { %v1165_v56 = vsel %vm1158_vm10, %v1161_v59, %v1164_v13  ;;  %v1337_v12 = vsub.s32 0, %v10826_v18  ;;  %v1391_v33 = vshrl.u32 %v9992_v34, %v1390_v62  ;;  %v1405_v4 = vshrl.u32 %v9997_v50, %v1390_v62 }
  0xee   : > { %v1166_v60 = vsel %vm1155_vm8, nan, %v1165_v56  ;;  %v1251_v57 = vxor.u32 2147483648, %v1250_v19  ;;  %v1394_v17 = vor.u32 %v1393_v7, %v1392_v14  ;;  %v1397_v20 = vor.u32 %v1396_v55, %v1395_v45 }
  0xef   : > { %vm1609_vm14 = vcmp.eq.s32.totalorder %v10796_v35, 2  ;;  %v1487_v22 = vrot.slane %v1166_v60, 7  ;;  %v1483_v31 = vcombine.high %v1166_v60, %v1166_v60  ;;  %v9232_v9 = vmin.u32 %v1337_v12, %v10826_v18 }
  0xf0   : > { %v1400_v43 = vor.u32 %v1399_v15, %v1398_v39  ;;  %vm1605_vm15 = vcmp.lt.s32.totalorder %v10796_v35, 2  ;;  %v1252_v21 = vsel %vm1169_vm4, %v1251_v57, %v1250_v19  ;;  %v1403_v25 = vor.u32 %v1402_v3, %v1401_v26 }
  0xf1   : > { %v1406_v32 = vor.u32 %v1405_v4, %v1404_v37  ;;  %vm1407_vm0 = vcmp.lt.s32.totalorder %v10810_v41, 1  ;;  %1503 = vst [vmem:[%s10124_s26 + $0x40] sm:$0xe] %v1487_v22  ;;  %v1488_v48 = vrot.slane %v1483_v31, 7  ;;  %v1255_v27 = vsel %vm10785_vm9, %v10483_v29, %v1252_v21 }
  0xf2   : > { %vm1273_vm1 = vcmp.lt.s32.totalorder %v10582_v23, 0  ;;  %v1339_v62 = vclz %v9232_v9  ;;  %vm1410_vm2 = vcmp.lt.s32.totalorder %v10810_v41, 4  ;;  %9757 = vcosq.f32 %v1255_v27 }
  0xf3   : > { %vm1408_vm3 = vcmp.lt.s32.totalorder %v10810_v41, 2  ;;  %vm1409_vm4 = vcmp.lt.s32.totalorder %v10810_v41, 3  ;;  %v1411_v51 = vsel %vm1407_vm0, %v1391_v33, %v1394_v17  ;;  %1504 = vst [vmem:[%s10124_s26 + $0x48] sm:$0xe] %v1488_v48  ;;  %9759 = vsinq.f32 %v1255_v27 }
  0xf4   : > { %v9233_v58 = vadd.s32 4294967294, %v1339_v62  ;;  %v1412_v14 = vsel %vm1410_vm2, %v1400_v43, 2102212464  ;;  %v1415_v10 = vsel %vm1407_vm0, %v1394_v17, %v1397_v20  ;;  %v1416_v45 = vsel %vm1410_vm2, %v1403_v25, 920167782 }
  0xf5   : > { %v1413_v54 = vsel %vm1409_vm4, %v1397_v20, %v1412_v14  ;;  %v1419_v39 = vsel %vm1407_vm0, %v1397_v20, %v1400_v43  ;;  %v1420_v8 = vsel %vm1410_vm2, %v1406_v32, 1326507024  ;;  %v1357_v7 = vsub.s32 4, %v10804_v47 }
  0xf6   : > { %vm9234_vm5 = vcmp.lt.s32.totalorder %v9233_v58, 0  ;;  %v1417_v55 = vsel %vm1409_vm4, %v1400_v43, %v1416_v45  ;;  %v1421_v13 = vsel %vm1409_vm4, %v1403_v25, %v1420_v8  ;;  %v1414_v26 = vsel %vm1408_vm3, %v1411_v51, %v1413_v54 }
  0xf7   : > { %v1342_v15 = vsel %vm9234_vm5, 0, %v9233_v58  ;;  %v1418_v59 = vsel %vm1408_vm3, %v1415_v10, %v1417_v55  ;;  %v1422_v19 = vsel %vm1408_vm3, %v1419_v39, %v1421_v13  ;;  %v1608_v12 = vsel %vm1606_vm13, %v10808_v63, %v1160_v5 }
  0xf8   : > { %v1343_v3 = vsub.s32 32, %v1342_v15  ;;  %v1344_v37 = vshll.u32 %v10826_v18, %v1342_v15  ;;  %v1347_v56 = vsub.s32 4294967266, %v1342_v15  ;;  %v1261_v41 = vand.u32 3, %v10799_v52 }
  0xf9   : > { %v10874_v33 = vmul.u32.u64.low %v10806_v49, %v1422_v19  ;;  %v10875_v4 = vmul.u32.u64.high %v10806_v49, %v1422_v19, %v10874_v33  ;;  %v10878_v60 = vmul.u32.u64.low %v10806_v49, %v1418_v59  ;;  %v10879_v57 = vmul.u32.u64.high %v10806_v49, %v1418_v59, %v10878_v60 }
  0xfa   : > { %v1345_v17 = vshrl.u32 %v10802_v30, %v1343_v3  ;;  %v1348_v18 = vadd.s32 127, %v1347_v56  ;;  %v1611_v5 = vsel %vm1609_vm14, %v1163_v11, %v10813_v16  ;;  %v1358_v20 = vsel %vm1273_vm1, %v1357_v7, %v10804_v47 }
  0xfb   : > { %v1612_v22 = vsel %vm1605_vm15, %v1608_v12, %v1611_v5  ;;  %v1707_v31 = vand.u32 3, %v10791_v28  ;;  %v1950_v52 = vand.u32 2139095040, %v10794_v24  ;;  %v1430_v43 = vmul.u32 %v10806_v49, %v1414_v26 }
  0xfc   : > { %v1346_v9 = vor.u32 %v1345_v17, %v1344_v37  ;;  %v1349_v30 = vshll.u32 %v1348_v18, 23  ;;  %v1613_v63 = vsel %vm1155_vm8, nan, %v1612_v22  ;;  %vm10901_vm6 = vcmp.le.f32.partialorder %v1271_v53, 0.7853982 }
  0xfd   : > { %vm1432_vm7 = vc.u32 %v10875_v4, %v10878_v60  ;;  %v1433_v28 = vadd.s32 1, %v10879_v57  ;;  %v1927_v35 = vcombine.low %v1613_v63, %v1613_v63  ;;  %1936 = vst [vmem:[%s10124_s26 + $0x48] sm:$0x70] %v1613_v63  ;;  %vm1262_vm9 = vcmp.lt.s32.totalorder %v1261_v41, 2 }
  0xfe   : > { %v1350_v47 = vor.u32 4788187, %v1349_v30  ;;  %v1353_v11 = vcvt.s32.f32 %v1346_v9  ;;  %v1360_v61 = vsel %vm10901_vm6, 0, %v1358_v20  ;;  %vm1263_vm8 = vcmp.eq.s32.totalorder %v1261_v41, 0 }
  0xff   : > { %vm1266_vm10 = vcmp.eq.s32.totalorder %v1261_v41, 2  ;;  %v1434_v53 = vsel %vm1432_vm7, %v1433_v28, %v10879_v57  ;;  %1935 = vst [vmem:[%s10124_s26 + $0x40] sm:$0x70] %v1927_v35  ;;  %v1951_v49 = vshrl.u32 %v1950_v52, 23  ;;  %v9758_v21 = vpop.eup %9757  ;;  %vm1712_vm11 = vcmp.eq.s32.totalorder %v1707_v31, 2 }
 0x100   : > { %v1351_v25 = vand.u32 2147483647, %v1350_v47  ;;  %v1435_v32 = vadd.s32 %v1434_v53, %v1430_v43  ;;  %v1947_v48 = vand.u32 2147483647, %v10794_v24  ;;  %v9760_v27 = vpop.eup %9759  ;;  %v1267_v62 = vxor.u32 2147483648, %v9758_v21 }
 0x101   : > { %v1364_v51 = vadd.s32 3, %v1360_v61  ;;  %vm1709_vm12 = vcmp.eq.s32.totalorder %v1707_v31, 0  ;;  %v9255_v58 = vadd.s32 4294967169, %v1951_v49  ;;  %v1264_v14 = vxor.u32 2147483648, %v9760_v27 }
 0x102   : > { %v1354_v10 = vmul.f32 %v1353_v11, %v1351_v25  ;;  %v1436_v54 = vadd.s32 536870912, %v1435_v32  ;;  %vm1708_vm13 = vcmp.lt.s32.totalorder %v1707_v31, 2  ;;  %vm1259_vm14 = vweird.f32 %v10483_v29 }
 0x103   : > { %v1268_v45 = vsel %vm1266_vm10, %v1267_v62, %v9760_v27  ;;  %v1714_v39 = vsel %vm1712_vm11, %v1267_v62, %v9760_v27  ;;  %v1957_v8 = vadd.s32 1, %v9255_v58  ;;  %v1265_v7 = vsel %vm1263_vm8, %v9758_v21, %v1264_v14 }
 0x104   : > { %v1355_v55 = vxor.u32 2147483648, %v1354_v10  ;;  %v1437_v13 = vshrl.u32 %v1436_v54, 30  ;;  %v1711_v15 = vsel %vm1709_vm12, %v9758_v21, %v1264_v14  ;;  %v1269_v26 = vsel %vm1262_vm9, %v1265_v7, %v1268_v45 }
 0x105   : > { %v10918_v59 = vand.u32 3, %v1364_v51  ;;  %v1715_v19 = vsel %vm1708_vm13, %v1711_v15, %v1714_v39  ;;  %v1954_v3 = vand.u32 8388607, %v1947_v48  ;;  %v1270_v37 = vsel %vm1259_vm14, nan, %v1269_v26 }
 0x106   : > { %v1356_v56 = vsel %vm1273_vm1, %v1355_v55, %v1354_v10  ;;  %v1438_v12 = vshll.u32 %v1437_v13, 30  ;;  %vm1958_vm15 = vcmp.gt.s32.totalorder %v1957_v8, 0  ;;  %v1489_v33 = vrot.slane %v1270_v37, 7 }
 0x107   : > { %v1484_v57 = vcombine.high %v1270_v37, %v1270_v37  ;;  %v1359_v41 = vsel %vm10901_vm6, %v10582_v23, %v1356_v56  ;;  %v1716_v17 = vsel %vm1259_vm14, nan, %v1715_v19  ;;  %v10934_v20 = vand.u32 3, %v1360_v61 }
 0x108   : > { %9761 = vcosq.f32 %v1359_v41  ;;  %v10931_v18 = vsub.s32 %v1435_v32, %v1438_v12  ;;  %v1928_v5 = vcombine.low %v1716_v17, %v1716_v17  ;;  %1938 = vst [vmem:[%s10124_s26 + $0x58] sm:$0x70] %v1716_v17  ;;  %1505 = vst [vmem:[%s10124_s26 + $0x50] sm:$0xe] %v1489_v33  ;;  %v1955_v31 = vor.u32 8388608, %v1954_v3 }
 0x109   : > { %v1490_v22 = vrot.slane %v1484_v57, 7  ;;  %9763 = vsinq.f32 %v1359_v41  ;;  %v1959_v52 = vsel %vm1958_vm15, %v1957_v8, 0  ;;  %v1461_v30 = vsub.s32 4, %v1437_v13 }
 0x10a   : > { %v1441_v9 = vsub.s32 0, %v10931_v18  ;;  %1937 = vst [vmem:[%s10124_s26 + $0x50] sm:$0x70] %v1928_v5  ;;  %v1961_v43 = vand.u32 31, %v1959_v52  ;;  %v10941_v29 = vmul.f32 4.0, %v10120_v1  ;;  %vm1377_vm0 = vcmp.lt.s32.totalorder %v10711_v46, 0 }
 0x10b   : > { %1506 = vst [vmem:[%s10124_s26 + $0x58] sm:$0xe] %v1490_v22  ;;  %v1431_v63 = vadd.s32 %v10878_v60, %v10875_v4  ;;  %vm1370_vm1 = vcmp.eq.s32.totalorder %v10918_v59, 2  ;;  %vm1815_vm2 = vcmp.eq.s32.totalorder %v10934_v20, 2  ;;  %v10950_v47 = vshll.u32 %v1955_v31, 8 }
 0x10c   : > { %v9236_v16 = vmin.u32 %v1441_v9, %v10931_v18  ;;  %v1962_v28 = vsub.s32 32, %v1961_v43  ;;  %v1964_v35 = vshll.u32 %v9992_v34, %v1961_v43  ;;  %v10953_v11 = vmul.f32 4.0, %v10122_v2 }
 0x10d   : > { %vm1367_vm3 = vcmp.eq.s32.totalorder %v10918_v59, 0  ;;  %v10958_v4 = vsel %vm1377_vm0, %v1461_v30, %v1437_v13  ;;  %vm1812_vm4 = vcmp.eq.s32.totalorder %v10934_v20, 0  ;;  %v10961_v60 = vshrl.u32 %v1959_v52, 5 }
 0x10e   : > { %v1443_v61 = vclz %v9236_v16  ;;  %v1967_v53 = vshll.u32 %v9993_v36, %v1961_v43  ;;  %vm1366_vm5 = vcmp.lt.s32.totalorder %v10918_v59, 2  ;;  %vm1811_vm6 = vcmp.lt.s32.totalorder %v10934_v20, 2 }
 0x10f   : > { %v1965_v49 = vshrl.u32 %v9993_v36, %v1962_v28  ;;  %v1968_v21 = vshrl.u32 %v9994_v38, %v1962_v28  ;;  %v1970_v25 = vshll.u32 %v9994_v38, %v1961_v43  ;;  %v2054_v32 = vand.u32 2139095040, %v10941_v29 }
 0x110   : > { %vm1363_vm7 = vweird.f32 %v10582_v23  ;;  %v9237_v27 = vadd.s32 4294967294, %v1443_v61  ;;  %v1971_v62 = vshrl.u32 %v9995_v40, %v1962_v28  ;;  %v1973_v51 = vshll.u32 %v9995_v40, %v1961_v43 }
 0x111   : > { %v1974_v58 = vshrl.u32 %v9996_v42, %v1962_v28  ;;  %v1963_v14 = vshrl.u32 %v9992_v34, %v1962_v28  ;;  %v1966_v10 = vor.u32 %v1965_v49, %v1964_v35  ;;  %v1976_v54 = vshll.u32 %v9996_v42, %v1961_v43 }
 0x112   : > { %v1977_v45 = vshrl.u32 %v9997_v50, %v1962_v28  ;;  %vm9238_vm9 = vcmp.lt.s32.totalorder %v9237_v27, 0  ;;  %v1969_v39 = vor.u32 %v1968_v21, %v1967_v53  ;;  %v1972_v8 = vor.u32 %v1971_v62, %v1970_v25 }
 0x113   : > { %v1975_v7 = vor.u32 %v1974_v58, %v1973_v51  ;;  %v1446_v55 = vsel %vm9238_vm9, 0, %v9237_v27  ;;  %vm1979_vm8 = vcmp.lt.s32.totalorder %v10961_v60, 1  ;;  %vm1981_vm10 = vcmp.lt.s32.totalorder %v10961_v60, 3 }
 0x114   : > { %v1978_v13 = vor.u32 %v1977_v45, %v1976_v54  ;;  %v1447_v15 = vsub.s32 32, %v1446_v55  ;;  %v1448_v26 = vshll.u32 %v10931_v18, %v1446_v55  ;;  %v1451_v19 = vsub.s32 4294967266, %v1446_v55 }
 0x115   : > { %vm1982_vm11 = vcmp.lt.s32.totalorder %v10961_v60, 4  ;;  %v9762_v3 = vpop.eup %9761  ;;  %vm1980_vm12 = vcmp.lt.s32.totalorder %v10961_v60, 2  ;;  %v1983_v37 = vsel %vm1979_vm8, %v1963_v14, %v1966_v10  ;;  %vm10990_vm13 = vcmp.le.f32.partialorder %v1375_v44, 0.7853982 }
 0x116   : > { %v1984_v56 = vsel %vm1982_vm11, %v1972_v8, 2102212464  ;;  %v1988_v12 = vsel %vm1982_vm11, %v1975_v7, 920167782  ;;  %v9764_v33 = vpop.eup %9763  ;;  %v1371_v57 = vxor.u32 2147483648, %v9762_v3  ;;  %v1449_v17 = vshrl.u32 %v1431_v63, %v1447_v15 }
 0x117   : > { %v1452_v18 = vadd.s32 127, %v1451_v19  ;;  %v1987_v5 = vsel %vm1979_vm8, %v1966_v10, %v1969_v39  ;;  %v1368_v22 = vxor.u32 2147483648, %v9764_v33  ;;  %v1985_v31 = vsel %vm1981_vm10, %v1969_v39, %v1984_v56 }
 0x118   : > { %v1989_v52 = vsel %vm1981_vm10, %v1972_v8, %v1988_v12  ;;  %v1991_v9 = vsel %vm1979_vm8, %v1969_v39, %v1972_v8  ;;  %v1372_v44 = vsel %vm1370_vm1, %v1371_v57, %v9764_v33  ;;  %v1450_v30 = vor.u32 %v1449_v17, %v1448_v26 }
 0x119   : > { %v1453_v43 = vshll.u32 %v1452_v18, 23  ;;  %v1817_v63 = vsel %vm1815_vm2, %v1371_v57, %v9764_v33  ;;  %v1369_v16 = vsel %vm1367_vm3, %v9762_v3, %v1368_v22  ;;  %v1814_v28 = vsel %vm1812_vm4, %v9762_v3, %v1368_v22 }
 0x11a   : > { %v1990_v35 = vsel %vm1980_vm12, %v1987_v5, %v1989_v52  ;;  %v1992_v61 = vsel %vm1982_vm11, %v1978_v13, 1326507024  ;;  %v1373_v53 = vsel %vm1366_vm5, %v1369_v16, %v1372_v44  ;;  %v1457_v21 = vcvt.s32.f32 %v1450_v30 }
 0x11b   : > { %v1454_v49 = vor.u32 4788187, %v1453_v43  ;;  %v1818_v25 = vsel %vm1811_vm6, %v1814_v28, %v1817_v63  ;;  %v1374_v27 = vsel %vm1363_vm7, nan, %v1373_v53  ;;  %v1986_v51 = vsel %vm1980_vm12, %v1983_v37, %v1985_v31 }
 0x11c   : > { %v1819_v62 = vsel %vm1363_vm7, nan, %v1818_v25  ;;  %v1993_v59 = vsel %vm1981_vm10, %v1975_v7, %v1992_v61  ;;  %v1491_v58 = vrot.slane %v1374_v27, 7  ;;  %v1485_v14 = vcombine.high %v1374_v27, %v1374_v27 }
 0x11d   : > { %v1455_v10 = vand.u32 2147483647, %v1454_v49  ;;  %v1929_v54 = vcombine.low %v1819_v62, %v1819_v62  ;;  %1940 = vst [vmem:[%s10124_s26 + $0x68] sm:$0x70] %v1819_v62  ;;  %v1994_v20 = vsel %vm1980_vm12, %v1991_v9, %v1993_v59  ;;  %v2055_v23 = vshrl.u32 %v2054_v32, 23 }
 0x11e   : > { %v11030_v45 = vmul.u32.u64.low %v10950_v47, %v1990_v35  ;;  %v11031_v39 = vmul.u32.u64.high %v10950_v47, %v1990_v35, %v11030_v45  ;;  %1507 = vst [vmem:[%s10124_s26 + $0x60] sm:$0xe] %v1491_v58  ;;  %v1492_v8 = vrot.slane %v1485_v14, 7  ;;  %v1464_v15 = vsel %vm10990_vm13, 0, %v10958_v4 }
 0x11f   : > { %v1458_v55 = vmul.f32 %v1457_v21, %v1455_v10  ;;  %1939 = vst [vmem:[%s10124_s26 + $0x60] sm:$0x70] %v1929_v54  ;;  %v11037_v7 = vmul.u32.u64.low %v10950_v47, %v1994_v20  ;;  %v11038_v13 = vmul.u32.u64.high %v10950_v47, %v1994_v20, %v11037_v7  ;;  %v9259_v60 = vadd.s32 4294967169, %v2055_v23 }
 0x120   : > { %1508 = vst [vmem:[%s10124_s26 + $0x68] sm:$0xe] %v1492_v8  ;;  %v2002_v19 = vmul.u32 %v10950_v47, %v1986_v51  ;;  %v2158_v3 = vand.u32 2139095040, %v10953_v11  ;;  %v2005_v32 = vadd.s32 1, %v11031_v39  ;;  %v1468_v12 = vadd.s32 3, %v1464_v15 }
 0x121   : > { %v1459_v26 = vxor.u32 2147483648, %v1458_v55  ;;  %v2061_v37 = vadd.s32 1, %v9259_v60  ;;  %vm2004_vm14 = vc.u32 %v11038_v13, %v11030_v45  ;;  %v2051_v33 = vand.u32 2147483647, %v10941_v29 }
 0x122   : > { %v2006_v47 = vsel %vm2004_vm14, %v2005_v32, %v11031_v39  ;;  %v2159_v57 = vshrl.u32 %v2158_v3, 23  ;;  %v11056_v5 = vand.u32 3, %v1464_v15  ;;  %v11058_v31 = vand.u32 3, %v1468_v12 }
 0x123   : > { %v1460_v56 = vsel %vm1377_vm0, %v1459_v26, %v1458_v55  ;;  %vm2062_vm15 = vcmp.gt.s32.totalorder %v2061_v37, 0  ;;  %v2007_v17 = vadd.s32 %v2006_v47, %v2002_v19  ;;  %v2058_v9 = vand.u32 8388607, %v2051_v33 }
 0x124   : > { %v1463_v4 = vsel %vm10990_vm13, %v10711_v46, %v1460_v56  ;;  %v2063_v18 = vsel %vm2062_vm15, %v2061_v37, 0  ;;  %v11063_v41 = vmul.f32 4.0, %v10138_v6  ;;  %v9263_v63 = vadd.s32 4294967169, %v2159_v57 }
 0x125   : > { %9765 = vcosq.f32 %v1463_v4  ;;  %v2065_v22 = vand.u32 31, %v2063_v18  ;;  %v2008_v52 = vadd.s32 536870912, %v2007_v17  ;;  %v11065_v44 = vshrl.u32 %v2063_v18, 5 }
 0x126   : > { %9767 = vsinq.f32 %v1463_v4  ;;  %vm1918_vm0 = vcmp.eq.s32.totalorder %v11056_v5, 2  ;;  %vm1471_vm1 = vcmp.eq.s32.totalorder %v11058_v31, 0  ;;  %vm1915_vm2 = vcmp.eq.s32.totalorder %v11056_v5, 0 }
 0x127   : > { %v2066_v30 = vsub.s32 32, %v2065_v22  ;;  %v2071_v43 = vshll.u32 %v9993_v36, %v2065_v22  ;;  %v11068_v16 = vshrl.u32 %v2008_v52, 30  ;;  %v2074_v28 = vshll.u32 %v9994_v38, %v2065_v22 }
 0x128   : > { %v2077_v35 = vshll.u32 %v9995_v40, %v2065_v22  ;;  %v2080_v61 = vshll.u32 %v9996_v42, %v2065_v22  ;;  %v2068_v53 = vshll.u32 %v9992_v34, %v2065_v22  ;;  %v2155_v59 = vand.u32 2147483647, %v10953_v11 }
 0x129   : > { %v2069_v49 = vshrl.u32 %v9993_v36, %v2066_v30  ;;  %v2072_v21 = vshrl.u32 %v9994_v38, %v2066_v30  ;;  %v2075_v25 = vshrl.u32 %v9995_v40, %v2066_v30  ;;  %v2010_v27 = vshll.u32 %v11068_v16, 30 }
 0x12a   : > { %v2078_v62 = vshrl.u32 %v9996_v42, %v2066_v30  ;;  %v2081_v51 = vshrl.u32 %v9997_v50, %v2066_v30  ;;  %vm1470_vm3 = vcmp.lt.s32.totalorder %v11058_v31, 2  ;;  %vm1474_vm4 = vcmp.eq.s32.totalorder %v11058_v31, 2 }
 0x12b   : > { %vm1914_vm5 = vcmp.lt.s32.totalorder %v11056_v5, 2  ;;  %v2059_v58 = vor.u32 8388608, %v2058_v9  ;;  %v2067_v14 = vshrl.u32 %v9992_v34, %v2066_v30  ;;  %v2073_v10 = vor.u32 %v2072_v21, %v2071_v43 }
 0x12c   : > { %vm1467_vm6 = vweird.f32 %v10711_v46  ;;  %v11089_v54 = vsub.s32 %v2007_v17, %v2010_v27  ;;  %v2076_v20 = vor.u32 %v2075_v25, %v2074_v28  ;;  %v2079_v39 = vor.u32 %v2078_v62, %v2077_v35 }
 0x12d   : > { %v2082_v23 = vor.u32 %v2081_v51, %v2080_v61  ;;  %v2070_v8 = vor.u32 %v2069_v49, %v2068_v53  ;;  %vm2083_vm7 = vcmp.lt.s32.totalorder %v11065_v44, 1  ;;  %vm2086_vm9 = vcmp.lt.s32.totalorder %v11065_v44, 4 }
 0x12e   : > { %v2165_v55 = vadd.s32 1, %v9263_v63  ;;  %v2013_v7 = vsub.s32 0, %v11089_v54  ;;  %vm2085_vm8 = vcmp.lt.s32.totalorder %v11065_v44, 3  ;;  %v2088_v15 = vsel %vm2086_vm9, %v2076_v20, 2102212464 }
 0x12f   : > { %v11097_v60 = vand.u32 8388607, %v2155_v59  ;;  %vm2084_vm10 = vcmp.lt.s32.totalorder %v11065_v44, 2  ;;  %v2092_v26 = vsel %vm2086_vm9, %v2079_v39, 920167782  ;;  %v11100_v3 = vshll.u32 %v2059_v58, 8 }
 0x130   : > { %v2096_v19 = vsel %vm2086_vm9, %v2082_v23, 1326507024  ;;  %v9256_v32 = vmin.u32 %v2013_v7, %v11089_v54  ;;  %v2087_v37 = vsel %vm2083_vm7, %v2067_v14, %v2070_v8  ;;  %v2089_v56 = vsel %vm2085_vm8, %v2073_v10, %v2088_v15 }
 0x131   : > { %v2095_v12 = vsel %vm2083_vm7, %v2073_v10, %v2076_v20  ;;  %v2091_v47 = vsel %vm2083_vm7, %v2070_v8, %v2073_v10  ;;  %v2093_v57 = vsel %vm2085_vm8, %v2076_v20, %v2092_v26  ;;  %v2097_v17 = vsel %vm2085_vm8, %v2079_v39, %v2096_v19 }
 0x132   : > { %v9766_v4 = vpop.eup %9765  ;;  %vm2166_vm11 = vcmp.gt.s32.totalorder %v2165_v55, 0  ;;  %v2003_v52 = vadd.s32 %v11030_v45, %v11038_v13  ;;  %v2015_v9 = vclz %v9256_v32  ;;  %v2163_v30 = vor.u32 8388608, %v11097_v60 }
 0x133   : > { %v9768_v18 = vpop.eup %9767  ;;  %v1475_v22 = vxor.u32 2147483648, %v9766_v4  ;;  %v2090_v63 = vsel %vm2084_vm10, %v2087_v37, %v2089_v56  ;;  %v2098_v28 = vsel %vm2084_vm10, %v2095_v12, %v2097_v17  ;;  %v2167_v35 = vsel %vm2166_vm11, %v2165_v55, 0 }
 0x134   : > { %v1472_v43 = vxor.u32 2147483648, %v9768_v18  ;;  %v9257_v49 = vadd.s32 4294967294, %v2015_v9  ;;  %v2094_v45 = vsel %vm2084_vm10, %v2091_v47, %v2093_v57  ;;  %v2169_v44 = vand.u32 31, %v2167_v35 }
 0x135   : > { %v1476_v61 = vsel %vm1474_vm4, %v1475_v22, %v9768_v18  ;;  %v1920_v53 = vsel %vm1918_vm0, %v1475_v22, %v9768_v18  ;;  %v11127_v25 = vmul.u32.u64.low %v11100_v3, %v2098_v28  ;;  %v11128_v27 = vmul.u32.u64.high %v11100_v3, %v2098_v28, %v11127_v25 }
 0x136   : > { %v1473_v13 = vsel %vm1471_vm1, %v9766_v4, %v1472_v43  ;;  %v1917_v21 = vsel %vm1915_vm2, %v9766_v4, %v1472_v43  ;;  %vm9258_vm12 = vcmp.lt.s32.totalorder %v9257_v49, 0  ;;  %v11138_v20 = vshrl.u32 %v2167_v35, 5 }
 0x137   : > { %v1477_v62 = vsel %vm1470_vm3, %v1473_v13, %v1476_v61  ;;  %v1921_v51 = vsel %vm1914_vm5, %v1917_v21, %v1920_v53  ;;  %v2018_v10 = vsel %vm9258_vm12, 0, %v9257_v49  ;;  %v2170_v19 = vsub.s32 32, %v2169_v44 }
 0x138   : > { %v1478_v58 = vsel %vm1467_vm6, nan, %v1477_v62  ;;  %v1922_v14 = vsel %vm1467_vm6, nan, %v1921_v51  ;;  %v2019_v5 = vsub.s32 32, %v2018_v10  ;;  %v2020_v8 = vshll.u32 %v11089_v54, %v2018_v10 }
 0x139   : > { %v1493_v39 = vrot.slane %v1478_v58, 7  ;;  %v1486_v23 = vcombine.high %v1478_v58, %v1478_v58  ;;  %v1930_v31 = vcombine.low %v1922_v14, %v1922_v14  ;;  %1942 = vst [vmem:[%s10124_s26 + $0x78] sm:$0x70] %v1922_v14  ;;  %v2023_v55 = vsub.s32 4294967266, %v2018_v10 }
 0x13a   : > { %v11143_v7 = vmul.u32.u64.low %v11100_v3, %v2094_v45  ;;  %v11144_v15 = vmul.u32.u64.high %v11100_v3, %v2094_v45, %v11143_v7  ;;  %v2021_v26 = vshrl.u32 %v2003_v52, %v2019_v5  ;;  %v2172_v32 = vshll.u32 %v9992_v34, %v2169_v44 }
 0x13b   : > { %1509 = vst [vmem:[%s10124_s26 + $0x70] sm:$0xe] %v1493_v39  ;;  %v1494_v46 = vrot.slane %v1486_v23, 7  ;;  %1941 = vst [vmem:[%s10124_s26 + $0x70] sm:$0x70] %v1930_v31  ;;  %vm1949_vm13 = vcmp.lt.s32.totalorder %v10794_v24, 0  ;;  %v2106_v54 = vmul.u32 %v11100_v3, %v2090_v63  ;;  %v2175_v12 = vshll.u32 %v9993_v36, %v2169_v44 }
 0x13c   : > { %v2024_v37 = vadd.s32 127, %v2023_v55  ;;  %v2033_v56 = vsub.s32 4, %v11068_v16  ;;  %v2022_v4 = vor.u32 %v2021_v26, %v2020_v8  ;;  %vm2108_vm14 = vc.u32 %v11128_v27, %v11143_v7 }
 0x13d   : > { %1510 = vst [vmem:[%s10124_s26 + $0x78] sm:$0xe] %v1494_v46  ;;  %v2173_v47 = vshrl.u32 %v9993_v36, %v2170_v19  ;;  %v2176_v57 = vshrl.u32 %v9994_v38, %v2170_v19  ;;  %vm11161_vm15 = vcmp.le.f32.partialorder %v1947_v48, 0.7853982  ;;  %v2109_v3 = vadd.s32 1, %v11144_v15 }
 0x13e   : > { %v2025_v18 = vshll.u32 %v2024_v37, 23  ;;  %v2178_v22 = vshll.u32 %v9994_v38, %v2169_v44  ;;  %v2179_v52 = vshrl.u32 %v9995_v40, %v2170_v19  ;;  %v2029_v9 = vcvt.s32.f32 %v2022_v4 }
 0x13f   : > { %v2174_v43 = vor.u32 %v2173_v47, %v2172_v32  ;;  %v2181_v63 = vshll.u32 %v9995_v40, %v2169_v44  ;;  %vm2187_vm0 = vcmp.lt.s32.totalorder %v11138_v20, 1  ;;  %v2110_v35 = vsel %vm2108_vm14, %v2109_v3, %v11144_v15 }
 0x140   : > { %v2026_v28 = vor.u32 4788187, %v2025_v18  ;;  %v2177_v48 = vor.u32 %v2176_v57, %v2175_v12  ;;  %v2182_v61 = vshrl.u32 %v9996_v42, %v2170_v19  ;;  %v2111_v53 = vadd.s32 %v2110_v35, %v2106_v54 }
 0x141   : > { %v2180_v49 = vor.u32 %v2179_v52, %v2178_v22  ;;  %v2184_v45 = vshll.u32 %v9996_v42, %v2169_v44  ;;  %v2185_v13 = vshrl.u32 %v9997_v50, %v2170_v19  ;;  %vm2189_vm1 = vcmp.lt.s32.totalorder %v11138_v20, 3 }
 0x142   : > { %v2027_v21 = vand.u32 2147483647, %v2026_v28  ;;  %v2183_v25 = vor.u32 %v2182_v61, %v2181_v63  ;;  %vm2190_vm2 = vcmp.lt.s32.totalorder %v11138_v20, 4  ;;  %v2112_v62 = vadd.s32 536870912, %v2111_v53 }
 0x143   : > { %v2171_v51 = vshrl.u32 %v9992_v34, %v2170_v19  ;;  %v2186_v58 = vor.u32 %v2185_v13, %v2184_v45  ;;  %vm2188_vm3 = vcmp.lt.s32.totalorder %v11138_v20, 2  ;;  %v2192_v10 = vsel %vm2190_vm2, %v2180_v49, 2102212464 }
 0x144   : > { %v2030_v14 = vmul.f32 %v2029_v9, %v2027_v21  ;;  %v2195_v39 = vsel %vm2187_vm0, %v2174_v43, %v2177_v48  ;;  %v2196_v44 = vsel %vm2190_vm2, %v2183_v25, 920167782  ;;  %v2034_v23 = vsel %vm1949_vm13, %v2033_v56, %v11068_v16 }
 0x145   : > { %v2113_v31 = vshrl.u32 %v2112_v62, 30  ;;  %v2197_v5 = vsel %vm2189_vm1, %v2180_v49, %v2196_v44  ;;  %v2199_v8 = vsel %vm2187_vm0, %v2177_v48, %v2180_v49  ;;  %v2200_v46 = vsel %vm2190_vm2, %v2186_v58, 1326507024 }
 0x146   : > { %v2031_v55 = vxor.u32 2147483648, %v2030_v14  ;;  %v2198_v15 = vsel %vm2188_vm3, %v2195_v39, %v2197_v5  ;;  %v2203_v26 = vshll.u32 %v2163_v30, 8  ;;  %v2191_v32 = vsel %vm2187_vm0, %v2171_v51, %v2174_v43 }
 0x147   : > { %v2114_v19 = vshll.u32 %v2113_v31, 30  ;;  %v2193_v16 = vsel %vm2189_vm1, %v2177_v48, %v2192_v10  ;;  %v2201_v37 = vsel %vm2189_vm1, %v2183_v25, %v2200_v46  ;;  %v2036_v30 = vsel %vm11161_vm15, 0, %v2034_v23 }
 0x148   : > { %v2032_v56 = vsel %vm1949_vm13, %v2031_v55, %v2030_v14  ;;  %v2202_v54 = vsel %vm2188_vm3, %v2199_v8, %v2201_v37  ;;  %v11201_v12 = vmul.u32.u64.low %v2203_v26, %v2198_v15  ;;  %v11202_v4 = vmul.u32.u64.high %v2203_v26, %v2198_v15, %v11201_v12 }
 0x149   : > { %v2035_v60 = vsel %vm11161_vm15, %v10794_v24, %v2032_v56  ;;  %v2115_v47 = vsub.s32 %v2111_v53, %v2114_v19  ;;  %v2137_v57 = vsub.s32 4, %v2113_v31  ;;  %v2194_v18 = vsel %vm2188_vm3, %v2191_v32, %v2193_v16 }
 0x14a   : > { %9769 = vcosq.f32 %v2035_v60  ;;  %v11212_v3 = vmul.u32.u64.low %v2203_v26, %v2202_v54  ;;  %v11213_v22 = vmul.u32.u64.high %v2203_v26, %v2202_v54, %v11212_v3  ;;  %v2262_v9 = vand.u32 2139095040, %v11063_v41 }
 0x14b   : > { %9771 = vsinq.f32 %v2035_v60  ;;  %v2117_v52 = vsub.s32 0, %v2115_v47  ;;  %v2040_v43 = vadd.s32 3, %v2036_v30  ;;  %vm2053_vm4 = vcmp.lt.s32.totalorder %v10941_v29, 0 }
 0x14c   : > { %v2213_v63 = vadd.s32 1, %v11202_v4  ;;  %v2138_v28 = vsel %vm2053_vm4, %v2137_v57, %v2113_v31  ;;  %v2210_v35 = vmul.u32 %v2203_v26, %v2194_v18  ;;  %v2263_v48 = vshrl.u32 %v2262_v9, 23 }
 0x14d   : > { %v9260_v17 = vmin.u32 %v2117_v52, %v2115_v47  ;;  %vm2212_vm5 = vc.u32 %v11213_v22, %v11201_v12  ;;  %vm11224_vm6 = vcmp.le.f32.partialorder %v2051_v33, 0.7853982  ;;  %v2259_v53 = vand.u32 2147483647, %v11063_v41 }
 0x14e   : > { %v2041_v49 = vand.u32 3, %v2040_v43  ;;  %v2140_v45 = vsel %vm11224_vm6, 0, %v2138_v28  ;;  %v2214_v13 = vsel %vm2212_vm5, %v2213_v63, %v11202_v4  ;;  %v9267_v21 = vadd.s32 4294967169, %v2263_v48 }
 0x14f   : > { %v2119_v61 = vclz %v9260_v17  ;;  %v2215_v62 = vadd.s32 %v2214_v13, %v2210_v35  ;;  %vm2039_vm7 = vweird.f32 %v10794_v24  ;;  %v2107_v33 = vadd.s32 %v11143_v7, %v11128_v27 }
 0x150   : > { %v2269_v51 = vadd.s32 1, %v9267_v21  ;;  %v2144_v58 = vadd.s32 3, %v2140_v45  ;;  %vm2042_vm8 = vcmp.lt.s32.totalorder %v2041_v49, 2  ;;  %v2266_v39 = vand.u32 8388607, %v2259_v53 }
 0x151   : > { %v9261_v25 = vadd.s32 4294967294, %v2119_v61  ;;  %v2216_v14 = vadd.s32 536870912, %v2215_v62  ;;  %vm2043_vm11 = vcmp.eq.s32.totalorder %v2041_v49, 0  ;;  %vm2046_vm12 = vcmp.eq.s32.totalorder %v2041_v49, 2 }
 0x152   : > { %vm2270_vm10 = vcmp.gt.s32.totalorder %v2269_v51, 0  ;;  %v11239_v55 = vand.u32 3, %v2036_v30  ;;  %v11243_v46 = vand.u32 3, %v2144_v58  ;;  %v2267_v16 = vor.u32 8388608, %v2266_v39 }
 0x153   : > { %vm9262_vm9 = vcmp.lt.s32.totalorder %v9261_v25, 0  ;;  %v11237_v5 = vshrl.u32 %v2216_v14, 30  ;;  %v2271_v8 = vsel %vm2270_vm10, %v2269_v51, 0  ;;  %v11250_v56 = vmul.f32 8.0, %v10118_v0 }
 0x154   : > { %v2122_v10 = vsel %vm9262_vm9, 0, %v9261_v25  ;;  %v2273_v37 = vand.u32 31, %v2271_v8  ;;  %v2211_v57 = vadd.s32 %v11201_v12, %v11213_v22  ;;  %v11261_v3 = vand.u32 3, %v2140_v45 }
 0x155   : > { %v2123_v44 = vsub.s32 32, %v2122_v10  ;;  %v2124_v23 = vshll.u32 %v2115_v47, %v2122_v10  ;;  %v2127_v31 = vsub.s32 4294967266, %v2122_v10  ;;  %v2218_v26 = vshll.u32 %v11237_v5, 30 }
 0x156   : > { %v2274_v18 = vsub.s32 32, %v2273_v37  ;;  %v2241_v28 = vsub.s32 4, %v11237_v5  ;;  %v11270_v35 = vshll.u32 %v2267_v16, 8  ;;  %v2854_v12 = vand.u32 2139095040, %v11250_v56 }
 0x157   : > { %v11241_v27 = vpop.eup %9769  ;;  %v2125_v7 = vshrl.u32 %v2107_v33, %v2123_v44  ;;  %v2128_v15 = vadd.s32 127, %v2127_v31  ;;  %v11253_v30 = vsub.s32 %v2215_v62, %v2218_v26  ;;  %v2276_v45 = vshll.u32 %v9992_v34, %v2273_v37 }
 0x158   : > { %v11246_v19 = vpop.eup %9771  ;;  %v2047_v32 = vxor.u32 2147483648, %v11241_v27  ;;  %v2277_v49 = vshrl.u32 %v9993_v36, %v2274_v18  ;;  %v2279_v25 = vshll.u32 %v9993_v36, %v2273_v37  ;;  %v2272_v33 = vshrl.u32 %v2271_v8, 5 }
 0x159   : > { %v2044_v54 = vxor.u32 2147483648, %v11246_v19  ;;  %v2126_v4 = vor.u32 %v2125_v7, %v2124_v23  ;;  %v2129_v60 = vshll.u32 %v2128_v15, 23  ;;  %v2221_v63 = vsub.s32 0, %v11253_v30 }
 0x15a   : > { %v2048_v47 = vsel %vm2046_vm12, %v2047_v32, %v11246_v19  ;;  %v2280_v58 = vshrl.u32 %v9994_v38, %v2274_v18  ;;  %vm2498_vm13 = vcmp.eq.s32.totalorder %v11239_v55, 0  ;;  %v2282_v10 = vshll.u32 %v9994_v38, %v2273_v37 }
 0x15b   : > { %v2045_v52 = vsel %vm2043_vm11, %v11241_v27, %v2044_v54  ;;  %v2130_v9 = vor.u32 4788187, %v2129_v60  ;;  %v2133_v43 = vcvt.s32.f32 %v2126_v4  ;;  %v9264_v61 = vmin.u32 %v2221_v63, %v11253_v30 }
 0x15c   : > { %v2049_v17 = vsel %vm2042_vm8, %v2045_v52, %v2048_v47  ;;  %v2283_v39 = vshrl.u32 %v9995_v40, %v2274_v18  ;;  %v2285_v44 = vshll.u32 %v9995_v40, %v2273_v37  ;;  %vm2157_vm14 = vcmp.lt.s32.totalorder %v10953_v11, 0 }
 0x15d   : > { %v2050_v22 = vsel %vm2039_vm7, nan, %v2049_v17  ;;  %v2131_v48 = vand.u32 2147483647, %v2130_v9  ;;  %v2223_v51 = vclz %v9264_v61  ;;  %v2275_v7 = vshrl.u32 %v9992_v34, %v2274_v18 }
 0x15e   : > { %v2371_v13 = vrot.slane %v2050_v22, 1  ;;  %v2367_v21 = vcombine.high %v2050_v22, %v2050_v22  ;;  %vm2501_vm15 = vcmp.eq.s32.totalorder %v11239_v55, 2  ;;  %v2855_v8 = vshrl.u32 %v2854_v12, 23 }
 0x15f   : > { %v2134_v62 = vmul.f32 %v2133_v43, %v2131_v48  ;;  %v9265_v31 = vadd.s32 4294967294, %v2223_v51  ;;  %v2278_v15 = vor.u32 %v2277_v49, %v2276_v45  ;;  %v2281_v26 = vor.u32 %v2280_v58, %v2279_v25 }
 0x160   : > { %2387 = vst [vmem:[%s10124_s26 + $0x80] ss:$-60 sps:$4 sm:$0x83] %v2371_v13   ;;  %v2372_v14 = vrot.slane %v2367_v21, 1  ;;  %v2284_v16 = vor.u32 %v2283_v39, %v2282_v10  ;;  %v2286_v4 = vshrl.u32 %v9996_v42, %v2274_v18  ;;  %vm2497_vm0 = vcmp.lt.s32.totalorder %v11239_v55, 2 }
 0x161   : > { %v2135_v23 = vxor.u32 2147483648, %v2134_v62  ;;  %vm9266_vm1 = vcmp.lt.s32.totalorder %v9265_v31, 0  ;;  %v2288_v47 = vshll.u32 %v9996_v42, %v2273_v37  ;;  %v2289_v52 = vshrl.u32 %v9997_v50, %v2274_v18 }
 0x162   : > { %2388 = vst [vmem:[%s10124_s26 + $0x88] ss:$-60 sps:$4 sm:$0x83] %v2372_v14   ;;  %v2226_v43 = vsel %vm9266_vm1, 0, %v9265_v31  ;;  %v2287_v63 = vor.u32 %v2286_v4, %v2285_v44  ;;  %vm2291_vm2 = vcmp.lt.s32.totalorder %v2272_v33, 1  ;;  %vm2292_vm3 = vcmp.lt.s32.totalorder %v2272_v33, 2 }
 0x163   : > { %v2136_v60 = vsel %vm2053_vm4, %v2135_v23, %v2134_v62  ;;  %v2227_v17 = vsub.s32 32, %v2226_v43  ;;  %v2228_v12 = vshll.u32 %v11253_v30, %v2226_v43  ;;  %v2231_v22 = vsub.s32 4294967266, %v2226_v43 }
 0x164   : > { %v2139_v9 = vsel %vm11224_vm6, %v10941_v29, %v2136_v60  ;;  %v2290_v48 = vor.u32 %v2289_v52, %v2288_v47  ;;  %vm2293_vm4 = vcmp.lt.s32.totalorder %v2272_v33, 3  ;;  %vm11301_vm5 = vcmp.le.f32.partialorder %v2155_v59, 0.7853982 }
 0x165   : > { %9773 = vcosq.f32 %v2139_v9  ;;  %v2229_v20 = vshrl.u32 %v2211_v57, %v2227_v17  ;;  %v2232_v18 = vadd.s32 127, %v2231_v22  ;;  %vm2294_vm6 = vcmp.lt.s32.totalorder %v2272_v33, 4 }
 0x166   : > { %9775 = vsinq.f32 %v2139_v9  ;;  %v2295_v61 = vsel %vm2291_vm2, %v2275_v7, %v2278_v15  ;;  %v2296_v45 = vsel %vm2294_vm6, %v2284_v16, 2102212464  ;;  %v2299_v13 = vsel %vm2291_vm2, %v2278_v15, %v2281_v26 }
 0x167   : > { %v2300_v30 = vsel %vm2294_vm6, %v2287_v63, 920167782  ;;  %v2303_v21 = vsel %vm2291_vm2, %v2281_v26, %v2284_v16  ;;  %v2230_v49 = vor.u32 %v2229_v20, %v2228_v12  ;;  %v2233_v25 = vshll.u32 %v2232_v18, 23 }
 0x168   : > { %v2297_v62 = vsel %vm2293_vm4, %v2281_v26, %v2296_v45  ;;  %v2301_v59 = vsel %vm2293_vm4, %v2284_v16, %v2300_v30  ;;  %v2242_v57 = vsel %vm2157_vm14, %v2241_v28, %v11237_v5  ;;  %v2304_v58 = vsel %vm2294_vm6, %v2290_v48, 1326507024 }
 0x169   : > { %v2302_v51 = vsel %vm2292_vm3, %v2299_v13, %v2301_v59  ;;  %v2500_v14 = vsel %vm2498_vm13, %v11241_v27, %v2044_v54  ;;  %v2234_v10 = vor.u32 4788187, %v2233_v25  ;;  %v2237_v39 = vcvt.s32.f32 %v2230_v49 }
 0x16a   : > { %v2298_v44 = vsel %vm2292_vm3, %v2295_v61, %v2297_v62  ;;  %v2305_v23 = vsel %vm2293_vm4, %v2287_v63, %v2304_v58  ;;  %v11325_v7 = vmul.u32.u64.low %v11270_v35, %v2302_v51  ;;  %v11326_v5 = vmul.u32.u64.high %v11270_v35, %v2302_v51, %v11325_v7 }
 0x16b   : > { %v2306_v31 = vsel %vm2292_vm3, %v2303_v21, %v2305_v23  ;;  %v2503_v28 = vsel %vm2501_vm15, %v2047_v32, %v11246_v19  ;;  %vm2143_vm9 = vweird.f32 %v10941_v29  ;;  %v2235_v54 = vand.u32 2147483647, %v2234_v10 }
 0x16c   : > { %v11336_v15 = vmul.u32.u64.low %v11270_v35, %v2306_v31  ;;  %v11337_v26 = vmul.u32.u64.high %v11270_v35, %v2306_v31, %v11336_v15  ;;  %v2504_v33 = vsel %vm2497_vm0, %v2500_v14, %v2503_v28  ;;  %vm2146_vm8 = vcmp.lt.s32.totalorder %v11243_v46, 2 }
 0x16d   : > { %vm2147_vm10 = vcmp.eq.s32.totalorder %v11243_v46, 0  ;;  %v2505_v27 = vsel %vm2039_vm7, nan, %v2504_v33  ;;  %v9287_v16 = vadd.s32 4294967169, %v2855_v8  ;;  %v2238_v19 = vmul.f32 %v2237_v39, %v2235_v54 }
 0x16e   : > { %v2314_v32 = vmul.u32 %v11270_v35, %v2298_v44  ;;  %v2823_v4 = vrot.slane %v2505_v27, 6  ;;  %v2819_v60 = vcombine.high %v2505_v27, %v2505_v27  ;;  %vm2150_vm11 = vcmp.eq.s32.totalorder %v11243_v46, 2 }
 0x16f   : > { %v2244_v55 = vsel %vm11301_vm5, 0, %v2242_v57  ;;  %v2317_v47 = vadd.s32 1, %v11326_v5  ;;  %v2851_v52 = vand.u32 2147483647, %v11250_v56  ;;  %v2239_v9 = vxor.u32 2147483648, %v2238_v19 }
 0x170   : > { %vm2316_vm7 = vc.u32 %v11337_v26, %v11325_v7  ;;  %2839 = vst [vmem:[%s10124_s26 + $0x80] sm:$0x1c] %v2823_v4  ;;  %v2824_v24 = vrot.slane %v2819_v60, 6  ;;  %vm2600_vm12 = vcmp.lt.s32.totalorder %v11261_v3, 2  ;;  %vm2601_vm13 = vcmp.eq.s32.totalorder %v11261_v3, 0 }
 0x171   : > { %v2318_v8 = vsel %vm2316_vm7, %v2317_v47, %v11326_v5  ;;  %vm2604_vm15 = vcmp.eq.s32.totalorder %v11261_v3, 2  ;;  %v2861_v43 = vadd.s32 1, %v9287_v16  ;;  %v2240_v12 = vsel %vm2157_vm14, %v2239_v9, %v2238_v19 }
 0x172   : > { %v9774_v35 = vpop.eup %9773  ;;  %v2248_v22 = vadd.s32 3, %v2244_v55  ;;  %v2319_v48 = vadd.s32 %v2318_v8, %v2314_v32  ;;  %2840 = vst [vmem:[%s10124_s26 + $0x88] sm:$0x1c] %v2824_v24  ;;  %v2243_v18 = vsel %vm11301_vm5, %v10953_v11, %v2240_v12  ;;  %v2858_v61 = vand.u32 8388607, %v2851_v52 }
 0x173   : > { %v9776_v63 = vpop.eup %9775  ;;  %v2151_v17 = vxor.u32 2147483648, %v9774_v35  ;;  %vm2862_vm0 = vcmp.gt.s32.totalorder %v2861_v43, 0  ;;  %9777 = vcosq.f32 %v2243_v18  ;;  %vm2261_vm14 = vcmp.lt.s32.totalorder %v11063_v41, 0 }
 0x174   : > { %v2148_v20 = vxor.u32 2147483648, %v9776_v63  ;;  %v2320_v13 = vadd.s32 536870912, %v2319_v48  ;;  %9779 = vsinq.f32 %v2243_v18  ;;  %v2863_v25 = vsel %vm2862_vm0, %v2861_v43, 0 }
 0x175   : > { %v2152_v45 = vsel %vm2150_vm11, %v2151_v17, %v9776_v63  ;;  %v2606_v30 = vsel %vm2604_vm15, %v2151_v17, %v9776_v63  ;;  %v11374_v62 = vand.u32 3, %v2248_v22  ;;  %v11383_v14 = vand.u32 3, %v2244_v55 }
 0x176   : > { %v2149_v21 = vsel %vm2147_vm10, %v9774_v35, %v2148_v20  ;;  %v2603_v49 = vsel %vm2601_vm13, %v9774_v35, %v2148_v20  ;;  %v2321_v59 = vshrl.u32 %v2320_v13, 30  ;;  %v2865_v46 = vand.u32 31, %v2863_v25 }
 0x177   : > { %v2153_v37 = vsel %vm2146_vm8, %v2149_v21, %v2152_v45  ;;  %v2607_v57 = vsel %vm2600_vm12, %v2603_v49, %v2606_v30  ;;  %v11386_v23 = vmul.f32 8.0, %v10120_v1  ;;  %v11389_v28 = vmul.f32 8.0, %v10122_v2 }
 0x178   : > { %v2154_v51 = vsel %vm2143_vm9, nan, %v2153_v37  ;;  %v2608_v58 = vsel %vm2143_vm9, nan, %v2607_v57  ;;  %v2322_v44 = vshll.u32 %v2321_v59, 30  ;;  %v2866_v5 = vsub.s32 32, %v2865_v46 }
 0x179   : > { %v2373_v10 = vrot.slane %v2154_v51, 1  ;;  %v2368_v39 = vcombine.high %v2154_v51, %v2154_v51  ;;  %v2825_v3 = vrot.slane %v2608_v58, 6  ;;  %v2820_v31 = vcombine.high %v2608_v58, %v2608_v58 }
 0x17a   : > { %vm2251_vm1 = vcmp.eq.s32.totalorder %v11374_v62, 0  ;;  %vm2254_vm2 = vcmp.eq.s32.totalorder %v11374_v62, 2  ;;  %v11394_v54 = vsub.s32 %v2319_v48, %v2322_v44  ;;  %vm2250_vm3 = vcmp.lt.s32.totalorder %v11374_v62, 2 }
 0x17b   : > { %2389 = vst [vmem:[%s10124_s26 + $0x90] ss:$-60 sps:$4 sm:$0x83] %v2373_v10   ;;  %v2374_v29 = vrot.slane %v2368_v39, 1  ;;  %2841 = vst [vmem:[%s10124_s26 + $0x90] sm:$0x1c] %v2825_v3  ;;  %vm2247_vm6 = vweird.f32 %v10953_v11  ;;  %v2868_v19 = vshll.u32 %v9992_v34, %v2865_v46  ;;  %v2869_v32 = vshrl.u32 %v9993_v36, %v2866_v5 }
 0x17c   : > { %v2826_v15 = vrot.slane %v2820_v31, 6  ;;  %vm2704_vm4 = vcmp.eq.s32.totalorder %v11383_v14, 0  ;;  %vm2707_vm5 = vcmp.eq.s32.totalorder %v11383_v14, 2  ;;  %v2859_v33 = vor.u32 8388608, %v2858_v61 }
 0x17d   : > { %2390 = vst [vmem:[%s10124_s26 + $0x98] ss:$-60 sps:$4 sm:$0x83] %v2374_v29   ;;  %v2325_v27 = vsub.s32 0, %v11394_v54  ;;  %v2345_v16 = vsub.s32 4, %v2321_v59  ;;  %vm2703_vm9 = vcmp.lt.s32.totalorder %v11383_v14, 2  ;;  %v2871_v4 = vshll.u32 %v9993_v36, %v2865_v46 }
 0x17e   : > { %2842 = vst [vmem:[%s10124_s26 + $0x98] sm:$0x1c] %v2826_v15  ;;  %v2872_v60 = vshrl.u32 %v9994_v38, %v2866_v5  ;;  %v2874_v55 = vshll.u32 %v9994_v38, %v2865_v46  ;;  %v2875_v47 = vshrl.u32 %v9995_v40, %v2866_v5  ;;  %v2315_v9 = vadd.s32 %v11325_v7, %v11337_v26 }
 0x17f   : > { %v9268_v24 = vmin.u32 %v2325_v27, %v11394_v54  ;;  %v11414_v35 = vshrl.u32 %v2863_v25, 5  ;;  %v2877_v8 = vshll.u32 %v9995_v40, %v2865_v46  ;;  %v2878_v43 = vshrl.u32 %v9996_v42, %v2866_v5 }
 0x180   : > { %v11418_v63 = vshll.u32 %v2859_v33, 8  ;;  %v2955_v17 = vand.u32 2147483647, %v11386_v23  ;;  %v2958_v12 = vand.u32 2139095040, %v11386_v23  ;;  %v11424_v48 = vsel %vm2261_vm14, %v2345_v16, %v2321_v59  ;;  %v9778_v20 = vpop.eup %9777 }
 0x181   : > { %v2327_v22 = vclz %v9268_v24  ;;  %v2867_v7 = vshrl.u32 %v9992_v34, %v2866_v5  ;;  %v2870_v26 = vor.u32 %v2869_v32, %v2868_v19  ;;  %v2873_v18 = vor.u32 %v2872_v60, %v2871_v4  ;;  %v9780_v30 = vpop.eup %9779 }
 0x182   : > { %v2876_v61 = vor.u32 %v2875_v47, %v2874_v55  ;;  %v2880_v45 = vshll.u32 %v9996_v42, %v2865_v46  ;;  %v2881_v13 = vshrl.u32 %v9997_v50, %v2866_v5  ;;  %v2255_v21 = vxor.u32 2147483648, %v9778_v20 }
 0x183   : > { %v9269_v49 = vadd.s32 4294967294, %v2327_v22  ;;  %v2879_v25 = vor.u32 %v2878_v43, %v2877_v8  ;;  %vm2883_vm8 = vcmp.lt.s32.totalorder %v11414_v35, 1  ;;  %v2252_v37 = vxor.u32 2147483648, %v9780_v30 }
 0x184   : > { %v2882_v57 = vor.u32 %v2881_v13, %v2880_v45  ;;  %vm2884_vm10 = vcmp.lt.s32.totalorder %v11414_v35, 2  ;;  %vm2885_vm11 = vcmp.lt.s32.totalorder %v11414_v35, 3  ;;  %v2256_v59 = vsel %vm2254_vm2, %v2255_v21, %v9780_v30 }
 0x185   : > { %vm9270_vm7 = vcmp.lt.s32.totalorder %v9269_v49, 0  ;;  %v2709_v51 = vsel %vm2707_vm5, %v2255_v21, %v9780_v30  ;;  %vm2886_vm12 = vcmp.lt.s32.totalorder %v11414_v35, 4  ;;  %v2253_v58 = vsel %vm2251_vm1, %v9778_v20, %v2252_v37 }
 0x186   : > { %v2330_v46 = vsel %vm9270_vm7, 0, %v9269_v49  ;;  %v2706_v10 = vsel %vm2704_vm4, %v9778_v20, %v2252_v37  ;;  %v2887_v39 = vsel %vm2883_vm8, %v2867_v7, %v2870_v26  ;;  %v2257_v44 = vsel %vm2250_vm3, %v2253_v58, %v2256_v59 }
 0x187   : > { %v2331_v3 = vsub.s32 32, %v2330_v46  ;;  %v2332_v31 = vshll.u32 %v11394_v54, %v2330_v46  ;;  %v2335_v5 = vsub.s32 4294967266, %v2330_v46  ;;  %v2258_v29 = vsel %vm2247_vm6, nan, %v2257_v44 }
 0x188   : > { %v2710_v15 = vsel %vm2703_vm9, %v2706_v10, %v2709_v51  ;;  %v2888_v33 = vsel %vm2886_vm12, %v2876_v61, 2102212464  ;;  %v2891_v27 = vsel %vm2883_vm8, %v2870_v26, %v2873_v18  ;;  %v2375_v16 = vrot.slane %v2258_v29, 1 }
 0x189   : > { %v2369_v62 = vcombine.high %v2258_v29, %v2258_v29  ;;  %v2333_v19 = vshrl.u32 %v2315_v9, %v2331_v3  ;;  %v2336_v32 = vadd.s32 127, %v2335_v5  ;;  %v2711_v54 = vsel %vm2247_vm6, nan, %v2710_v15 }
 0x18a   : > { %v2892_v4 = vsel %vm2886_vm12, %v2879_v25, 920167782  ;;  %v2895_v14 = vsel %vm2883_vm8, %v2873_v18, %v2876_v61  ;;  %v2896_v60 = vsel %vm2886_vm12, %v2882_v57, 1326507024  ;;  %v2827_v8 = vrot.slane %v2711_v54, 6 }
 0x18b   : > { %2391 = vst [vmem:[%s10124_s26 + $0xa0] ss:$-60 sps:$4 sm:$0x83] %v2375_v16   ;;  %v2376_v55 = vrot.slane %v2369_v62, 1  ;;  %v2334_v47 = vor.u32 %v2333_v19, %v2332_v31  ;;  %v2337_v24 = vshll.u32 %v2336_v32, 23  ;;  %v2821_v9 = vcombine.high %v2711_v54, %v2711_v54 }
 0x18c   : > { %v2889_v11 = vsel %vm2885_vm11, %v2873_v18, %v2888_v33  ;;  %v2893_v43 = vsel %vm2885_vm11, %v2876_v61, %v2892_v4  ;;  %v2897_v22 = vsel %vm2885_vm11, %v2879_v25, %v2896_v60  ;;  %2843 = vst [vmem:[%s10124_s26 + $0xa0] sm:$0x1c] %v2827_v8  ;;  %v2959_v21 = vshrl.u32 %v2958_v12, 23 }
 0x18d   : > { %2392 = vst [vmem:[%s10124_s26 + $0xa8] ss:$-60 sps:$4 sm:$0x83] %v2376_v55   ;;  %v2338_v7 = vor.u32 4788187, %v2337_v24  ;;  %v2341_v26 = vcvt.s32.f32 %v2334_v47  ;;  %v2894_v20 = vsel %vm2884_vm10, %v2891_v27, %v2893_v43  ;;  %v2898_v45 = vsel %vm2884_vm10, %v2895_v14, %v2897_v22 }
 0x18e   : > { %v2828_v13 = vrot.slane %v2821_v9, 6  ;;  %v11476_v18 = vmul.u32.u64.low %v11418_v63, %v2898_v45  ;;  %v11477_v30 = vmul.u32.u64.high %v11418_v63, %v2898_v45, %v11476_v18  ;;  %v2890_v49 = vsel %vm2884_vm10, %v2887_v39, %v2889_v11 }
 0x18f   : > { %v2339_v61 = vand.u32 2147483647, %v2338_v7  ;;  %v11482_v25 = vmul.u32.u64.low %v11418_v63, %v2894_v20  ;;  %v11483_v37 = vmul.u32.u64.high %v11418_v63, %v2894_v20, %v11482_v25  ;;  %vm11488_vm13 = vcmp.le.f32.partialorder %v2259_v53, 0.7853982 }
 0x190   : > { %2844 = vst [vmem:[%s10124_s26 + $0xa8] sm:$0x1c] %v2828_v13  ;;  %v9291_v59 = vadd.s32 4294967169, %v2959_v21  ;;  %v2348_v12 = vsel %vm11488_vm13, 0, %v11424_v48  ;;  %v2906_v35 = vmul.u32 %v11418_v63, %v2890_v49  ;;  %v3062_v46 = vand.u32 2139095040, %v11389_v28 }
 0x191   : > { %v2342_v51 = vmul.f32 %v2341_v26, %v2339_v61  ;;  %vm2908_vm15 = vc.u32 %v11477_v30, %v11482_v25  ;;  %v2909_v53 = vadd.s32 1, %v11483_v37  ;;  %v2962_v39 = vand.u32 8388607, %v2955_v17 }
 0x192   : > { %v2965_v58 = vadd.s32 1, %v9291_v59  ;;  %v2352_v3 = vadd.s32 3, %v2348_v12  ;;  %v3063_v15 = vshrl.u32 %v3062_v46, 23  ;;  %v11509_v33 = vand.u32 3, %v2348_v12 }
 0x193   : > { %v2343_v10 = vxor.u32 2147483648, %v2342_v51  ;;  %v2910_v48 = vsel %vm2908_vm15, %v2909_v53, %v11483_v37  ;;  %v2963_v27 = vor.u32 8388608, %v2962_v39  ;;  %vm2351_vm5 = vweird.f32 %v11063_v41 }
 0x194   : > { %vm2966_vm0 = vcmp.gt.s32.totalorder %v2965_v58, 0  ;;  %v2911_v5 = vadd.s32 %v2910_v48, %v2906_v35  ;;  %v9295_v8 = vadd.s32 4294967169, %v3063_v15  ;;  %v2353_v45 = vand.u32 3, %v2352_v3 }
 0x195   : > { %v2344_v44 = vsel %vm2261_vm14, %v2343_v10, %v2342_v51  ;;  %v2967_v63 = vsel %vm2966_vm0, %v2965_v58, 0  ;;  %vm2806_vm1 = vcmp.lt.s32.totalorder %v11509_v33, 2  ;;  %vm2807_vm2 = vcmp.eq.s32.totalorder %v11509_v33, 0 }
 0x196   : > { %v2347_v31 = vsel %vm11488_vm13, %v11063_v41, %v2344_v44  ;;  %v2969_v29 = vand.u32 31, %v2967_v63  ;;  %v2968_v16 = vshrl.u32 %v2967_v63, 5  ;;  %v2912_v62 = vadd.s32 536870912, %v2911_v5 }
 0x197   : > { %9781 = vcosq.f32 %v2347_v31  ;;  %v11531_v57 = vshll.u32 %v2963_v27, 8  ;;  %v3069_v35 = vadd.s32 1, %v9295_v8  ;;  %vm2810_vm9 = vcmp.eq.s32.totalorder %v11509_v33, 2 }
 0x198   : > { %9783 = vsinq.f32 %v2347_v31  ;;  %v2970_v19 = vsub.s32 32, %v2969_v29  ;;  %v2972_v32 = vshll.u32 %v9992_v34, %v2969_v29  ;;  %v2975_v54 = vshll.u32 %v9993_v36, %v2969_v29 }
 0x199   : > { %v2978_v4 = vshll.u32 %v9994_v38, %v2969_v29  ;;  %v2981_v14 = vshll.u32 %v9995_v40, %v2969_v29  ;;  %v2984_v60 = vshll.u32 %v9996_v42, %v2969_v29  ;;  %v11516_v55 = vshrl.u32 %v2912_v62, 30 }
 0x19a   : > { %v2973_v47 = vshrl.u32 %v9993_v36, %v2970_v19  ;;  %v2976_v24 = vshrl.u32 %v9994_v38, %v2970_v19  ;;  %v2971_v9 = vshrl.u32 %v9992_v34, %v2970_v19  ;;  %v2979_v11 = vshrl.u32 %v9995_v40, %v2970_v19 }
 0x19b   : > { %v2982_v43 = vshrl.u32 %v9996_v42, %v2970_v19  ;;  %v2985_v22 = vshrl.u32 %v9997_v50, %v2970_v19  ;;  %v2914_v7 = vshll.u32 %v11516_v55, 30  ;;  %vm2987_vm14 = vcmp.lt.s32.totalorder %v2968_v16, 1 }
 0x19c   : > { %v2974_v26 = vor.u32 %v2973_v47, %v2972_v32  ;;  %v2977_v20 = vor.u32 %v2976_v24, %v2975_v54  ;;  %v2980_v13 = vor.u32 %v2979_v11, %v2978_v4  ;;  %vm2989_vm3 = vcmp.lt.s32.totalorder %v2968_v16, 3 }
 0x19d   : > { %v2983_v18 = vor.u32 %v2982_v43, %v2981_v14  ;;  %v2986_v21 = vor.u32 %v2985_v22, %v2984_v60  ;;  %v11527_v61 = vsub.s32 %v2911_v5, %v2914_v7  ;;  %vm2990_vm4 = vcmp.lt.s32.totalorder %v2968_v16, 4 }
 0x19e   : > { %vm2988_vm6 = vcmp.lt.s32.totalorder %v2968_v16, 2  ;;  %v2992_v49 = vsel %vm2990_vm4, %v2980_v13, 2102212464  ;;  %v2995_v37 = vsel %vm2987_vm14, %v2974_v26, %v2977_v20  ;;  %v2991_v51 = vsel %vm2987_vm14, %v2971_v9, %v2974_v26 }
 0x19f   : > { %v2917_v59 = vsub.s32 0, %v11527_v61  ;;  %v2996_v12 = vsel %vm2990_vm4, %v2983_v18, 920167782  ;;  %v2993_v58 = vsel %vm2989_vm3, %v2977_v20, %v2992_v49  ;;  %v2999_v10 = vsel %vm2987_vm14, %v2977_v20, %v2980_v13 }
 0x1a0   : > { %v2997_v46 = vsel %vm2989_vm3, %v2980_v13, %v2996_v12  ;;  %v3000_v53 = vsel %vm2990_vm4, %v2986_v21, 1326507024  ;;  %vm2354_vm8 = vcmp.lt.s32.totalorder %v2353_v45, 2  ;;  %vm2355_vm10 = vcmp.eq.s32.totalorder %v2353_v45, 0 }
 0x1a1   : > { %v9288_v39 = vmin.u32 %v2917_v59, %v11527_v61  ;;  %v2998_v44 = vsel %vm2988_vm6, %v2995_v37, %v2997_v46  ;;  %v3001_v3 = vsel %vm2989_vm3, %v2983_v18, %v3000_v53  ;;  %vm2358_vm11 = vcmp.eq.s32.totalorder %v2353_v45, 2 }
 0x1a2   : > { %v3002_v48 = vsel %vm2988_vm6, %v2999_v10, %v3001_v3  ;;  %v11544_v63 = vmul.u32.u64.low %v11531_v57, %v2998_v44  ;;  %v11545_v31 = vmul.u32.u64.high %v11531_v57, %v2998_v44, %v11544_v63  ;;  %v2994_v15 = vsel %vm2988_vm6, %v2991_v51, %v2993_v58 }
 0x1a3   : > { %v2919_v29 = vclz %v9288_v39  ;;  %v11550_v19 = vmul.u32.u64.low %v11531_v57, %v3002_v48  ;;  %v11551_v32 = vmul.u32.u64.high %v11531_v57, %v3002_v48, %v11550_v19  ;;  %vm3070_vm7 = vcmp.gt.s32.totalorder %v3069_v35, 0 }
 0x1a4   : > { %v9782_v5 = vpop.eup %9781  ;;  %v3059_v14 = vand.u32 2147483647, %v11389_v28  ;;  %v3071_v60 = vsel %vm3070_vm7, %v3069_v35, 0  ;;  %v2907_v16 = vadd.s32 %v11482_v25, %v11477_v30  ;;  %v3010_v8 = vmul.u32 %v11531_v57, %v2994_v15 }
 0x1a5   : > { %v9784_v27 = vpop.eup %9783  ;;  %v2359_v62 = vxor.u32 2147483648, %v9782_v5  ;;  %v9289_v4 = vadd.s32 4294967294, %v2919_v29  ;;  %v3073_v43 = vand.u32 31, %v3071_v60  ;;  %v3013_v20 = vadd.s32 1, %v11545_v31 }
 0x1a6   : > { %v2356_v54 = vxor.u32 2147483648, %v9784_v27  ;;  %vm3012_vm13 = vc.u32 %v11551_v32, %v11544_v63  ;;  %v11578_v10 = vshrl.u32 %v3071_v60, 5  ;;  %vm2853_vm15 = vcmp.lt.s32.totalorder %v11250_v56, 0 }
 0x1a7   : > { %v2360_v47 = vsel %vm2358_vm11, %v2359_v62, %v9784_v27  ;;  %v2812_v24 = vsel %vm2810_vm9, %v2359_v62, %v9784_v27  ;;  %vm9290_vm12 = vcmp.lt.s32.totalorder %v9289_v4, 0  ;;  %v3074_v59 = vsub.s32 32, %v3073_v43 }
 0x1a8   : > { %v2357_v9 = vsel %vm2355_vm10, %v9782_v5, %v2356_v54  ;;  %v2809_v11 = vsel %vm2807_vm2, %v9782_v5, %v2356_v54  ;;  %v2922_v26 = vsel %vm9290_vm12, 0, %v9289_v4  ;;  %v3014_v12 = vsel %vm3012_vm13, %v3013_v20, %v11545_v31 }
 0x1a9   : > { %v2361_v22 = vsel %vm2354_vm8, %v2357_v9, %v2360_v47  ;;  %v2813_v7 = vsel %vm2806_vm1, %v2809_v11, %v2812_v24  ;;  %v2923_v13 = vsub.s32 32, %v2922_v26  ;;  %v2924_v18 = vshll.u32 %v11527_v61, %v2922_v26 }
 0x1aa   : > { %v2362_v30 = vsel %vm2351_vm5, nan, %v2361_v22  ;;  %v2814_v25 = vsel %vm2351_vm5, nan, %v2813_v7  ;;  %v2927_v57 = vsub.s32 4294967266, %v2922_v26  ;;  %v3066_v61 = vand.u32 8388607, %v3059_v14 }
 0x1ab   : > { %v2377_v21 = vrot.slane %v2362_v30, 1  ;;  %v2370_v45 = vcombine.high %v2362_v30, %v2362_v30  ;;  %v2829_v49 = vrot.slane %v2814_v25, 6  ;;  %v2822_v33 = vcombine.high %v2814_v25, %v2814_v25 }
 0x1ac   : > { %v2925_v37 = vshrl.u32 %v2907_v16, %v2923_v13  ;;  %v2928_v58 = vadd.s32 127, %v2927_v57  ;;  %v3015_v46 = vadd.s32 %v3014_v12, %v3010_v8  ;;  %v3076_v53 = vshll.u32 %v9992_v34, %v3073_v43 }
 0x1ad   : > { %2393 = vst [vmem:[%s10124_s26 + $0xb0] ss:$-60 sps:$4 sm:$0x83] %v2377_v21   ;;  %v2378_v51 = vrot.slane %v2370_v45, 1  ;;  %2845 = vst [vmem:[%s10124_s26 + $0xb0] sm:$0x1c] %v2829_v49  ;;  %v3077_v39 = vshrl.u32 %v9993_v36, %v3074_v59  ;;  %v3079_v44 = vshll.u32 %v9993_v36, %v3073_v43  ;;  %v3080_v3 = vshrl.u32 %v9994_v38, %v3074_v59 }
 0x1ae   : > { %v2830_v41 = vrot.slane %v2822_v33, 6  ;;  %v2926_v35 = vor.u32 %v2925_v37, %v2924_v18  ;;  %v2929_v48 = vshll.u32 %v2928_v58, 23  ;;  %v3016_v31 = vadd.s32 536870912, %v3015_v46 }
 0x1af   : > { %2394 = vst [vmem:[%s10124_s26 + $0xb8] ss:$-60 sps:$4 sm:$0x83] %v2378_v51   ;;  %v3082_v5 = vshll.u32 %v9994_v38, %v3073_v43  ;;  %v3083_v29 = vshrl.u32 %v9995_v40, %v3074_v59  ;;  %v2937_v15 = vsub.s32 4, %v11516_v55  ;;  %v3067_v27 = vor.u32 8388608, %v3066_v61 }
 0x1b0   : > { %2846 = vst [vmem:[%s10124_s26 + $0xb8] sm:$0x1c] %v2830_v41  ;;  %v3085_v62 = vshll.u32 %v9995_v40, %v3073_v43  ;;  %v3086_v19 = vshrl.u32 %v9996_v42, %v3074_v59  ;;  %v2930_v54 = vor.u32 4788187, %v2929_v48  ;;  %v2933_v4 = vcvt.s32.f32 %v2926_v35 }
 0x1b1   : > { %v3017_v60 = vshrl.u32 %v3016_v31, 30  ;;  %v3088_v47 = vshll.u32 %v9996_v42, %v3073_v43  ;;  %v3078_v24 = vor.u32 %v3077_v39, %v3076_v53  ;;  %v3081_v16 = vor.u32 %v3080_v3, %v3079_v44 }
 0x1b2   : > { %v3087_v8 = vor.u32 %v3086_v19, %v3085_v62  ;;  %v3089_v9 = vshrl.u32 %v9997_v50, %v3074_v59  ;;  %v2931_v11 = vand.u32 2147483647, %v2930_v54  ;;  %v3084_v7 = vor.u32 %v3083_v29, %v3082_v5 }
 0x1b3   : > { %v3018_v22 = vshll.u32 %v3017_v60, 30  ;;  %vm3091_vm0 = vcmp.lt.s32.totalorder %v11578_v10, 1  ;;  %vm11597_vm14 = vcmp.le.f32.partialorder %v2851_v52, 0.7853982  ;;  %v3075_v20 = vshrl.u32 %v9992_v34, %v3074_v59 }
 0x1b4   : > { %v3090_v30 = vor.u32 %v3089_v9, %v3088_v47  ;;  %vm3094_vm1 = vcmp.lt.s32.totalorder %v11578_v10, 4  ;;  %v2934_v43 = vmul.f32 %v2933_v4, %v2931_v11  ;;  %vm3093_vm2 = vcmp.lt.s32.totalorder %v11578_v10, 3 }
 0x1b5   : > { %v3019_v25 = vsub.s32 %v3015_v46, %v3018_v22  ;;  %v3096_v13 = vsel %vm3094_vm1, %v3084_v7, 2102212464  ;;  %vm3092_vm3 = vcmp.lt.s32.totalorder %v11578_v10, 2  ;;  %v3099_v52 = vsel %vm3091_vm0, %v3078_v24, %v3081_v16 }
 0x1b6   : > { %v3100_v18 = vsel %vm3094_vm1, %v3087_v8, 920167782  ;;  %v3107_v21 = vshll.u32 %v3067_v27, 8  ;;  %v2935_v45 = vxor.u32 2147483648, %v2934_v43  ;;  %v2938_v49 = vsel %vm2853_vm15, %v2937_v15, %v11516_v55 }
 0x1b7   : > { %v3021_v33 = vsub.s32 0, %v3019_v25  ;;  %v11615_v37 = vmul.f32 8.0, %v10138_v6  ;;  %v3095_v57 = vsel %vm3091_vm0, %v3075_v20, %v3078_v24  ;;  %v3097_v59 = vsel %vm3093_vm2, %v3081_v16, %v3096_v13 }
 0x1b8   : > { %v3101_v51 = vsel %vm3093_vm2, %v3084_v7, %v3100_v18  ;;  %v3104_v41 = vsel %vm3094_vm1, %v3090_v30, 1326507024  ;;  %v2936_v12 = vsel %vm2853_vm15, %v2935_v45, %v2934_v43  ;;  %v3103_v35 = vsel %vm3091_vm0, %v3081_v16, %v3084_v7 }
 0x1b9   : > { %v9292_v55 = vmin.u32 %v3021_v33, %v3019_v25  ;;  %v3102_v61 = vsel %vm3092_vm3, %v3099_v52, %v3101_v51  ;;  %v2939_v58 = vsel %vm11597_vm14, %v11250_v56, %v2936_v12  ;;  %v3105_v46 = vsel %vm3093_vm2, %v3087_v8, %v3104_v41 }
 0x1ba   : > { %v11636_v53 = vmul.u32.u64.low %v3107_v21, %v3102_v61  ;;  %v11637_v39 = vmul.u32.u64.high %v3107_v21, %v3102_v61, %v11636_v53  ;;  %v2940_v44 = vsel %vm11597_vm14, 0, %v2938_v49  ;;  %9785 = vcosq.f32 %v2939_v58 }
 0x1bb   : > { %v3023_v3 = vclz %v9292_v55  ;;  %v3041_v48 = vsub.s32 4, %v3017_v60  ;;  %9787 = vsinq.f32 %v2939_v58  ;;  %v3098_v31 = vsel %vm3092_vm3, %v3095_v57, %v3097_v59 }
 0x1bc   : > { %v3106_v5 = vsel %vm3092_vm3, %v3103_v35, %v3105_v46  ;;  %v3166_v62 = vand.u32 2139095040, %v11615_v37  ;;  %v2944_v19 = vadd.s32 3, %v2940_v44  ;;  %vm2957_vm4 = vcmp.lt.s32.totalorder %v11386_v23, 0 }
 0x1bd   : > { %v9293_v29 = vadd.s32 4294967294, %v3023_v3  ;;  %v11646_v15 = vmul.u32.u64.low %v3107_v21, %v3106_v5  ;;  %v11647_v27 = vmul.u32.u64.high %v3107_v21, %v3106_v5, %v11646_v15  ;;  %v3011_v54 = vadd.s32 %v11544_v63, %v11551_v32 }
 0x1be   : > { %v3042_v4 = vsel %vm2957_vm4, %v3041_v48, %v3017_v60  ;;  %v3117_v47 = vadd.s32 1, %v11637_v39  ;;  %v3167_v10 = vshrl.u32 %v3166_v62, 23  ;;  %v3114_v16 = vmul.u32 %v3107_v21, %v3098_v31 }
 0x1bf   : > { %vm9294_vm5 = vcmp.lt.s32.totalorder %v9293_v29, 0  ;;  %v3163_v8 = vand.u32 2147483647, %v11615_v37  ;;  %vm11659_vm6 = vcmp.le.f32.partialorder %v2955_v17, 0.7853982  ;;  %v2945_v32 = vand.u32 3, %v2944_v19 }
 0x1c0   : > { %v3026_v24 = vsel %vm9294_vm5, 0, %v9293_v29  ;;  %v3044_v60 = vsel %vm11659_vm6, 0, %v3042_v4  ;;  %vm3116_vm9 = vc.u32 %v11647_v27, %v11636_v53  ;;  %v9299_v7 = vadd.s32 4294967169, %v3167_v10 }
 0x1c1   : > { %v3027_v11 = vsub.s32 32, %v3026_v24  ;;  %v3028_v22 = vshll.u32 %v3019_v25, %v3026_v24  ;;  %v3031_v63 = vsub.s32 4294967266, %v3026_v24  ;;  %v3118_v30 = vsel %vm3116_vm9, %v3117_v47, %v11637_v39 }
 0x1c2   : > { %v3119_v43 = vadd.s32 %v3118_v30, %v3114_v16  ;;  %v3170_v17 = vand.u32 8388607, %v3163_v8  ;;  %v3173_v13 = vadd.s32 1, %v9299_v7  ;;  %vm2943_vm8 = vweird.f32 %v11250_v56 }
 0x1c3   : > { %v3029_v26 = vshrl.u32 %v3011_v54, %v3027_v11  ;;  %v3032_v20 = vadd.s32 127, %v3031_v63  ;;  %v3048_v18 = vadd.s32 3, %v3044_v60  ;;  %vm2946_vm10 = vcmp.lt.s32.totalorder %v2945_v32, 2 }
 0x1c4   : > { %v3120_v21 = vadd.s32 536870912, %v3119_v43  ;;  %vm3174_vm11 = vcmp.gt.s32.totalorder %v3173_v13, 0  ;;  %v11672_v45 = vmul.f32 16.0, %v10118_v0  ;;  %vm2947_vm7 = vcmp.eq.s32.totalorder %v2945_v32, 0 }
 0x1c5   : > { %v3030_v25 = vor.u32 %v3029_v26, %v3028_v22  ;;  %v3033_v52 = vshll.u32 %v3032_v20, 23  ;;  %v3175_v57 = vsel %vm3174_vm11, %v3173_v13, 0  ;;  %vm2950_vm12 = vcmp.eq.s32.totalorder %v2945_v32, 2 }
 0x1c6   : > { %v11676_v51 = vshrl.u32 %v3120_v21, 30  ;;  %v3171_v41 = vor.u32 8388608, %v3170_v17  ;;  %v3177_v12 = vand.u32 31, %v3175_v57  ;;  %v11681_v58 = vand.u32 3, %v3048_v18 }
 0x1c7   : > { %v3034_v49 = vor.u32 4788187, %v3033_v52  ;;  %v3037_v33 = vcvt.s32.f32 %v3030_v25  ;;  %v11674_v59 = vpop.eup %9785  ;;  %v11683_v46 = vand.u32 3, %v2940_v44  ;;  %v11687_v31 = vand.u32 3, %v3044_v60 }
 0x1c8   : > { %v11678_v55 = vpop.eup %9787  ;;  %v2951_v61 = vxor.u32 2147483648, %v11674_v59  ;;  %v3122_v3 = vshll.u32 %v11676_v51, 30  ;;  %v3178_v48 = vsub.s32 32, %v3177_v12  ;;  %v11694_v15 = vadd.s32 %v11636_v53, %v11647_v27 }
 0x1c9   : > { %v3035_v35 = vand.u32 2147483647, %v3034_v49  ;;  %v2948_v39 = vxor.u32 2147483648, %v11678_v55  ;;  %v3735_v62 = vand.u32 2147483647, %v11672_v45  ;;  %v11703_v54 = vshll.u32 %v3171_v41, 8 }
 0x1ca   : > { %v2952_v5 = vsel %vm2950_vm12, %v2951_v61, %v11678_v55  ;;  %v11701_v19 = vsub.s32 %v3119_v43, %v3122_v3  ;;  %v3738_v4 = vand.u32 2139095040, %v11672_v45  ;;  %v11707_v24 = vshrl.u32 %v3175_v57, 5 }
 0x1cb   : > { %v3038_v29 = vmul.f32 %v3037_v33, %v3035_v35  ;;  %v2949_v44 = vsel %vm2947_vm7, %v11674_v59, %v2948_v39  ;;  %v3180_v53 = vshll.u32 %v9992_v34, %v3177_v12  ;;  %v3181_v11 = vshrl.u32 %v9993_v36, %v3178_v48 }
 0x1cc   : > { %v2953_v47 = vsel %vm2946_vm10, %v2949_v44, %v2952_v5  ;;  %v3125_v16 = vsub.s32 0, %v11701_v19  ;;  %v3183_v22 = vshll.u32 %v9993_v36, %v3177_v12  ;;  %vm3061_vm13 = vcmp.lt.s32.totalorder %v11389_v28, 0 }
 0x1cd   : > { %v3039_v10 = vxor.u32 2147483648, %v3038_v29  ;;  %v2954_v27 = vsel %vm2943_vm8, nan, %v2953_v47  ;;  %v3184_v7 = vshrl.u32 %v9994_v38, %v3178_v48  ;;  %v3145_v30 = vsub.s32 4, %v11676_v51 }
 0x1ce   : > { %v3275_v63 = vrot.slane %v2954_v27, 3  ;;  %v3271_v60 = vcombine.high %v2954_v27, %v2954_v27  ;;  %v9296_v20 = vmin.u32 %v3125_v16, %v11701_v19  ;;  %vm3394_vm15 = vcmp.eq.s32.totalorder %v11683_v46, 0 }
 0x1cf   : > { %v3040_v32 = vsel %vm2957_vm4, %v3039_v10, %v3038_v29  ;;  %v11725_v43 = vshrl.u32 %v3738_v4, 23  ;;  %v3186_v13 = vshll.u32 %v9994_v38, %v3177_v12  ;;  %v3187_v25 = vshrl.u32 %v9995_v40, %v3178_v48 }
 0x1d0   : > { %v3043_v26 = vsel %vm11659_vm6, %v11386_v23, %v3040_v32  ;;  %3291 = vst [vmem:[%s10124_s26 + $0x80] sm:$0xe0] %v3275_v63  ;;  %v3276_v17 = vrot.slane %v3271_v60, 3  ;;  %v3127_v52 = vclz %v9296_v20  ;;  %v3179_v9 = vshrl.u32 %v9992_v34, %v3178_v48 }
 0x1d1   : > { %9789 = vcosq.f32 %v3043_v26  ;;  %v3182_v18 = vor.u32 %v3181_v11, %v3180_v53  ;;  %vm3397_vm0 = vcmp.eq.s32.totalorder %v11683_v46, 2  ;;  %v3185_v21 = vor.u32 %v3184_v7, %v3183_v22 }
 0x1d2   : > { %9791 = vsinq.f32 %v3043_v26  ;;  %3292 = vst [vmem:[%s10124_s26 + $0x88] sm:$0xe0] %v3276_v17  ;;  %v3188_v49 = vor.u32 %v3187_v25, %v3186_v13  ;;  %v3189_v33 = vshll.u32 %v9995_v40, %v3177_v12  ;;  %v3190_v57 = vshrl.u32 %v9996_v42, %v3178_v48 }
 0x1d3   : > { %vm3393_vm14 = vcmp.lt.s32.totalorder %v11683_v46, 2  ;;  %v9297_v41 = vadd.s32 4294967294, %v3127_v52  ;;  %v3192_v35 = vshll.u32 %v9996_v42, %v3177_v12  ;;  %v3193_v3 = vshrl.u32 %v9997_v50, %v3178_v48 }
 0x1d4   : > { %vm3195_vm1 = vcmp.lt.s32.totalorder %v11707_v24, 1  ;;  %v3191_v5 = vor.u32 %v3190_v57, %v3189_v33  ;;  %vm3196_vm2 = vcmp.lt.s32.totalorder %v11707_v24, 2  ;;  %vm3197_vm3 = vcmp.lt.s32.totalorder %v11707_v24, 3 }
 0x1d5   : > { %vm3198_vm4 = vcmp.lt.s32.totalorder %v11707_v24, 4  ;;  %vm3054_vm5 = vcmp.eq.s32.totalorder %v11681_v58, 2  ;;  %vm11745_vm6 = vcmp.le.f32.partialorder %v3059_v14, 0.7853982  ;;  %vm9298_vm9 = vcmp.lt.s32.totalorder %v9297_v41, 0 }
 0x1d6   : > { %v3194_v12 = vor.u32 %v3193_v3, %v3192_v35  ;;  %v3199_v48 = vsel %vm3195_vm1, %v3179_v9, %v3182_v18  ;;  %v3200_v44 = vsel %vm3198_vm4, %v3188_v49, 2102212464  ;;  %vm3051_vm10 = vcmp.eq.s32.totalorder %v11681_v58, 0 }
 0x1d7   : > { %v3130_v4 = vsel %vm9298_vm9, 0, %v9297_v41  ;;  %v3201_v47 = vsel %vm3197_vm3, %v3185_v21, %v3200_v44  ;;  %v3203_v14 = vsel %vm3195_vm1, %v3182_v18, %v3185_v21  ;;  %v3204_v10 = vsel %vm3198_vm4, %v3191_v5, 920167782 }
 0x1d8   : > { %vm3050_vm11 = vcmp.lt.s32.totalorder %v11681_v58, 2  ;;  %v3131_v53 = vsub.s32 32, %v3130_v4  ;;  %v3132_v27 = vshll.u32 %v11701_v19, %v3130_v4  ;;  %v3135_v16 = vsub.s32 4294967266, %v3130_v4 }
 0x1d9   : > { %v3146_v11 = vsel %vm3061_vm13, %v3145_v30, %v11676_v51  ;;  %vm3047_vm7 = vweird.f32 %v11386_v23  ;;  %v3202_v22 = vsel %vm3196_vm2, %v3199_v48, %v3201_v47  ;;  %v3205_v63 = vsel %vm3197_vm3, %v3188_v49, %v3204_v10 }
 0x1da   : > { %v3207_v60 = vsel %vm3195_vm1, %v3185_v21, %v3188_v49  ;;  %v3208_v32 = vsel %vm3198_vm4, %v3194_v12, 1326507024  ;;  %v3133_v19 = vshrl.u32 %v11694_v15, %v3131_v53  ;;  %v3136_v7 = vadd.s32 127, %v3135_v16 }
 0x1db   : > { %v3206_v51 = vsel %vm3196_vm2, %v3203_v14, %v3205_v63  ;;  %v3209_v26 = vsel %vm3197_vm3, %v3191_v5, %v3208_v32  ;;  %v3396_v15 = vsel %vm3394_vm15, %v11674_v59, %v2948_v39  ;;  %v3399_v24 = vsel %vm3397_vm0, %v2951_v61, %v11678_v55 }
 0x1dc   : > { %v3210_v20 = vsel %vm3196_vm2, %v3207_v60, %v3209_v26  ;;  %v11782_v30 = vmul.u32.u64.low %v11703_v54, %v3206_v51  ;;  %v11783_v17 = vmul.u32.u64.high %v11703_v54, %v3206_v51, %v11782_v30  ;;  %v3134_v13 = vor.u32 %v3133_v19, %v3132_v27 }
 0x1dd   : > { %v3137_v25 = vshll.u32 %v3136_v7, 23  ;;  %v11792_v52 = vmul.u32.u64.low %v11703_v54, %v3210_v20  ;;  %v11793_v9 = vmul.u32.u64.high %v11703_v54, %v3210_v20, %v11792_v52  ;;  %vm3496_vm12 = vcmp.lt.s32.totalorder %v11687_v31, 2 }
 0x1de   : > { %vm3497_vm1 = vcmp.eq.s32.totalorder %v11687_v31, 0  ;;  %vm3500_vm2 = vcmp.eq.s32.totalorder %v11687_v31, 2  ;;  %v9790_v39 = vpop.eup %9789  ;;  %v3141_v21 = vcvt.s32.f32 %v3134_v13  ;;  %v3218_v49 = vmul.u32 %v11703_v54, %v3202_v22 }
 0x1df   : > { %v3138_v18 = vor.u32 4788187, %v3137_v25  ;;  %v3400_v33 = vsel %vm3393_vm14, %v3396_v15, %v3399_v24  ;;  %v9792_v57 = vpop.eup %9791  ;;  %v3055_v59 = vxor.u32 2147483648, %v9790_v39  ;;  %v3148_v55 = vsel %vm11745_vm6, 0, %v3146_v11 }
 0x1e0   : > { %v3221_v61 = vadd.s32 1, %v11783_v17  ;;  %v3401_v41 = vsel %vm2943_vm8, nan, %v3400_v33  ;;  %v3052_v35 = vxor.u32 2147483648, %v9792_v57  ;;  %vm3220_vm15 = vc.u32 %v11793_v9, %v11782_v30 }
 0x1e1   : > { %v3139_v3 = vand.u32 2147483647, %v3138_v18  ;;  %3723 = vst [vmem:[%s10124_s26 + $0xc0] sm:$0x7] %v3401_v41  ;;  %v9319_v46 = vadd.s32 4294967169, %v11725_v43  ;;  %v3056_v54 = vsel %vm3054_vm5, %v3055_v59, %v9792_v57  ;;  %v3715_v12 = vcombine.high %v3401_v41, %v3401_v41 }
 0x1e2   : > { %v3222_v5 = vsel %vm3220_vm15, %v3221_v61, %v11783_v17  ;;  %v3502_v48 = vsel %vm3500_vm2, %v3055_v59, %v9792_v57  ;;  %v3053_v56 = vsel %vm3051_vm10, %v9790_v39, %v3052_v35  ;;  %v3499_v47 = vsel %vm3497_vm1, %v9790_v39, %v3052_v35 }
 0x1e3   : > { %v3142_v44 = vmul.f32 %v3141_v21, %v3139_v3  ;;  %v3223_v4 = vadd.s32 %v3222_v5, %v3218_v49  ;;  %v3057_v43 = vsel %vm3050_vm11, %v3053_v56, %v3056_v54  ;;  %v3152_v14 = vadd.s32 3, %v3148_v55  ;;  %3724 = vst [vmem:[%s10124_s26 + $0xc8] sm:$0x7] %v3715_v12 }
 0x1e4   : > { %v3503_v10 = vsel %vm3496_vm12, %v3499_v47, %v3502_v48  ;;  %v3742_v53 = vand.u32 8388607, %v3735_v62  ;;  %v3058_v27 = vsel %vm3047_vm7, nan, %v3057_v43  ;;  %v3745_v32 = vadd.s32 1, %v9319_v46 }
 0x1e5   : > { %v3143_v16 = vxor.u32 2147483648, %v3142_v44  ;;  %v3224_v11 = vadd.s32 536870912, %v3223_v4  ;;  %v3504_v22 = vsel %vm3047_vm7, nan, %v3503_v10  ;;  %v3277_v58 = vrot.slane %v3058_v27, 3 }
 0x1e6   : > { %v3272_v63 = vcombine.high %v3058_v27, %v3058_v27  ;;  %v3716_v60 = vcombine.high %v3504_v22, %v3504_v22  ;;  %3725 = vst [vmem:[%s10124_s26 + $0xd0] sm:$0x7] %v3504_v22  ;;  %vm3746_vm8 = vcmp.gt.s32.totalorder %v3745_v32, 0  ;;  %v11844_v23 = vmul.f32 16.0, %v10120_v1 }
 0x1e7   : > { %v3144_v31 = vsel %vm3061_vm13, %v3143_v16, %v3142_v44  ;;  %v3225_v19 = vshrl.u32 %v3224_v11, 30  ;;  %3293 = vst [vmem:[%s10124_s26 + $0x90] sm:$0xe0] %v3277_v58  ;;  %v3747_v20 = vsel %vm3746_vm8, %v3745_v32, 0  ;;  %v11847_v17 = vand.u32 3, %v3152_v14 }
 0x1e8   : > { %v3278_v7 = vrot.slane %v3272_v63, 3  ;;  %v3147_v51 = vsel %vm11745_vm6, %v11389_v28, %v3144_v31  ;;  %3726 = vst [vmem:[%s10124_s26 + $0xd8] sm:$0x7] %v3716_v60  ;;  %v3743_v15 = vor.u32 8388608, %v3742_v53  ;;  %v3749_v13 = vand.u32 31, %v3747_v20 }
 0x1e9   : > { %9793 = vcosq.f32 %v3147_v51  ;;  %v3226_v26 = vshll.u32 %v3225_v19, 30  ;;  %vm3165_vm13 = vcmp.lt.s32.totalorder %v11615_v37, 0  ;;  %v11852_v29 = vand.u32 3, %v3148_v55 }
 0x1ea   : > { %3294 = vst [vmem:[%s10124_s26 + $0x98] sm:$0xe0] %v3278_v7  ;;  %9795 = vsinq.f32 %v3147_v51  ;;  %v3750_v52 = vsub.s32 32, %v3749_v13  ;;  %v3842_v24 = vand.u32 2139095040, %v11844_v23  ;;  %v3752_v18 = vshll.u32 %v9992_v34, %v3749_v13 }
 0x1eb   : > { %v11849_v25 = vsub.s32 %v3223_v4, %v3226_v26  ;;  %v3755_v21 = vshll.u32 %v9993_v36, %v3749_v13  ;;  %v3758_v49 = vshll.u32 %v9994_v38, %v3749_v13  ;;  %vm3158_vm0 = vcmp.eq.s32.totalorder %v11847_v17, 2 }
 0x1ec   : > { %v3753_v33 = vshrl.u32 %v9993_v36, %v3750_v52  ;;  %v3756_v57 = vshrl.u32 %v9994_v38, %v3750_v52  ;;  %v3759_v59 = vshrl.u32 %v9995_v40, %v3750_v52  ;;  %v11863_v55 = vshll.u32 %v3743_v15, 8 }
 0x1ed   : > { %v3229_v39 = vsub.s32 0, %v11849_v25  ;;  %vm3155_vm14 = vcmp.eq.s32.totalorder %v11847_v17, 0  ;;  %v3219_v61 = vadd.s32 %v11782_v30, %v11793_v9  ;;  %v3249_v35 = vsub.s32 4, %v3225_v19 }
 0x1ee   : > { %v11869_v3 = vshrl.u32 %v3747_v20, 5  ;;  %vm3154_vm3 = vcmp.lt.s32.totalorder %v11847_v17, 2  ;;  %vm3599_vm4 = vcmp.lt.s32.totalorder %v11852_v29, 2  ;;  %vm3600_vm5 = vcmp.eq.s32.totalorder %v11852_v29, 0 }
 0x1ef   : > { %v9300_v41 = vmin.u32 %v3229_v39, %v11849_v25  ;;  %vm3603_vm6 = vcmp.eq.s32.totalorder %v11852_v29, 2  ;;  %v3751_v46 = vshrl.u32 %v9992_v34, %v3750_v52  ;;  %v11876_v54 = vshrl.u32 %v3842_v24, 23 }
 0x1f0   : > { %vm3151_vm9 = vweird.f32 %v11389_v28  ;;  %v3754_v9 = vor.u32 %v3753_v33, %v3752_v18  ;;  %v3757_v5 = vor.u32 %v3756_v57, %v3755_v21  ;;  %v3760_v12 = vor.u32 %v3759_v59, %v3758_v49 }
 0x1f1   : > { %v3231_v30 = vclz %v9300_v41  ;;  %v3761_v48 = vshll.u32 %v9995_v40, %v3749_v13  ;;  %v3762_v56 = vshrl.u32 %v9996_v42, %v3750_v52  ;;  %v3764_v44 = vshll.u32 %v9996_v42, %v3749_v13 }
 0x1f2   : > { %v3765_v4 = vshrl.u32 %v9997_v50, %v3750_v52  ;;  %v3250_v43 = vsel %vm3165_vm13, %v3249_v35, %v3225_v19  ;;  %vm3767_vm10 = vcmp.lt.s32.totalorder %v11869_v3, 1  ;;  %vm3768_vm11 = vcmp.lt.s32.totalorder %v11869_v3, 2 }
 0x1f3   : > { %v9301_v47 = vadd.s32 4294967294, %v3231_v30  ;;  %v3763_v14 = vor.u32 %v3762_v56, %v3761_v48  ;;  %vm3769_vm7 = vcmp.lt.s32.totalorder %v11869_v3, 3  ;;  %vm3770_vm12 = vcmp.lt.s32.totalorder %v11869_v3, 4 }
 0x1f4   : > { %v3766_v10 = vor.u32 %v3765_v4, %v3764_v44  ;;  %v3771_v53 = vsel %vm3767_vm10, %v3751_v46, %v3754_v9  ;;  %v3772_v27 = vsel %vm3770_vm12, %v3760_v12, 2102212464  ;;  %v3775_v16 = vsel %vm3767_vm10, %v3754_v9, %v3757_v5 }
 0x1f5   : > { %vm9302_vm1 = vcmp.lt.s32.totalorder %v9301_v47, 0  ;;  %vm11891_vm2 = vcmp.le.f32.partialorder %v3163_v8, 0.7853982  ;;  %v3776_v63 = vsel %vm3770_vm12, %v3763_v14, 920167782  ;;  %v3779_v60 = vsel %vm3767_vm10, %v3757_v5, %v3760_v12 }
 0x1f6   : > { %v9794_v11 = vpop.eup %9793  ;;  %v3234_v58 = vsel %vm9302_vm1, 0, %v9301_v47  ;;  %v3780_v32 = vsel %vm3770_vm12, %v3766_v10, 1326507024  ;;  %v3773_v15 = vsel %vm3769_vm7, %v3757_v5, %v3772_v27  ;;  %v3777_v8 = vsel %vm3769_vm7, %v3760_v12, %v3776_v63 }
 0x1f7   : > { %v9796_v31 = vpop.eup %9795  ;;  %v3159_v19 = vxor.u32 2147483648, %v9794_v11  ;;  %v3235_v7 = vsub.s32 32, %v3234_v58  ;;  %v3236_v51 = vshll.u32 %v11849_v25, %v3234_v58  ;;  %v3239_v26 = vsub.s32 4294967266, %v3234_v58 }
 0x1f8   : > { %v3156_v20 = vxor.u32 2147483648, %v9796_v31  ;;  %v3781_v13 = vsel %vm3769_vm7, %v3763_v14, %v3780_v32  ;;  %v3778_v49 = vsel %vm3768_vm11, %v3775_v16, %v3777_v8  ;;  %v3774_v29 = vsel %vm3768_vm11, %v3771_v53, %v3773_v15 }
 0x1f9   : > { %v3160_v52 = vsel %vm3158_vm0, %v3159_v19, %v9796_v31  ;;  %v3237_v24 = vshrl.u32 %v3219_v61, %v3235_v7  ;;  %v3240_v39 = vadd.s32 127, %v3239_v26  ;;  %v3605_v18 = vsel %vm3603_vm6, %v3159_v19, %v9796_v31 }
 0x1fa   : > { %v3157_v25 = vsel %vm3155_vm14, %v9794_v11, %v3156_v20  ;;  %v3602_v21 = vsel %vm3600_vm5, %v9794_v11, %v3156_v20  ;;  %v3782_v33 = vsel %vm3768_vm11, %v3779_v60, %v3781_v13  ;;  %v3252_v14 = vsel %vm11891_vm2, 0, %v3250_v43 }
 0x1fb   : > { %v3161_v57 = vsel %vm3154_vm3, %v3157_v25, %v3160_v52  ;;  %v3238_v59 = vor.u32 %v3237_v24, %v3236_v51  ;;  %v3241_v61 = vshll.u32 %v3240_v39, 23  ;;  %v3606_v41 = vsel %vm3599_vm4, %v3602_v21, %v3605_v18 }
 0x1fc   : > { %v3162_v35 = vsel %vm3151_vm9, nan, %v3161_v57  ;;  %v3607_v46 = vsel %vm3151_vm9, nan, %v3606_v41  ;;  %v11923_v30 = vmul.u32.u64.low %v11863_v55, %v3782_v33  ;;  %v11924_v9 = vmul.u32.u64.high %v11863_v55, %v3782_v33, %v11923_v30 }
 0x1fd   : > { %v3279_v17 = vrot.slane %v3162_v35, 3  ;;  %v3273_v5 = vcombine.high %v3162_v35, %v3162_v35  ;;  %v3242_v12 = vor.u32 4788187, %v3241_v61  ;;  %v3245_v48 = vcvt.s32.f32 %v3238_v59  ;;  %3727 = vst [vmem:[%s10124_s26 + $0xe0] sm:$0x7] %v3607_v46 }
 0x1fe   : > { %v3717_v56 = vcombine.high %v3607_v46, %v3607_v46  ;;  %v11930_v44 = vmul.u32.u64.low %v11863_v55, %v3778_v49  ;;  %v11931_v4 = vmul.u32.u64.high %v11863_v55, %v3778_v49, %v11930_v44  ;;  %v9323_v10 = vadd.s32 4294967169, %v11876_v54 }
 0x1ff   : > { %3295 = vst [vmem:[%s10124_s26 + $0xa0] sm:$0xe0] %v3279_v17  ;;  %v3280_v28 = vrot.slane %v3273_v5, 3  ;;  %v3243_v47 = vand.u32 2147483647, %v3242_v12  ;;  %v3790_v3 = vmul.u32 %v11863_v55, %v3774_v29  ;;  %v3256_v11 = vadd.s32 3, %v3252_v14 }
 0x200   : > { %3728 = vst [vmem:[%s10124_s26 + $0xe8] sm:$0x7] %v3717_v56  ;;  %v3839_v27 = vand.u32 2147483647, %v11844_v23  ;;  %vm3792_vm15 = vc.u32 %v11924_v9, %v11930_v44  ;;  %v3849_v53 = vadd.s32 1, %v9323_v10  ;;  %v3793_v58 = vadd.s32 1, %v11931_v4 }
 0x201   : > { %3296 = vst [vmem:[%s10124_s26 + $0xa8] sm:$0xe0] %v3280_v28  ;;  %v3246_v16 = vmul.f32 %v3245_v48, %v3243_v47  ;;  %v11946_v63 = vmul.f32 16.0, %v10122_v2  ;;  %v11953_v31 = vand.u32 3, %v3252_v14  ;;  %v11958_v26 = vand.u32 3, %v3256_v11 }
 0x202   : > { %vm3850_vm8 = vcmp.gt.s32.totalorder %v3849_v53, 0  ;;  %v3794_v54 = vsel %vm3792_vm15, %v3793_v58, %v11931_v4  ;;  %v3846_v60 = vand.u32 8388607, %v3839_v27  ;;  %vm3255_vm10 = vweird.f32 %v11615_v37 }
 0x203   : > { %v3247_v43 = vxor.u32 2147483648, %v3246_v16  ;;  %v3851_v32 = vsel %vm3850_vm8, %v3849_v53, 0  ;;  %v3795_v19 = vadd.s32 %v3794_v54, %v3790_v3  ;;  %v3946_v15 = vand.u32 2139095040, %v11946_v63 }
 0x204   : > { %v3853_v7 = vand.u32 31, %v3851_v32  ;;  %v11960_v20 = vshrl.u32 %v3851_v32, 5  ;;  %v3847_v25 = vor.u32 8388608, %v3846_v60  ;;  %vm3703_vm0 = vcmp.eq.s32.totalorder %v11953_v31, 0 }
 0x205   : > { %v3248_v55 = vsel %vm3165_vm13, %v3247_v43, %v3246_v16  ;;  %v3796_v8 = vadd.s32 536870912, %v3795_v19  ;;  %v3947_v30 = vshrl.u32 %v3946_v15, 23  ;;  %vm3706_vm14 = vcmp.eq.s32.totalorder %v11953_v31, 2 }
 0x206   : > { %v3251_v51 = vsel %vm11891_vm2, %v11615_v37, %v3248_v55  ;;  %v3854_v13 = vsub.s32 32, %v3853_v7  ;;  %v3856_v52 = vshll.u32 %v9992_v34, %v3853_v7  ;;  %v3859_v24 = vshll.u32 %v9993_v36, %v3853_v7 }
 0x207   : > { %9797 = vcosq.f32 %v3251_v51  ;;  %v3862_v39 = vshll.u32 %v9994_v38, %v3853_v7  ;;  %v3865_v18 = vshll.u32 %v9995_v40, %v3853_v7  ;;  %v11967_v22 = vshrl.u32 %v3796_v8, 30 }
 0x208   : > { %9799 = vsinq.f32 %v3251_v51  ;;  %v3857_v21 = vshrl.u32 %v9993_v36, %v3854_v13  ;;  %v3860_v49 = vshrl.u32 %v9994_v38, %v3854_v13  ;;  %v3863_v33 = vshrl.u32 %v9995_v40, %v3854_v13 }
 0x209   : > { %v3866_v57 = vshrl.u32 %v9996_v42, %v3854_v13  ;;  %v3868_v59 = vshll.u32 %v9996_v42, %v3853_v7  ;;  %v3869_v61 = vshrl.u32 %v9997_v50, %v3854_v13  ;;  %v3798_v41 = vshll.u32 %v11967_v22, 30 }
 0x20a   : > { %v3858_v35 = vor.u32 %v3857_v21, %v3856_v52  ;;  %v3861_v46 = vor.u32 %v3860_v49, %v3859_v24  ;;  %v3864_v17 = vor.u32 %v3863_v33, %v3862_v39  ;;  %vm3871_vm13 = vcmp.lt.s32.totalorder %v11960_v20, 1 }
 0x20b   : > { %v3867_v5 = vor.u32 %v3866_v57, %v3865_v18  ;;  %v3870_v12 = vor.u32 %v3869_v61, %v3868_v59  ;;  %v11979_v48 = vsub.s32 %v3795_v19, %v3798_v41  ;;  %vm3873_vm3 = vcmp.lt.s32.totalorder %v11960_v20, 3 }
 0x20c   : > { %vm3258_vm4 = vcmp.lt.s32.totalorder %v11958_v26, 2  ;;  %vm3702_vm5 = vcmp.lt.s32.totalorder %v11953_v31, 2  ;;  %vm3872_vm6 = vcmp.lt.s32.totalorder %v11960_v20, 2  ;;  %vm3874_vm9 = vcmp.lt.s32.totalorder %v11960_v20, 4 }
 0x20d   : > { %v3879_v56 = vsel %vm3871_vm13, %v3858_v35, %v3861_v46  ;;  %v11988_v29 = vshll.u32 %v3847_v25, 8  ;;  %v3801_v4 = vsub.s32 0, %v11979_v48  ;;  %v3855_v28 = vshrl.u32 %v9992_v34, %v3854_v13 }
 0x20e   : > { %v3880_v47 = vsel %vm3874_vm9, %v3867_v5, 920167782  ;;  %v3943_v14 = vand.u32 2147483647, %v11946_v63  ;;  %v3876_v10 = vsel %vm3874_vm9, %v3864_v17, 2102212464  ;;  %v3883_v43 = vsel %vm3871_vm13, %v3861_v46, %v3864_v17 }
 0x20f   : > { %v3881_v16 = vsel %vm3873_vm3, %v3864_v17, %v3880_v47  ;;  %v3884_v3 = vsel %vm3874_vm9, %v3870_v12, 1326507024  ;;  %v9327_v53 = vadd.s32 4294967169, %v3947_v30  ;;  %vm3259_vm11 = vcmp.eq.s32.totalorder %v11958_v26, 0 }
 0x210   : > { %v9320_v11 = vmin.u32 %v3801_v4, %v11979_v48  ;;  %v3882_v58 = vsel %vm3872_vm6, %v3879_v56, %v3881_v16  ;;  %vm3262_vm7 = vcmp.eq.s32.totalorder %v11958_v26, 2  ;;  %v3885_v54 = vsel %vm3873_vm3, %v3867_v5, %v3884_v3 }
 0x211   : > { %v12006_v60 = vmul.u32.u64.low %v11988_v29, %v3882_v58  ;;  %v12007_v32 = vmul.u32.u64.high %v11988_v29, %v3882_v58, %v12006_v60  ;;  %vm3737_vm12 = vcmp.lt.s32.totalorder %v11672_v45, 0  ;;  %v3791_v55 = vadd.s32 %v11930_v44, %v11924_v9 }
 0x212   : > { %v3803_v19 = vclz %v9320_v11  ;;  %v3875_v7 = vsel %vm3871_vm13, %v3855_v28, %v3858_v35  ;;  %v3877_v51 = vsel %vm3873_vm3, %v3861_v46, %v3876_v10  ;;  %v3886_v8 = vsel %vm3872_vm6, %v3883_v43, %v3885_v54 }
 0x213   : > { %v12021_v13 = vand.u32 8388607, %v3943_v14  ;;  %v3953_v52 = vadd.s32 1, %v9327_v53  ;;  %v12024_v24 = vmul.f32 16.0, %v10138_v6  ;;  %v3821_v49 = vsub.s32 4, %v11967_v22 }
 0x214   : > { %v9798_v15 = vpop.eup %9797  ;;  %v9321_v39 = vadd.s32 4294967294, %v3803_v19  ;;  %v12027_v18 = vmul.u32.u64.low %v11988_v29, %v3886_v8  ;;  %v12028_v25 = vmul.u32.u64.high %v11988_v29, %v3886_v8, %v12027_v18  ;;  %v3878_v33 = vsel %vm3872_vm6, %v3875_v7, %v3877_v51 }
 0x215   : > { %v9800_v9 = vpop.eup %9799  ;;  %v3263_v44 = vxor.u32 2147483648, %v9798_v15  ;;  %vm3954_vm1 = vcmp.gt.s32.totalorder %v3953_v52, 0  ;;  %v3897_v61 = vadd.s32 1, %v12007_v32  ;;  %v3894_v47 = vmul.u32 %v11988_v29, %v3878_v33 }
 0x216   : > { %v3260_v21 = vxor.u32 2147483648, %v9800_v9  ;;  %vm9322_vm2 = vcmp.lt.s32.totalorder %v9321_v39, 0  ;;  %v3955_v20 = vsel %vm3954_vm1, %v3953_v52, 0  ;;  %vm12055_vm15 = vcmp.le.f32.partialorder %v3735_v62, 0.7853982 }
 0x217   : > { %v3264_v57 = vsel %vm3262_vm7, %v3263_v44, %v9800_v9  ;;  %v3708_v59 = vsel %vm3706_vm14, %v3263_v44, %v9800_v9  ;;  %v3806_v46 = vsel %vm9322_vm2, 0, %v9321_v39  ;;  %v3822_v37 = vsel %vm3737_vm12, %v3821_v49, %v11967_v22 }
 0x218   : > { %v3261_v41 = vsel %vm3259_vm11, %v9798_v15, %v3260_v21  ;;  %v3705_v35 = vsel %vm3703_vm0, %v9798_v15, %v3260_v21  ;;  %v3807_v5 = vsub.s32 32, %v3806_v46  ;;  %v3808_v12 = vshll.u32 %v11979_v48, %v3806_v46 }
 0x219   : > { %v3265_v30 = vsel %vm3258_vm4, %v3261_v41, %v3264_v57  ;;  %v3709_v17 = vsel %vm3702_vm5, %v3705_v35, %v3708_v59  ;;  %v3811_v28 = vsub.s32 4294967266, %v3806_v46  ;;  %vm3896_vm8 = vc.u32 %v12028_v25, %v12006_v60 }
 0x21a   : > { %v3266_v56 = vsel %vm3255_vm10, nan, %v3265_v30  ;;  %v3710_v4 = vsel %vm3255_vm10, nan, %v3709_v17  ;;  %v3809_v31 = vshrl.u32 %v3791_v55, %v3807_v5  ;;  %v3957_v29 = vand.u32 31, %v3955_v20 }
 0x21b   : > { %v3281_v10 = vrot.slane %v3266_v56, 3  ;;  %v3274_v26 = vcombine.high %v3266_v56, %v3266_v56  ;;  %v3718_v16 = vcombine.high %v3710_v4, %v3710_v4  ;;  %3729 = vst [vmem:[%s10124_s26 + $0xf0] sm:$0x7] %v3710_v4  ;;  %v3812_v3 = vadd.s32 127, %v3811_v28 }
 0x21c   : > { %v3810_v11 = vor.u32 %v3809_v31, %v3808_v12  ;;  %v3898_v58 = vsel %vm3896_vm8, %v3897_v61, %v12007_v32  ;;  %v3951_v62 = vor.u32 8388608, %v12021_v13  ;;  %v3956_v55 = vshrl.u32 %v3955_v20, 5 }
 0x21d   : > { %3297 = vst [vmem:[%s10124_s26 + $0xb0] sm:$0xe0] %v3281_v10  ;;  %v3282_v53 = vrot.slane %v3274_v26, 3  ;;  %3730 = vst [vmem:[%s10124_s26 + $0xf8] sm:$0x7] %v3718_v16  ;;  %v3813_v43 = vshll.u32 %v3812_v3, 23  ;;  %v3899_v54 = vadd.s32 %v3898_v58, %v3894_v47  ;;  %v3960_v22 = vshll.u32 %v9992_v34, %v3957_v29 }
 0x21e   : > { %v3958_v19 = vsub.s32 32, %v3957_v29  ;;  %v3817_v7 = vcvt.s32.f32 %v3810_v11  ;;  %v3963_v51 = vshll.u32 %v9993_v36, %v3957_v29  ;;  %v3969_v15 = vshll.u32 %v9995_v40, %v3957_v29 }
 0x21f   : > { %3298 = vst [vmem:[%s10124_s26 + $0xb8] sm:$0xe0] %v3282_v53  ;;  %v3814_v8 = vor.u32 4788187, %v3813_v43  ;;  %v3900_v52 = vadd.s32 536870912, %v3899_v54  ;;  %v3966_v32 = vshll.u32 %v9994_v38, %v3957_v29  ;;  %v3972_v18 = vshll.u32 %v9996_v42, %v3957_v29 }
 0x220   : > { %v3961_v9 = vshrl.u32 %v9993_v36, %v3958_v19  ;;  %v3964_v13 = vshrl.u32 %v9994_v38, %v3958_v19  ;;  %v3967_v44 = vshrl.u32 %v9995_v40, %v3958_v19  ;;  %v3970_v39 = vshrl.u32 %v9996_v42, %v3958_v19 }
 0x221   : > { %v3815_v21 = vand.u32 2147483647, %v3814_v8  ;;  %v3901_v49 = vshrl.u32 %v3900_v52, 30  ;;  %v3973_v33 = vshrl.u32 %v9997_v50, %v3958_v19  ;;  %vm3975_vm13 = vcmp.lt.s32.totalorder %v3956_v55, 1 }
 0x222   : > { %v3959_v57 = vshrl.u32 %v9992_v34, %v3958_v19  ;;  %v3962_v59 = vor.u32 %v3961_v9, %v3960_v22  ;;  %v3965_v61 = vor.u32 %v3964_v13, %v3963_v51  ;;  %v3971_v41 = vor.u32 %v3970_v39, %v3969_v15 }
 0x223   : > { %v3818_v35 = vmul.f32 %v3817_v7, %v3815_v21  ;;  %v3902_v46 = vshll.u32 %v3901_v49, 30  ;;  %v3968_v20 = vor.u32 %v3967_v44, %v3966_v32  ;;  %v3974_v30 = vor.u32 %v3973_v33, %v3972_v18 }
 0x224   : > { %v12082_v17 = vsel %vm12055_vm15, 0, %v3822_v37  ;;  %vm3976_vm0 = vcmp.lt.s32.totalorder %v3956_v55, 2  ;;  %vm3978_vm14 = vcmp.lt.s32.totalorder %v3956_v55, 4  ;;  %v3991_v5 = vshll.u32 %v3951_v62, 8 }
 0x225   : > { %v3819_v12 = vxor.u32 2147483648, %v3818_v35  ;;  %v3903_v56 = vsub.s32 %v3899_v54, %v3902_v46  ;;  %vm3977_vm3 = vcmp.lt.s32.totalorder %v3956_v55, 3  ;;  %v3980_v4 = vsel %vm3978_vm14, %v3968_v20, 2102212464 }
 0x226   : > { %v3925_v28 = vsub.s32 4, %v3901_v49  ;;  %v3983_v47 = vsel %vm3975_vm13, %v3962_v59, %v3965_v61  ;;  %v3984_v10 = vsel %vm3978_vm14, %v3971_v41, 920167782  ;;  %v3988_v26 = vsel %vm3978_vm14, %v3974_v30, 1326507024 }
 0x227   : > { %v3820_v16 = vsel %vm3737_vm12, %v3819_v12, %v3818_v35  ;;  %v3905_v31 = vsub.s32 0, %v3903_v56  ;;  %v3979_v3 = vsel %vm3975_vm13, %v3959_v57, %v3962_v59  ;;  %v3987_v37 = vsel %vm3975_vm13, %v3965_v61, %v3968_v20 }
 0x228   : > { %v3823_v29 = vsel %vm12055_vm15, %v11672_v45, %v3820_v16  ;;  %v3981_v53 = vsel %vm3977_vm3, %v3965_v61, %v3980_v4  ;;  %v3985_v11 = vsel %vm3977_vm3, %v3968_v20, %v3984_v10  ;;  %v3989_v58 = vsel %vm3977_vm3, %v3971_v41, %v3988_v26 }
 0x229   : > { %9801 = vcosq.f32 %v3823_v29  ;;  %v9324_v62 = vmin.u32 %v3905_v31, %v3903_v56  ;;  %v3986_v43 = vsel %vm3976_vm0, %v3983_v47, %v3985_v11  ;;  %v3990_v54 = vsel %vm3976_vm0, %v3987_v37, %v3989_v58 }
 0x22a   : > { %9803 = vsinq.f32 %v3823_v29  ;;  %v12094_v19 = vmul.u32.u64.low %v3991_v5, %v3986_v43  ;;  %v12095_v7 = vmul.u32.u64.high %v3991_v5, %v3986_v43, %v12094_v19  ;;  %v3828_v22 = vadd.s32 3, %v12082_v17 }
 0x22b   : > { %vm3841_vm4 = vcmp.lt.s32.totalorder %v11844_v23, 0  ;;  %v3907_v51 = vclz %v9324_v62  ;;  %v3982_v48 = vsel %vm3976_vm0, %v3979_v3, %v3981_v53  ;;  %v4050_v9 = vand.u32 2139095040, %v12024_v24 }
 0x22c   : > { %v3926_v15 = vsel %vm3841_vm4, %v3925_v28, %v3901_v49  ;;  %v12102_v8 = vmul.u32.u64.low %v3991_v5, %v3990_v54  ;;  %v12103_v52 = vmul.u32.u64.high %v3991_v5, %v3990_v54, %v12102_v8  ;;  %vm12108_vm5 = vcmp.le.f32.partialorder %v3839_v27, 0.7853982 }
 0x22d   : > { %v9325_v13 = vadd.s32 4294967294, %v3907_v51  ;;  %v3998_v44 = vmul.u32 %v3991_v5, %v3982_v48  ;;  %v4001_v39 = vadd.s32 1, %v12095_v7  ;;  %v4047_v55 = vand.u32 2147483647, %v12024_v24 }
 0x22e   : > { %v4051_v18 = vshrl.u32 %v4050_v9, 23  ;;  %v3895_v21 = vadd.s32 %v12006_v60, %v12028_v25  ;;  %v3928_v49 = vsel %vm12108_vm5, 0, %v3926_v15  ;;  %v3829_v33 = vand.u32 3, %v3828_v22 }
 0x22f   : > { %vm9326_vm6 = vcmp.lt.s32.totalorder %v9325_v13, 0  ;;  %vm4000_vm9 = vc.u32 %v12103_v52, %v12094_v19  ;;  %v3932_v46 = vadd.s32 3, %v3928_v49  ;;  %v4054_v30 = vand.u32 8388607, %v4047_v55 }
 0x230   : > { %v3910_v57 = vsel %vm9326_vm6, 0, %v9325_v13  ;;  %v9331_v27 = vadd.s32 4294967169, %v4051_v18  ;;  %v4002_v35 = vsel %vm4000_vm9, %v4001_v39, %v12095_v7  ;;  %vm3827_vm10 = vweird.f32 %v11672_v45 }
 0x231   : > { %v3911_v59 = vsub.s32 32, %v3910_v57  ;;  %v3912_v61 = vshll.u32 %v3903_v56, %v3910_v57  ;;  %v3915_v41 = vsub.s32 4294967266, %v3910_v57  ;;  %v4003_v20 = vadd.s32 %v4002_v35, %v3998_v44 }
 0x232   : > { %v4057_v60 = vadd.s32 1, %v9331_v27  ;;  %v12124_v12 = vmul.f32 32.0, %v10118_v0  ;;  %vm3830_vm11 = vcmp.lt.s32.totalorder %v3829_v33, 2  ;;  %vm3831_vm7 = vcmp.eq.s32.totalorder %v3829_v33, 0 }
 0x233   : > { %v3913_v25 = vshrl.u32 %v3895_v21, %v3911_v59  ;;  %v3916_v5 = vadd.s32 127, %v3915_v41  ;;  %v4004_v4 = vadd.s32 536870912, %v4003_v20  ;;  %vm3834_vm1 = vcmp.eq.s32.totalorder %v3829_v33, 2 }
 0x234   : > { %vm4058_vm12 = vcmp.gt.s32.totalorder %v4057_v60, 0  ;;  %v12128_v26 = vand.u32 3, %v3932_v46  ;;  %v4055_v31 = vor.u32 8388608, %v4054_v30  ;;  %v12136_v58 = vand.u32 3, %v12082_v17 }
 0x235   : > { %v3914_v56 = vor.u32 %v3913_v25, %v3912_v61  ;;  %v3917_v28 = vshll.u32 %v3916_v5, 23  ;;  %v4059_v47 = vsel %vm4058_vm12, %v4057_v60, 0  ;;  %v12130_v16 = vshrl.u32 %v4004_v4, 30 }
 0x236   : > { %v12126_v10 = vpop.eup %9801  ;;  %v4061_v3 = vand.u32 31, %v4059_v47  ;;  %v12140_v7 = vand.u32 3, %v3928_v49  ;;  %v12147_v48 = vadd.s32 %v12094_v19, %v12103_v52  ;;  %v4639_v15 = vand.u32 2147483647, %v12124_v12 }
 0x237   : > { %v12132_v37 = vpop.eup %9803  ;;  %v3835_v29 = vxor.u32 2147483648, %v12126_v10  ;;  %v3918_v53 = vor.u32 4788187, %v3917_v28  ;;  %v3921_v11 = vcvt.s32.f32 %v3914_v56  ;;  %v4006_v43 = vshll.u32 %v12130_v16, 30 }
 0x238   : > { %v3832_v62 = vxor.u32 2147483648, %v12132_v37  ;;  %v4062_v54 = vsub.s32 32, %v4061_v3  ;;  %v12156_v9 = vshll.u32 %v4055_v31, 8  ;;  %v4642_v13 = vand.u32 2139095040, %v12124_v12 }
 0x239   : > { %v3836_v22 = vsel %vm3834_vm1, %v3835_v29, %v12132_v37  ;;  %v3919_v51 = vand.u32 2147483647, %v3918_v53  ;;  %v12154_v8 = vsub.s32 %v4003_v20, %v4006_v43  ;;  %v12160_v18 = vshrl.u32 %v4059_v47, 5 }
 0x23a   : > { %v3833_v17 = vsel %vm3831_vm7, %v12126_v10, %v3832_v62  ;;  %v4064_v19 = vshll.u32 %v9992_v34, %v4061_v3  ;;  %v4065_v49 = vshrl.u32 %v9993_v36, %v4062_v54  ;;  %v4067_v57 = vshll.u32 %v9993_v36, %v4061_v3 }
 0x23b   : > { %v3837_v44 = vsel %vm3830_vm11, %v3833_v17, %v3836_v22  ;;  %v3922_v39 = vmul.f32 %v3921_v11, %v3919_v51  ;;  %v4009_v21 = vsub.s32 0, %v12154_v8  ;;  %v4068_v33 = vshrl.u32 %v9994_v38, %v4062_v54 }
 0x23c   : > { %v3838_v52 = vsel %vm3827_vm10, nan, %v3837_v44  ;;  %v4029_v35 = vsub.s32 4, %v12130_v16  ;;  %v4070_v46 = vshll.u32 %v9994_v38, %v4061_v3  ;;  %v12172_v20 = vshrl.u32 %v4642_v13, 23 }
 0x23d   : > { %v4159_v27 = vrot.slane %v3838_v52, 5  ;;  %v4155_v59 = vcombine.high %v3838_v52, %v3838_v52  ;;  %v3923_v61 = vxor.u32 2147483648, %v3922_v39  ;;  %v9328_v41 = vmin.u32 %v4009_v21, %v12154_v8 }
 0x23e   : > { %v4071_v25 = vshrl.u32 %v9995_v40, %v4062_v54  ;;  %v4073_v5 = vshll.u32 %v9995_v40, %v4061_v3  ;;  %v4063_v28 = vshrl.u32 %v9992_v34, %v4062_v54  ;;  %v4066_v47 = vor.u32 %v4065_v49, %v4064_v19 }
 0x23f   : > { %4175 = vst [vmem:[%s10124_s26 + $0xc0] sm:$0x38] %v4159_v27  ;;  %v4160_v30 = vrot.slane %v4155_v59, 5  ;;  %v3924_v60 = vsel %vm3841_vm4, %v3923_v61, %v3922_v39  ;;  %v4011_v56 = vclz %v9328_v41  ;;  %vm4278_vm2 = vcmp.eq.s32.totalorder %v12136_v58, 0 }
 0x240   : > { %v3927_v4 = vsel %vm12108_vm5, %v11844_v23, %v3924_v60  ;;  %vm4281_vm15 = vcmp.eq.s32.totalorder %v12136_v58, 2  ;;  %v4069_v31 = vor.u32 %v4068_v33, %v4067_v57  ;;  %v4072_v53 = vor.u32 %v4071_v25, %v4070_v46 }
 0x241   : > { %4176 = vst [vmem:[%s10124_s26 + $0xc8] sm:$0x38] %v4160_v30  ;;  %9805 = vcosq.f32 %v3927_v4  ;;  %v4074_v11 = vshrl.u32 %v9996_v42, %v4062_v54  ;;  %vm3945_vm8 = vcmp.lt.s32.totalorder %v11946_v63, 0  ;;  %v9329_v43 = vadd.s32 4294967294, %v4011_v56 }
 0x242   : > { %9807 = vsinq.f32 %v3927_v4  ;;  %v4076_v32 = vshll.u32 %v9996_v42, %v4061_v3  ;;  %v4077_v22 = vshrl.u32 %v9997_v50, %v4062_v54  ;;  %vm4079_vm13 = vcmp.lt.s32.totalorder %v12160_v18, 1 }
 0x243   : > { %v4075_v51 = vor.u32 %v4074_v11, %v4073_v5  ;;  %vm4080_vm0 = vcmp.lt.s32.totalorder %v12160_v18, 2  ;;  %vm4081_vm14 = vcmp.lt.s32.totalorder %v12160_v18, 3  ;;  %vm9330_vm3 = vcmp.lt.s32.totalorder %v9329_v43, 0 }
 0x244   : > { %v4078_v17 = vor.u32 %v4077_v22, %v4076_v32  ;;  %vm4082_vm4 = vcmp.lt.s32.totalorder %v12160_v18, 4  ;;  %v4083_v13 = vsel %vm4079_vm13, %v4063_v28, %v4066_v47  ;;  %v4014_v44 = vsel %vm9330_vm3, 0, %v9329_v43 }
 0x245   : > { %v4084_v3 = vsel %vm4082_vm4, %v4072_v53, 2102212464  ;;  %v4087_v54 = vsel %vm4079_vm13, %v4066_v47, %v4069_v31  ;;  %v4088_v39 = vsel %vm4082_vm4, %v4075_v51, 920167782  ;;  %vm3938_vm5 = vcmp.eq.s32.totalorder %v12128_v26, 2 }
 0x246   : > { %vm12205_vm6 = vcmp.le.f32.partialorder %v3943_v14, 0.7853982  ;;  %v4015_v52 = vsub.s32 32, %v4014_v44  ;;  %v4016_v21 = vshll.u32 %v12154_v8, %v4014_v44  ;;  %v4019_v49 = vsub.s32 4294967266, %v4014_v44 }
 0x247   : > { %v4085_v57 = vsel %vm4081_vm14, %v4069_v31, %v4084_v3  ;;  %vm3935_vm9 = vcmp.eq.s32.totalorder %v12128_v26, 0  ;;  %v4089_v59 = vsel %vm4081_vm14, %v4072_v53, %v4088_v39  ;;  %v4091_v14 = vsel %vm4079_vm13, %v4069_v31, %v4072_v53 }
 0x248   : > { %v4086_v27 = vsel %vm4080_vm0, %v4083_v13, %v4085_v57  ;;  %v4092_v61 = vsel %vm4082_vm4, %v4078_v17, 1326507024  ;;  %vm3934_vm11 = vcmp.lt.s32.totalorder %v12128_v26, 2  ;;  %v4017_v8 = vshrl.u32 %v12147_v48, %v4015_v52 }
 0x249   : > { %v4020_v33 = vadd.s32 127, %v4019_v49  ;;  %v4090_v41 = vsel %vm4080_vm0, %v4087_v54, %v4089_v59  ;;  %v4093_v46 = vsel %vm4081_vm14, %v4075_v51, %v4092_v61  ;;  %vm3931_vm7 = vweird.f32 %v11844_v23 }
 0x24a   : > { %v4094_v30 = vsel %vm4080_vm0, %v4091_v14, %v4093_v46  ;;  %v12231_v60 = vmul.u32.u64.low %v12156_v9, %v4090_v41  ;;  %v12232_v25 = vmul.u32.u64.high %v12156_v9, %v4090_v41, %v12231_v60  ;;  %vm4277_vm12 = vcmp.lt.s32.totalorder %v12136_v58, 2 }
 0x24b   : > { %v4018_v48 = vor.u32 %v4017_v8, %v4016_v21  ;;  %v4021_v5 = vshll.u32 %v4020_v33, 23  ;;  %v12237_v4 = vmul.u32.u64.low %v12156_v9, %v4094_v30  ;;  %v12238_v56 = vmul.u32.u64.high %v12156_v9, %v4094_v30, %v12237_v4 }
 0x24c   : > { %v4030_v28 = vsel %vm3945_vm8, %v4029_v35, %v12130_v16  ;;  %v4102_v18 = vmul.u32 %v12156_v9, %v4086_v27  ;;  %v4280_v47 = vsel %vm4278_vm2, %v12126_v10, %v3832_v62  ;;  %v4283_v31 = vsel %vm4281_vm15, %v3835_v29, %v12132_v37 }
 0x24d   : > { %v4022_v53 = vor.u32 4788187, %v4021_v5  ;;  %v4025_v11 = vcvt.s32.f32 %v4018_v48  ;;  %v4284_v43 = vsel %vm4277_vm12, %v4280_v47, %v4283_v31  ;;  %v9351_v32 = vadd.s32 4294967169, %v12172_v20 }
 0x24e   : > { %v4105_v16 = vadd.s32 1, %v12232_v25  ;;  %v4285_v9 = vsel %vm3827_vm10, nan, %v4284_v43  ;;  %vm4380_vm1 = vcmp.lt.s32.totalorder %v12140_v7, 2  ;;  %vm4381_vm2 = vcmp.eq.s32.totalorder %v12140_v7, 0  ;;  %v9806_v62 = vpop.eup %9805 }
 0x24f   : > { %v4023_v10 = vand.u32 2147483647, %v4022_v53  ;;  %vm4104_vm15 = vc.u32 %v12238_v56, %v12231_v60  ;;  %v4603_v37 = vrot.slane %v4285_v9, 2  ;;  %vm4384_vm13 = vcmp.eq.s32.totalorder %v12140_v7, 2  ;;  %v9808_v29 = vpop.eup %9807 }
 0x250   : > { %v3939_v58 = vxor.u32 2147483648, %v9806_v62  ;;  %v4032_v35 = vsel %vm12205_vm6, 0, %v4030_v28  ;;  %v4106_v45 = vsel %vm4104_vm15, %v4105_v16, %v12232_v25  ;;  %v4599_v20 = vcombine.high %v4285_v9, %v4285_v9 }
 0x251   : > { %v3936_v22 = vxor.u32 2147483648, %v9808_v29  ;;  %v4026_v51 = vmul.f32 %v4025_v11, %v4023_v10  ;;  %v4107_v17 = vadd.s32 %v4106_v45, %v4102_v18  ;;  %4619 = vst [vmem:[%s10124_s26 + $0x100] ss:$-60 sps:$4 sm:$0xc1] %v4603_v37   ;;  %v4649_v13 = vadd.s32 1, %v9351_v32 }
 0x252   : > { %v3940_v44 = vsel %vm3938_vm5, %v3939_v58, %v9808_v29  ;;  %v4604_v3 = vrot.slane %v4599_v20, 2  ;;  %v4386_v54 = vsel %vm4384_vm13, %v3939_v58, %v9808_v29  ;;  %v4646_v39 = vand.u32 8388607, %v4639_v15 }
 0x253   : > { %v3937_v52 = vsel %vm3935_vm9, %v9806_v62, %v3936_v22  ;;  %v4027_v21 = vxor.u32 2147483648, %v4026_v51  ;;  %v4108_v49 = vadd.s32 536870912, %v4107_v17  ;;  %v4383_v57 = vsel %vm4381_vm2, %v9806_v62, %v3936_v22 }
 0x254   : > { %v3941_v27 = vsel %vm3934_vm11, %v3937_v52, %v3940_v44  ;;  %v4036_v59 = vadd.s32 3, %v4032_v35  ;;  %4620 = vst [vmem:[%s10124_s26 + $0x108] ss:$-60 sps:$4 sm:$0xc1] %v4604_v3   ;;  %v4387_v14 = vsel %vm4380_vm1, %v4383_v57, %v4386_v54  ;;  %vm4650_vm10 = vcmp.gt.s32.totalorder %v4649_v13, 0 }
 0x255   : > { %v3942_v61 = vsel %vm3931_vm7, nan, %v3941_v27  ;;  %v4028_v8 = vsel %vm3945_vm8, %v4027_v21, %v4026_v51  ;;  %v4109_v33 = vshrl.u32 %v4108_v49, 30  ;;  %v4388_v41 = vsel %vm3931_vm7, nan, %v4387_v14 }
 0x256   : > { %v4161_v26 = vrot.slane %v3942_v61, 5  ;;  %v4156_v46 = vcombine.high %v3942_v61, %v3942_v61  ;;  %v4031_v7 = vsel %vm12205_vm6, %v11946_v63, %v4028_v8  ;;  %v4605_v30 = vrot.slane %v4388_v41, 2 }
 0x257   : > { %9809 = vcosq.f32 %v4031_v7  ;;  %v4110_v25 = vshll.u32 %v4109_v33, 30  ;;  %v4600_v48 = vcombine.high %v4388_v41, %v4388_v41  ;;  %v12290_v4 = vand.u32 3, %v4036_v59 }
 0x258   : > { %4177 = vst [vmem:[%s10124_s26 + $0xd0] sm:$0x38] %v4161_v26  ;;  %v4162_v5 = vrot.slane %v4156_v46, 5  ;;  %9811 = vsinq.f32 %v4031_v7  ;;  %4621 = vst [vmem:[%s10124_s26 + $0x110] ss:$-60 sps:$4 sm:$0xc1] %v4605_v30   ;;  %v4103_v9 = vadd.s32 %v12231_v60, %v12238_v56  ;;  %vm4035_vm9 = vweird.f32 %v11946_v63 }
 0x259   : > { %v4651_v23 = vsel %vm4650_vm10, %v4649_v13, 0  ;;  %v12294_v28 = vsub.s32 %v4107_v17, %v4110_v25  ;;  %v4606_v18 = vrot.slane %v4600_v48, 2  ;;  %v12296_v47 = vand.u32 3, %v4032_v35 }
 0x25a   : > { %v4647_v19 = vor.u32 8388608, %v4646_v39  ;;  %4178 = vst [vmem:[%s10124_s26 + $0xd8] sm:$0x38] %v4162_v5  ;;  %v4653_v31 = vand.u32 31, %v4651_v23  ;;  %vm4049_vm8 = vcmp.lt.s32.totalorder %v12024_v24, 0  ;;  %v12302_v11 = vshrl.u32 %v4651_v23, 5 }
 0x25b   : > { %v4113_v53 = vsub.s32 0, %v12294_v28  ;;  %4622 = vst [vmem:[%s10124_s26 + $0x118] ss:$-60 sps:$4 sm:$0xc1] %v4606_v18   ;;  %vm4042_vm0 = vcmp.eq.s32.totalorder %v12290_v4, 2  ;;  %vm4039_vm14 = vcmp.eq.s32.totalorder %v12290_v4, 0 }
 0x25c   : > { %v4654_v43 = vsub.s32 32, %v4653_v31  ;;  %v4656_v32 = vshll.u32 %v9992_v34, %v4653_v31  ;;  %v4659_v16 = vshll.u32 %v9993_v36, %v4653_v31  ;;  %vm4484_vm3 = vcmp.eq.s32.totalorder %v12296_v47, 0 }
 0x25d   : > { %v9332_v62 = vmin.u32 %v4113_v53, %v12294_v28  ;;  %vm4487_vm4 = vcmp.eq.s32.totalorder %v12296_v47, 2  ;;  %v12313_v10 = vshll.u32 %v4647_v19, 8  ;;  %vm4038_vm5 = vcmp.lt.s32.totalorder %v12290_v4, 2 }
 0x25e   : > { %v4133_v37 = vsub.s32 4, %v4109_v33  ;;  %vm4483_vm6 = vcmp.lt.s32.totalorder %v12296_v47, 2  ;;  %v4657_v29 = vshrl.u32 %v9993_v36, %v4654_v43  ;;  %v4660_v58 = vshrl.u32 %v9994_v38, %v4654_v43 }
 0x25f   : > { %v4662_v35 = vshll.u32 %v9994_v38, %v4653_v31  ;;  %v4115_v60 = vclz %v9332_v62  ;;  %v4655_v56 = vshrl.u32 %v9992_v34, %v4654_v43  ;;  %vm4671_vm11 = vcmp.lt.s32.totalorder %v12302_v11, 1 }
 0x260   : > { %v12324_v45 = vmul.f32 32.0, %v10120_v1  ;;  %v4658_v20 = vor.u32 %v4657_v29, %v4656_v32  ;;  %v4661_v22 = vor.u32 %v4660_v58, %v4659_v16  ;;  %v4663_v51 = vshrl.u32 %v9995_v40, %v4654_v43 }
 0x261   : > { %v4665_v17 = vshll.u32 %v9995_v40, %v4653_v31  ;;  %v9333_v13 = vadd.s32 4294967294, %v4115_v60  ;;  %v4666_v44 = vshrl.u32 %v9996_v42, %v4654_v43  ;;  %v4668_v3 = vshll.u32 %v9996_v42, %v4653_v31 }
 0x262   : > { %v4669_v54 = vshrl.u32 %v9997_v50, %v4654_v43  ;;  %v4134_v39 = vsel %vm4049_vm8, %v4133_v37, %v4109_v33  ;;  %v4664_v52 = vor.u32 %v4663_v51, %v4662_v35  ;;  %vm4672_vm7 = vcmp.lt.s32.totalorder %v12302_v11, 2 }
 0x263   : > { %vm4673_vm12 = vcmp.lt.s32.totalorder %v12302_v11, 3  ;;  %vm9334_vm1 = vcmp.lt.s32.totalorder %v9333_v13, 0  ;;  %v4667_v21 = vor.u32 %v4666_v44, %v4665_v17  ;;  %vm4674_vm2 = vcmp.lt.s32.totalorder %v12302_v11, 4 }
 0x264   : > { %v4670_v49 = vor.u32 %v4669_v54, %v4668_v3  ;;  %v9810_v57 = vpop.eup %9809  ;;  %v4118_v27 = vsel %vm9334_vm1, 0, %v9333_v13  ;;  %v4675_v59 = vsel %vm4671_vm11, %v4655_v56, %v4658_v20  ;;  %v4676_v14 = vsel %vm4674_vm2, %v4664_v52, 2102212464 }
 0x265   : > { %v4679_v61 = vsel %vm4671_vm11, %v4658_v20, %v4661_v22  ;;  %v9812_v8 = vpop.eup %9811  ;;  %v4043_v33 = vxor.u32 2147483648, %v9810_v57  ;;  %v4119_v41 = vsub.s32 32, %v4118_v27  ;;  %v4120_v26 = vshll.u32 %v12294_v28, %v4118_v27 }
 0x266   : > { %v4123_v46 = vsub.s32 4294967266, %v4118_v27  ;;  %v4040_v7 = vxor.u32 2147483648, %v9812_v8  ;;  %vm12343_vm15 = vcmp.le.f32.partialorder %v4047_v55, 0.7853982  ;;  %v4680_v25 = vsel %vm4674_vm2, %v4667_v21, 920167782 }
 0x267   : > { %v4683_v48 = vsel %vm4671_vm11, %v4661_v22, %v4664_v52  ;;  %v4684_v5 = vsel %vm4674_vm2, %v4670_v49, 1326507024  ;;  %v4044_v23 = vsel %vm4042_vm0, %v4043_v33, %v9812_v8  ;;  %v4121_v18 = vshrl.u32 %v4103_v9, %v4119_v41 }
 0x268   : > { %v4124_v19 = vadd.s32 127, %v4123_v46  ;;  %v4489_v28 = vsel %vm4487_vm4, %v4043_v33, %v9812_v8  ;;  %v4041_v31 = vsel %vm4039_vm14, %v9810_v57, %v4040_v7  ;;  %v4486_v55 = vsel %vm4484_vm3, %v9810_v57, %v4040_v7 }
 0x269   : > { %v4677_v53 = vsel %vm4673_vm12, %v4661_v22, %v4676_v14  ;;  %v4681_v43 = vsel %vm4673_vm12, %v4664_v52, %v4680_v25  ;;  %v4045_v32 = vsel %vm4038_vm5, %v4041_v31, %v4044_v23  ;;  %v4122_v16 = vor.u32 %v4121_v18, %v4120_v26 }
 0x26a   : > { %v4125_v9 = vshll.u32 %v4124_v19, 23  ;;  %v4490_v62 = vsel %vm4483_vm6, %v4486_v55, %v4489_v28  ;;  %v4046_v37 = vsel %vm4035_vm9, nan, %v4045_v32  ;;  %v4682_v58 = vsel %vm4672_vm7, %v4679_v61, %v4681_v43 }
 0x26b   : > { %v4491_v29 = vsel %vm4035_vm9, nan, %v4490_v62  ;;  %v4685_v4 = vsel %vm4673_vm12, %v4667_v21, %v4684_v5  ;;  %v4163_v35 = vrot.slane %v4046_v37, 5  ;;  %v4157_v60 = vcombine.high %v4046_v37, %v4046_v37 }
 0x26c   : > { %v4126_v56 = vor.u32 4788187, %v4125_v9  ;;  %v4129_v20 = vcvt.s32.f32 %v4122_v16  ;;  %v4607_v47 = vrot.slane %v4491_v29, 2  ;;  %v4601_v22 = vcombine.high %v4491_v29, %v4491_v29 }
 0x26d   : > { %v4686_v51 = vsel %vm4672_vm7, %v4683_v48, %v4685_v4  ;;  %v4743_v63 = vand.u32 2147483647, %v12324_v45  ;;  %4179 = vst [vmem:[%s10124_s26 + $0xe0] sm:$0x38] %v4163_v35  ;;  %v4164_v17 = vrot.slane %v4157_v60, 5  ;;  %v4678_v52 = vsel %vm4672_vm7, %v4675_v59, %v4677_v53 }
 0x26e   : > { %v4127_v13 = vand.u32 2147483647, %v4126_v56  ;;  %v12378_v44 = vmul.u32.u64.low %v12313_v10, %v4686_v51  ;;  %v12379_v3 = vmul.u32.u64.high %v12313_v10, %v4686_v51, %v12378_v44  ;;  %4623 = vst [vmem:[%s10124_s26 + $0x120] ss:$-60 sps:$4 sm:$0xc1] %v4607_v47   ;;  %v4608_v54 = vrot.slane %v4601_v22, 2 }
 0x26f   : > { %v12385_v21 = vmul.u32.u64.low %v12313_v10, %v4682_v58  ;;  %v12386_v49 = vmul.u32.u64.high %v12313_v10, %v4682_v58, %v12385_v21  ;;  %4180 = vst [vmem:[%s10124_s26 + $0xe8] sm:$0x38] %v4164_v17  ;;  %v4136_v27 = vsel %vm12343_vm15, 0, %v4134_v39  ;;  %v4746_v14 = vand.u32 2139095040, %v12324_v45 }
 0x270   : > { %v4130_v57 = vmul.f32 %v4129_v20, %v4127_v13  ;;  %4624 = vst [vmem:[%s10124_s26 + $0x128] ss:$-60 sps:$4 sm:$0xc1] %v4608_v54   ;;  %v12394_v61 = vmul.f32 32.0, %v10122_v2  ;;  %v4694_v33 = vmul.u32 %v12313_v10, %v4678_v52  ;;  %v4140_v59 = vadd.s32 3, %v4136_v27 }
 0x271   : > { %vm4696_vm13 = vc.u32 %v12379_v3, %v12385_v21  ;;  %v4747_v11 = vshrl.u32 %v4746_v14, 23  ;;  %v4697_v41 = vadd.s32 1, %v12386_v49  ;;  %v4750_v26 = vand.u32 8388607, %v4743_v63 }
 0x272   : > { %v4131_v8 = vxor.u32 2147483648, %v4130_v57  ;;  %v4850_v7 = vand.u32 2139095040, %v12394_v61  ;;  %v12408_v48 = vand.u32 3, %v4136_v27  ;;  %v12410_v18 = vand.u32 3, %v4140_v59 }
 0x273   : > { %v9355_v46 = vadd.s32 4294967169, %v4747_v11  ;;  %v4698_v10 = vsel %vm4696_vm13, %v4697_v41, %v12386_v49  ;;  %v4751_v19 = vor.u32 8388608, %v4750_v26  ;;  %v4847_v28 = vand.u32 2147483647, %v12394_v61 }
 0x274   : > { %v4132_v39 = vsel %vm4049_vm8, %v4131_v8, %v4130_v57  ;;  %v4699_v5 = vadd.s32 %v4698_v10, %v4694_v33  ;;  %v4851_v55 = vshrl.u32 %v4850_v7, 23  ;;  %v12414_v30 = vmul.f32 32.0, %v10138_v6 }
 0x275   : > { %v4135_v25 = vsel %vm12343_vm15, %v12024_v24, %v4132_v39  ;;  %v4753_v23 = vadd.s32 1, %v9355_v46  ;;  %vm12418_vm8 = vcmp.le.f32.partialorder %v4639_v15, 0.7853982  ;;  %vm4641_vm0 = vcmp.lt.s32.totalorder %v12124_v12, 0 }
 0x276   : > { %9813 = vcosq.f32 %v4135_v25  ;;  %v4700_v31 = vadd.s32 536870912, %v4699_v5  ;;  %vm4146_vm14 = vcmp.eq.s32.totalorder %v12410_v18, 2  ;;  %vm4590_vm3 = vcmp.eq.s32.totalorder %v12408_v48, 2 }
 0x277   : > { %9815 = vsinq.f32 %v4135_v25  ;;  %vm4754_vm10 = vcmp.gt.s32.totalorder %v4753_v23, 0  ;;  %v12426_v9 = vadd.s32 %v12385_v21, %v12379_v3  ;;  %v12428_v62 = vshll.u32 %v4751_v19, 8 }
 0x278   : > { %v4755_v53 = vsel %vm4754_vm10, %v4753_v23, 0  ;;  %v4701_v32 = vshrl.u32 %v4700_v31, 30  ;;  %v12432_v37 = vand.u32 8388607, %v4847_v28  ;;  %vm4143_vm4 = vcmp.eq.s32.totalorder %v12410_v18, 0 }
 0x279   : > { %v4757_v16 = vand.u32 31, %v4755_v53  ;;  %vm4587_vm5 = vcmp.eq.s32.totalorder %v12408_v48, 0  ;;  %v9359_v4 = vadd.s32 4294967169, %v4851_v55  ;;  %vm4142_vm6 = vcmp.lt.s32.totalorder %v12410_v18, 2 }
 0x27a   : > { %v4702_v15 = vshll.u32 %v4701_v32, 30  ;;  %v4725_v29 = vsub.s32 4, %v4701_v32  ;;  %vm4586_vm9 = vcmp.lt.s32.totalorder %v12408_v48, 2  ;;  %v4954_v20 = vand.u32 2139095040, %v12414_v30 }
 0x27b   : > { %v4758_v58 = vsub.s32 32, %v4757_v16  ;;  %v4760_v35 = vshll.u32 %v9992_v34, %v4757_v16  ;;  %v4763_v60 = vshll.u32 %v9993_v36, %v4757_v16  ;;  %v4769_v56 = vshll.u32 %v9995_v40, %v4757_v16 }
 0x27c   : > { %vm4139_vm11 = vweird.f32 %v12024_v24  ;;  %v12443_v47 = vsub.s32 %v4699_v5, %v4702_v15  ;;  %v12445_v22 = vshrl.u32 %v4755_v53, 5  ;;  %v4766_v17 = vshll.u32 %v9994_v38, %v4757_v16 }
 0x27d   : > { %v4761_v51 = vshrl.u32 %v9993_v36, %v4758_v58  ;;  %v4764_v13 = vshrl.u32 %v9994_v38, %v4758_v58  ;;  %v4767_v44 = vshrl.u32 %v9995_v40, %v4758_v58  ;;  %v4770_v3 = vshrl.u32 %v9996_v42, %v4758_v58 }
 0x27e   : > { %v4772_v54 = vshll.u32 %v9996_v42, %v4757_v16  ;;  %v4705_v52 = vsub.s32 0, %v12443_v47  ;;  %v4726_v21 = vsel %vm4641_vm0, %v4725_v29, %v4701_v32  ;;  %v4773_v49 = vshrl.u32 %v9997_v50, %v4758_v58 }
 0x27f   : > { %v4951_v57 = vand.u32 2147483647, %v12414_v30  ;;  %v4762_v27 = vor.u32 %v4761_v51, %v4760_v35  ;;  %v4765_v14 = vor.u32 %v4764_v13, %v4763_v60  ;;  %v4771_v8 = vor.u32 %v4770_v3, %v4769_v56 }
 0x280   : > { %v4857_v33 = vadd.s32 1, %v9359_v4  ;;  %v9352_v11 = vmin.u32 %v4705_v52, %v12443_v47  ;;  %v4759_v59 = vshrl.u32 %v9992_v34, %v4758_v58  ;;  %vm4775_vm7 = vcmp.lt.s32.totalorder %v12445_v22, 1 }
 0x281   : > { %v4955_v41 = vshrl.u32 %v4954_v20, 23  ;;  %v12463_v39 = vsel %vm12418_vm8, 0, %v4726_v21  ;;  %v4768_v46 = vor.u32 %v4767_v44, %v4766_v17  ;;  %v4774_v7 = vor.u32 %v4773_v49, %v4772_v54 }
 0x282   : > { %vm4778_vm12 = vcmp.lt.s32.totalorder %v12445_v22, 4  ;;  %v4707_v5 = vclz %v9352_v11  ;;  %vm4776_vm1 = vcmp.lt.s32.totalorder %v12445_v22, 2  ;;  %vm4777_vm2 = vcmp.lt.s32.totalorder %v12445_v22, 3 }
 0x283   : > { %v9814_v26 = vpop.eup %9813  ;;  %v4780_v19 = vsel %vm4778_vm12, %v4768_v46, 2102212464  ;;  %v4783_v31 = vsel %vm4775_vm7, %v4762_v27, %v4765_v14  ;;  %v4784_v55 = vsel %vm4778_vm12, %v4771_v8, 920167782  ;;  %v4779_v15 = vsel %vm4775_vm7, %v4759_v59, %v4762_v27 }
 0x284   : > { %v9816_v25 = vpop.eup %9815  ;;  %v4147_v10 = vxor.u32 2147483648, %v9814_v26  ;;  %v9353_v16 = vadd.s32 4294967294, %v4707_v5  ;;  %v4781_v4 = vsel %vm4777_vm2, %v4765_v14, %v4780_v19  ;;  %v4785_v35 = vsel %vm4777_vm2, %v4768_v46, %v4784_v55 }
 0x285   : > { %v4144_v23 = vxor.u32 2147483648, %v9816_v25  ;;  %v4786_v20 = vsel %vm4776_vm1, %v4783_v31, %v4785_v35  ;;  %v4787_v18 = vsel %vm4775_vm7, %v4765_v14, %v4768_v46  ;;  %v4788_v27 = vsel %vm4778_vm12, %v4774_v7, 1326507024 }
 0x286   : > { %v4148_v53 = vsel %vm4146_vm14, %v4147_v10, %v9816_v25  ;;  %v4592_v32 = vsel %vm4590_vm3, %v4147_v10, %v9816_v25  ;;  %vm9354_vm15 = vcmp.lt.s32.totalorder %v9353_v16, 0  ;;  %v4782_v14 = vsel %vm4776_vm1, %v4779_v15, %v4781_v4 }
 0x287   : > { %v4145_v29 = vsel %vm4143_vm4, %v9814_v26, %v4144_v23  ;;  %v4589_v58 = vsel %vm4587_vm5, %v9814_v26, %v4144_v23  ;;  %v4710_v13 = vsel %vm9354_vm15, 0, %v9353_v16  ;;  %v4789_v59 = vsel %vm4777_vm2, %v4771_v8, %v4788_v27 }
 0x288   : > { %v4149_v60 = vsel %vm4142_vm6, %v4145_v29, %v4148_v53  ;;  %v4593_v56 = vsel %vm4586_vm9, %v4589_v58, %v4592_v32  ;;  %v4711_v52 = vsub.s32 32, %v4710_v13  ;;  %v4712_v21 = vshll.u32 %v12443_v47, %v4710_v13 }
 0x289   : > { %v4150_v51 = vsel %vm4139_vm11, nan, %v4149_v60  ;;  %v4594_v17 = vsel %vm4139_vm11, nan, %v4593_v56  ;;  %v4715_v49 = vsub.s32 4294967266, %v4710_v13  ;;  %v4790_v47 = vsel %vm4776_vm1, %v4787_v18, %v4789_v59 }
 0x28a   : > { %v4165_v44 = vrot.slane %v4150_v51, 5  ;;  %v4158_v3 = vcombine.high %v4150_v51, %v4150_v51  ;;  %v4609_v48 = vrot.slane %v4594_v17, 2  ;;  %v4602_v54 = vcombine.high %v4594_v17, %v4594_v17 }
 0x28b   : > { %v4713_v26 = vshrl.u32 %v12426_v9, %v4711_v52  ;;  %v4716_v46 = vadd.s32 127, %v4715_v49  ;;  %vm4858_vm13 = vcmp.gt.s32.totalorder %v4857_v33, 0  ;;  %v9363_v9 = vadd.s32 4294967169, %v4955_v41 }
 0x28c   : > { %4181 = vst [vmem:[%s10124_s26 + $0xf0] sm:$0x38] %v4165_v44  ;;  %v4166_v24 = vrot.slane %v4158_v3, 5  ;;  %4625 = vst [vmem:[%s10124_s26 + $0x130] ss:$-60 sps:$4 sm:$0xc1] %v4609_v48   ;;  %v12515_v7 = vmul.u32.u64.low %v12428_v62, %v4790_v47  ;;  %v12516_v25 = vmul.u32.u64.high %v12428_v62, %v4790_v47, %v12515_v7  ;;  %v4798_v15 = vmul.u32 %v12428_v62, %v4782_v14 }
 0x28d   : > { %v4610_v11 = vrot.slane %v4602_v54, 2  ;;  %v12519_v10 = vmul.u32.u64.low %v12428_v62, %v4786_v20  ;;  %v12520_v5 = vmul.u32.u64.high %v12428_v62, %v4786_v20, %v12519_v10  ;;  %v4714_v23 = vor.u32 %v4713_v26, %v4712_v21 }
 0x28e   : > { %4182 = vst [vmem:[%s10124_s26 + $0xf8] sm:$0x38] %v4166_v24  ;;  %v4717_v8 = vshll.u32 %v4716_v46, 23  ;;  %v4859_v19 = vsel %vm4858_vm13, %v4857_v33, 0  ;;  %v4732_v31 = vadd.s32 3, %v12463_v39  ;;  %v4855_v22 = vor.u32 8388608, %v12432_v37 }
 0x28f   : > { %4626 = vst [vmem:[%s10124_s26 + $0x138] ss:$-60 sps:$4 sm:$0xc1] %v4610_v11   ;;  %v4861_v55 = vand.u32 31, %v4859_v19  ;;  %v12527_v53 = vand.u32 8388607, %v4951_v57  ;;  %v4721_v16 = vcvt.s32.f32 %v4714_v23  ;;  %vm4800_vm10 = vc.u32 %v12516_v25, %v12519_v10 }
 0x290   : > { %v4718_v32 = vor.u32 4788187, %v4717_v8  ;;  %v4860_v29 = vshrl.u32 %v4859_v19, 5  ;;  %v4801_v33 = vadd.s32 1, %v12520_v5  ;;  %v4961_v58 = vadd.s32 1, %v9363_v9 }
 0x291   : > { %v4862_v41 = vsub.s32 32, %v4861_v55  ;;  %v4864_v37 = vshll.u32 %v9992_v34, %v4861_v55  ;;  %v4867_v35 = vshll.u32 %v9993_v36, %v4861_v55  ;;  %v4870_v60 = vshll.u32 %v9994_v38, %v4861_v55 }
 0x292   : > { %v4719_v4 = vand.u32 2147483647, %v4718_v32  ;;  %v4802_v56 = vsel %vm4800_vm10, %v4801_v33, %v12520_v5  ;;  %v4873_v44 = vshll.u32 %v9995_v40, %v4861_v55  ;;  %vm4745_vm14 = vcmp.lt.s32.totalorder %v12324_v45, 0 }
 0x293   : > { %v4863_v20 = vshrl.u32 %v9992_v34, %v4862_v41  ;;  %v4865_v62 = vshrl.u32 %v9993_v36, %v4862_v41  ;;  %v4868_v51 = vshrl.u32 %v9994_v38, %v4862_v41  ;;  %v4803_v13 = vadd.s32 %v4802_v56, %v4798_v15 }
 0x294   : > { %v4722_v17 = vmul.f32 %v4721_v16, %v4719_v4  ;;  %v4871_v18 = vshrl.u32 %v9995_v40, %v4862_v41  ;;  %v4874_v54 = vshrl.u32 %v9996_v42, %v4862_v41  ;;  %v4876_v52 = vshll.u32 %v9996_v42, %v4861_v55 }
 0x295   : > { %v4866_v3 = vor.u32 %v4865_v62, %v4864_v37  ;;  %v4869_v48 = vor.u32 %v4868_v51, %v4867_v35  ;;  %v4804_v49 = vadd.s32 536870912, %v4803_v13  ;;  %v4877_v24 = vshrl.u32 %v9997_v50, %v4862_v41 }
 0x296   : > { %v4723_v21 = vxor.u32 2147483648, %v4722_v17  ;;  %v4872_v27 = vor.u32 %v4871_v18, %v4870_v60  ;;  %v4875_v11 = vor.u32 %v4874_v54, %v4873_v44  ;;  %vm4879_vm3 = vcmp.lt.s32.totalorder %v4860_v29, 1 }
 0x297   : > { %vm4880_vm4 = vcmp.lt.s32.totalorder %v4860_v29, 2  ;;  %vm4881_vm5 = vcmp.lt.s32.totalorder %v4860_v29, 3  ;;  %v4805_v59 = vshrl.u32 %v4804_v49, 30  ;;  %v4878_v26 = vor.u32 %v4877_v24, %v4876_v52 }
 0x298   : > { %v4724_v14 = vsel %vm4641_vm0, %v4723_v21, %v4722_v17  ;;  %vm4882_vm6 = vcmp.lt.s32.totalorder %v4860_v29, 4  ;;  %v4883_v47 = vsel %vm4879_vm3, %v4863_v20, %v4866_v3  ;;  %v4887_v5 = vsel %vm4879_vm3, %v4866_v3, %v4869_v48 }
 0x299   : > { %v4727_v46 = vsel %vm12418_vm8, %v12124_v12, %v4724_v14  ;;  %v4884_v7 = vsel %vm4882_vm6, %v4872_v27, 2102212464  ;;  %v4806_v23 = vshll.u32 %v4805_v59, 30  ;;  %v4829_v8 = vsub.s32 4, %v4805_v59 }
 0x29a   : > { %9817 = vcosq.f32 %v4727_v46  ;;  %v4885_v19 = vsel %vm4881_vm5, %v4869_v48, %v4884_v7  ;;  %v4888_v9 = vsel %vm4882_vm6, %v4875_v11, 920167782  ;;  %v4891_v55 = vsel %vm4879_vm3, %v4869_v48, %v4872_v27 }
 0x29b   : > { %9819 = vsinq.f32 %v4727_v46  ;;  %v4895_v32 = vshll.u32 %v4855_v22, 8  ;;  %v12555_v16 = vsub.s32 %v4803_v13, %v4806_v23  ;;  %v4889_v43 = vsel %vm4881_vm5, %v4872_v27, %v4888_v9 }
 0x29c   : > { %v4892_v15 = vsel %vm4882_vm6, %v4878_v26, 1326507024  ;;  %v4959_v33 = vor.u32 8388608, %v12527_v53  ;;  %v12559_v41 = vand.u32 3, %v4732_v31  ;;  %v4886_v4 = vsel %vm4880_vm4, %v4883_v47, %v4885_v19 }
 0x29d   : > { %v4890_v37 = vsel %vm4880_vm4, %v4887_v5, %v4889_v43  ;;  %v4893_v35 = vsel %vm4881_vm5, %v4875_v11, %v4892_v15  ;;  %v4809_v60 = vsub.s32 0, %v12555_v16  ;;  %v4830_v22 = vsel %vm4745_vm14, %v4829_v8, %v4805_v59 }
 0x29e   : > { %v4894_v56 = vsel %vm4880_vm4, %v4891_v55, %v4893_v35  ;;  %vm4962_vm8 = vcmp.gt.s32.totalorder %v4961_v58, 0  ;;  %v12571_v53 = vmul.u32.u64.low %v4895_v32, %v4890_v37  ;;  %v12572_v31 = vmul.u32.u64.high %v4895_v32, %v4890_v37, %v12571_v53 }
 0x29f   : > { %v12568_v20 = vmul.u32.u64.low %v4895_v32, %v4894_v56  ;;  %v12569_v62 = vmul.u32.u64.high %v4895_v32, %v4894_v56, %v12568_v20  ;;  %vm12577_vm0 = vcmp.le.f32.partialorder %v4743_v63, 0.7853982  ;;  %v9356_v17 = vmin.u32 %v4809_v60, %v12555_v16 }
 0x2a0   : > { %v4963_v13 = vsel %vm4962_vm8, %v4961_v58, 0  ;;  %vm4734_vm9 = vcmp.lt.s32.totalorder %v12559_v41, 2  ;;  %v12585_v29 = vsel %vm12577_vm0, 0, %v4830_v22  ;;  %vm4731_vm11 = vweird.f32 %v12124_v12 }
 0x2a1   : > { %v4965_v18 = vand.u32 31, %v4963_v13  ;;  %vm4735_vm7 = vcmp.eq.s32.totalorder %v12559_v41, 0  ;;  %vm4738_vm12 = vcmp.eq.s32.totalorder %v12559_v41, 2  ;;  %v4811_v63 = vclz %v9356_v17 }
 0x2a2   : > { %v4902_v44 = vmul.u32 %v4895_v32, %v4886_v4  ;;  %vm4904_vm1 = vc.u32 %v12569_v62, %v12571_v53  ;;  %v4905_v58 = vadd.s32 1, %v12572_v31  ;;  %v12593_v48 = vshll.u32 %v4959_v33, 8 }
 0x2a3   : > { %v4966_v3 = vsub.s32 32, %v4965_v18  ;;  %v4799_v54 = vadd.s32 %v12519_v10, %v12516_v25  ;;  %v9357_v52 = vadd.s32 4294967294, %v4811_v63  ;;  %v12598_v21 = vadd.s32 3, %v12585_v29 }
 0x2a4   : > { %v12601_v49 = vand.u32 3, %v12463_v39  ;;  %v4906_v27 = vsel %vm4904_vm1, %v4905_v58, %v12572_v31  ;;  %v12604_v24 = vshrl.u32 %v4963_v13, 5  ;;  %v4968_v11 = vshll.u32 %v9992_v34, %v4965_v18 }
 0x2a5   : > { %v4971_v14 = vshll.u32 %v9993_v36, %v4965_v18  ;;  %vm9358_vm2 = vcmp.lt.s32.totalorder %v9357_v52, 0  ;;  %v4907_v59 = vadd.s32 %v4906_v27, %v4902_v44  ;;  %v4969_v26 = vshrl.u32 %v9993_v36, %v4966_v3 }
 0x2a6   : > { %v4974_v25 = vshll.u32 %v9994_v38, %v4965_v18  ;;  %v4814_v46 = vsel %vm9358_vm2, 0, %v9357_v52  ;;  %v4967_v39 = vshrl.u32 %v9992_v34, %v4966_v3  ;;  %v4972_v47 = vshrl.u32 %v9994_v38, %v4966_v3 }
 0x2a7   : > { %v12610_v10 = vpop.eup %9817  ;;  %v4975_v7 = vshrl.u32 %v9995_v40, %v4966_v3  ;;  %v4815_v8 = vsub.s32 32, %v4814_v46  ;;  %v4816_v19 = vshll.u32 %v12555_v16, %v4814_v46  ;;  %v4819_v9 = vsub.s32 4294967266, %v4814_v46 }
 0x2a8   : > { %v12615_v5 = vpop.eup %9819  ;;  %v4739_v23 = vxor.u32 2147483648, %v12610_v10  ;;  %v4908_v32 = vadd.s32 536870912, %v4907_v59  ;;  %v4977_v43 = vshll.u32 %v9995_v40, %v4965_v18  ;;  %v4978_v15 = vshrl.u32 %v9996_v42, %v4966_v3 }
 0x2a9   : > { %v4736_v55 = vxor.u32 2147483648, %v12615_v5  ;;  %v4817_v4 = vshrl.u32 %v4799_v54, %v4815_v8  ;;  %v4820_v37 = vadd.s32 127, %v4819_v9  ;;  %v4970_v35 = vor.u32 %v4969_v26, %v4968_v11 }
 0x2aa   : > { %v4740_v33 = vsel %vm4738_vm12, %v4739_v23, %v12615_v5  ;;  %v4909_v60 = vshrl.u32 %v4908_v32, 30  ;;  %v4973_v22 = vor.u32 %v4972_v47, %v4971_v14  ;;  %v4980_v56 = vshll.u32 %v9996_v42, %v4965_v18 }
 0x2ab   : > { %v4737_v16 = vsel %vm4735_vm7, %v12610_v10, %v4736_v55  ;;  %v4818_v31 = vor.u32 %v4817_v4, %v4816_v19  ;;  %v4821_v17 = vshll.u32 %v4820_v37, 23  ;;  %v4981_v13 = vshrl.u32 %v9997_v50, %v4966_v3 }
 0x2ac   : > { %v4741_v20 = vsel %vm4734_vm9, %v4737_v16, %v4740_v33  ;;  %v4910_v44 = vshll.u32 %v4909_v60, 30  ;;  %v4979_v58 = vor.u32 %v4978_v15, %v4977_v43  ;;  %vm4983_vm15 = vcmp.lt.s32.totalorder %v12604_v24, 1 }
 0x2ad   : > { %v4742_v63 = vsel %vm4731_vm11, nan, %v4741_v20  ;;  %v4822_v27 = vor.u32 4788187, %v4821_v17  ;;  %v4825_v18 = vcvt.s32.f32 %v4818_v31  ;;  %v4976_v41 = vor.u32 %v4975_v7, %v4974_v25 }
 0x2ae   : > { %v5063_v54 = vrot.slane %v4742_v63, 7  ;;  %v5059_v52 = vcombine.high %v4742_v63, %v4742_v63  ;;  %v12637_v11 = vsub.s32 %v4907_v59, %v4910_v44  ;;  %vm4986_vm13 = vcmp.lt.s32.totalorder %v12604_v24, 4 }
 0x2af   : > { %vm5181_vm10 = vcmp.lt.s32.totalorder %v12601_v49, 2  ;;  %v4823_v14 = vand.u32 2147483647, %v4822_v27  ;;  %vm4849_vm3 = vcmp.lt.s32.totalorder %v12394_v61, 0  ;;  %v4982_v26 = vor.u32 %v4981_v13, %v4980_v56 }
 0x2b0   : > { %5079 = vst [vmem:[%s10124_s26 + $0x100] sm:$0xe] %v5063_v54  ;;  %v5064_v3 = vrot.slane %v5059_v52, 7  ;;  %vm4985_vm4 = vcmp.lt.s32.totalorder %v12604_v24, 3  ;;  %v4913_v46 = vsub.s32 0, %v12637_v11  ;;  %vm4984_vm5 = vcmp.lt.s32.totalorder %v12604_v24, 2 }
 0x2b1   : > { %v4988_v59 = vsel %vm4986_vm13, %v4976_v41, 2102212464  ;;  %v4991_v25 = vsel %vm4983_vm15, %v4970_v35, %v4973_v22  ;;  %v4826_v47 = vmul.f32 %v4825_v18, %v4823_v14  ;;  %v4987_v7 = vsel %vm4983_vm15, %v4967_v39, %v4970_v35 }
 0x2b2   : > { %5080 = vst [vmem:[%s10124_s26 + $0x108] sm:$0xe] %v5064_v3  ;;  %v4989_v8 = vsel %vm4985_vm4, %v4973_v22, %v4988_v59  ;;  %v4992_v19 = vsel %vm4986_vm13, %v4979_v58, 920167782  ;;  %v9360_v9 = vmin.u32 %v4913_v46, %v12637_v11  ;;  %vm5182_vm6 = vcmp.eq.s32.totalorder %v12601_v49, 0 }
 0x2b3   : > { %v4993_v32 = vsel %vm4985_vm4, %v4976_v41, %v4992_v19  ;;  %vm5185_vm8 = vcmp.eq.s32.totalorder %v12601_v49, 2  ;;  %v4827_v43 = vxor.u32 2147483648, %v4826_v47  ;;  %v4995_v39 = vsel %vm4983_vm15, %v4973_v22, %v4976_v41 }
 0x2b4   : > { %v4994_v15 = vsel %vm4984_vm5, %v4991_v25, %v4993_v32  ;;  %v4996_v33 = vsel %vm4986_vm13, %v4982_v26, 1326507024  ;;  %v4903_v4 = vadd.s32 %v12571_v53, %v12569_v62  ;;  %v4915_v37 = vclz %v9360_v9 }
 0x2b5   : > { %v4933_v35 = vsub.s32 4, %v4909_v60  ;;  %v4990_v16 = vsel %vm4984_vm5, %v4987_v7, %v4989_v8  ;;  %v4828_v56 = vsel %vm4745_vm14, %v4827_v43, %v4826_v47  ;;  %v4997_v20 = vsel %vm4985_vm4, %v4979_v58, %v4996_v33 }
 0x2b6   : > { %v12677_v31 = vmul.u32.u64.low %v12593_v48, %v4994_v15  ;;  %v12678_v22 = vmul.u32.u64.high %v12593_v48, %v4994_v15, %v12677_v31  ;;  %v4831_v62 = vsel %vm12577_vm0, %v12324_v45, %v4828_v56  ;;  %v9361_v53 = vadd.s32 4294967294, %v4915_v37 }
 0x2b7   : > { %v4998_v17 = vsel %vm4984_vm5, %v4995_v39, %v4997_v20  ;;  %v5184_v13 = vsel %vm5182_vm6, %v12610_v10, %v4736_v55  ;;  %9821 = vcosq.f32 %v4831_v62  ;;  %v5187_v51 = vsel %vm5185_vm8, %v4739_v23, %v12615_v5 }
 0x2b8   : > { %v12690_v63 = vmul.u32.u64.low %v12593_v48, %v4998_v17  ;;  %v12691_v44 = vmul.u32.u64.high %v12593_v48, %v4998_v17, %v12690_v63  ;;  %9823 = vsinq.f32 %v4831_v62  ;;  %vm9362_vm14 = vcmp.lt.s32.totalorder %v9361_v53, 0 }
 0x2b9   : > { %v4934_v24 = vsel %vm4849_vm3, %v4933_v35, %v4909_v60  ;;  %v5188_v55 = vsel %vm5181_vm10, %v5184_v13, %v5187_v51  ;;  %v4918_v58 = vsel %vm9362_vm14, 0, %v9361_v53  ;;  %v5006_v54 = vmul.u32 %v12593_v48, %v4990_v16 }
 0x2ba   : > { %v5009_v52 = vadd.s32 1, %v12678_v22  ;;  %v5189_v10 = vsel %vm4731_vm11, nan, %v5188_v55  ;;  %v4919_v27 = vsub.s32 32, %v4918_v58  ;;  %v4920_v5 = vshll.u32 %v12637_v11, %v4918_v58 }
 0x2bb   : > { %v4923_v23 = vsub.s32 4294967266, %v4918_v58  ;;  %v5503_v18 = vcombine.low %v5189_v10, %v5189_v10  ;;  %5512 = vst [vmem:[%s10124_s26 + $0x108] sm:$0x70] %v5189_v10  ;;  %vm12710_vm0 = vcmp.le.f32.partialorder %v4847_v28, 0.7853982  ;;  %vm5008_vm9 = vc.u32 %v12691_v44, %v12677_v31 }
 0x2bc   : > { %v12717_v48 = vmul.f32 64.0, %v10118_v0  ;;  %v4921_v12 = vshrl.u32 %v4903_v4, %v4919_v27  ;;  %v4936_v11 = vsel %vm12710_vm0, 0, %v4934_v24  ;;  %v5010_v41 = vsel %vm5008_vm9, %v5009_v52, %v12678_v22 }
 0x2bd   : > { %v4924_v60 = vadd.s32 127, %v4923_v23  ;;  %5511 = vst [vmem:[%s10124_s26 + $0x100] sm:$0x70] %v5503_v18  ;;  %v4837_v3 = vand.u32 3, %v12598_v21  ;;  %v5011_v28 = vadd.s32 %v5010_v41, %v5006_v54  ;;  %v12726_v59 = vmul.f32 64.0, %v10120_v1 }
 0x2be   : > { %v4922_v14 = vor.u32 %v4921_v12, %v4920_v5  ;;  %v5523_v46 = vand.u32 2147483647, %v12717_v48  ;;  %vm4835_vm11 = vweird.f32 %v12324_v45  ;;  %v4940_v25 = vadd.s32 3, %v4936_v11 }
 0x2bf   : > { %v4925_v26 = vshll.u32 %v4924_v60, 23  ;;  %v5012_v47 = vadd.s32 536870912, %v5011_v28  ;;  %v5526_v7 = vand.u32 2139095040, %v12717_v48  ;;  %vm4953_vm7 = vcmp.lt.s32.totalorder %v12414_v30, 0 }
 0x2c0   : > { %v4929_v19 = vcvt.s32.f32 %v4922_v14  ;;  %v5283_v21 = vand.u32 3, %v12585_v29  ;;  %vm4838_vm12 = vcmp.lt.s32.totalorder %v4837_v3, 2  ;;  %vm4839_vm1 = vcmp.eq.s32.totalorder %v4837_v3, 0 }
 0x2c1   : > { %v4926_v8 = vor.u32 4788187, %v4925_v26  ;;  %v5013_v9 = vshrl.u32 %v5012_v47, 30  ;;  %v5527_v32 = vshrl.u32 %v5526_v7, 23  ;;  %vm4842_vm2 = vcmp.eq.s32.totalorder %v4837_v3, 2 }
 0x2c2   : > { %v5530_v15 = vand.u32 8388607, %v5523_v46  ;;  %v5630_v39 = vand.u32 2139095040, %v12726_v59  ;;  %v12735_v33 = vand.u32 3, %v4940_v25  ;;  %vm12739_vm15 = vcmp.le.f32.partialorder %v4951_v57, 0.7853982 }
 0x2c3   : > { %v4927_v43 = vand.u32 2147483647, %v4926_v8  ;;  %v5014_v29 = vshll.u32 %v5013_v9, 30  ;;  %v12743_v37 = vand.u32 3, %v4936_v11  ;;  %v5627_v35 = vand.u32 2147483647, %v12726_v59 }
 0x2c4   : > { %v9822_v16 = vpop.eup %9821  ;;  %v5037_v20 = vsub.s32 4, %v5013_v9  ;;  %vm5284_vm13 = vcmp.lt.s32.totalorder %v5283_v21, 2  ;;  %vm5288_vm10 = vcmp.eq.s32.totalorder %v5283_v21, 2  ;;  %vm5285_vm4 = vcmp.eq.s32.totalorder %v5283_v21, 0 }
 0x2c5   : > { %v4930_v56 = vmul.f32 %v4929_v19, %v4927_v43  ;;  %v9824_v22 = vpop.eup %9823  ;;  %v4843_v62 = vxor.u32 2147483648, %v9822_v16  ;;  %v12746_v53 = vsub.s32 %v5011_v28, %v5014_v29  ;;  %v9383_v17 = vadd.s32 4294967169, %v5527_v32 }
 0x2c6   : > { %v4840_v57 = vxor.u32 2147483648, %v9824_v22  ;;  %v5531_v63 = vor.u32 8388608, %v5530_v15  ;;  %v5631_v51 = vshrl.u32 %v5630_v39, 23  ;;  %v12752_v54 = vand.u32 8388607, %v5627_v35 }
 0x2c7   : > { %v4931_v13 = vxor.u32 2147483648, %v4930_v56  ;;  %v4844_v24 = vsel %vm4842_vm2, %v4843_v62, %v9824_v22  ;;  %v5017_v55 = vsub.s32 0, %v12746_v53  ;;  %v5290_v58 = vsel %vm5288_vm10, %v4843_v62, %v9824_v22 }
 0x2c8   : > { %v4841_v52 = vsel %vm4839_vm1, %v9822_v16, %v4840_v57  ;;  %v5038_v27 = vsel %vm4953_vm7, %v5037_v20, %v5013_v9  ;;  %v5287_v5 = vsel %vm5285_vm4, %v9822_v16, %v4840_v57  ;;  %v5533_v60 = vadd.s32 1, %v9383_v17 }
 0x2c9   : > { %v4932_v10 = vsel %vm4849_vm3, %v4931_v13, %v4930_v56  ;;  %v4845_v23 = vsel %vm4838_vm12, %v4841_v52, %v4844_v24  ;;  %v9364_v12 = vmin.u32 %v5017_v55, %v12746_v53  ;;  %v5291_v41 = vsel %vm5284_vm13, %v5287_v5, %v5290_v58 }
 0x2ca   : > { %v4935_v18 = vsel %vm12710_vm0, %v12394_v61, %v4932_v10  ;;  %v4846_v11 = vsel %vm4835_vm11, nan, %v4845_v23  ;;  %v9387_v28 = vadd.s32 4294967169, %v5631_v51  ;;  %v5040_v49 = vsel %vm12739_vm15, 0, %v5038_v27 }
 0x2cb   : > { %9825 = vcosq.f32 %v4935_v18  ;;  %v5065_v14 = vrot.slane %v4846_v11, 7  ;;  %v5060_v26 = vcombine.high %v4846_v11, %v4846_v11  ;;  %v5019_v3 = vclz %v9364_v12 }
 0x2cc   : > { %9827 = vsinq.f32 %v4935_v18  ;;  %v5292_v25 = vsel %vm4835_vm11, nan, %v5291_v41  ;;  %v5007_v7 = vadd.s32 %v12677_v31, %v12691_v44  ;;  %vm5534_vm3 = vcmp.gt.s32.totalorder %v5533_v60, 0 }
 0x2cd   : > { %5081 = vst [vmem:[%s10124_s26 + $0x110] sm:$0xe] %v5065_v14  ;;  %v5066_v47 = vrot.slane %v5060_v26, 7  ;;  %v9365_v8 = vadd.s32 4294967294, %v5019_v3  ;;  %v5504_v19 = vcombine.low %v5292_v25, %v5292_v25  ;;  %5514 = vst [vmem:[%s10124_s26 + $0x118] sm:$0x70] %v5292_v25  ;;  %vm4939_vm1 = vweird.f32 %v12394_v61 }
 0x2ce   : > { %v12775_v21 = vshll.u32 %v5531_v63, 8  ;;  %v5635_v9 = vor.u32 8388608, %v12752_v54  ;;  %v5637_v32 = vadd.s32 1, %v9387_v28  ;;  %vm4946_vm5 = vcmp.eq.s32.totalorder %v12735_v33, 2 }
 0x2cf   : > { %5082 = vst [vmem:[%s10124_s26 + $0x118] sm:$0xe] %v5066_v47  ;;  %vm9366_vm6 = vcmp.lt.s32.totalorder %v9365_v8, 0  ;;  %v12780_v45 = vadd.s32 3, %v5040_v49  ;;  %5513 = vst [vmem:[%s10124_s26 + $0x110] sm:$0x70] %v5504_v19 }
 0x2d0   : > { %vm5391_vm8 = vcmp.eq.s32.totalorder %v12743_v37, 2  ;;  %v5535_v43 = vsel %vm5534_vm3, %v5533_v60, 0  ;;  %v12785_v31 = vmul.f32 64.0, %v10122_v2  ;;  %vm4943_vm14 = vcmp.eq.s32.totalorder %v12735_v33, 0 }
 0x2d1   : > { %v5022_v44 = vsel %vm9366_vm6, 0, %v9365_v8  ;;  %vm5388_vm0 = vcmp.eq.s32.totalorder %v12743_v37, 0  ;;  %v12789_v15 = vand.u32 3, %v5040_v49  ;;  %v5537_v39 = vand.u32 31, %v5535_v43 }
 0x2d2   : > { %vm5638_vm9 = vcmp.gt.s32.totalorder %v5637_v32, 0  ;;  %vm4942_vm11 = vcmp.lt.s32.totalorder %v12735_v33, 2  ;;  %v5023_v29 = vsub.s32 32, %v5022_v44  ;;  %v5024_v16 = vshll.u32 %v12746_v53, %v5022_v44 }
 0x2d3   : > { %v5027_v56 = vsub.s32 4294967266, %v5022_v44  ;;  %vm5387_vm12 = vcmp.lt.s32.totalorder %v12743_v37, 2  ;;  %v12794_v20 = vshrl.u32 %v5535_v43, 5  ;;  %v5538_v22 = vsub.s32 32, %v5537_v39 }
 0x2d4   : > { %v5540_v62 = vshll.u32 %v9992_v34, %v5537_v39  ;;  %v5543_v17 = vshll.u32 %v9993_v36, %v5537_v39  ;;  %v5546_v57 = vshll.u32 %v9994_v38, %v5537_v39  ;;  %v5025_v13 = vshrl.u32 %v5007_v7, %v5023_v29 }
 0x2d5   : > { %v5028_v63 = vadd.s32 127, %v5027_v56  ;;  %v5549_v51 = vshll.u32 %v9995_v40, %v5537_v39  ;;  %v5639_v24 = vsel %vm5638_vm9, %v5637_v32, 0  ;;  %v5541_v53 = vshrl.u32 %v9993_v36, %v5538_v22 }
 0x2d6   : > { %v5544_v55 = vshrl.u32 %v9994_v38, %v5538_v22  ;;  %v5547_v58 = vshrl.u32 %v9995_v40, %v5538_v22  ;;  %v5552_v52 = vshll.u32 %v9996_v42, %v5537_v39  ;;  %v5026_v10 = vor.u32 %v5025_v13, %v5024_v16 }
 0x2d7   : > { %v5029_v27 = vshll.u32 %v5028_v63, 23  ;;  %v5550_v5 = vshrl.u32 %v9996_v42, %v5538_v22  ;;  %v5553_v23 = vshrl.u32 %v9997_v50, %v5538_v22  ;;  %v5539_v18 = vshrl.u32 %v9992_v34, %v5538_v22 }
 0x2d8   : > { %v5542_v12 = vor.u32 %v5541_v53, %v5540_v62  ;;  %v5545_v60 = vor.u32 %v5544_v55, %v5543_v17  ;;  %v5548_v11 = vor.u32 %v5547_v58, %v5546_v57  ;;  %v9826_v41 = vpop.eup %9825  ;;  %v5033_v14 = vcvt.s32.f32 %v5026_v10 }
 0x2d9   : > { %v5030_v28 = vor.u32 4788187, %v5029_v27  ;;  %v5551_v26 = vor.u32 %v5550_v5, %v5549_v51  ;;  %vm5555_vm2 = vcmp.lt.s32.totalorder %v12794_v20, 1  ;;  %v9828_v3 = vpop.eup %9827  ;;  %v4947_v49 = vxor.u32 2147483648, %v9826_v41 }
 0x2da   : > { %v5554_v25 = vor.u32 %v5553_v23, %v5552_v52  ;;  %vm5556_vm13 = vcmp.lt.s32.totalorder %v12794_v20, 2  ;;  %vm5558_vm10 = vcmp.lt.s32.totalorder %v12794_v20, 4  ;;  %v4944_v47 = vxor.u32 2147483648, %v9828_v3 }
 0x2db   : > { %v5031_v7 = vand.u32 2147483647, %v5030_v28  ;;  %vm5557_vm4 = vcmp.lt.s32.totalorder %v12794_v20, 3  ;;  %v5560_v8 = vsel %vm5558_vm10, %v5548_v11, 2102212464  ;;  %v4948_v19 = vsel %vm4946_vm5, %v4947_v49, %v9828_v3 }
 0x2dc   : > { %v5393_v32 = vsel %vm5391_vm8, %v4947_v49, %v9828_v3  ;;  %v5559_v43 = vsel %vm5555_vm2, %v5539_v18, %v5542_v12  ;;  %v5561_v44 = vsel %vm5557_vm4, %v5545_v60, %v5560_v8  ;;  %v4945_v39 = vsel %vm4943_vm14, %v9826_v41, %v4944_v47 }
 0x2dd   : > { %v5034_v29 = vmul.f32 %v5033_v14, %v5031_v7  ;;  %v5390_v16 = vsel %vm5388_vm0, %v9826_v41, %v4944_v47  ;;  %v5563_v56 = vsel %vm5555_vm2, %v5542_v12, %v5545_v60  ;;  %v4949_v22 = vsel %vm4942_vm11, %v4945_v39, %v4948_v19 }
 0x2de   : > { %v5394_v62 = vsel %vm5387_vm12, %v5390_v16, %v5393_v32  ;;  %v5564_v17 = vsel %vm5558_vm10, %v5551_v26, 920167782  ;;  %v5567_v57 = vsel %vm5555_vm2, %v5545_v60, %v5548_v11  ;;  %v4950_v13 = vsel %vm4939_vm1, nan, %v4949_v22 }
 0x2df   : > { %v5035_v63 = vxor.u32 2147483648, %v5034_v29  ;;  %v5395_v51 = vsel %vm4939_vm1, nan, %v5394_v62  ;;  %v5565_v33 = vsel %vm5557_vm4, %v5548_v11, %v5564_v17  ;;  %v5067_v37 = vrot.slane %v4950_v13, 7 }
 0x2e0   : > { %v5061_v53 = vcombine.high %v4950_v13, %v4950_v13  ;;  %v5505_v55 = vcombine.low %v5395_v51, %v5395_v51  ;;  %5516 = vst [vmem:[%s10124_s26 + $0x128] sm:$0x70] %v5395_v51  ;;  %v5566_v58 = vsel %vm5556_vm13, %v5563_v56, %v5565_v33  ;;  %v5568_v10 = vsel %vm5558_vm10, %v5554_v25, 1326507024 }
 0x2e1   : > { %v5036_v52 = vsel %vm4953_vm7, %v5035_v63, %v5034_v29  ;;  %v12850_v61 = vmul.u32.u64.low %v12775_v21, %v5566_v58  ;;  %v12851_v27 = vmul.u32.u64.high %v12775_v21, %v5566_v58, %v12850_v61  ;;  %5083 = vst [vmem:[%s10124_s26 + $0x120] sm:$0xe] %v5067_v37  ;;  %v5562_v18 = vsel %vm5556_vm13, %v5559_v43, %v5561_v44 }
 0x2e2   : > { %v5068_v5 = vrot.slane %v5061_v53, 7  ;;  %v5039_v23 = vsel %vm12739_vm15, %v12414_v30, %v5036_v52  ;;  %5515 = vst [vmem:[%s10124_s26 + $0x120] sm:$0x70] %v5505_v55  ;;  %v5569_v12 = vsel %vm5557_vm4, %v5551_v26, %v5568_v10  ;;  %v5640_v11 = vshrl.u32 %v5639_v24, 5 }
 0x2e3   : > { %9829 = vcosq.f32 %v5039_v23  ;;  %v5570_v60 = vsel %vm5556_vm13, %v5567_v57, %v5569_v12  ;;  %v5641_v41 = vand.u32 31, %v5639_v24  ;;  %v12867_v28 = vand.u32 3, %v12780_v45 }
 0x2e4   : > { %5084 = vst [vmem:[%s10124_s26 + $0x128] sm:$0xe] %v5068_v5  ;;  %9831 = vsinq.f32 %v5039_v23  ;;  %v12870_v4 = vmul.u32.u64.low %v12775_v21, %v5570_v60  ;;  %v12871_v14 = vmul.u32.u64.high %v12775_v21, %v5570_v60, %v12870_v4  ;;  %v5581_v3 = vadd.s32 1, %v12851_v27 }
 0x2e5   : > { %v5642_v49 = vsub.s32 32, %v5641_v41  ;;  %v5644_v26 = vshll.u32 %v9992_v34, %v5641_v41  ;;  %v5647_v25 = vshll.u32 %v9993_v36, %v5641_v41  ;;  %v5578_v20 = vmul.u32 %v12775_v21, %v5562_v18 }
 0x2e6   : > { %v5650_v24 = vshll.u32 %v9994_v38, %v5641_v41  ;;  %v5653_v47 = vshll.u32 %v9995_v40, %v5641_v41  ;;  %v5656_v45 = vshll.u32 %v9996_v42, %v5641_v41  ;;  %vm5659_vm7 = vcmp.lt.s32.totalorder %v5640_v11, 1 }
 0x2e7   : > { %v5645_v7 = vshrl.u32 %v9993_v36, %v5642_v49  ;;  %v5648_v8 = vshrl.u32 %v9994_v38, %v5642_v49  ;;  %v5651_v19 = vshrl.u32 %v9995_v40, %v5642_v49  ;;  %vm5580_vm15 = vc.u32 %v12871_v14, %v12850_v61 }
 0x2e8   : > { %v5643_v32 = vshrl.u32 %v9992_v34, %v5642_v49  ;;  %v5654_v21 = vshrl.u32 %v9996_v42, %v5642_v49  ;;  %v5657_v43 = vshrl.u32 %v9997_v50, %v5642_v49  ;;  %v5582_v44 = vsel %vm5580_vm15, %v5581_v3, %v12851_v27 }
 0x2e9   : > { %v5646_v39 = vor.u32 %v5645_v7, %v5644_v26  ;;  %v5649_v29 = vor.u32 %v5648_v8, %v5647_v25  ;;  %v5652_v16 = vor.u32 %v5651_v19, %v5650_v24  ;;  %vm5490_vm3 = vcmp.lt.s32.totalorder %v12789_v15, 2 }
 0x2ea   : > { %v5583_v56 = vadd.s32 %v5582_v44, %v5578_v20  ;;  %v5655_v22 = vor.u32 %v5654_v21, %v5653_v47  ;;  %v5658_v62 = vor.u32 %v5657_v43, %v5656_v45  ;;  %v12892_v17 = vshll.u32 %v5635_v9, 8 }
 0x2eb   : > { %vm5043_vm5 = vweird.f32 %v12414_v30  ;;  %vm5660_vm6 = vcmp.lt.s32.totalorder %v5640_v11, 2  ;;  %vm5661_vm8 = vcmp.lt.s32.totalorder %v5640_v11, 3  ;;  %vm5662_vm14 = vcmp.lt.s32.totalorder %v5640_v11, 4 }
 0x2ec   : > { %v5667_v57 = vsel %vm5659_vm7, %v5646_v39, %v5649_v29  ;;  %v5584_v13 = vadd.s32 536870912, %v5583_v56  ;;  %v5664_v63 = vsel %vm5662_vm14, %v5652_v16, 2102212464  ;;  %v5668_v51 = vsel %vm5662_vm14, %v5655_v22, 920167782 }
 0x2ed   : > { %v5671_v33 = vsel %vm5659_vm7, %v5649_v29, %v5652_v16  ;;  %v5663_v37 = vsel %vm5659_vm7, %v5643_v32, %v5646_v39  ;;  %v5665_v53 = vsel %vm5661_vm8, %v5649_v29, %v5664_v63  ;;  %v5669_v55 = vsel %vm5661_vm8, %v5652_v16, %v5668_v51 }
 0x2ee   : > { %v5672_v58 = vsel %vm5662_vm14, %v5658_v62, 1326507024  ;;  %vm5050_vm0 = vcmp.eq.s32.totalorder %v12867_v28, 2  ;;  %v5585_v54 = vshrl.u32 %v5584_v13, 30  ;;  %v5670_v9 = vsel %vm5660_vm6, %v5667_v57, %v5669_v55 }
 0x2ef   : > { %v5673_v52 = vsel %vm5661_vm8, %v5655_v22, %v5672_v58  ;;  %vm5494_vm9 = vcmp.eq.s32.totalorder %v12789_v15, 2  ;;  %v12903_v27 = vmul.u32.u64.low %v12892_v17, %v5670_v9  ;;  %v12904_v5 = vmul.u32.u64.high %v12892_v17, %v5670_v9, %v12903_v27 }
 0x2f0   : > { %v5674_v10 = vsel %vm5660_vm6, %v5671_v33, %v5673_v52  ;;  %v9830_v23 = vpop.eup %9829  ;;  %v5586_v18 = vshll.u32 %v5585_v54, 30  ;;  %v5666_v12 = vsel %vm5660_vm6, %v5663_v37, %v5665_v53  ;;  %vm5047_vm11 = vcmp.eq.s32.totalorder %v12867_v28, 0 }
 0x2f1   : > { %v12909_v60 = vmul.u32.u64.low %v12892_v17, %v5674_v10  ;;  %v12910_v41 = vmul.u32.u64.high %v12892_v17, %v5674_v10, %v12909_v60  ;;  %v9832_v4 = vpop.eup %9831  ;;  %v5051_v3 = vxor.u32 2147483648, %v9830_v23  ;;  %vm5491_vm12 = vcmp.eq.s32.totalorder %v12789_v15, 0 }
 0x2f2   : > { %v5734_v49 = vand.u32 2139095040, %v12785_v31  ;;  %vm5046_vm1 = vcmp.lt.s32.totalorder %v12867_v28, 2  ;;  %v5048_v26 = vxor.u32 2147483648, %v9832_v4  ;;  %v5587_v25 = vsub.s32 %v5583_v56, %v5586_v18 }
 0x2f3   : > { %v5731_v20 = vand.u32 2147483647, %v12785_v31  ;;  %v5052_v11 = vsel %vm5050_vm0, %v5051_v3, %v9832_v4  ;;  %v5496_v24 = vsel %vm5494_vm9, %v5051_v3, %v9832_v4  ;;  %v5682_v47 = vmul.u32 %v12892_v17, %v5666_v12 }
 0x2f4   : > { %v5685_v45 = vadd.s32 1, %v12904_v5  ;;  %v5049_v7 = vsel %vm5047_vm11, %v9830_v23, %v5048_v26  ;;  %v5493_v8 = vsel %vm5491_vm12, %v9830_v23, %v5048_v26  ;;  %v5589_v19 = vsub.s32 0, %v5587_v25 }
 0x2f5   : > { %v5609_v32 = vsub.s32 4, %v5585_v54  ;;  %v5053_v21 = vsel %vm5046_vm1, %v5049_v7, %v5052_v11  ;;  %v5497_v43 = vsel %vm5490_vm3, %v5493_v8, %v5496_v24  ;;  %vm5684_vm2 = vc.u32 %v12910_v41, %v12903_v27 }
 0x2f6   : > { %v5735_v28 = vshrl.u32 %v5734_v49, 23  ;;  %v5054_v44 = vsel %vm5043_vm5, nan, %v5053_v21  ;;  %v5498_v39 = vsel %vm5043_vm5, nan, %v5497_v43  ;;  %vm5525_vm13 = vcmp.lt.s32.totalorder %v12717_v48, 0 }
 0x2f7   : > { %v9384_v29 = vmin.u32 %v5589_v19, %v5587_v25  ;;  %v5069_v16 = vrot.slane %v5054_v44, 7  ;;  %v5062_v56 = vcombine.high %v5054_v44, %v5054_v44  ;;  %v5506_v15 = vcombine.low %v5498_v39, %v5498_v39  ;;  %5518 = vst [vmem:[%s10124_s26 + $0x138] sm:$0x70] %v5498_v39 }
 0x2f8   : > { %v5686_v22 = vsel %vm5684_vm2, %v5685_v45, %v12904_v5  ;;  %v5610_v17 = vsel %vm5525_vm13, %v5609_v32, %v5585_v54  ;;  %v5738_v57 = vand.u32 8388607, %v5731_v20  ;;  %v9391_v63 = vadd.s32 4294967169, %v5735_v28 }
 0x2f9   : > { %v5591_v62 = vclz %v9384_v29  ;;  %5085 = vst [vmem:[%s10124_s26 + $0x130] sm:$0xe] %v5069_v16  ;;  %v5070_v30 = vrot.slane %v5062_v56, 7  ;;  %5517 = vst [vmem:[%s10124_s26 + $0x130] sm:$0x70] %v5506_v15  ;;  %v5687_v13 = vadd.s32 %v5686_v22, %v5682_v47  ;;  %v12941_v51 = vmul.f32 64.0, %v10138_v6 }
 0x2fa   : > { %vm12946_vm10 = vcmp.le.f32.partialorder %v5523_v46, 0.7853982  ;;  %v5579_v53 = vadd.s32 %v12850_v61, %v12871_v14  ;;  %v5741_v58 = vadd.s32 1, %v9391_v63  ;;  %v5739_v9 = vor.u32 8388608, %v5738_v57 }
 0x2fb   : > { %v9385_v33 = vadd.s32 4294967294, %v5591_v62  ;;  %5086 = vst [vmem:[%s10124_s26 + $0x138] sm:$0xe] %v5070_v30  ;;  %v5688_v55 = vadd.s32 536870912, %v5687_v13  ;;  %v12954_v54 = vsel %vm12946_vm10, 0, %v5610_v17  ;;  %v5838_v46 = vand.u32 2139095040, %v12941_v51 }
 0x2fc   : > { %v5835_v52 = vand.u32 2147483647, %v12941_v51  ;;  %vm5742_vm7 = vcmp.gt.s32.totalorder %v5741_v58, 0  ;;  %v12959_v49 = vadd.s32 3, %v12954_v54  ;;  %vm5629_vm15 = vcmp.lt.s32.totalorder %v12726_v59, 0 }
 0x2fd   : > { %vm9386_vm4 = vcmp.lt.s32.totalorder %v9385_v33, 0  ;;  %v5689_v5 = vshrl.u32 %v5688_v55, 30  ;;  %v5743_v60 = vsel %vm5742_vm7, %v5741_v58, 0  ;;  %v5683_v26 = vadd.s32 %v12903_v27, %v12910_v41 }
 0x2fe   : > { %v5594_v10 = vsel %vm9386_vm4, 0, %v9385_v33  ;;  %v5745_v14 = vand.u32 31, %v5743_v60  ;;  %v12966_v47 = vshll.u32 %v5739_v9, 8  ;;  %v5839_v7 = vshrl.u32 %v5838_v46, 23 }
 0x2ff   : > { %v5595_v23 = vsub.s32 32, %v5594_v10  ;;  %v5596_v18 = vshll.u32 %v5587_v25, %v5594_v10  ;;  %v5599_v12 = vsub.s32 4294967266, %v5594_v10  ;;  %v5690_v61 = vshll.u32 %v5689_v5, 30 }
 0x300   : > { %v5746_v24 = vsub.s32 32, %v5745_v14  ;;  %v12970_v8 = vand.u32 8388607, %v5835_v52  ;;  %v5713_v32 = vsub.s32 4, %v5689_v5  ;;  %v5748_v21 = vshll.u32 %v9992_v34, %v5745_v14 }
 0x301   : > { %v5597_v4 = vshrl.u32 %v5579_v53, %v5595_v23  ;;  %v5600_v3 = vadd.s32 127, %v5599_v12  ;;  %v12964_v11 = vsub.s32 %v5687_v13, %v5690_v61  ;;  %v5751_v28 = vshll.u32 %v9993_v36, %v5745_v14 }
 0x302   : > { %v5749_v43 = vshrl.u32 %v9993_v36, %v5746_v24  ;;  %v5752_v44 = vshrl.u32 %v9994_v38, %v5746_v24  ;;  %v5744_v29 = vshrl.u32 %v5743_v60, 5  ;;  %v5754_v16 = vshll.u32 %v9994_v38, %v5745_v14 }
 0x303   : > { %v5598_v25 = vor.u32 %v5597_v4, %v5596_v18  ;;  %v5601_v45 = vshll.u32 %v5600_v3, 23  ;;  %v5693_v19 = vsub.s32 0, %v12964_v11  ;;  %v5755_v56 = vshrl.u32 %v9995_v40, %v5746_v24 }
 0x304   : > { %v5757_v22 = vshll.u32 %v9995_v40, %v5745_v14  ;;  %v5758_v62 = vshrl.u32 %v9996_v42, %v5746_v24  ;;  %v9395_v17 = vadd.s32 4294967169, %v5839_v7  ;;  %vm12984_vm3 = vcmp.le.f32.partialorder %v5627_v35, 0.7853982 }
 0x305   : > { %v5602_v27 = vor.u32 4788187, %v5601_v45  ;;  %v5605_v41 = vcvt.s32.f32 %v5598_v25  ;;  %v9388_v39 = vmin.u32 %v5693_v19, %v12964_v11  ;;  %v5714_v13 = vsel %vm5629_vm15, %v5713_v32, %v5689_v5 }
 0x306   : > { %v5747_v63 = vshrl.u32 %v9992_v34, %v5746_v24  ;;  %v5750_v33 = vor.u32 %v5749_v43, %v5748_v21  ;;  %v5753_v55 = vor.u32 %v5752_v44, %v5751_v28  ;;  %v5759_v58 = vor.u32 %v5758_v62, %v5757_v22 }
 0x307   : > { %v5603_v15 = vand.u32 2147483647, %v5602_v27  ;;  %v5695_v30 = vclz %v9388_v39  ;;  %v5760_v9 = vshll.u32 %v9996_v42, %v5745_v14  ;;  %v5756_v46 = vor.u32 %v5755_v56, %v5754_v16 }
 0x308   : > { %v5761_v23 = vshrl.u32 %v9997_v50, %v5746_v24  ;;  %vm5763_vm5 = vcmp.lt.s32.totalorder %v5744_v29, 1  ;;  %vm5764_vm6 = vcmp.lt.s32.totalorder %v5744_v29, 2  ;;  %vm5765_vm8 = vcmp.lt.s32.totalorder %v5744_v29, 3 }
 0x309   : > { %v5606_v53 = vmul.f32 %v5605_v41, %v5603_v15  ;;  %v9389_v10 = vadd.s32 4294967294, %v5695_v30  ;;  %vm5766_vm14 = vcmp.lt.s32.totalorder %v5744_v29, 4  ;;  %v5767_v5 = vsel %vm5763_vm5, %v5747_v63, %v5750_v33 }
 0x30a   : > { %v5762_v18 = vor.u32 %v5761_v23, %v5760_v9  ;;  %v5768_v12 = vsel %vm5766_vm14, %v5756_v46, 2102212464  ;;  %v5771_v14 = vsel %vm5763_vm5, %v5750_v33, %v5753_v55  ;;  %v5772_v4 = vsel %vm5766_vm14, %v5759_v58, 920167782 }
 0x30b   : > { %v5607_v35 = vxor.u32 2147483648, %v5606_v53  ;;  %vm9390_vm0 = vcmp.lt.s32.totalorder %v9389_v10, 0  ;;  %v5769_v7 = vsel %vm5765_vm8, %v5753_v55, %v5768_v12  ;;  %v5773_v19 = vsel %vm5765_vm8, %v5756_v46, %v5772_v4 }
 0x30c   : > { %v5698_v61 = vsel %vm9390_vm0, 0, %v9389_v10  ;;  %v5775_v32 = vsel %vm5763_vm5, %v5753_v55, %v5756_v46  ;;  %v5774_v27 = vsel %vm5764_vm6, %v5771_v14, %v5773_v19  ;;  %v5716_v37 = vsel %vm12984_vm3, 0, %v5714_v13 }
 0x30d   : > { %v5608_v60 = vsel %vm5525_vm13, %v5607_v35, %v5606_v53  ;;  %v5699_v24 = vsub.s32 32, %v5698_v61  ;;  %v5700_v25 = vshll.u32 %v12964_v11, %v5698_v61  ;;  %v5703_v45 = vsub.s32 4294967266, %v5698_v61 }
 0x30e   : > { %v5611_v3 = vsel %vm12946_vm10, %v12717_v48, %v5608_v60  ;;  %v5776_v41 = vsel %vm5766_vm14, %v5762_v18, 1326507024  ;;  %v13011_v11 = vmul.u32.u64.low %v12966_v47, %v5774_v27  ;;  %v13012_v28 = vmul.u32.u64.high %v12966_v47, %v5774_v27, %v13011_v11 }
 0x30f   : > { %9833 = vcosq.f32 %v5611_v3  ;;  %v5701_v21 = vshrl.u32 %v5683_v26, %v5699_v24  ;;  %v5704_v43 = vadd.s32 127, %v5703_v45  ;;  %v5777_v16 = vsel %vm5765_vm8, %v5759_v58, %v5776_v41 }
 0x310   : > { %9835 = vsinq.f32 %v5611_v3  ;;  %v5845_v56 = vadd.s32 1, %v9395_v17  ;;  %v5617_v26 = vand.u32 3, %v12959_v49  ;;  %v5770_v15 = vsel %vm5764_vm6, %v5767_v5, %v5769_v7 }
 0x311   : > { %v5702_v44 = vor.u32 %v5701_v21, %v5700_v25  ;;  %v5705_v39 = vshll.u32 %v5704_v43, 23  ;;  %v5778_v22 = vsel %vm5764_vm6, %v5775_v32, %v5777_v16  ;;  %v5720_v33 = vadd.s32 3, %v5716_v37 }
 0x312   : > { %v13020_v13 = vmul.u32.u64.low %v12966_v47, %v5778_v22  ;;  %v13021_v63 = vmul.u32.u64.high %v12966_v47, %v5778_v22, %v13020_v13  ;;  %v5789_v53 = vadd.s32 1, %v13012_v28  ;;  %vm5846_vm9 = vcmp.gt.s32.totalorder %v5845_v56, 0 }
 0x313   : > { %v5706_v62 = vor.u32 4788187, %v5705_v39  ;;  %v5709_v30 = vcvt.s32.f32 %v5702_v44  ;;  %v5786_v58 = vmul.u32 %v12966_v47, %v5770_v15  ;;  %v5843_v17 = vor.u32 8388608, %v12970_v8 }
 0x314   : > { %v5847_v49 = vsel %vm5846_vm9, %v5845_v56, 0  ;;  %vm5615_vm11 = vweird.f32 %v12717_v48  ;;  %vm5618_vm12 = vcmp.lt.s32.totalorder %v5617_v26, 2  ;;  %vm5619_vm1 = vcmp.eq.s32.totalorder %v5617_v26, 0 }
 0x315   : > { %v5707_v55 = vand.u32 2147483647, %v5706_v62  ;;  %v5849_v29 = vand.u32 31, %v5847_v49  ;;  %vm5788_vm2 = vc.u32 %v13021_v63, %v13011_v11  ;;  %v13030_v10 = vand.u32 3, %v12954_v54 }
 0x316   : > { %vm5622_vm13 = vcmp.eq.s32.totalorder %v5617_v26, 2  ;;  %v13032_v46 = vand.u32 3, %v5720_v33  ;;  %v5790_v47 = vsel %vm5788_vm2, %v5789_v53, %v13012_v28  ;;  %v13035_v18 = vshll.u32 %v5843_v17, 8 }
 0x317   : > { %v5710_v9 = vmul.f32 %v5709_v30, %v5707_v55  ;;  %v5850_v23 = vsub.s32 32, %v5849_v29  ;;  %v5791_v35 = vadd.s32 %v5790_v47, %v5786_v58  ;;  %v13037_v5 = vand.u32 3, %v5716_v37 }
 0x318   : > { %v13039_v12 = vshrl.u32 %v5847_v49, 5  ;;  %v5852_v60 = vshll.u32 %v9992_v34, %v5849_v29  ;;  %v5855_v61 = vshll.u32 %v9993_v36, %v5849_v29  ;;  %v5858_v54 = vshll.u32 %v9994_v38, %v5849_v29 }
 0x319   : > { %v5711_v8 = vxor.u32 2147483648, %v5710_v9  ;;  %v5792_v3 = vadd.s32 536870912, %v5791_v35  ;;  %v5853_v24 = vshrl.u32 %v9993_v36, %v5850_v23  ;;  %v5856_v25 = vshrl.u32 %v9994_v38, %v5850_v23 }
 0x31a   : > { %vm6074_vm10 = vcmp.eq.s32.totalorder %v13030_v10, 0  ;;  %v5861_v32 = vshll.u32 %v9995_v40, %v5849_v29  ;;  %v5862_v21 = vshrl.u32 %v9996_v42, %v5850_v23  ;;  %v5859_v37 = vshrl.u32 %v9995_v40, %v5850_v23 }
 0x31b   : > { %v5712_v4 = vsel %vm5629_vm15, %v5711_v8, %v5710_v9  ;;  %v13057_v27 = vshrl.u32 %v5792_v3, 30  ;;  %v5864_v28 = vshll.u32 %v9996_v42, %v5849_v29  ;;  %v5865_v44 = vshrl.u32 %v9997_v50, %v5850_v23 }
 0x31c   : > { %v13044_v14 = vpop.eup %9833  ;;  %v5715_v19 = vsel %vm12984_vm3, %v12726_v59, %v5712_v4  ;;  %vm6073_vm4 = vcmp.lt.s32.totalorder %v13030_v10, 2  ;;  %v5854_v16 = vor.u32 %v5853_v24, %v5852_v60  ;;  %v5857_v56 = vor.u32 %v5856_v25, %v5855_v61 }
 0x31d   : > { %v9836_v45 = vpop.eup %9835  ;;  %v5623_v7 = vxor.u32 2147483648, %v13044_v14  ;;  %9837 = vcosq.f32 %v5715_v19  ;;  %v5794_v39 = vshll.u32 %v13057_v27, 30  ;;  %v5851_v22 = vshrl.u32 %v9992_v34, %v5850_v23 }
 0x31e   : > { %v5620_v43 = vxor.u32 2147483648, %v9836_v45  ;;  %9839 = vsinq.f32 %v5715_v19  ;;  %v5863_v62 = vor.u32 %v5862_v21, %v5861_v32  ;;  %vm5867_vm7 = vcmp.lt.s32.totalorder %v13039_v12, 1 }
 0x31f   : > { %v5624_v41 = vsel %vm5622_vm13, %v5623_v7, %v9836_v45  ;;  %v13072_v13 = vsub.s32 %v5791_v35, %v5794_v39  ;;  %v5860_v33 = vor.u32 %v5859_v37, %v5858_v54  ;;  %vm5870_vm15 = vcmp.lt.s32.totalorder %v13039_v12, 4 }
 0x320   : > { %v5621_v57 = vsel %vm5619_vm1, %v13044_v14, %v5620_v43  ;;  %vm5726_vm3 = vcmp.eq.s32.totalorder %v13032_v46, 2  ;;  %v5866_v26 = vor.u32 %v5865_v44, %v5864_v28  ;;  %vm5869_vm5 = vcmp.lt.s32.totalorder %v13039_v12, 3 }
 0x321   : > { %v5625_v15 = vsel %vm5618_vm12, %v5621_v57, %v5624_v41  ;;  %vm5723_vm6 = vcmp.eq.s32.totalorder %v13032_v46, 0  ;;  %v5797_v58 = vsub.s32 0, %v13072_v13  ;;  %vm5868_vm8 = vcmp.lt.s32.totalorder %v13039_v12, 2 }
 0x322   : > { %v5626_v30 = vsel %vm5615_vm11, nan, %v5625_v15  ;;  %v5872_v17 = vsel %vm5870_vm15, %v5860_v33, 2102212464  ;;  %v5875_v49 = vsel %vm5867_vm7, %v5854_v16, %v5857_v56  ;;  %vm5722_vm14 = vcmp.lt.s32.totalorder %v13032_v46, 2 }
 0x323   : > { %v5947_v53 = vrot.slane %v5626_v30, 1  ;;  %v5943_v55 = vcombine.high %v5626_v30, %v5626_v30  ;;  %v5876_v9 = vsel %vm5870_vm15, %v5863_v62, 920167782  ;;  %vm6077_vm0 = vcmp.eq.s32.totalorder %v13030_v10, 2 }
 0x324   : > { %v13090_v47 = vmul.f32 128.0, %v10118_v0  ;;  %vm5719_vm9 = vweird.f32 %v12726_v59  ;;  %v9392_v23 = vmin.u32 %v5797_v58, %v13072_v13  ;;  %v5871_v8 = vsel %vm5867_vm7, %v5851_v22, %v5854_v16 }
 0x325   : > { %5963 = vst [vmem:[%s10124_s26 + $0x140] ss:$-60 sps:$4 sm:$0x83] %v5947_v53   ;;  %v5948_v29 = vrot.slane %v5943_v55, 1  ;;  %v5873_v35 = vsel %vm5869_vm5, %v5857_v56, %v5872_v17  ;;  %v5877_v60 = vsel %vm5869_vm5, %v5860_v33, %v5876_v9  ;;  %v5879_v54 = vsel %vm5867_vm7, %v5857_v56, %v5860_v33 }
 0x326   : > { %v5878_v61 = vsel %vm5868_vm8, %v5875_v49, %v5877_v60  ;;  %v5880_v4 = vsel %vm5870_vm15, %v5866_v26, 1326507024  ;;  %v6076_v3 = vsel %vm6074_vm10, %v13044_v14, %v5620_v43  ;;  %v5787_v24 = vadd.s32 %v13011_v11, %v13021_v63 }
 0x327   : > { %5964 = vst [vmem:[%s10124_s26 + $0x148] ss:$-60 sps:$4 sm:$0x83] %v5948_v29   ;;  %v5799_v25 = vclz %v9392_v23  ;;  %vm6176_vm12 = vcmp.lt.s32.totalorder %v13037_v5, 2  ;;  %vm6177_vm1 = vcmp.eq.s32.totalorder %v13037_v5, 0  ;;  %v5881_v19 = vsel %vm5869_vm5, %v5863_v62, %v5880_v4 }
 0x328   : > { %v13117_v32 = vmul.u32.u64.low %v13035_v18, %v5878_v61  ;;  %v13118_v21 = vmul.u32.u64.high %v13035_v18, %v5878_v61, %v13117_v32  ;;  %v6079_v37 = vsel %vm6077_vm0, %v5623_v7, %v9836_v45  ;;  %vm5733_vm2 = vcmp.lt.s32.totalorder %v12785_v31, 0 }
 0x329   : > { %v9393_v14 = vadd.s32 4294967294, %v5799_v25  ;;  %v5874_v11 = vsel %vm5868_vm8, %v5871_v8, %v5873_v35  ;;  %v5882_v63 = vsel %vm5868_vm8, %v5879_v54, %v5881_v19  ;;  %v6080_v43 = vsel %vm6073_vm4, %v6076_v3, %v6079_v37 }
 0x32a   : > { %v9838_v41 = vpop.eup %9837  ;;  %v13131_v28 = vmul.u32.u64.low %v13035_v18, %v5882_v63  ;;  %v13132_v44 = vmul.u32.u64.high %v13035_v18, %v5882_v63, %v13131_v28  ;;  %v6081_v45 = vsel %vm5615_vm11, nan, %v6080_v43  ;;  %vm6180_vm13 = vcmp.eq.s32.totalorder %v13037_v5, 2 }
 0x32b   : > { %v9840_v7 = vpop.eup %9839  ;;  %v5727_v57 = vxor.u32 2147483648, %v9838_v41  ;;  %vm9394_vm10 = vcmp.lt.s32.totalorder %v9393_v14, 0  ;;  %v6399_v39 = vrot.slane %v6081_v45, 6  ;;  %v6395_v12 = vcombine.high %v6081_v45, %v6081_v45 }
 0x32c   : > { %v5724_v16 = vxor.u32 2147483648, %v9840_v7  ;;  %v5802_v56 = vsel %vm9394_vm10, 0, %v9393_v14  ;;  %v5890_v10 = vmul.u32 %v13035_v18, %v5874_v11  ;;  %v5893_v15 = vadd.s32 1, %v13118_v21 }
 0x32d   : > { %v5728_v22 = vsel %vm5726_vm3, %v5727_v57, %v9840_v7  ;;  %v5803_v48 = vsub.s32 32, %v5802_v56  ;;  %v5804_v62 = vshll.u32 %v13072_v13, %v5802_v56  ;;  %v5807_v30 = vsub.s32 4294967266, %v5802_v56  ;;  %6415 = vst [vmem:[%s10124_s26 + $0x140] sm:$0x1c] %v6399_v39 }
 0x32e   : > { %v5725_v33 = vsel %vm5723_vm6, %v9838_v41, %v5724_v16  ;;  %v5817_v53 = vsub.s32 4, %v13057_v27  ;;  %vm5892_vm11 = vc.u32 %v13132_v44, %v13117_v32  ;;  %v6400_v18 = vrot.slane %v6395_v12, 6 }
 0x32f   : > { %v5729_v55 = vsel %vm5722_vm14, %v5725_v33, %v5728_v22  ;;  %v5805_v26 = vshrl.u32 %v5787_v24, %v5803_v48  ;;  %v5808_v58 = vadd.s32 127, %v5807_v30  ;;  %v5894_v17 = vsel %vm5892_vm11, %v5893_v15, %v13118_v21 }
 0x330   : > { %v5730_v13 = vsel %vm5719_vm9, nan, %v5729_v55  ;;  %v5895_v49 = vadd.s32 %v5894_v17, %v5890_v10  ;;  %6416 = vst [vmem:[%s10124_s26 + $0x148] sm:$0x1c] %v6400_v18  ;;  %v6179_v29 = vsel %vm6177_vm1, %v9838_v41, %v5724_v16  ;;  %v6182_v9 = vsel %vm6180_vm13, %v5727_v57, %v9840_v7 }
 0x331   : > { %v5949_v23 = vrot.slane %v5730_v13, 1  ;;  %v5944_v46 = vcombine.high %v5730_v13, %v5730_v13  ;;  %v5806_v8 = vor.u32 %v5805_v26, %v5804_v62  ;;  %v5809_v35 = vshll.u32 %v5808_v58, 23 }
 0x332   : > { %v5818_v60 = vsel %vm5733_vm2, %v5817_v53, %v13057_v27  ;;  %v5896_v61 = vadd.s32 536870912, %v5895_v49  ;;  %v6183_v54 = vsel %vm6176_vm12, %v6179_v29, %v6182_v9  ;;  %v6427_v14 = vand.u32 2147483647, %v13090_v47 }
 0x333   : > { %5965 = vst [vmem:[%s10124_s26 + $0x150] ss:$-60 sps:$4 sm:$0x83] %v5949_v23   ;;  %v5950_v4 = vrot.slane %v5944_v46, 1  ;;  %v5810_v3 = vor.u32 4788187, %v5809_v35  ;;  %v5813_v24 = vcvt.s32.f32 %v5806_v8  ;;  %v5891_v29 = vadd.s32 %v13117_v32, %v13132_v44 }
 0x334   : > { %v6184_v25 = vsel %vm5719_vm9, nan, %v6183_v54  ;;  %v5897_v19 = vshrl.u32 %v5896_v61, 30  ;;  %vm13170_vm4 = vcmp.le.f32.partialorder %v5731_v20, 0.7853982  ;;  %v6430_v11 = vand.u32 2139095040, %v13090_v47 }
 0x335   : > { %v6401_v21 = vrot.slane %v6184_v25, 6  ;;  %v6396_v37 = vcombine.high %v6184_v25, %v6184_v25  ;;  %5966 = vst [vmem:[%s10124_s26 + $0x158] ss:$-60 sps:$4 sm:$0x83] %v5950_v4   ;;  %v5811_v27 = vand.u32 2147483647, %v5810_v3  ;;  %vm5823_vm1 = vweird.f32 %v12785_v31 }
 0x336   : > { %v13176_v63 = vmul.f32 128.0, %v10120_v1  ;;  %vm5837_vm7 = vcmp.lt.s32.totalorder %v12941_v51, 0  ;;  %v5898_v59 = vshll.u32 %v5897_v19, 30  ;;  %v5921_v43 = vsub.s32 4, %v5897_v19 }
 0x337   : > { %6417 = vst [vmem:[%s10124_s26 + $0x150] sm:$0x1c] %v6401_v21  ;;  %v6402_v41 = vrot.slane %v6396_v37, 6  ;;  %v5814_v28 = vmul.f32 %v5813_v24, %v5811_v27  ;;  %v5820_v45 = vsel %vm13170_vm4, 0, %v5818_v60  ;;  %vm13184_vm15 = vcmp.le.f32.partialorder %v5835_v52, 0.7853982 }
 0x338   : > { %v6431_v7 = vshrl.u32 %v6430_v11, 23  ;;  %v13188_v57 = vsub.s32 %v5895_v49, %v5898_v59  ;;  %v5922_v39 = vsel %vm5837_vm7, %v5921_v43, %v5897_v19  ;;  %v6434_v12 = vand.u32 8388607, %v6427_v14 }
 0x339   : > { %6418 = vst [vmem:[%s10124_s26 + $0x158] sm:$0x1c] %v6402_v41  ;;  %v6531_v16 = vand.u32 2147483647, %v13176_v63  ;;  %v5815_v56 = vxor.u32 2147483648, %v5814_v28  ;;  %v5924_v10 = vsel %vm13184_vm15, 0, %v5922_v39 }
 0x33a   : > { %v9415_v52 = vadd.s32 4294967169, %v6431_v7  ;;  %v6534_v15 = vand.u32 2139095040, %v13176_v63  ;;  %v5824_v22 = vadd.s32 3, %v5820_v45  ;;  %v5901_v48 = vsub.s32 0, %v13188_v57 }
 0x33b   : > { %v5816_v62 = vsel %vm5733_vm2, %v5815_v56, %v5814_v28  ;;  %v5928_v18 = vadd.s32 3, %v5924_v10  ;;  %v6435_v55 = vor.u32 8388608, %v6434_v12  ;;  %v13208_v58 = vand.u32 8388607, %v6531_v16 }
 0x33c   : > { %v6437_v30 = vadd.s32 1, %v9415_v52  ;;  %v5819_v33 = vsel %vm13170_vm4, %v12785_v31, %v5816_v62  ;;  %v9396_v53 = vmin.u32 %v5901_v48, %v13188_v57  ;;  %v6535_v26 = vshrl.u32 %v6534_v15, 23 }
 0x33d   : > { %9841 = vcosq.f32 %v5819_v33  ;;  %v13210_v17 = vand.u32 3, %v5824_v22  ;;  %v13212_v49 = vand.u32 3, %v5820_v45  ;;  %v13216_v46 = vand.u32 3, %v5924_v10 }
 0x33e   : > { %vm6438_vm3 = vcmp.gt.s32.totalorder %v6437_v30, 0  ;;  %9843 = vsinq.f32 %v5819_v33  ;;  %v5903_v13 = vclz %v9396_v53  ;;  %v13218_v35 = vshll.u32 %v6435_v55, 8 }
 0x33f   : > { %v6439_v9 = vsel %vm6438_vm3, %v6437_v30, 0  ;;  %v13220_v60 = vand.u32 3, %v5928_v18  ;;  %v9419_v54 = vadd.s32 4294967169, %v6535_v26  ;;  %v6539_v4 = vor.u32 8388608, %v13208_v58 }
 0x340   : > { %v9397_v23 = vadd.s32 4294967294, %v5903_v13  ;;  %v6441_v8 = vand.u32 31, %v6439_v9  ;;  %v13222_v61 = vshrl.u32 %v6439_v9, 5  ;;  %vm5830_vm5 = vcmp.eq.s32.totalorder %v13210_v17, 2 }
 0x341   : > { %vm6283_vm8 = vcmp.eq.s32.totalorder %v13212_v49, 2  ;;  %vm5827_vm14 = vcmp.eq.s32.totalorder %v13210_v17, 0  ;;  %vm6280_vm0 = vcmp.eq.s32.totalorder %v13212_v49, 0  ;;  %vm5826_vm9 = vcmp.lt.s32.totalorder %v13210_v17, 2 }
 0x342   : > { %vm9398_vm6 = vcmp.lt.s32.totalorder %v9397_v23, 0  ;;  %v6442_v32 = vsub.s32 32, %v6441_v8  ;;  %v6444_v44 = vshll.u32 %v9992_v34, %v6441_v8  ;;  %v6447_v3 = vshll.u32 %v9993_v36, %v6441_v8 }
 0x343   : > { %v5906_v24 = vsel %vm9398_vm6, 0, %v9397_v23  ;;  %v6450_v25 = vshll.u32 %v9994_v38, %v6441_v8  ;;  %v6453_v19 = vshll.u32 %v9995_v40, %v6441_v8  ;;  %v6456_v21 = vshll.u32 %v9996_v42, %v6441_v8 }
 0x344   : > { %v5907_v37 = vsub.s32 32, %v5906_v24  ;;  %v5908_v5 = vshll.u32 %v13188_v57, %v5906_v24  ;;  %v5911_v27 = vsub.s32 4294967266, %v5906_v24  ;;  %vm6279_vm12 = vcmp.lt.s32.totalorder %v13212_v49, 2 }
 0x345   : > { %v6443_v11 = vshrl.u32 %v9992_v34, %v6442_v32  ;;  %v6445_v59 = vshrl.u32 %v9993_v36, %v6442_v32  ;;  %v6448_v43 = vshrl.u32 %v9994_v38, %v6442_v32  ;;  %v6451_v41 = vshrl.u32 %v9995_v40, %v6442_v32 }
 0x346   : > { %v6454_v28 = vshrl.u32 %v9996_v42, %v6442_v32  ;;  %v5909_v45 = vshrl.u32 %v5891_v29, %v5907_v37  ;;  %v5912_v7 = vadd.s32 127, %v5911_v27  ;;  %v6457_v39 = vshrl.u32 %v9997_v50, %v6442_v32 }
 0x347   : > { %vm6459_vm2 = vcmp.lt.s32.totalorder %v13222_v61, 1  ;;  %v6446_v57 = vor.u32 %v6445_v59, %v6444_v44  ;;  %v6449_v12 = vor.u32 %v6448_v43, %v6447_v3  ;;  %v6452_v56 = vor.u32 %v6451_v41, %v6450_v25 }
 0x348   : > { %v6455_v10 = vor.u32 %v6454_v28, %v6453_v19  ;;  %v5910_v52 = vor.u32 %v5909_v45, %v5908_v5  ;;  %v5913_v15 = vshll.u32 %v5912_v7, 23  ;;  %v6458_v22 = vor.u32 %v6457_v39, %v6456_v21 }
 0x349   : > { %vm6460_vm13 = vcmp.lt.s32.totalorder %v13222_v61, 2  ;;  %vm6461_vm10 = vcmp.lt.s32.totalorder %v13222_v61, 3  ;;  %vm6462_vm11 = vcmp.lt.s32.totalorder %v13222_v61, 4  ;;  %v6463_v48 = vsel %vm6459_vm2, %v6443_v11, %v6446_v57 }
 0x34a   : > { %v6467_v62 = vsel %vm6459_vm2, %v6446_v57, %v6449_v12  ;;  %v9842_v30 = vpop.eup %9841  ;;  %v5914_v33 = vor.u32 4788187, %v5913_v15  ;;  %v5917_v53 = vcvt.s32.f32 %v5910_v52  ;;  %v6464_v18 = vsel %vm6462_vm11, %v6452_v56, 2102212464 }
 0x34b   : > { %v6468_v55 = vsel %vm6462_vm11, %v6455_v10, 920167782  ;;  %v9844_v26 = vpop.eup %9843  ;;  %v5831_v13 = vxor.u32 2147483648, %v9842_v30  ;;  %v6465_v29 = vsel %vm6461_vm10, %v6449_v12, %v6464_v18  ;;  %v6541_v23 = vadd.s32 1, %v9419_v54 }
 0x34c   : > { %v6469_v9 = vsel %vm6461_vm10, %v6452_v56, %v6468_v55  ;;  %v5828_v8 = vxor.u32 2147483648, %v9844_v26  ;;  %v5915_v32 = vand.u32 2147483647, %v5914_v33  ;;  %v13262_v44 = vsel %vm6460_vm13, %v6463_v48, %v6465_v29 }
 0x34d   : > { %v6471_v3 = vsel %vm6459_vm2, %v6449_v12, %v6452_v56  ;;  %v5832_v24 = vsel %vm5830_vm5, %v5831_v13, %v9844_v26  ;;  %v6285_v25 = vsel %vm6283_vm8, %v5831_v13, %v9844_v26  ;;  %v6470_v19 = vsel %vm6460_vm13, %v6467_v62, %v6469_v9 }
 0x34e   : > { %v6472_v54 = vsel %vm6462_vm11, %v6458_v22, 1326507024  ;;  %v5829_v21 = vsel %vm5827_vm14, %v9842_v30, %v5828_v8  ;;  %v5918_v37 = vmul.f32 %v5917_v53, %v5915_v32  ;;  %v6282_v5 = vsel %vm6280_vm0, %v9842_v30, %v5828_v8 }
 0x34f   : > { %v6473_v27 = vsel %vm6461_vm10, %v6455_v10, %v6472_v54  ;;  %v5833_v11 = vsel %vm5826_vm9, %v5829_v21, %v5832_v24  ;;  %v6286_v59 = vsel %vm6279_vm12, %v6282_v5, %v6285_v25  ;;  %vm6542_vm4 = vcmp.gt.s32.totalorder %v6541_v23, 0 }
 0x350   : > { %v6474_v43 = vsel %vm6460_vm13, %v6471_v3, %v6473_v27  ;;  %v5834_v41 = vsel %vm5823_vm1, nan, %v5833_v11  ;;  %v5919_v28 = vxor.u32 2147483648, %v5918_v37  ;;  %v6287_v45 = vsel %vm5823_vm1, nan, %v6286_v59 }
 0x351   : > { %v6543_v7 = vsel %vm6542_vm4, %v6541_v23, 0  ;;  %v5951_v39 = vrot.slane %v5834_v41, 1  ;;  %v5945_v17 = vcombine.high %v5834_v41, %v5834_v41  ;;  %v6403_v57 = vrot.slane %v6287_v45, 6 }
 0x352   : > { %v6397_v49 = vcombine.high %v6287_v45, %v6287_v45  ;;  %v5920_v61 = vsel %vm5837_vm7, %v5919_v28, %v5918_v37  ;;  %v13293_v12 = vmul.u32.u64.low %v13218_v35, %v6474_v43  ;;  %v13294_v56 = vmul.u32.u64.high %v13218_v35, %v6474_v43, %v13293_v12 }
 0x353   : > { %v13296_v10 = vshrl.u32 %v6543_v7, 5  ;;  %5967 = vst [vmem:[%s10124_s26 + $0x160] ss:$-60 sps:$4 sm:$0x83] %v5951_v39   ;;  %v5952_v52 = vrot.slane %v5945_v17, 1  ;;  %v5923_v31 = vsel %vm13184_vm15, %v12941_v51, %v5920_v61  ;;  %v6545_v22 = vand.u32 31, %v6543_v7 }
 0x354   : > { %6419 = vst [vmem:[%s10124_s26 + $0x160] sm:$0x1c] %v6403_v57  ;;  %v6404_v15 = vrot.slane %v6397_v49, 6  ;;  %9845 = vcosq.f32 %v5923_v31  ;;  %v13304_v48 = vmul.u32.u64.low %v13218_v35, %v6470_v19  ;;  %v13305_v62 = vmul.u32.u64.high %v13218_v35, %v6470_v19, %v13304_v48 }
 0x355   : > { %v13310_v30 = vshll.u32 %v6539_v4, 8  ;;  %5968 = vst [vmem:[%s10124_s26 + $0x168] ss:$-60 sps:$4 sm:$0x83] %v5952_v52   ;;  %9847 = vsinq.f32 %v5923_v31  ;;  %v6546_v33 = vsub.s32 32, %v6545_v22  ;;  %v6548_v20 = vshll.u32 %v9992_v34, %v6545_v22 }
 0x356   : > { %6420 = vst [vmem:[%s10124_s26 + $0x168] sm:$0x1c] %v6404_v15  ;;  %v6551_v53 = vshll.u32 %v9993_v36, %v6545_v22  ;;  %v6482_v18 = vmul.u32 %v13218_v35, %v13262_v44  ;;  %v6554_v55 = vshll.u32 %v9994_v38, %v6545_v22  ;;  %v6557_v26 = vshll.u32 %v9995_v40, %v6545_v22 }
 0x357   : > { %vm6563_vm7 = vcmp.lt.s32.totalorder %v13296_v10, 1  ;;  %vm6484_vm15 = vc.u32 %v13294_v56, %v13304_v48  ;;  %v6549_v58 = vshrl.u32 %v9993_v36, %v6546_v33  ;;  %v6552_v4 = vshrl.u32 %v9994_v38, %v6546_v33 }
 0x358   : > { %v6555_v13 = vshrl.u32 %v9995_v40, %v6546_v33  ;;  %v6485_v29 = vadd.s32 1, %v13305_v62  ;;  %v6558_v9 = vshrl.u32 %v9996_v42, %v6546_v33  ;;  %v6560_v35 = vshll.u32 %v9996_v42, %v6545_v22 }
 0x359   : > { %v6561_v23 = vshrl.u32 %v9997_v50, %v6546_v33  ;;  %v6547_v8 = vshrl.u32 %v9992_v34, %v6546_v33  ;;  %v6550_v32 = vor.u32 %v6549_v58, %v6548_v20  ;;  %v6553_v44 = vor.u32 %v6552_v4, %v6551_v53 }
 0x35a   : > { %v6556_v3 = vor.u32 %v6555_v13, %v6554_v55  ;;  %v6486_v24 = vsel %vm6484_vm15, %v6485_v29, %v13305_v62  ;;  %v6559_v25 = vor.u32 %v6558_v9, %v6557_v26  ;;  %vm6565_vm3 = vcmp.lt.s32.totalorder %v13296_v10, 3 }
 0x35b   : > { %v6562_v19 = vor.u32 %v6561_v23, %v6560_v35  ;;  %v6487_v54 = vadd.s32 %v6486_v24, %v6482_v18  ;;  %vm6564_vm5 = vcmp.lt.s32.totalorder %v13296_v10, 2  ;;  %vm6566_vm6 = vcmp.lt.s32.totalorder %v13296_v10, 4 }
 0x35c   : > { %v6571_v21 = vsel %vm6563_vm7, %v6550_v32, %v6553_v44  ;;  %vm5927_vm8 = vweird.f32 %v12941_v51  ;;  %v6568_v37 = vsel %vm6566_vm6, %v6556_v3, 2102212464  ;;  %v6572_v5 = vsel %vm6566_vm6, %v6559_v25, 920167782 }
 0x35d   : > { %v6575_v27 = vsel %vm6563_vm7, %v6553_v44, %v6556_v3  ;;  %v6576_v11 = vsel %vm6566_vm6, %v6562_v19, 1326507024  ;;  %v6488_v59 = vadd.s32 536870912, %v6487_v54  ;;  %v6573_v43 = vsel %vm6565_vm3, %v6556_v3, %v6572_v5 }
 0x35e   : > { %v6577_v41 = vsel %vm6565_vm3, %v6559_v25, %v6576_v11  ;;  %v13341_v28 = vmul.f32 128.0, %v10122_v2  ;;  %v6567_v45 = vsel %vm6563_vm7, %v6547_v8, %v6550_v32  ;;  %v6569_v7 = vsel %vm6565_vm3, %v6553_v44, %v6568_v37 }
 0x35f   : > { %v6574_v39 = vsel %vm6564_vm5, %v6571_v21, %v6573_v43  ;;  %v6578_v17 = vsel %vm6564_vm5, %v6575_v27, %v6577_v41  ;;  %vm6429_vm14 = vcmp.lt.s32.totalorder %v13090_v47, 0  ;;  %v6489_v57 = vshrl.u32 %v6488_v59, 30 }
 0x360   : > { %v13351_v49 = vmul.u32.u64.low %v13310_v30, %v6578_v17  ;;  %v13352_v61 = vmul.u32.u64.high %v13310_v30, %v6578_v17, %v13351_v49  ;;  %vm6382_vm0 = vcmp.lt.s32.totalorder %v13216_v46, 2  ;;  %vm6386_vm9 = vcmp.eq.s32.totalorder %v13216_v46, 2 }
 0x361   : > { %v13357_v12 = vmul.u32.u64.low %v13310_v30, %v6574_v39  ;;  %v13358_v52 = vmul.u32.u64.high %v13310_v30, %v6574_v39, %v13357_v12  ;;  %v9846_v31 = vpop.eup %9845  ;;  %vm5934_vm12 = vcmp.eq.s32.totalorder %v13220_v60, 2  ;;  %v6490_v15 = vshll.u32 %v6489_v57, 30 }
 0x362   : > { %v6513_v22 = vsub.s32 4, %v6489_v57  ;;  %v6570_v62 = vsel %vm6564_vm5, %v6567_v45, %v6569_v7  ;;  %v9848_v33 = vpop.eup %9847  ;;  %vm5931_vm1 = vcmp.eq.s32.totalorder %v13220_v60, 0  ;;  %v5935_v20 = vxor.u32 2147483648, %v9846_v31 }
 0x363   : > { %vm6383_vm2 = vcmp.eq.s32.totalorder %v13216_v46, 0  ;;  %v6638_v53 = vand.u32 2139095040, %v13341_v28  ;;  %vm5930_vm13 = vcmp.lt.s32.totalorder %v13220_v60, 2  ;;  %v5932_v18 = vxor.u32 2147483648, %v9848_v33 }
 0x364   : > { %v6491_v55 = vsub.s32 %v6487_v54, %v6490_v15  ;;  %v13369_v26 = vmul.f32 128.0, %v10138_v6  ;;  %v5936_v58 = vsel %vm5934_vm12, %v5935_v20, %v9848_v33  ;;  %v6388_v10 = vsel %vm6386_vm9, %v5935_v20, %v9848_v33 }
 0x365   : > { %v6586_v4 = vmul.u32 %v13310_v30, %v6570_v62  ;;  %v6635_v13 = vand.u32 2147483647, %v13341_v28  ;;  %v5933_v29 = vsel %vm5931_vm1, %v9846_v31, %v5932_v18  ;;  %v6385_v9 = vsel %vm6383_vm2, %v9846_v31, %v5932_v18 }
 0x366   : > { %v6493_v35 = vsub.s32 0, %v6491_v55  ;;  %v6514_v60 = vsel %vm6429_vm14, %v6513_v22, %v6489_v57  ;;  %v5937_v23 = vsel %vm5930_vm13, %v5933_v29, %v5936_v58  ;;  %v6389_v8 = vsel %vm6382_vm0, %v6385_v9, %v6388_v10 }
 0x367   : > { %v6589_v32 = vadd.s32 1, %v13358_v52  ;;  %v6639_v44 = vshrl.u32 %v6638_v53, 23  ;;  %v5938_v30 = vsel %vm5927_vm8, nan, %v5937_v23  ;;  %v6390_v3 = vsel %vm5927_vm8, nan, %v6389_v8 }
 0x368   : > { %v9416_v24 = vmin.u32 %v6493_v35, %v6491_v55  ;;  %vm6588_vm10 = vc.u32 %v13352_v61, %v13357_v12  ;;  %v5953_v25 = vrot.slane %v5938_v30, 1  ;;  %v5946_v19 = vcombine.high %v5938_v30, %v5938_v30 }
 0x369   : > { %v6405_v46 = vrot.slane %v6390_v3, 6  ;;  %v6398_v54 = vcombine.high %v6390_v3, %v6390_v3  ;;  %vm13388_vm11 = vcmp.le.f32.partialorder %v6427_v14, 0.7853982  ;;  %v6590_v27 = vsel %vm6588_vm10, %v6589_v32, %v13358_v52 }
 0x36a   : > { %v6495_v37 = vclz %v9416_v24  ;;  %5969 = vst [vmem:[%s10124_s26 + $0x170] ss:$-60 sps:$4 sm:$0x83] %v5953_v25   ;;  %v5954_v51 = vrot.slane %v5946_v19, 1  ;;  %v9423_v11 = vadd.s32 4294967169, %v6639_v44  ;;  %v13397_v43 = vsel %vm13388_vm11, 0, %v6514_v60 }
 0x36b   : > { %6421 = vst [vmem:[%s10124_s26 + $0x170] sm:$0x1c] %v6405_v46  ;;  %v6406_v5 = vrot.slane %v6398_v54, 6  ;;  %v6591_v41 = vadd.s32 %v6590_v27, %v6586_v4  ;;  %v6642_v14 = vand.u32 8388607, %v6635_v13  ;;  %v6742_v39 = vand.u32 2139095040, %v13369_v26 }
 0x36c   : > { %v9417_v59 = vadd.s32 4294967294, %v6495_v37  ;;  %5970 = vst [vmem:[%s10124_s26 + $0x178] ss:$-60 sps:$4 sm:$0x83] %v5954_v51   ;;  %v6645_v45 = vadd.s32 1, %v9423_v11  ;;  %v6483_v17 = vadd.s32 %v13304_v48, %v13294_v56  ;;  %v6520_v52 = vadd.s32 3, %v13397_v43 }
 0x36d   : > { %6422 = vst [vmem:[%s10124_s26 + $0x178] sm:$0x1c] %v6406_v5  ;;  %v6739_v7 = vand.u32 2147483647, %v13369_v26  ;;  %v6592_v57 = vadd.s32 536870912, %v6591_v41  ;;  %v6643_v33 = vor.u32 8388608, %v6642_v14  ;;  %v6587_v10 = vadd.s32 %v13357_v12, %v13352_v61 }
 0x36e   : > { %vm9418_vm4 = vcmp.lt.s32.totalorder %v9417_v59, 0  ;;  %vm6646_vm7 = vcmp.gt.s32.totalorder %v6645_v45, 0  ;;  %v6743_v53 = vshrl.u32 %v6742_v39, 23  ;;  %v13417_v9 = vand.u32 3, %v6520_v52 }
 0x36f   : > { %v6498_v49 = vsel %vm9418_vm4, 0, %v9417_v59  ;;  %v13408_v62 = vshrl.u32 %v6592_v57, 30  ;;  %v6647_v20 = vsel %vm6646_vm7, %v6645_v45, 0  ;;  %v13412_v18 = vand.u32 8388607, %v6739_v7 }
 0x370   : > { %v6499_v31 = vsub.s32 32, %v6498_v49  ;;  %v6500_v15 = vshll.u32 %v6491_v55, %v6498_v49  ;;  %v6503_v22 = vsub.s32 4294967266, %v6498_v49  ;;  %v6649_v4 = vand.u32 31, %v6647_v20 }
 0x371   : > { %v6594_v48 = vshll.u32 %v13408_v62, 30  ;;  %v13421_v23 = vshll.u32 %v6643_v33, 8  ;;  %v9427_v8 = vadd.s32 4294967169, %v6743_v53  ;;  %v6747_v32 = vor.u32 8388608, %v13412_v18 }
 0x372   : > { %v6501_v58 = vshrl.u32 %v6483_v17, %v6499_v31  ;;  %v6504_v56 = vadd.s32 127, %v6503_v22  ;;  %v6650_v60 = vsub.s32 32, %v6649_v4  ;;  %v6652_v24 = vshll.u32 %v9992_v34, %v6649_v4 }
 0x373   : > { %v13419_v35 = vsub.s32 %v6591_v41, %v6594_v48  ;;  %v6655_v12 = vshll.u32 %v9993_v36, %v6649_v4  ;;  %v6658_v19 = vshll.u32 %v9994_v38, %v6649_v4  ;;  %vm6533_vm15 = vcmp.lt.s32.totalorder %v13176_v63, 0 }
 0x374   : > { %v6502_v29 = vor.u32 %v6501_v58, %v6500_v15  ;;  %v6505_v55 = vshll.u32 %v6504_v56, 23  ;;  %v6653_v61 = vshrl.u32 %v9993_v36, %v6650_v60  ;;  %v6656_v25 = vshrl.u32 %v9994_v38, %v6650_v60 }
 0x375   : > { %v6597_v3 = vsub.s32 0, %v13419_v35  ;;  %v6648_v37 = vshrl.u32 %v6647_v20, 5  ;;  %v6659_v51 = vshrl.u32 %v9995_v40, %v6650_v60  ;;  %v6617_v5 = vsub.s32 4, %v13408_v62 }
 0x376   : > { %v6506_v44 = vor.u32 4788187, %v6505_v55  ;;  %v6509_v30 = vcvt.s32.f32 %v6502_v29  ;;  %v6651_v27 = vshrl.u32 %v9992_v34, %v6650_v60  ;;  %v6661_v11 = vshll.u32 %v9995_v40, %v6649_v4 }
 0x377   : > { %v9420_v54 = vmin.u32 %v6597_v3, %v13419_v35  ;;  %v6662_v59 = vshrl.u32 %v9996_v42, %v6650_v60  ;;  %v6654_v45 = vor.u32 %v6653_v61, %v6652_v24  ;;  %v6749_v39 = vadd.s32 1, %v9427_v8 }
 0x378   : > { %v6507_v46 = vand.u32 2147483647, %v6506_v44  ;;  %v6657_v17 = vor.u32 %v6656_v25, %v6655_v12  ;;  %v6660_v57 = vor.u32 %v6659_v51, %v6658_v19  ;;  %v6664_v52 = vshll.u32 %v9996_v42, %v6649_v4 }
 0x379   : > { %v6599_v14 = vclz %v9420_v54  ;;  %v6663_v49 = vor.u32 %v6662_v59, %v6661_v11  ;;  %v6665_v22 = vshrl.u32 %v9997_v50, %v6650_v60  ;;  %vm6667_vm3 = vcmp.lt.s32.totalorder %v6648_v37, 1 }
 0x37a   : > { %v6510_v41 = vmul.f32 %v6509_v30, %v6507_v46  ;;  %vm6668_vm5 = vcmp.lt.s32.totalorder %v6648_v37, 2  ;;  %vm6669_vm6 = vcmp.lt.s32.totalorder %v6648_v37, 3  ;;  %vm6670_vm8 = vcmp.lt.s32.totalorder %v6648_v37, 4 }
 0x37b   : > { %v9421_v15 = vadd.s32 4294967294, %v6599_v14  ;;  %v6671_v33 = vsel %vm6667_vm3, %v6651_v27, %v6654_v45  ;;  %v6666_v53 = vor.u32 %v6665_v22, %v6664_v52  ;;  %v6672_v58 = vsel %vm6670_vm8, %v6660_v57, 2102212464 }
 0x37c   : > { %v6511_v31 = vxor.u32 2147483648, %v6510_v41  ;;  %v6673_v4 = vsel %vm6669_vm6, %v6657_v17, %v6672_v58  ;;  %v6675_v29 = vsel %vm6667_vm3, %v6654_v45, %v6657_v17  ;;  %v6618_v44 = vsel %vm6533_vm15, %v6617_v5, %v13408_v62 }
 0x37d   : > { %vm9422_vm0 = vcmp.lt.s32.totalorder %v9421_v15, 0  ;;  %v6676_v30 = vsel %vm6670_vm8, %v6663_v49, 920167782  ;;  %v6679_v21 = vsel %vm6667_vm3, %v6657_v17, %v6660_v57  ;;  %v6680_v12 = vsel %vm6670_vm8, %v6666_v53, 1326507024 }
 0x37e   : > { %v6512_v20 = vsel %vm6429_vm14, %v6511_v31, %v6510_v41  ;;  %v6602_v48 = vsel %vm9422_vm0, 0, %v9421_v15  ;;  %v6677_v61 = vsel %vm6669_vm6, %v6660_v57, %v6676_v30  ;;  %v6674_v25 = vsel %vm6668_vm5, %v6671_v33, %v6673_v4 }
 0x37f   : > { %v6515_v56 = vsel %vm13388_vm11, %v13090_v47, %v6512_v20  ;;  %v6603_v55 = vsub.s32 32, %v6602_v48  ;;  %v6604_v60 = vshll.u32 %v13419_v35, %v6602_v48  ;;  %v6607_v8 = vsub.s32 4294967266, %v6602_v48 }
 0x380   : > { %9849 = vcosq.f32 %v6515_v56  ;;  %v6678_v35 = vsel %vm6668_vm5, %v6675_v29, %v6677_v61  ;;  %v6681_v19 = vsel %vm6669_vm6, %v6663_v49, %v6680_v12  ;;  %vm6750_vm14 = vcmp.gt.s32.totalorder %v6749_v39, 0 }
 0x381   : > { %9851 = vsinq.f32 %v6515_v56  ;;  %v6605_v3 = vshrl.u32 %v6587_v10, %v6603_v55  ;;  %v6608_v24 = vadd.s32 127, %v6607_v8  ;;  %v6682_v62 = vsel %vm6668_vm5, %v6679_v21, %v6681_v19 }
 0x382   : > { %v6751_v51 = vsel %vm6750_vm14, %v6749_v39, 0  ;;  %v13461_v5 = vmul.u32.u64.low %v13421_v23, %v6682_v62  ;;  %v13462_v10 = vmul.u32.u64.high %v13421_v23, %v6682_v62, %v13461_v5  ;;  %vm13471_vm9 = vcmp.le.f32.partialorder %v6531_v16, 0.7853982 }
 0x383   : > { %v6606_v46 = vor.u32 %v6605_v3, %v6604_v60  ;;  %v6609_v54 = vshll.u32 %v6608_v24, 23  ;;  %v13465_v27 = vmul.u32.u64.low %v13421_v23, %v6678_v35  ;;  %v13466_v11 = vmul.u32.u64.high %v13421_v23, %v6678_v35, %v13465_v27 }
 0x384   : > { %v6753_v37 = vand.u32 31, %v6751_v51  ;;  %vm6522_vm12 = vcmp.lt.s32.totalorder %v13417_v9, 2  ;;  %vm6523_vm1 = vcmp.eq.s32.totalorder %v13417_v9, 0  ;;  %vm6526_vm2 = vcmp.eq.s32.totalorder %v13417_v9, 2 }
 0x385   : > { %v6610_v41 = vor.u32 4788187, %v6609_v54  ;;  %v6613_v14 = vcvt.s32.f32 %v6606_v46  ;;  %v13480_v45 = vsel %vm13471_vm9, 0, %v6618_v44  ;;  %vm6519_vm13 = vweird.f32 %v13090_v47 }
 0x386   : > { %v6690_v16 = vmul.u32 %v13421_v23, %v6674_v25  ;;  %v6754_v17 = vsub.s32 32, %v6753_v37  ;;  %v13485_v57 = vand.u32 3, %v13397_v43  ;;  %vm6692_vm10 = vc.u32 %v13462_v10, %v13465_v27 }
 0x387   : > { %v6611_v39 = vand.u32 2147483647, %v6610_v41  ;;  %v6693_v49 = vadd.s32 1, %v13466_v11  ;;  %v6756_v52 = vshll.u32 %v9992_v34, %v6753_v37  ;;  %v13493_v31 = vshll.u32 %v6747_v32, 8 }
 0x388   : > { %v6624_v22 = vadd.s32 3, %v13480_v45  ;;  %v6757_v23 = vshrl.u32 %v9993_v36, %v6754_v17  ;;  %v6759_v33 = vshll.u32 %v9993_v36, %v6753_v37  ;;  %v6760_v20 = vshrl.u32 %v9994_v38, %v6754_v17 }
 0x389   : > { %v6614_v15 = vmul.f32 %v6613_v14, %v6611_v39  ;;  %v6694_v43 = vsel %vm6692_vm10, %v6693_v49, %v13466_v11  ;;  %v6765_v53 = vshll.u32 %v9995_v40, %v6753_v37  ;;  %v6766_v58 = vshrl.u32 %v9996_v42, %v6754_v17 }
 0x38a   : > { %v6695_v48 = vadd.s32 %v6694_v43, %v6690_v16  ;;  %v13502_v18 = vshrl.u32 %v6751_v51, 5  ;;  %v6762_v32 = vshll.u32 %v9994_v38, %v6753_v37  ;;  %v6755_v29 = vshrl.u32 %v9992_v34, %v6754_v17 }
 0x38b   : > { %v6615_v56 = vxor.u32 2147483648, %v6614_v15  ;;  %v6758_v55 = vor.u32 %v6757_v23, %v6756_v52  ;;  %v6763_v60 = vshrl.u32 %v9995_v40, %v6754_v17  ;;  %v6768_v8 = vshll.u32 %v9996_v42, %v6753_v37 }
 0x38c   : > { %vm6970_vm11 = vcmp.eq.s32.totalorder %v13485_v57, 0  ;;  %v6696_v3 = vadd.s32 536870912, %v6695_v48  ;;  %v6769_v24 = vshrl.u32 %v9997_v50, %v6754_v17  ;;  %v6761_v25 = vor.u32 %v6760_v20, %v6759_v33 }
 0x38d   : > { %v9850_v4 = vpop.eup %9849  ;;  %v6616_v21 = vsel %vm6533_vm15, %v6615_v56, %v6614_v15  ;;  %v6767_v35 = vor.u32 %v6766_v58, %v6765_v53  ;;  %vm6771_vm4 = vcmp.lt.s32.totalorder %v13502_v18, 1  ;;  %vm6969_vm7 = vcmp.lt.s32.totalorder %v13485_v57, 2 }
 0x38e   : > { %v9852_v44 = vpop.eup %9851  ;;  %v6527_v30 = vxor.u32 2147483648, %v9850_v4  ;;  %v6619_v12 = vsel %vm13471_vm9, %v13176_v63, %v6616_v21  ;;  %v6697_v46 = vshrl.u32 %v6696_v3, 30  ;;  %v6764_v62 = vor.u32 %v6763_v60, %v6762_v32 }
 0x38f   : > { %v6524_v61 = vxor.u32 2147483648, %v9852_v44  ;;  %9853 = vcosq.f32 %v6619_v12  ;;  %vm6774_vm15 = vcmp.lt.s32.totalorder %v13502_v18, 4  ;;  %v6770_v11 = vor.u32 %v6769_v24, %v6768_v8 }
 0x390   : > { %v6528_v19 = vsel %vm6526_vm2, %v6527_v30, %v9852_v44  ;;  %9855 = vsinq.f32 %v6619_v12  ;;  %v6698_v5 = vshll.u32 %v6697_v46, 30  ;;  %vm6773_vm3 = vcmp.lt.s32.totalorder %v13502_v18, 3 }
 0x391   : > { %v6525_v54 = vsel %vm6523_vm1, %v9850_v4, %v6524_v61  ;;  %vm6637_vm5 = vcmp.lt.s32.totalorder %v13341_v28, 0  ;;  %vm6772_vm6 = vcmp.lt.s32.totalorder %v13502_v18, 2  ;;  %v6779_v41 = vsel %vm6771_vm4, %v6758_v55, %v6761_v25 }
 0x392   : > { %v6529_v51 = vsel %vm6522_vm12, %v6525_v54, %v6528_v19  ;;  %v6780_v14 = vsel %vm6774_vm15, %v6767_v35, 920167782  ;;  %v13533_v39 = vsub.s32 %v6695_v48, %v6698_v5  ;;  %v6776_v16 = vsel %vm6774_vm15, %v6764_v62, 2102212464 }
 0x393   : > { %v6530_v59 = vsel %vm6519_vm13, nan, %v6529_v51  ;;  %v6625_v17 = vand.u32 3, %v6624_v22  ;;  %v6775_v49 = vsel %vm6771_vm4, %v6755_v29, %v6758_v55  ;;  %v6781_v52 = vsel %vm6773_vm3, %v6764_v62, %v6780_v14 }
 0x394   : > { %v6851_v9 = vrot.slane %v6530_v59, 3  ;;  %v6847_v37 = vcombine.high %v6530_v59, %v6530_v59  ;;  %vm6973_vm8 = vcmp.eq.s32.totalorder %v13485_v57, 2  ;;  %v6701_v23 = vsub.s32 0, %v13533_v39 }
 0x395   : > { %v6782_v33 = vsel %vm6772_vm6, %v6779_v41, %v6781_v52  ;;  %v6783_v43 = vsel %vm6771_vm4, %v6761_v25, %v6764_v62  ;;  %v6777_v22 = vsel %vm6773_vm3, %v6761_v25, %v6776_v16  ;;  %v6784_v20 = vsel %vm6774_vm15, %v6770_v11, 1326507024 }
 0x396   : > { %6867 = vst [vmem:[%s10124_s26 + $0x140] sm:$0xe0] %v6851_v9  ;;  %v6852_v15 = vrot.slane %v6847_v37, 3  ;;  %v13553_v53 = vmul.u32.u64.low %v13493_v31, %v6782_v33  ;;  %v13554_v58 = vmul.u32.u64.high %v13493_v31, %v6782_v33, %v13553_v53  ;;  %vm6623_vm0 = vweird.f32 %v13176_v63 }
 0x397   : > { %v9424_v56 = vmin.u32 %v6701_v23, %v13533_v39  ;;  %v6721_v48 = vsub.s32 4, %v6697_v46  ;;  %v6785_v32 = vsel %vm6773_vm3, %v6767_v35, %v6784_v20  ;;  %v6972_v29 = vsel %vm6970_vm11, %v9850_v4, %v6524_v61 }
 0x398   : > { %6868 = vst [vmem:[%s10124_s26 + $0x148] sm:$0xe0] %v6852_v15  ;;  %vm6626_vm14 = vcmp.lt.s32.totalorder %v6625_v17, 2  ;;  %v6786_v55 = vsel %vm6772_vm6, %v6783_v43, %v6785_v32  ;;  %v6975_v60 = vsel %vm6973_vm8, %v6527_v30, %v9852_v44  ;;  %v7071_v8 = vand.u32 3, %v13480_v45 }
 0x399   : > { %vm6627_vm9 = vcmp.eq.s32.totalorder %v6625_v17, 0  ;;  %vm6630_vm12 = vcmp.eq.s32.totalorder %v6625_v17, 2  ;;  %v6703_v21 = vclz %v9424_v56  ;;  %v6778_v3 = vsel %vm6772_vm6, %v6775_v49, %v6777_v22 }
 0x39a   : > { %v13572_v24 = vmul.u32.u64.low %v13493_v31, %v6786_v55  ;;  %v13573_v12 = vmul.u32.u64.high %v13493_v31, %v6786_v55, %v13572_v24  ;;  %v6976_v4 = vsel %vm6969_vm7, %v6972_v29, %v6975_v60  ;;  %v13578_v61 = vmul.f32 256.0, %v10118_v0 }
 0x39b   : > { %vm13582_vm1 = vcmp.le.f32.partialorder %v6635_v13, 0.7853982  ;;  %v6691_v18 = vadd.s32 %v13465_v27, %v13462_v10  ;;  %v9425_v44 = vadd.s32 4294967294, %v6703_v21  ;;  %v6722_v30 = vsel %vm6637_vm5, %v6721_v48, %v6697_v46 }
 0x39c   : > { %v6977_v57 = vsel %vm6519_vm13, nan, %v6976_v4  ;;  %v9854_v25 = vpop.eup %9853  ;;  %v6794_v35 = vmul.u32 %v13493_v31, %v6778_v3  ;;  %v6797_v19 = vadd.s32 1, %v13554_v58  ;;  %vm7072_vm2 = vcmp.lt.s32.totalorder %v7071_v8, 2 }
 0x39d   : > { %v7291_v13 = vcombine.high %v6977_v57, %v6977_v57  ;;  %7299 = vst [vmem:[%s10124_s26 + $0x180] sm:$0x7] %v6977_v57  ;;  %v9856_v54 = vpop.eup %9855  ;;  %v6631_v62 = vxor.u32 2147483648, %v9854_v25  ;;  %vm9426_vm10 = vcmp.lt.s32.totalorder %v9425_v44, 0  ;;  %vm7073_vm11 = vcmp.eq.s32.totalorder %v7071_v8, 0 }
 0x39e   : > { %vm7076_vm4 = vcmp.eq.s32.totalorder %v7071_v8, 2  ;;  %v6628_v10 = vxor.u32 2147483648, %v9856_v54  ;;  %v6706_v27 = vsel %vm9426_vm10, 0, %v9425_v44  ;;  %vm6796_vm7 = vc.u32 %v13573_v12, %v13553_v53 }
 0x39f   : > { %7300 = vst [vmem:[%s10124_s26 + $0x188] sm:$0x7] %v7291_v13  ;;  %v7314_v47 = vand.u32 2139095040, %v13578_v61  ;;  %v6632_v31 = vsel %vm6630_vm12, %v6631_v62, %v9856_v54  ;;  %v6707_v46 = vsub.s32 32, %v6706_v27  ;;  %v6708_v51 = vshll.u32 %v13533_v39, %v6706_v27 }
 0x3a0   : > { %v6711_v5 = vsub.s32 4294967266, %v6706_v27  ;;  %v6629_v11 = vsel %vm6627_vm9, %v9854_v25, %v6628_v10  ;;  %v6798_v59 = vsel %vm6796_vm7, %v6797_v19, %v13554_v58  ;;  %v7075_v41 = vsel %vm7073_vm11, %v9854_v25, %v6628_v10 }
 0x3a1   : > { %v7078_v14 = vsel %vm7076_vm4, %v6631_v62, %v9856_v54  ;;  %v6633_v9 = vsel %vm6626_vm14, %v6629_v11, %v6632_v31  ;;  %v6709_v37 = vshrl.u32 %v6691_v18, %v6707_v46  ;;  %v6799_v49 = vadd.s32 %v6798_v59, %v6794_v35 }
 0x3a2   : > { %v6712_v16 = vadd.s32 127, %v6711_v5  ;;  %v6634_v52 = vsel %vm6623_vm0, nan, %v6633_v9  ;;  %v7079_v15 = vsel %vm7072_vm2, %v7075_v41, %v7078_v14  ;;  %v7311_v39 = vand.u32 2147483647, %v13578_v61 }
 0x3a3   : > { %v13609_v23 = vmul.f32 256.0, %v10120_v1  ;;  %v6853_v33 = vrot.slane %v6634_v52, 3  ;;  %v6848_v43 = vcombine.high %v6634_v52, %v6634_v52  ;;  %v6710_v17 = vor.u32 %v6709_v37, %v6708_v51 }
 0x3a4   : > { %v6713_v22 = vshll.u32 %v6712_v16, 23  ;;  %v6724_v20 = vsel %vm13582_vm1, 0, %v6722_v30  ;;  %v6800_v58 = vadd.s32 536870912, %v6799_v49  ;;  %v7080_v56 = vsel %vm6623_vm0, nan, %v7079_v15 }
 0x3a5   : > { %v7315_v48 = vshrl.u32 %v7314_v47, 23  ;;  %6869 = vst [vmem:[%s10124_s26 + $0x150] sm:$0xe0] %v6853_v33  ;;  %v6854_v32 = vrot.slane %v6848_v43, 3  ;;  %v6717_v55 = vcvt.s32.f32 %v6710_v17  ;;  %v7292_v60 = vcombine.high %v7080_v56, %v7080_v56  ;;  %7301 = vst [vmem:[%s10124_s26 + $0x190] sm:$0x7] %v7080_v56 }
 0x3a6   : > { %v6714_v29 = vor.u32 4788187, %v6713_v22  ;;  %v6801_v8 = vshrl.u32 %v6800_v58, 30  ;;  %v7318_v24 = vand.u32 8388607, %v7311_v39  ;;  %v7418_v4 = vand.u32 2139095040, %v13609_v23 }
 0x3a7   : > { %v9447_v21 = vadd.s32 4294967169, %v7315_v48  ;;  %6870 = vst [vmem:[%s10124_s26 + $0x158] sm:$0xe0] %v6854_v32  ;;  %7302 = vst [vmem:[%s10124_s26 + $0x198] sm:$0x7] %v7292_v60  ;;  %v6728_v18 = vadd.s32 3, %v6724_v20  ;;  %vm6727_vm2 = vweird.f32 %v13341_v28 }
 0x3a8   : > { %v6715_v3 = vand.u32 2147483647, %v6714_v29  ;;  %v6802_v63 = vshll.u32 %v6801_v8, 30  ;;  %v6825_v57 = vsub.s32 4, %v6801_v8  ;;  %v7419_v25 = vshrl.u32 %v7418_v4, 23 }
 0x3a9   : > { %v7321_v44 = vadd.s32 1, %v9447_v21  ;;  %v7319_v13 = vor.u32 8388608, %v7318_v24  ;;  %v7415_v62 = vand.u32 2147483647, %v13609_v23  ;;  %v13625_v10 = vand.u32 3, %v6728_v18 }
 0x3aa   : > { %v6718_v30 = vmul.f32 %v6717_v55, %v6715_v3  ;;  %v13622_v35 = vsub.s32 %v6799_v49, %v6802_v63  ;;  %vm13629_vm15 = vcmp.le.f32.partialorder %v6739_v7, 0.7853982  ;;  %vm6741_vm3 = vcmp.lt.s32.totalorder %v13369_v26, 0 }
 0x3ab   : > { %vm7322_vm13 = vcmp.gt.s32.totalorder %v7321_v44, 0  ;;  %v6826_v46 = vsel %vm6741_vm3, %v6825_v57, %v6801_v8  ;;  %v9451_v5 = vadd.s32 4294967169, %v7419_v25  ;;  %v6795_v7 = vadd.s32 %v13553_v53, %v13573_v12 }
 0x3ac   : > { %v6719_v19 = vxor.u32 2147483648, %v6718_v30  ;;  %v7323_v54 = vsel %vm7322_vm13, %v7321_v44, 0  ;;  %v6805_v47 = vsub.s32 0, %v13622_v35  ;;  %v13645_v41 = vand.u32 3, %v6724_v20 }
 0x3ad   : > { %v7325_v51 = vand.u32 31, %v7323_v54  ;;  %v13647_v9 = vshll.u32 %v7319_v13, 8  ;;  %v13651_v37 = vand.u32 8388607, %v7415_v62  ;;  %v13655_v45 = vsel %vm13629_vm15, 0, %v6826_v46 }
 0x3ae   : > { %v6720_v31 = vsel %vm6637_vm5, %v6719_v19, %v6718_v30  ;;  %v9428_v59 = vmin.u32 %v6805_v47, %v13622_v35  ;;  %v7324_v49 = vshrl.u32 %v7323_v54, 5  ;;  %v7425_v15 = vadd.s32 1, %v9451_v5 }
 0x3af   : > { %v6723_v11 = vsel %vm13582_vm1, %v13341_v28, %v6720_v31  ;;  %v7326_v14 = vsub.s32 32, %v7325_v51  ;;  %v7328_v12 = vshll.u32 %v9992_v34, %v7325_v51  ;;  %v7331_v43 = vshll.u32 %v9993_v36, %v7325_v51 }
 0x3b0   : > { %9857 = vcosq.f32 %v6723_v11  ;;  %v6807_v16 = vclz %v9428_v59  ;;  %v7334_v22 = vshll.u32 %v9994_v38, %v7325_v51  ;;  %v7337_v56 = vshll.u32 %v9995_v40, %v7325_v51 }
 0x3b1   : > { %9859 = vsinq.f32 %v6723_v11  ;;  %v7327_v53 = vshrl.u32 %v9992_v34, %v7326_v14  ;;  %v7329_v52 = vshrl.u32 %v9993_v36, %v7326_v14  ;;  %v7332_v17 = vshrl.u32 %v9994_v38, %v7326_v14 }
 0x3b2   : > { %v9429_v33 = vadd.s32 4294967294, %v6807_v16  ;;  %v7335_v58 = vshrl.u32 %v9995_v40, %v7326_v14  ;;  %v7338_v48 = vshrl.u32 %v9996_v42, %v7326_v14  ;;  %vm6734_vm5 = vcmp.eq.s32.totalorder %v13625_v10, 2 }
 0x3b3   : > { %v7330_v20 = vor.u32 %v7329_v52, %v7328_v12  ;;  %vm7179_vm8 = vcmp.eq.s32.totalorder %v13645_v41, 2  ;;  %v7333_v32 = vor.u32 %v7332_v17, %v7331_v43  ;;  %v7340_v29 = vshll.u32 %v9996_v42, %v7325_v51 }
 0x3b4   : > { %vm9430_vm6 = vcmp.lt.s32.totalorder %v9429_v33, 0  ;;  %v7341_v55 = vshrl.u32 %v9997_v50, %v7326_v14  ;;  %vm6731_vm0 = vcmp.eq.s32.totalorder %v13625_v10, 0  ;;  %vm7176_vm14 = vcmp.eq.s32.totalorder %v13645_v41, 0 }
 0x3b5   : > { %v6810_v60 = vsel %vm9430_vm6, 0, %v9429_v33  ;;  %v7336_v8 = vor.u32 %v7335_v58, %v7334_v22  ;;  %v7339_v21 = vor.u32 %v7338_v48, %v7337_v56  ;;  %vm7343_vm9 = vcmp.lt.s32.totalorder %v7324_v49, 1 }
 0x3b6   : > { %vm6730_vm12 = vcmp.lt.s32.totalorder %v13625_v10, 2  ;;  %v6811_v3 = vsub.s32 32, %v6810_v60  ;;  %v6812_v24 = vshll.u32 %v13622_v35, %v6810_v60  ;;  %v6815_v4 = vsub.s32 4294967266, %v6810_v60 }
 0x3b7   : > { %vm7175_vm1 = vcmp.lt.s32.totalorder %v13645_v41, 2  ;;  %v7342_v18 = vor.u32 %v7341_v55, %v7340_v29  ;;  %vm7344_vm10 = vcmp.lt.s32.totalorder %v7324_v49, 2  ;;  %vm7345_vm11 = vcmp.lt.s32.totalorder %v7324_v49, 3 }
 0x3b8   : > { %vm7346_vm4 = vcmp.lt.s32.totalorder %v7324_v49, 4  ;;  %v7347_v63 = vsel %vm7343_vm9, %v7327_v53, %v7330_v20  ;;  %v6813_v44 = vshrl.u32 %v6795_v7, %v6811_v3  ;;  %v6816_v30 = vadd.s32 127, %v6815_v4 }
 0x3b9   : > { %v7348_v57 = vsel %vm7346_vm4, %v7336_v8, 2102212464  ;;  %v7351_v25 = vsel %vm7343_vm9, %v7330_v20, %v7333_v32  ;;  %v7352_v13 = vsel %vm7346_vm4, %v7339_v21, 920167782  ;;  %v7355_v35 = vsel %vm7343_vm9, %v7333_v32, %v7336_v8 }
 0x3ba   : > { %v7349_v19 = vsel %vm7345_vm11, %v7333_v32, %v7348_v57  ;;  %v7356_v54 = vsel %vm7346_vm4, %v7342_v18, 1326507024  ;;  %v6814_v47 = vor.u32 %v6813_v44, %v6812_v24  ;;  %v6817_v31 = vshll.u32 %v6816_v30, 23 }
 0x3bb   : > { %v13681_v46 = vadd.s32 3, %v13655_v45  ;;  %v7353_v51 = vsel %vm7345_vm11, %v7336_v8, %v7352_v13  ;;  %v7350_v5 = vsel %vm7344_vm10, %v7347_v63, %v7349_v19  ;;  %v7357_v7 = vsel %vm7345_vm11, %v7339_v21, %v7356_v54 }
 0x3bc   : > { %v7354_v11 = vsel %vm7344_vm10, %v7351_v25, %v7353_v51  ;;  %vm7426_vm7 = vcmp.gt.s32.totalorder %v7425_v15, 0  ;;  %v6818_v14 = vor.u32 4788187, %v6817_v31  ;;  %v6821_v16 = vcvt.s32.f32 %v6814_v47 }
 0x3bd   : > { %v9858_v59 = vpop.eup %9857  ;;  %v7358_v53 = vsel %vm7344_vm10, %v7355_v35, %v7357_v7  ;;  %v7427_v12 = vsel %vm7426_vm7, %v7425_v15, 0  ;;  %v13695_v56 = vmul.u32.u64.low %v13647_v9, %v7354_v11  ;;  %v13696_v48 = vmul.u32.u64.high %v13647_v9, %v7354_v11, %v13695_v56 }
 0x3be   : > { %v9860_v52 = vpop.eup %9859  ;;  %v6735_v33 = vxor.u32 2147483648, %v9858_v59  ;;  %v13689_v43 = vmul.u32.u64.low %v13647_v9, %v7358_v53  ;;  %v13690_v17 = vmul.u32.u64.high %v13647_v9, %v7358_v53, %v13689_v43  ;;  %v13692_v22 = vshrl.u32 %v7427_v12, 5 }
 0x3bf   : > { %v6732_v20 = vxor.u32 2147483648, %v9860_v52  ;;  %v6819_v58 = vand.u32 2147483647, %v6818_v14  ;;  %v7423_v32 = vor.u32 8388608, %v13651_v37  ;;  %v7429_v29 = vand.u32 31, %v7427_v12 }
 0x3c0   : > { %v6736_v49 = vsel %vm6734_vm5, %v6735_v33, %v9860_v52  ;;  %v7181_v15 = vsel %vm7179_vm8, %v6735_v33, %v9860_v52  ;;  %v7366_v21 = vmul.u32 %v13647_v9, %v7350_v5  ;;  %vm7368_vm13 = vc.u32 %v13690_v17, %v13695_v56 }
 0x3c1   : > { %v6733_v55 = vsel %vm6731_vm0, %v9858_v59, %v6732_v20  ;;  %v6822_v60 = vmul.f32 %v6821_v16, %v6819_v58  ;;  %v7178_v8 = vsel %vm7176_vm14, %v9858_v59, %v6732_v20  ;;  %vm7447_vm5 = vcmp.lt.s32.totalorder %v13692_v22, 1 }
 0x3c2   : > { %v6737_v3 = vsel %vm6730_vm12, %v6733_v55, %v6736_v49  ;;  %v7182_v24 = vsel %vm7175_vm1, %v7178_v8, %v7181_v15  ;;  %v7369_v10 = vadd.s32 1, %v13696_v48  ;;  %v7430_v44 = vsub.s32 32, %v7429_v29 }
 0x3c3   : > { %v6738_v37 = vsel %vm6727_vm2, nan, %v6737_v3  ;;  %v6823_v4 = vxor.u32 2147483648, %v6822_v60  ;;  %v7183_v9 = vsel %vm6727_vm2, nan, %v7182_v24  ;;  %v7432_v25 = vshll.u32 %v9992_v34, %v7429_v29 }
 0x3c4   : > { %v6855_v18 = vrot.slane %v6738_v37, 3  ;;  %v6849_v63 = vcombine.high %v6738_v37, %v6738_v37  ;;  %v7293_v41 = vcombine.high %v7183_v9, %v7183_v9  ;;  %7303 = vst [vmem:[%s10124_s26 + $0x1a0] sm:$0x7] %v7183_v9  ;;  %v7370_v57 = vsel %vm7368_vm13, %v7369_v10, %v13696_v48 }
 0x3c5   : > { %v6824_v30 = vsel %vm6741_vm3, %v6823_v4, %v6822_v60  ;;  %v7435_v19 = vshll.u32 %v9993_v36, %v7429_v29  ;;  %v7371_v35 = vadd.s32 %v7370_v57, %v7366_v21  ;;  %v7431_v54 = vshrl.u32 %v9992_v34, %v7430_v44 }
 0x3c6   : > { %6871 = vst [vmem:[%s10124_s26 + $0x160] sm:$0xe0] %v6855_v18  ;;  %v6856_v28 = vrot.slane %v6849_v63, 3  ;;  %v6827_v13 = vsel %vm13629_vm15, %v13369_v26, %v6824_v30  ;;  %7304 = vst [vmem:[%s10124_s26 + $0x1a8] sm:$0x7] %v7293_v41  ;;  %v7433_v47 = vshrl.u32 %v9993_v36, %v7430_v44  ;;  %v7436_v31 = vshrl.u32 %v9994_v38, %v7430_v44 }
 0x3c7   : > { %9861 = vcosq.f32 %v6827_v13  ;;  %v7438_v51 = vshll.u32 %v9994_v38, %v7429_v29  ;;  %v7372_v5 = vadd.s32 536870912, %v7371_v35  ;;  %v7439_v11 = vshrl.u32 %v9995_v40, %v7430_v44 }
 0x3c8   : > { %6872 = vst [vmem:[%s10124_s26 + $0x168] sm:$0xe0] %v6856_v28  ;;  %9863 = vsinq.f32 %v6827_v13  ;;  %v7441_v7 = vshll.u32 %v9995_v40, %v7429_v29  ;;  %v7434_v27 = vor.u32 %v7433_v47, %v7432_v25  ;;  %v7437_v59 = vor.u32 %v7436_v31, %v7435_v19 }
 0x3c9   : > { %v7442_v14 = vshrl.u32 %v9996_v42, %v7430_v44  ;;  %v7444_v16 = vshll.u32 %v9996_v42, %v7429_v29  ;;  %v13742_v53 = vand.u32 3, %v13655_v45  ;;  %v7373_v12 = vshrl.u32 %v7372_v5, 30 }
 0x3ca   : > { %v7440_v52 = vor.u32 %v7439_v11, %v7438_v51  ;;  %v7445_v33 = vshrl.u32 %v9997_v50, %v7430_v44  ;;  %vm7448_vm15 = vcmp.lt.s32.totalorder %v13692_v22, 2  ;;  %vm7449_vm3 = vcmp.lt.s32.totalorder %v13692_v22, 3 }
 0x3cb   : > { %v7443_v43 = vor.u32 %v7442_v14, %v7441_v7  ;;  %vm7450_vm6 = vcmp.lt.s32.totalorder %v13692_v22, 4  ;;  %v7374_v20 = vshll.u32 %v7373_v12, 30  ;;  %v7455_v45 = vsel %vm7447_vm5, %v7434_v27, %v7437_v59 }
 0x3cc   : > { %v7446_v58 = vor.u32 %v7445_v33, %v7444_v16  ;;  %v7452_v48 = vsel %vm7450_vm6, %v7440_v52, 2102212464  ;;  %vm7313_vm8 = vcmp.lt.s32.totalorder %v13578_v61, 0  ;;  %v7451_v49 = vsel %vm7447_vm5, %v7431_v54, %v7434_v27 }
 0x3cd   : > { %v7456_v15 = vsel %vm7450_vm6, %v7443_v43, 920167782  ;;  %v7463_v29 = vshll.u32 %v7423_v32, 8  ;;  %v13757_v55 = vsub.s32 %v7371_v35, %v7374_v20  ;;  %v7453_v60 = vsel %vm7449_vm3, %v7437_v59, %v7452_v48 }
 0x3ce   : > { %v7457_v8 = vsel %vm7449_vm3, %v7440_v52, %v7456_v15  ;;  %v7459_v21 = vsel %vm7447_vm5, %v7437_v59, %v7440_v52  ;;  %vm6831_vm0 = vweird.f32 %v13369_v26  ;;  %v6833_v3 = vand.u32 3, %v13681_v46 }
 0x3cf   : > { %vm7278_vm14 = vcmp.lt.s32.totalorder %v13742_v53, 2  ;;  %v7458_v32 = vsel %vm7448_vm15, %v7455_v45, %v7457_v8  ;;  %v7460_v24 = vsel %vm7450_vm6, %v7446_v58, 1326507024  ;;  %vm7279_vm9 = vcmp.eq.s32.totalorder %v13742_v53, 0 }
 0x3d0   : > { %v7377_v37 = vsub.s32 0, %v13757_v55  ;;  %v7461_v4 = vsel %vm7449_vm3, %v7443_v43, %v7460_v24  ;;  %v13777_v9 = vmul.f32 256.0, %v10122_v2  ;;  %v7454_v46 = vsel %vm7448_vm15, %v7451_v49, %v7453_v60 }
 0x3d1   : > { %v7462_v10 = vsel %vm7448_vm15, %v7459_v21, %v7461_v4  ;;  %v13783_v18 = vmul.u32.u64.low %v7463_v29, %v7458_v32  ;;  %v13784_v63 = vmul.u32.u64.high %v7463_v29, %v7458_v32, %v13783_v18  ;;  %v7397_v44 = vsub.s32 4, %v7373_v12 }
 0x3d2   : > { %v9448_v41 = vmin.u32 %v7377_v37, %v13757_v55  ;;  %v13788_v30 = vmul.u32.u64.low %v7463_v29, %v7462_v10  ;;  %v13789_v57 = vmul.u32.u64.high %v7463_v29, %v7462_v10, %v13788_v30  ;;  %vm6834_vm12 = vcmp.lt.s32.totalorder %v6833_v3, 2 }
 0x3d3   : > { %vm6835_vm1 = vcmp.eq.s32.totalorder %v6833_v3, 0  ;;  %vm7282_vm2 = vcmp.eq.s32.totalorder %v13742_v53, 2  ;;  %v7522_v25 = vand.u32 2139095040, %v13777_v9  ;;  %vm6838_vm10 = vcmp.eq.s32.totalorder %v6833_v3, 2 }
 0x3d4   : > { %v9862_v19 = vpop.eup %9861  ;;  %v7367_v22 = vadd.s32 %v13695_v56, %v13690_v17  ;;  %v7379_v28 = vclz %v9448_v41  ;;  %v7470_v13 = vmul.u32 %v7463_v29, %v7454_v46  ;;  %v7473_v47 = vadd.s32 1, %v13784_v63 }
 0x3d5   : > { %v9864_v35 = vpop.eup %9863  ;;  %v6839_v54 = vxor.u32 2147483648, %v9862_v19  ;;  %v7519_v31 = vand.u32 2147483647, %v13777_v9  ;;  %v7523_v51 = vshrl.u32 %v7522_v25, 23  ;;  %v7398_v7 = vsel %vm7313_vm8, %v7397_v44, %v7373_v12 }
 0x3d6   : > { %v6836_v5 = vxor.u32 2147483648, %v9864_v35  ;;  %v9449_v11 = vadd.s32 4294967294, %v7379_v28  ;;  %vm7472_vm11 = vc.u32 %v13789_v57, %v13783_v18  ;;  %v13819_v32 = vmul.f32 256.0, %v10138_v6 }
 0x3d7   : > { %v6840_v27 = vsel %vm6838_vm10, %v6839_v54, %v9864_v35  ;;  %v7284_v17 = vsel %vm7282_vm2, %v6839_v54, %v9864_v35  ;;  %v7474_v56 = vsel %vm7472_vm11, %v7473_v47, %v13784_v63  ;;  %v9455_v59 = vadd.s32 4294967169, %v7523_v51 }
 0x3d8   : > { %v6837_v14 = vsel %vm6835_vm1, %v9862_v19, %v6836_v5  ;;  %v7281_v16 = vsel %vm7279_vm9, %v9862_v19, %v6836_v5  ;;  %vm9450_vm4 = vcmp.lt.s32.totalorder %v9449_v11, 0  ;;  %v7475_v52 = vadd.s32 %v7474_v56, %v7470_v13 }
 0x3d9   : > { %v6841_v12 = vsel %vm6834_vm12, %v6837_v14, %v6840_v27  ;;  %v7285_v33 = vsel %vm7278_vm14, %v7281_v16, %v7284_v17  ;;  %v7382_v43 = vsel %vm9450_vm4, 0, %v9449_v11  ;;  %v7526_v20 = vand.u32 8388607, %v7519_v31 }
 0x3da   : > { %v6842_v58 = vsel %vm6831_vm0, nan, %v6841_v12  ;;  %v7286_v48 = vsel %vm6831_vm0, nan, %v7285_v33  ;;  %v7383_v45 = vsub.s32 32, %v7382_v43  ;;  %v7384_v49 = vshll.u32 %v13757_v55, %v7382_v43 }
 0x3db   : > { %v6857_v15 = vrot.slane %v6842_v58, 3  ;;  %v6850_v29 = vcombine.high %v6842_v58, %v6842_v58  ;;  %v7294_v60 = vcombine.high %v7286_v48, %v7286_v48  ;;  %7305 = vst [vmem:[%s10124_s26 + $0x1b0] sm:$0x7] %v7286_v48  ;;  %v7387_v53 = vsub.s32 4294967266, %v7382_v43 }
 0x3dc   : > { %v7385_v8 = vshrl.u32 %v7367_v22, %v7383_v45  ;;  %v7476_v21 = vadd.s32 536870912, %v7475_v52  ;;  %v7529_v3 = vadd.s32 1, %v9455_v59  ;;  %vm13825_vm7 = vcmp.le.f32.partialorder %v7311_v39, 0.7853982 }
 0x3dd   : > { %6873 = vst [vmem:[%s10124_s26 + $0x170] sm:$0xe0] %v6857_v15  ;;  %v6858_v24 = vrot.slane %v6850_v29, 3  ;;  %7306 = vst [vmem:[%s10124_s26 + $0x1b8] sm:$0x7] %v7294_v60  ;;  %v7388_v55 = vadd.s32 127, %v7387_v53  ;;  %v7471_v13 = vadd.s32 %v13783_v18, %v13789_v57  ;;  %vm7403_vm12 = vweird.f32 %v13578_v61 }
 0x3de   : > { %v7386_v37 = vor.u32 %v7385_v8, %v7384_v49  ;;  %v7477_v4 = vshrl.u32 %v7476_v21, 30  ;;  %v7527_v46 = vor.u32 8388608, %v7526_v20  ;;  %vm7530_vm13 = vcmp.gt.s32.totalorder %v7529_v3, 0 }
 0x3df   : > { %6874 = vst [vmem:[%s10124_s26 + $0x178] sm:$0xe0] %v6858_v24  ;;  %v7389_v10 = vshll.u32 %v7388_v55, 23  ;;  %v13832_v63 = vsel %vm13825_vm7, 0, %v7398_v7  ;;  %v7531_v41 = vsel %vm7530_vm13, %v7529_v3, 0  ;;  %v7626_v39 = vand.u32 2139095040, %v13819_v32 }
 0x3e0   : > { %v7478_v44 = vshll.u32 %v7477_v4, 30  ;;  %v7623_v30 = vand.u32 2147483647, %v13819_v32  ;;  %v7393_v19 = vcvt.s32.f32 %v7386_v37  ;;  %vm7417_vm5 = vcmp.lt.s32.totalorder %v13609_v23, 0 }
 0x3e1   : > { %v7390_v25 = vor.u32 4788187, %v7389_v10  ;;  %v7533_v22 = vand.u32 31, %v7531_v41  ;;  %v13838_v28 = vadd.s32 3, %v13832_v63  ;;  %v13844_v54 = vshll.u32 %v7527_v46, 8 }
 0x3e2   : > { %v13842_v35 = vsub.s32 %v7475_v52, %v7478_v44  ;;  %v7501_v51 = vsub.s32 4, %v7477_v4  ;;  %v7532_v5 = vshrl.u32 %v7531_v41, 5  ;;  %v7627_v17 = vshrl.u32 %v7626_v39, 23 }
 0x3e3   : > { %v7391_v47 = vand.u32 2147483647, %v7390_v25  ;;  %v7534_v11 = vsub.s32 32, %v7533_v22  ;;  %v7536_v27 = vshll.u32 %v9992_v34, %v7533_v22  ;;  %v13850_v56 = vand.u32 8388607, %v7623_v30 }
 0x3e4   : > { %v7481_v7 = vsub.s32 0, %v13842_v35  ;;  %v7539_v57 = vshll.u32 %v9993_v36, %v7533_v22  ;;  %vm13857_vm15 = vcmp.le.f32.partialorder %v7415_v62, 0.7853982  ;;  %v7542_v12 = vshll.u32 %v9994_v38, %v7533_v22 }
 0x3e5   : > { %v7394_v59 = vmul.f32 %v7393_v19, %v7391_v47  ;;  %v7537_v18 = vshrl.u32 %v9993_v36, %v7534_v11  ;;  %v7540_v14 = vshrl.u32 %v9994_v38, %v7534_v11  ;;  %v7543_v33 = vshrl.u32 %v9995_v40, %v7534_v11 }
 0x3e6   : > { %v9452_v52 = vmin.u32 %v7481_v7, %v13842_v35  ;;  %v7545_v43 = vshll.u32 %v9995_v40, %v7533_v22  ;;  %v7502_v58 = vsel %vm7417_vm5, %v7501_v51, %v7477_v4  ;;  %v7535_v48 = vshrl.u32 %v9992_v34, %v7534_v11 }
 0x3e7   : > { %v7395_v20 = vxor.u32 2147483648, %v7394_v59  ;;  %v7546_v45 = vshrl.u32 %v9996_v42, %v7534_v11  ;;  %v7538_v49 = vor.u32 %v7537_v18, %v7536_v27  ;;  %vm7551_vm3 = vcmp.lt.s32.totalorder %v7532_v5, 1 }
 0x3e8   : > { %v7483_v62 = vclz %v9452_v52  ;;  %vm7552_vm6 = vcmp.lt.s32.totalorder %v7532_v5, 2  ;;  %v7541_v29 = vor.u32 %v7540_v14, %v7539_v57  ;;  %v7548_v53 = vshll.u32 %v9996_v42, %v7533_v22 }
 0x3e9   : > { %v7396_v15 = vsel %vm7313_vm8, %v7395_v20, %v7394_v59  ;;  %v7547_v60 = vor.u32 %v7546_v45, %v7545_v43  ;;  %v7544_v3 = vor.u32 %v7543_v33, %v7542_v12  ;;  %v7549_v24 = vshrl.u32 %v9997_v50, %v7534_v11 }
 0x3ea   : > { %v7399_v8 = vsel %vm13825_vm7, %v13578_v61, %v7396_v15  ;;  %v9453_v21 = vadd.s32 4294967294, %v7483_v62  ;;  %vm7553_vm0 = vcmp.lt.s32.totalorder %v7532_v5, 3  ;;  %vm7554_vm14 = vcmp.lt.s32.totalorder %v7532_v5, 4 }
 0x3eb   : > { %9865 = vcosq.f32 %v7399_v8  ;;  %v7555_v55 = vsel %vm7551_vm3, %v7535_v48, %v7538_v49  ;;  %v7550_v37 = vor.u32 %v7549_v24, %v7548_v53  ;;  %v7556_v4 = vsel %vm7554_vm14, %v7544_v3, 2102212464 }
 0x3ec   : > { %9867 = vsinq.f32 %v7399_v8  ;;  %vm9454_vm9 = vcmp.lt.s32.totalorder %v9453_v21, 0  ;;  %v7557_v10 = vsel %vm7553_vm0, %v7541_v29, %v7556_v4  ;;  %v7559_v26 = vsel %vm7551_vm3, %v7538_v49, %v7541_v29 }
 0x3ed   : > { %v7486_v46 = vsel %vm9454_vm9, 0, %v9453_v21  ;;  %v7560_v41 = vsel %vm7554_vm14, %v7547_v60, 920167782  ;;  %v7563_v19 = vsel %vm7551_vm3, %v7541_v29, %v7544_v3  ;;  %v7504_v22 = vsel %vm13857_vm15, 0, %v7502_v58 }
 0x3ee   : > { %v7487_v44 = vsub.s32 32, %v7486_v46  ;;  %v7488_v39 = vshll.u32 %v13842_v35, %v7486_v46  ;;  %v7491_v25 = vsub.s32 4294967266, %v7486_v46  ;;  %v7561_v47 = vsel %vm7553_vm0, %v7544_v3, %v7560_v41 }
 0x3ef   : > { %v7564_v51 = vsel %vm7554_vm14, %v7550_v37, 1326507024  ;;  %v9459_v11 = vadd.s32 4294967169, %v7627_v17  ;;  %v7562_v59 = vsel %vm7552_vm6, %v7559_v26, %v7561_v47  ;;  %v7558_v57 = vsel %vm7552_vm6, %v7555_v55, %v7557_v10 }
 0x3f0   : > { %v7489_v7 = vshrl.u32 %v7471_v13, %v7487_v44  ;;  %v7492_v27 = vadd.s32 127, %v7491_v25  ;;  %v7565_v18 = vsel %vm7553_vm0, %v7547_v60, %v7564_v51  ;;  %v7405_v13 = vand.u32 3, %v13838_v28 }
 0x3f1   : > { %v7566_v35 = vsel %vm7552_vm6, %v7563_v19, %v7565_v18  ;;  %v13892_v14 = vmul.u32.u64.low %v13844_v54, %v7562_v59  ;;  %v13893_v52 = vmul.u32.u64.high %v13844_v54, %v7562_v59, %v13892_v14  ;;  %v7633_v20 = vadd.s32 1, %v9459_v11 }
 0x3f2   : > { %v7490_v12 = vor.u32 %v7489_v7, %v7488_v39  ;;  %v7493_v33 = vshll.u32 %v7492_v27, 23  ;;  %v13897_v43 = vmul.u32.u64.low %v13844_v54, %v7566_v35  ;;  %v13898_v17 = vmul.u32.u64.high %v13844_v54, %v7566_v35, %v13897_v43 }
 0x3f3   : > { %v7508_v45 = vadd.s32 3, %v7504_v22  ;;  %v7574_v5 = vmul.u32 %v13844_v54, %v7558_v57  ;;  %v7577_v62 = vadd.s32 1, %v13893_v52  ;;  %v7631_v49 = vor.u32 8388608, %v13850_v56 }
 0x3f4   : > { %v7494_v58 = vor.u32 4788187, %v7493_v33  ;;  %v7497_v48 = vcvt.s32.f32 %v7490_v12  ;;  %vm7634_vm8 = vcmp.gt.s32.totalorder %v7633_v20, 0  ;;  %vm7576_vm1 = vc.u32 %v13898_v17, %v13892_v14 }
 0x3f5   : > { %v7635_v29 = vsel %vm7634_vm8, %v7633_v20, 0  ;;  %vm7406_vm2 = vcmp.lt.s32.totalorder %v7405_v13, 2  ;;  %vm7407_vm10 = vcmp.eq.s32.totalorder %v7405_v13, 0  ;;  %v7578_v28 = vsel %vm7576_vm1, %v7577_v62, %v13893_v52 }
 0x3f6   : > { %v7495_v15 = vand.u32 2147483647, %v7494_v58  ;;  %v7637_v60 = vand.u32 31, %v7635_v29  ;;  %vm7410_vm11 = vcmp.eq.s32.totalorder %v7405_v13, 2  ;;  %v13910_v8 = vand.u32 3, %v7508_v45 }
 0x3f7   : > { %v7579_v56 = vadd.s32 %v7578_v28, %v7574_v5  ;;  %v13915_v55 = vshll.u32 %v7631_v49, 8  ;;  %v13918_v37 = vand.u32 3, %v13832_v63  ;;  %v13921_v26 = vand.u32 3, %v7504_v22 }
 0x3f8   : > { %v13908_v53 = vpop.eup %9865  ;;  %v7498_v54 = vmul.f32 %v7497_v48, %v7495_v15  ;;  %v7638_v24 = vsub.s32 32, %v7637_v60  ;;  %v13926_v44 = vshrl.u32 %v7635_v29, 5  ;;  %v7640_v39 = vshll.u32 %v9992_v34, %v7637_v60 }
 0x3f9   : > { %v13912_v21 = vpop.eup %9867  ;;  %v7411_v3 = vxor.u32 2147483648, %v13908_v53  ;;  %v7580_v10 = vadd.s32 536870912, %v7579_v56  ;;  %v7643_v25 = vshll.u32 %v9993_v36, %v7637_v60  ;;  %v7646_v27 = vshll.u32 %v9994_v38, %v7637_v60 }
 0x3fa   : > { %v7408_v4 = vxor.u32 2147483648, %v13912_v21  ;;  %v7499_v46 = vxor.u32 2147483648, %v7498_v54  ;;  %v7641_v22 = vshrl.u32 %v9993_v36, %v7638_v24  ;;  %v7644_v7 = vshrl.u32 %v9994_v38, %v7638_v24 }
 0x3fb   : > { %v7412_v41 = vsel %vm7410_vm11, %v7411_v3, %v13912_v21  ;;  %v13934_v47 = vshrl.u32 %v7580_v10, 30  ;;  %v7647_v57 = vshrl.u32 %v9995_v40, %v7638_v24  ;;  %v7639_v16 = vshrl.u32 %v9992_v34, %v7638_v24 }
 0x3fc   : > { %v7409_v63 = vsel %vm7407_vm10, %v13908_v53, %v7408_v4  ;;  %v7500_v19 = vsel %vm7417_vm5, %v7499_v46, %v7498_v54  ;;  %v7642_v33 = vor.u32 %v7641_v22, %v7640_v39  ;;  %v7649_v43 = vshll.u32 %v9995_v40, %v7637_v60 }
 0x3fd   : > { %v7413_v51 = vsel %vm7406_vm2, %v7409_v63, %v7412_v41  ;;  %v7503_v11 = vsel %vm13857_vm15, %v13609_v23, %v7500_v19  ;;  %v7582_v18 = vshll.u32 %v13934_v47, 30  ;;  %v7650_v13 = vshrl.u32 %v9996_v42, %v7638_v24 }
 0x3fe   : > { %v7414_v59 = vsel %vm7403_vm12, nan, %v7413_v51  ;;  %9869 = vcosq.f32 %v7503_v11  ;;  %v7645_v58 = vor.u32 %v7644_v7, %v7643_v25  ;;  %v7652_v48 = vshll.u32 %v9996_v42, %v7637_v60 }
 0x3ff   : > { %v7735_v35 = vrot.slane %v7414_v59, 5  ;;  %v7731_v52 = vcombine.high %v7414_v59, %v7414_v59  ;;  %9871 = vsinq.f32 %v7503_v11  ;;  %v13948_v12 = vsub.s32 %v7579_v56, %v7582_v18 }
 0x400   : > { %v7653_v45 = vshrl.u32 %v9997_v50, %v7638_v24  ;;  %v7648_v62 = vor.u32 %v7647_v57, %v7646_v27  ;;  %v7651_v49 = vor.u32 %v7650_v13, %v7649_v43  ;;  %vm7655_vm4 = vcmp.lt.s32.totalorder %v13926_v44, 1 }
 0x401   : > { %7751 = vst [vmem:[%s10124_s26 + $0x180] sm:$0x38] %v7735_v35  ;;  %v7736_v20 = vrot.slane %v7731_v52, 5  ;;  %v7585_v5 = vsub.s32 0, %v13948_v12  ;;  %vm7514_vm7 = vcmp.eq.s32.totalorder %v13910_v8, 2  ;;  %vm7658_vm13 = vcmp.lt.s32.totalorder %v13926_v44, 4 }
 0x402   : > { %v7654_v15 = vor.u32 %v7653_v45, %v7652_v48  ;;  %vm7853_vm5 = vcmp.lt.s32.totalorder %v13918_v37, 2  ;;  %vm7854_vm15 = vcmp.eq.s32.totalorder %v13918_v37, 0  ;;  %vm7511_vm3 = vcmp.eq.s32.totalorder %v13910_v8, 0 }
 0x403   : > { %7752 = vst [vmem:[%s10124_s26 + $0x188] sm:$0x38] %v7736_v20  ;;  %v9456_v29 = vmin.u32 %v7585_v5, %v13948_v12  ;;  %vm7656_vm6 = vcmp.lt.s32.totalorder %v13926_v44, 2  ;;  %vm7657_vm0 = vcmp.lt.s32.totalorder %v13926_v44, 3  ;;  %v7660_v28 = vsel %vm7658_vm13, %v7648_v62, 2102212464 }
 0x404   : > { %vm7510_vm14 = vcmp.lt.s32.totalorder %v13910_v8, 2  ;;  %v7659_v60 = vsel %vm7655_vm4, %v7639_v16, %v7642_v33  ;;  %v7661_v54 = vsel %vm7657_vm0, %v7645_v58, %v7660_v28  ;;  %v7663_v56 = vsel %vm7655_vm4, %v7642_v33, %v7645_v58 }
 0x405   : > { %v7664_v24 = vsel %vm7658_vm13, %v7651_v49, 920167782  ;;  %vm7507_vm9 = vweird.f32 %v13609_v23  ;;  %v7575_v46 = vadd.s32 %v13892_v14, %v13898_v17  ;;  %v7587_v10 = vclz %v9456_v29 }
 0x406   : > { %v7667_v41 = vsel %vm7655_vm4, %v7645_v58, %v7648_v62  ;;  %vm7857_vm8 = vcmp.eq.s32.totalorder %v13918_v37, 2  ;;  %v7665_v39 = vsel %vm7657_vm0, %v7648_v62, %v7664_v24  ;;  %v7668_v25 = vsel %vm7658_vm13, %v7654_v15, 1326507024 }
 0x407   : > { %v7856_v63 = vsel %vm7854_vm15, %v13908_v53, %v7408_v4  ;;  %vm7957_vm1 = vcmp.eq.s32.totalorder %v13921_v26, 0  ;;  %v9457_v19 = vadd.s32 4294967294, %v7587_v10  ;;  %v7662_v14 = vsel %vm7656_vm6, %v7659_v60, %v7661_v54 }
 0x408   : > { %v7666_v17 = vsel %vm7656_vm6, %v7663_v56, %v7665_v39  ;;  %v7669_v22 = vsel %vm7657_vm0, %v7651_v49, %v7668_v25  ;;  %vm7956_vm2 = vcmp.lt.s32.totalorder %v13921_v26, 2  ;;  %v7859_v7 = vsel %vm7857_vm8, %v7411_v3, %v13912_v21 }
 0x409   : > { %v7670_v51 = vsel %vm7656_vm6, %v7667_v41, %v7669_v22  ;;  %v14001_v11 = vmul.u32.u64.low %v13915_v55, %v7666_v17  ;;  %v14002_v4 = vmul.u32.u64.high %v13915_v55, %v7666_v17, %v14001_v11  ;;  %vm7521_vm10 = vcmp.lt.s32.totalorder %v13777_v9, 0 }
 0x40a   : > { %vm9458_vm11 = vcmp.lt.s32.totalorder %v9457_v19, 0  ;;  %v14010_v27 = vmul.u32.u64.low %v13915_v55, %v7670_v51  ;;  %v14011_v59 = vmul.u32.u64.high %v13915_v55, %v7670_v51, %v14010_v27  ;;  %v7860_v44 = vsel %vm7853_vm5, %v7856_v63, %v7859_v7 }
 0x40b   : > { %v9870_v18 = vpop.eup %9869  ;;  %v7590_v57 = vsel %vm9458_vm11, 0, %v9457_v19  ;;  %v7605_v35 = vsub.s32 4, %v13934_v47  ;;  %v7678_v52 = vmul.u32 %v13915_v55, %v7662_v14  ;;  %v7861_v53 = vsel %vm7403_vm12, nan, %v7860_v44 }
 0x40c   : > { %v9872_v21 = vpop.eup %9871  ;;  %v7515_v3 = vxor.u32 2147483648, %v9870_v18  ;;  %v7591_v16 = vsub.s32 32, %v7590_v57  ;;  %v7592_v33 = vshll.u32 %v13948_v12, %v7590_v57  ;;  %v7595_v43 = vsub.s32 4294967266, %v7590_v57 }
 0x40d   : > { %v7512_v13 = vxor.u32 2147483648, %v9872_v21  ;;  %v7681_v37 = vadd.s32 1, %v14002_v4  ;;  %v8179_v20 = vrot.slane %v7861_v53, 2  ;;  %v8175_v58 = vcombine.high %v7861_v53, %v7861_v53 }
 0x40e   : > { %v7516_v48 = vsel %vm7514_vm7, %v7515_v3, %v9872_v21  ;;  %v7593_v55 = vshrl.u32 %v7575_v46, %v7591_v16  ;;  %v7596_v45 = vadd.s32 127, %v7595_v43  ;;  %vm7960_vm12 = vcmp.eq.s32.totalorder %v13921_v26, 2 }
 0x40f   : > { %v7513_v61 = vsel %vm7511_vm3, %v9870_v18, %v7512_v13  ;;  %vm7680_vm4 = vc.u32 %v14011_v59, %v14001_v11  ;;  %8195 = vst [vmem:[%s10124_s26 + $0x1c0] ss:$-60 sps:$4 sm:$0xc1] %v8179_v20   ;;  %v8180_v12 = vrot.slane %v8175_v58, 2  ;;  %v7959_v5 = vsel %vm7957_vm1, %v9870_v18, %v7512_v13 }
 0x410   : > { %v7517_v62 = vsel %vm7510_vm14, %v7513_v61, %v7516_v48  ;;  %v7594_v49 = vor.u32 %v7593_v55, %v7592_v33  ;;  %v7597_v15 = vshll.u32 %v7596_v45, 23  ;;  %v7682_v29 = vsel %vm7680_vm4, %v7681_v37, %v14002_v4 }
 0x411   : > { %v7518_v28 = vsel %vm7507_vm9, nan, %v7517_v62  ;;  %v7683_v60 = vadd.s32 %v7682_v29, %v7678_v52  ;;  %8196 = vst [vmem:[%s10124_s26 + $0x1c8] ss:$-60 sps:$4 sm:$0xc1] %v8180_v12   ;;  %v7962_v54 = vsel %vm7960_vm12, %v7515_v3, %v9872_v21  ;;  %v14038_v56 = vmul.f32 512.0, %v10118_v0 }
 0x412   : > { %v7737_v24 = vrot.slane %v7518_v28, 5  ;;  %v7732_v46 = vcombine.high %v7518_v28, %v7518_v28  ;;  %v7598_v10 = vor.u32 4788187, %v7597_v15  ;;  %v7601_v8 = vcvt.s32.f32 %v7594_v49 }
 0x413   : > { %v7606_v41 = vsel %vm7521_vm10, %v7605_v35, %v13934_v47  ;;  %v7684_v39 = vadd.s32 536870912, %v7683_v60  ;;  %v7963_v25 = vsel %vm7956_vm2, %v7959_v5, %v7962_v54  ;;  %vm14050_vm7 = vcmp.le.f32.partialorder %v7519_v31, 0.7853982 }
 0x414   : > { %7753 = vst [vmem:[%s10124_s26 + $0x190] sm:$0x38] %v7737_v24  ;;  %v7738_v63 = vrot.slane %v7732_v46, 5  ;;  %v7599_v19 = vand.u32 2147483647, %v7598_v10  ;;  %v7964_v0 = vsel %vm7507_vm9, nan, %v7963_v25  ;;  %v7679_v61 = vadd.s32 %v14001_v11, %v14011_v59 }
 0x415   : > { %v7685_v17 = vshrl.u32 %v7684_v39, 30  ;;  %v8181_v47 = vrot.slane %v7964_v0, 2  ;;  %v8176_v22 = vcombine.high %v7964_v0, %v7964_v0  ;;  %v7608_v51 = vsel %vm14050_vm7, 0, %v7606_v41 }
 0x416   : > { %7754 = vst [vmem:[%s10124_s26 + $0x198] sm:$0x38] %v7738_v63  ;;  %v7602_v26 = vmul.f32 %v7601_v8, %v7599_v19  ;;  %v8215_v4 = vand.u32 2147483647, %v14038_v56  ;;  %v8218_v23 = vand.u32 2139095040, %v14038_v56  ;;  %v7612_v57 = vadd.s32 3, %v7608_v51 }
 0x417   : > { %v7686_v7 = vshll.u32 %v7685_v17, 30  ;;  %8197 = vst [vmem:[%s10124_s26 + $0x1d0] ss:$-60 sps:$4 sm:$0xc1] %v8181_v47   ;;  %v8182_v27 = vrot.slane %v8176_v22, 2  ;;  %v7709_v44 = vsub.s32 4, %v7685_v17  ;;  %vm7611_vm2 = vweird.f32 %v13777_v9 }
 0x418   : > { %v7603_v31 = vxor.u32 2147483648, %v7602_v26  ;;  %v8219_v18 = vshrl.u32 %v8218_v23, 23  ;;  %v8222_v21 = vand.u32 8388607, %v8215_v4  ;;  %vm7625_vm13 = vcmp.lt.s32.totalorder %v13819_v32, 0 }
 0x419   : > { %v14060_v35 = vsub.s32 %v7683_v60, %v7686_v7  ;;  %8198 = vst [vmem:[%s10124_s26 + $0x1d8] ss:$-60 sps:$4 sm:$0xc1] %v8182_v27   ;;  %v7710_v33 = vsel %vm7625_vm13, %v7709_v44, %v7685_v17  ;;  %v14075_v13 = vmul.f32 512.0, %v10120_v1  ;;  %v14077_v37 = vand.u32 3, %v7612_v57 }
 0x41a   : > { %v7604_v52 = vsel %vm7521_vm10, %v7603_v31, %v7602_v26  ;;  %v9479_v53 = vadd.s32 4294967169, %v8219_v18  ;;  %v14080_v58 = vand.u32 3, %v7608_v51  ;;  %vm14084_vm5 = vcmp.le.f32.partialorder %v7623_v30, 0.7853982 }
 0x41b   : > { %v7607_v3 = vsel %vm14050_vm7, %v13777_v9, %v7604_v52  ;;  %v7689_v16 = vsub.s32 0, %v14060_v35  ;;  %v8223_v55 = vor.u32 8388608, %v8222_v21  ;;  %v14090_v1 = vsel %vm14084_vm5, 0, %v7710_v33 }
 0x41c   : > { %9873 = vcosq.f32 %v7607_v3  ;;  %v8225_v43 = vadd.s32 1, %v9479_v53  ;;  %v8322_v5 = vand.u32 2139095040, %v14075_v13  ;;  %vm7618_vm3 = vcmp.eq.s32.totalorder %v14077_v37, 2 }
 0x41d   : > { %9875 = vsinq.f32 %v7607_v3  ;;  %v9460_v20 = vmin.u32 %v7689_v16, %v14060_v35  ;;  %vm8063_vm6 = vcmp.eq.s32.totalorder %v14080_v58, 2  ;;  %v14098_v49 = vmul.f32 512.0, %v10122_v2 }
 0x41e   : > { %vm8226_vm15 = vcmp.gt.s32.totalorder %v8225_v43, 0  ;;  %vm7615_vm0 = vcmp.eq.s32.totalorder %v14077_v37, 0  ;;  %v14102_v15 = vadd.s32 3, %v14090_v1  ;;  %vm8060_vm14 = vcmp.eq.s32.totalorder %v14080_v58, 0 }
 0x41f   : > { %v7691_v45 = vclz %v9460_v20  ;;  %v8227_v12 = vsel %vm8226_vm15, %v8225_v43, 0  ;;  %v14107_v59 = vshll.u32 %v8223_v55, 8  ;;  %v8319_v29 = vand.u32 2147483647, %v14075_v13 }
 0x420   : > { %v8229_v30 = vand.u32 31, %v8227_v12  ;;  %v14105_v11 = vshrl.u32 %v8227_v12, 5  ;;  %vm7614_vm9 = vcmp.lt.s32.totalorder %v14077_v37, 2  ;;  %vm8059_vm1 = vcmp.lt.s32.totalorder %v14080_v58, 2 }
 0x421   : > { %v9461_v62 = vadd.s32 4294967294, %v7691_v45  ;;  %v14113_v60 = vshrl.u32 %v8322_v5, 23  ;;  %v8326_v48 = vand.u32 8388607, %v8319_v29 }
 0x422   : > { %v8230_v2 = vsub.s32 32, %v8229_v30  ;;  %v8232_v28 = vshll.u32 %v9992_v34, %v8229_v30  ;;  %v8235_v24 = vshll.u32 %v9993_v36, %v8229_v30  ;;  %v8238_v46 = vshll.u32 %v9994_v38, %v8229_v30 }
 0x423   : > { %vm9462_vm8 = vcmp.lt.s32.totalorder %v9461_v62, 0  ;;  %v8241_v10 = vshll.u32 %v9995_v40, %v8229_v30  ;;  %v8244_v25 = vshll.u32 %v9996_v42, %v8229_v30  ;;  %vm8247_vm10 = vcmp.lt.s32.totalorder %v14105_v11, 1 }
 0x424   : > { %v7694_v54 = vsel %vm9462_vm8, 0, %v9461_v62  ;;  %v8233_v63 = vshrl.u32 %v9993_v36, %v8230_v2  ;;  %v8236_v19 = vshrl.u32 %v9994_v38, %v8230_v2  ;;  %v8239_v0 = vshrl.u32 %v9995_v40, %v8230_v2 }
 0x425   : > { %v7695_v8 = vsub.s32 32, %v7694_v54  ;;  %v7696_v41 = vshll.u32 %v14060_v35, %v7694_v54  ;;  %v7699_v39 = vsub.s32 4294967266, %v7694_v54  ;;  %v8242_v14 = vshrl.u32 %v9996_v42, %v8230_v2 }
 0x426   : > { %v8231_v22 = vshrl.u32 %v9992_v34, %v8230_v2  ;;  %v8245_v26 = vshrl.u32 %v9997_v50, %v8230_v2  ;;  %v8234_v51 = vor.u32 %v8233_v63, %v8232_v28  ;;  %v8237_v23 = vor.u32 %v8236_v19, %v8235_v24 }
 0x427   : > { %v7697_v17 = vshrl.u32 %v7679_v61, %v7695_v8  ;;  %v7700_v47 = vadd.s32 127, %v7699_v39  ;;  %v8240_v7 = vor.u32 %v8239_v0, %v8238_v46  ;;  %v8243_v18 = vor.u32 %v8242_v14, %v8241_v10 }
 0x428   : > { %v8246_v57 = vor.u32 %v8245_v26, %v8244_v25  ;;  %vm8248_vm11 = vcmp.lt.s32.totalorder %v14105_v11, 2  ;;  %vm8249_vm12 = vcmp.lt.s32.totalorder %v14105_v11, 3  ;;  %vm8250_vm4 = vcmp.lt.s32.totalorder %v14105_v11, 4 }
 0x429   : > { %v9874_v27 = vpop.eup %9873  ;;  %v7698_v31 = vor.u32 %v7697_v17, %v7696_v41  ;;  %v7701_v44 = vshll.u32 %v7700_v47, 23  ;;  %v8252_v16 = vsel %vm8250_vm4, %v8240_v7, 2102212464  ;;  %v8251_v20 = vsel %vm8247_vm10, %v8231_v22, %v8234_v51 }
 0x42a   : > { %v9876_v35 = vpop.eup %9875  ;;  %v7619_v52 = vxor.u32 2147483648, %v9874_v27  ;;  %v8253_v55 = vsel %vm8249_vm12, %v8237_v23, %v8252_v16  ;;  %v8255_v5 = vsel %vm8247_vm10, %v8234_v51, %v8237_v23  ;;  %v8256_v2 = vsel %vm8250_vm4, %v8243_v18, 920167782 }
 0x42b   : > { %v7616_v53 = vxor.u32 2147483648, %v9876_v35  ;;  %v7702_v21 = vor.u32 4788187, %v7701_v44  ;;  %v7705_v3 = vcvt.s32.f32 %v7698_v31  ;;  %v8259_v28 = vsel %vm8247_vm10, %v8237_v23, %v8240_v7 }
 0x42c   : > { %v7620_v33 = vsel %vm7618_vm3, %v7619_v52, %v9876_v35  ;;  %v8065_v43 = vsel %vm8063_vm6, %v7619_v52, %v9876_v35  ;;  %v8257_v37 = vsel %vm8249_vm12, %v8240_v7, %v8256_v2  ;;  %v8254_v25 = vsel %vm8248_vm11, %v8251_v20, %v8253_v55 }
 0x42d   : > { %v7617_v45 = vsel %vm7615_vm0, %v9874_v27, %v7616_v53  ;;  %v7703_v61 = vand.u32 2147483647, %v7702_v21  ;;  %v8062_v12 = vsel %vm8060_vm14, %v9874_v27, %v7616_v53  ;;  %v8258_v63 = vsel %vm8248_vm11, %v8255_v5, %v8257_v37 }
 0x42e   : > { %v7621_v62 = vsel %vm7614_vm9, %v7617_v45, %v7620_v33  ;;  %v8066_v30 = vsel %vm8059_vm1, %v8062_v12, %v8065_v43  ;;  %v8260_v9 = vsel %vm8250_vm4, %v8246_v57, 1326507024  ;;  %v9483_v17 = vadd.s32 4294967169, %v14113_v60 }
 0x42f   : > { %v7622_v54 = vsel %vm7611_vm2, nan, %v7621_v62  ;;  %v7706_v24 = vmul.f32 %v7705_v3, %v7703_v61  ;;  %v8067_v46 = vsel %vm7611_vm2, nan, %v8066_v30  ;;  %v8261_v14 = vsel %vm8249_vm12, %v8243_v18, %v8260_v9 }
 0x430   : > { %v7739_v58 = vrot.slane %v7622_v54, 5  ;;  %v7733_v10 = vcombine.high %v7622_v54, %v7622_v54  ;;  %v8183_v8 = vrot.slane %v8067_v46, 2  ;;  %v8177_v41 = vcombine.high %v8067_v46, %v8067_v46 }
 0x431   : > { %v7707_v39 = vxor.u32 2147483648, %v7706_v24  ;;  %v8262_v22 = vsel %vm8248_vm11, %v8259_v28, %v8261_v14  ;;  %v14177_v26 = vmul.u32.u64.low %v14107_v59, %v8258_v63  ;;  %v14178_v51 = vmul.u32.u64.high %v14107_v59, %v8258_v63, %v14177_v26 }
 0x432   : > { %7755 = vst [vmem:[%s10124_s26 + $0x1a0] sm:$0x38] %v7739_v58  ;;  %v7740_v19 = vrot.slane %v7733_v10, 5  ;;  %8199 = vst [vmem:[%s10124_s26 + $0x1e0] ss:$-60 sps:$4 sm:$0xc1] %v8183_v8   ;;  %v14187_v7 = vmul.u32.u64.low %v14107_v59, %v8262_v22  ;;  %v14188_v60 = vmul.u32.u64.high %v14107_v59, %v8262_v22, %v14187_v7  ;;  %v8270_v44 = vmul.u32 %v14107_v59, %v8254_v25 }
 0x433   : > { %v8184_v0 = vrot.slane %v8177_v41, 2  ;;  %v7708_v47 = vsel %vm7625_vm13, %v7707_v39, %v7706_v24  ;;  %v8329_v27 = vadd.s32 1, %v9483_v17  ;;  %v8426_v11 = vand.u32 2139095040, %v14098_v49 }
 0x434   : > { %7756 = vst [vmem:[%s10124_s26 + $0x1a8] sm:$0x38] %v7740_v19  ;;  %v7711_v23 = vsel %vm14084_vm5, %v13819_v32, %v7708_v47  ;;  %v14192_v31 = vand.u32 3, %v14090_v1  ;;  %v8273_v18 = vadd.s32 1, %v14178_v51  ;;  %v14199_v35 = vand.u32 3, %v14102_v15 }
 0x435   : > { %8200 = vst [vmem:[%s10124_s26 + $0x1e8] ss:$-60 sps:$4 sm:$0xc1] %v8184_v0   ;;  %9877 = vcosq.f32 %v7711_v23  ;;  %vm8330_vm7 = vcmp.gt.s32.totalorder %v8329_v27, 0  ;;  %vm8272_vm13 = vc.u32 %v14188_v60, %v14177_v26  ;;  %v8427_v1 = vshrl.u32 %v8426_v11, 23 }
 0x436   : > { %9879 = vsinq.f32 %v7711_v23  ;;  %v8331_v57 = vsel %vm8330_vm7, %v8329_v27, 0  ;;  %v8274_v53 = vsel %vm8272_vm13, %v8273_v18, %v14178_v51  ;;  %vm8166_vm5 = vcmp.eq.s32.totalorder %v14192_v31, 2 }
 0x437   : > { %v8333_v52 = vand.u32 31, %v8331_v57  ;;  %v8275_v59 = vadd.s32 %v8274_v53, %v8270_v44  ;;  %v14205_v21 = vshrl.u32 %v8331_v57, 5  ;;  %vm8163_vm15 = vcmp.eq.s32.totalorder %v14192_v31, 0 }
 0x438   : > { %v8327_v33 = vor.u32 8388608, %v8326_v48  ;;  %vm7718_vm3 = vcmp.lt.s32.totalorder %v14199_v35, 2  ;;  %vm8162_vm6 = vcmp.lt.s32.totalorder %v14192_v31, 2  ;;  %vm7715_vm0 = vweird.f32 %v13819_v32 }
 0x439   : > { %v8334_v3 = vsub.s32 32, %v8333_v52  ;;  %v8339_v16 = vshll.u32 %v9993_v36, %v8333_v52  ;;  %v8342_v15 = vshll.u32 %v9994_v38, %v8333_v52  ;;  %v8345_v43 = vshll.u32 %v9995_v40, %v8333_v52 }
 0x43a   : > { %v8348_v20 = vshll.u32 %v9996_v42, %v8333_v52  ;;  %v8276_v55 = vadd.s32 536870912, %v8275_v59  ;;  %v8336_v45 = vshll.u32 %v9992_v34, %v8333_v52  ;;  %v9487_v2 = vadd.s32 4294967169, %v8427_v1 }
 0x43b   : > { %v8337_v61 = vshrl.u32 %v9993_v36, %v8334_v3  ;;  %v8340_v12 = vshrl.u32 %v9994_v38, %v8334_v3  ;;  %v8343_v5 = vshrl.u32 %v9995_v40, %v8334_v3  ;;  %v8346_v62 = vshrl.u32 %v9996_v42, %v8334_v3 }
 0x43c   : > { %v8349_v30 = vshrl.u32 %v9997_v50, %v8334_v3  ;;  %v14221_v28 = vshrl.u32 %v8276_v55, 30  ;;  %v8335_v54 = vshrl.u32 %v9992_v34, %v8334_v3  ;;  %vm8351_vm14 = vcmp.lt.s32.totalorder %v14205_v21, 1 }
 0x43d   : > { %v8341_v24 = vor.u32 %v8340_v12, %v8339_v16  ;;  %v8344_v46 = vor.u32 %v8343_v5, %v8342_v15  ;;  %v8347_v37 = vor.u32 %v8346_v62, %v8345_v43  ;;  %vm8354_vm9 = vcmp.lt.s32.totalorder %v14205_v21, 4 }
 0x43e   : > { %v8350_v58 = vor.u32 %v8349_v30, %v8348_v20  ;;  %vm7719_vm8 = vcmp.eq.s32.totalorder %v14199_v35, 0  ;;  %vm7722_vm1 = vcmp.eq.s32.totalorder %v14199_v35, 2  ;;  %v8278_v10 = vshll.u32 %v14221_v28, 30 }
 0x43f   : > { %v8338_v8 = vor.u32 %v8337_v61, %v8336_v45  ;;  %vm8353_vm2 = vcmp.lt.s32.totalorder %v14205_v21, 3  ;;  %v14232_v39 = vshll.u32 %v8327_v33, 8  ;;  %v8423_v25 = vand.u32 2147483647, %v14098_v49 }
 0x440   : > { %v8364_v41 = vsel %vm8354_vm9, %v8350_v58, 1326507024  ;;  %v14235_v9 = vsub.s32 %v8275_v59, %v8278_v10  ;;  %vm8352_vm10 = vcmp.lt.s32.totalorder %v14205_v21, 2  ;;  %v8360_v19 = vsel %vm8354_vm9, %v8347_v37, 920167782 }
 0x441   : > { %v8363_v0 = vsel %vm8351_vm14, %v8341_v24, %v8344_v46  ;;  %v8355_v47 = vsel %vm8351_vm14, %v8335_v54, %v8338_v8  ;;  %v8356_v22 = vsel %vm8354_vm9, %v8344_v46, 2102212464  ;;  %v8433_v51 = vadd.s32 1, %v9487_v2 }
 0x442   : > { %v9878_v63 = vpop.eup %9877  ;;  %v8281_v7 = vsub.s32 0, %v14235_v9  ;;  %v8359_v27 = vsel %vm8351_vm14, %v8338_v8, %v8341_v24  ;;  %v8365_v11 = vsel %vm8353_vm2, %v8347_v37, %v8364_v41  ;;  %v8361_v48 = vsel %vm8353_vm2, %v8344_v46, %v8360_v19 }
 0x443   : > { %v9880_v14 = vpop.eup %9879  ;;  %v7723_v17 = vxor.u32 2147483648, %v9878_v63  ;;  %v8366_v57 = vsel %vm8352_vm10, %v8363_v0, %v8365_v11  ;;  %v8357_v59 = vsel %vm8353_vm2, %v8341_v24, %v8356_v22  ;;  %v8362_v35 = vsel %vm8352_vm10, %v8359_v27, %v8361_v48 }
 0x444   : > { %v7720_v23 = vxor.u32 2147483648, %v9880_v14  ;;  %v9480_v1 = vmin.u32 %v8281_v7, %v14235_v9  ;;  %v14271_v33 = vmul.u32.u64.low %v14232_v39, %v8366_v57  ;;  %v14272_v15 = vmul.u32.u64.high %v14232_v39, %v8366_v57, %v14271_v33 }
 0x445   : > { %v7724_v44 = vsel %vm7722_vm1, %v7723_v17, %v9880_v14  ;;  %v8168_v18 = vsel %vm8166_vm5, %v7723_v17, %v9880_v14  ;;  %v8358_v62 = vsel %vm8352_vm10, %v8355_v47, %v8357_v59  ;;  %v14284_v30 = vand.u32 8388607, %v8423_v25 }
 0x446   : > { %v7721_v52 = vsel %vm7719_vm8, %v9878_v63, %v7720_v23  ;;  %v8165_v53 = vsel %vm8163_vm15, %v9878_v63, %v7720_v23  ;;  %v8283_v55 = vclz %v9480_v1  ;;  %vm8434_vm11 = vcmp.gt.s32.totalorder %v8433_v51, 0 }
 0x447   : > { %v7725_v3 = vsel %vm7718_vm3, %v7721_v52, %v7724_v44  ;;  %v8169_v16 = vsel %vm8162_vm6, %v8165_v53, %v8168_v18  ;;  %v14289_v54 = vmul.u32.u64.low %v14232_v39, %v8362_v35  ;;  %v14290_v24 = vmul.u32.u64.high %v14232_v39, %v8362_v35, %v14289_v54 }
 0x448   : > { %v7726_v43 = vsel %vm7715_vm0, nan, %v7725_v3  ;;  %v8170_v20 = vsel %vm7715_vm0, nan, %v8169_v16  ;;  %v9481_v5 = vadd.s32 4294967294, %v8283_v55  ;;  %v8271_v46 = vadd.s32 %v14177_v26, %v14188_v60 }
 0x449   : > { %v7741_v45 = vrot.slane %v7726_v43, 5  ;;  %v7734_v61 = vcombine.high %v7726_v43, %v7726_v43  ;;  %v8185_v31 = vrot.slane %v8170_v20, 2  ;;  %v8178_v12 = vcombine.high %v8170_v20, %v8170_v20 }
 0x44a   : > { %vm9482_vm12 = vcmp.lt.s32.totalorder %v9481_v5, 0  ;;  %v8435_v21 = vsel %vm8434_vm11, %v8433_v51, 0  ;;  %v14296_v37 = vmul.f32 512.0, %v10138_v6  ;;  %v8374_v10 = vmul.u32 %v14232_v39, %v8358_v62 }
 0x44b   : > { %7757 = vst [vmem:[%s10124_s26 + $0x1b0] sm:$0x38] %v7741_v45  ;;  %v7742_v32 = vrot.slane %v7734_v61, 5  ;;  %8201 = vst [vmem:[%s10124_s26 + $0x1f0] ss:$-60 sps:$4 sm:$0xc1] %v8185_v31   ;;  %vm8376_vm4 = vc.u32 %v14272_v15, %v14289_v54  ;;  %vm8307_vm2 = vweird.f32 %v14038_v56 }
 0x44c   : > { %v8186_v2 = vrot.slane %v8178_v12, 2  ;;  %v8286_v58 = vsel %vm9482_vm12, 0, %v9481_v5  ;;  %v14303_v8 = vshrl.u32 %v8435_v21, 5  ;;  %v8437_v26 = vand.u32 31, %v8435_v21 }
 0x44d   : > { %7758 = vst [vmem:[%s10124_s26 + $0x1b8] sm:$0x38] %v7742_v32  ;;  %v8287_v41 = vsub.s32 32, %v8286_v58  ;;  %v8288_v63 = vshll.u32 %v14235_v9, %v8286_v58  ;;  %v8291_v19 = vsub.s32 4294967266, %v8286_v58  ;;  %v8301_v60 = vsub.s32 4, %v14221_v28 }
 0x44e   : > { %8202 = vst [vmem:[%s10124_s26 + $0x1f8] ss:$-60 sps:$4 sm:$0xc1] %v8186_v2   ;;  %v8377_v6 = vadd.s32 1, %v14290_v24  ;;  %v8431_v0 = vor.u32 8388608, %v14284_v30  ;;  %vm8455_vm7 = vcmp.lt.s32.totalorder %v14303_v8, 1  ;;  %v8440_v47 = vshll.u32 %v9992_v34, %v8437_v26 }
 0x44f   : > { %vm8217_vm13 = vcmp.lt.s32.totalorder %v14038_v56, 0  ;;  %v8289_v39 = vshrl.u32 %v8271_v46, %v8287_v41  ;;  %v8292_v14 = vadd.s32 127, %v8291_v19  ;;  %v8438_v17 = vsub.s32 32, %v8437_v26 }
 0x450   : > { %v8378_v22 = vsel %vm8376_vm4, %v8377_v6, %v14290_v24  ;;  %v8443_v9 = vshll.u32 %v9993_v36, %v8437_v26  ;;  %v8446_v51 = vshll.u32 %v9994_v38, %v8437_v26  ;;  %v8449_v23 = vshll.u32 %v9995_v40, %v8437_v26 }
 0x451   : > { %v8290_v7 = vor.u32 %v8289_v39, %v8288_v63  ;;  %v8293_v27 = vshll.u32 %v8292_v14, 23  ;;  %v8379_v11 = vadd.s32 %v8378_v22, %v8374_v10  ;;  %vm8457_vm5 = vcmp.lt.s32.totalorder %v14303_v8, 3 }
 0x452   : > { %v8441_v44 = vshrl.u32 %v9993_v36, %v8438_v17  ;;  %v8444_v18 = vshrl.u32 %v9994_v38, %v8438_v17  ;;  %v8447_v48 = vshrl.u32 %v9995_v40, %v8438_v17  ;;  %v8450_v57 = vshrl.u32 %v9996_v42, %v8438_v17 }
 0x453   : > { %v8294_v52 = vor.u32 4788187, %v8293_v27  ;;  %v8297_v53 = vcvt.s32.f32 %v8290_v7  ;;  %v8380_v1 = vadd.s32 536870912, %v8379_v11  ;;  %v8452_v59 = vshll.u32 %v9996_v42, %v8437_v26 }
 0x454   : > { %v8442_v3 = vor.u32 %v8441_v44, %v8440_v47  ;;  %v8445_v16 = vor.u32 %v8444_v18, %v8443_v9  ;;  %v8448_v33 = vor.u32 %v8447_v48, %v8446_v51  ;;  %v8451_v43 = vor.u32 %v8450_v57, %v8449_v23 }
 0x455   : > { %v8295_v20 = vand.u32 2147483647, %v8294_v52  ;;  %v8381_v55 = vshrl.u32 %v8380_v1, 30  ;;  %v8453_v35 = vshrl.u32 %v9997_v50, %v8438_v17  ;;  %vm8458_vm15 = vcmp.lt.s32.totalorder %v14303_v8, 4 }
 0x456   : > { %v8439_v45 = vshrl.u32 %v9992_v34, %v8438_v17  ;;  %vm8456_vm3 = vcmp.lt.s32.totalorder %v14303_v8, 2  ;;  %v8460_v61 = vsel %vm8458_vm15, %v8448_v33, 2102212464  ;;  %v8464_v31 = vsel %vm8458_vm15, %v8451_v43, 920167782 }
 0x457   : > { %v8298_v12 = vmul.f32 %v8297_v53, %v8295_v20  ;;  %v8382_v5 = vshll.u32 %v8381_v55, 30  ;;  %v8454_v62 = vor.u32 %v8453_v35, %v8452_v59  ;;  %v8463_v30 = vsel %vm8455_vm7, %v8442_v3, %v8445_v16 }
 0x458   : > { %vm14334_vm6 = vcmp.le.f32.partialorder %v8215_v4, 0.7853982  ;;  %v8302_v2 = vsel %vm8217_vm13, %v8301_v60, %v14221_v28  ;;  %v8465_v24 = vsel %vm8457_vm5, %v8448_v33, %v8464_v31  ;;  %v8471_v46 = vshll.u32 %v8431_v0, 8 }
 0x459   : > { %v8299_v21 = vxor.u32 2147483648, %v8298_v12  ;;  %v8383_v58 = vsub.s32 %v8379_v11, %v8382_v5  ;;  %v8467_v10 = vsel %vm8455_vm7, %v8445_v16, %v8448_v33  ;;  %v8530_v41 = vand.u32 2139095040, %v14296_v37 }
 0x45a   : > { %v8459_v4 = vsel %vm8455_vm7, %v8439_v45, %v8442_v3  ;;  %v8461_v63 = vsel %vm8457_vm5, %v8445_v16, %v8460_v61  ;;  %v8466_v28 = vsel %vm8456_vm3, %v8463_v30, %v8465_v24  ;;  %v8468_v19 = vsel %vm8458_vm15, %v8454_v62, 1326507024 }
 0x45b   : > { %v8300_v26 = vsel %vm8217_vm13, %v8299_v21, %v8298_v12  ;;  %v8304_v60 = vsel %vm14334_vm6, 0, %v8302_v2  ;;  %v8385_v6 = vsub.s32 0, %v8383_v58  ;;  %v8469_v0 = vsel %vm8457_vm5, %v8451_v43, %v8468_v19 }
 0x45c   : > { %v8303_v39 = vsel %vm14334_vm6, %v14038_v56, %v8300_v26  ;;  %v8470_v14 = vsel %vm8456_vm3, %v8467_v10, %v8469_v0  ;;  %v14365_v17 = vmul.u32.u64.low %v8471_v46, %v8466_v28  ;;  %v14366_v47 = vmul.u32.u64.high %v8471_v46, %v8466_v28, %v14365_v17 }
 0x45d   : > { %9881 = vcosq.f32 %v8303_v39  ;;  %v9484_v22 = vmin.u32 %v8385_v6, %v8383_v58  ;;  %v8462_v9 = vsel %vm8456_vm3, %v8459_v4, %v8461_v63  ;;  %v8531_v51 = vshrl.u32 %v8530_v41, 23 }
 0x45e   : > { %9883 = vsinq.f32 %v8303_v39  ;;  %v8308_v23 = vadd.s32 3, %v8304_v60  ;;  %v14370_v7 = vmul.u32.u64.low %v8471_v46, %v8470_v14  ;;  %v14371_v27 = vmul.u32.u64.high %v8471_v46, %v8470_v14, %v14370_v7 }
 0x45f   : > { %v8387_v11 = vclz %v9484_v22  ;;  %v8527_v44 = vand.u32 2147483647, %v14296_v37  ;;  %v8405_v18 = vsub.s32 4, %v8381_v55  ;;  %v8478_v48 = vmul.u32 %v8471_v46, %v8462_v9 }
 0x460   : > { %v8481_v57 = vadd.s32 1, %v14366_v47  ;;  %v9491_v52 = vadd.s32 4294967169, %v8531_v51  ;;  %v8309_v1 = vand.u32 3, %v8308_v23  ;;  %vm8321_vm0 = vcmp.lt.s32.totalorder %v14075_v13, 0 }
 0x461   : > { %v9485_v53 = vadd.s32 4294967294, %v8387_v11  ;;  %vm8480_vm14 = vc.u32 %v14371_v27, %v14365_v17  ;;  %v8375_v59 = vadd.s32 %v14289_v54, %v14272_v15  ;;  %v8534_v16 = vand.u32 8388607, %v8527_v44 }
 0x462   : > { %v8537_v8 = vadd.s32 1, %v9491_v52  ;;  %v8482_v3 = vsel %vm8480_vm14, %v8481_v57, %v14366_v47  ;;  %v8406_v43 = vsel %vm8321_vm0, %v8405_v18, %v8381_v55  ;;  %vm14386_vm1 = vcmp.le.f32.partialorder %v8319_v29, 0.7853982 }
 0x463   : > { %vm9486_vm9 = vcmp.lt.s32.totalorder %v9485_v53, 0  ;;  %v8483_v20 = vadd.s32 %v8482_v3, %v8478_v48  ;;  %v14392_v30 = vsel %vm14386_vm1, 0, %v8406_v43  ;;  %v8535_v55 = vor.u32 8388608, %v8534_v16 }
 0x464   : > { %v8390_v33 = vsel %vm9486_vm9, 0, %v9485_v53  ;;  %vm8538_vm8 = vcmp.gt.s32.totalorder %v8537_v8, 0  ;;  %vm8310_vm10 = vcmp.lt.s32.totalorder %v8309_v1, 2  ;;  %vm8311_vm11 = vcmp.eq.s32.totalorder %v8309_v1, 0 }
 0x465   : > { %v8391_v35 = vsub.s32 32, %v8390_v33  ;;  %v8392_v45 = vshll.u32 %v8383_v58, %v8390_v33  ;;  %v8395_v61 = vsub.s32 4294967266, %v8390_v33  ;;  %v8539_v31 = vsel %vm8538_vm8, %v8537_v8, 0 }
 0x466   : > { %v8484_v54 = vadd.s32 536870912, %v8483_v20  ;;  %v8541_v12 = vand.u32 31, %v8539_v31  ;;  %vm8314_vm12 = vcmp.eq.s32.totalorder %v8309_v1, 2  ;;  %v14400_v21 = vadd.s32 3, %v14392_v30 }
 0x467   : > { %v8393_v5 = vshrl.u32 %v8375_v59, %v8391_v35  ;;  %v8396_v62 = vadd.s32 127, %v8395_v61  ;;  %v14403_v58 = vadd.s32 %v14365_v17, %v14371_v27  ;;  %v14406_v41 = vand.u32 3, %v8304_v60 }
 0x468   : > { %v14395_v32 = vshrl.u32 %v8484_v54, 30  ;;  %v8542_v24 = vsub.s32 32, %v8541_v12  ;;  %v14411_v26 = vshll.u32 %v8535_v55, 8  ;;  %v8544_v39 = vshll.u32 %v9992_v34, %v8541_v12 }
 0x469   : > { %v8394_v29 = vor.u32 %v8393_v5, %v8392_v45  ;;  %v8397_v2 = vshll.u32 %v8396_v62, 23  ;;  %v8547_v14 = vshll.u32 %v9993_v36, %v8541_v12  ;;  %v8550_v22 = vshll.u32 %v9994_v38, %v8541_v12 }
 0x46a   : > { %v14397_v46 = vpop.eup %9881  ;;  %v8486_v10 = vshll.u32 %v14395_v32, 30  ;;  %v8545_v47 = vshrl.u32 %v9993_v36, %v8542_v24  ;;  %v8548_v23 = vshrl.u32 %v9994_v38, %v8542_v24  ;;  %v8551_v7 = vshrl.u32 %v9995_v40, %v8542_v24 }
 0x46b   : > { %v14408_v4 = vpop.eup %9883  ;;  %v8315_v63 = vxor.u32 2147483648, %v14397_v46  ;;  %v8398_v28 = vor.u32 4788187, %v8397_v2  ;;  %v8401_v19 = vcvt.s32.f32 %v8394_v29  ;;  %vm8758_vm4 = vcmp.eq.s32.totalorder %v14406_v41, 0 }
 0x46c   : > { %v8312_v6 = vxor.u32 2147483648, %v14408_v4  ;;  %v14414_v0 = vsub.s32 %v8483_v20, %v8486_v10  ;;  %v8553_v18 = vshll.u32 %v9995_v40, %v8541_v12  ;;  %v8554_v36 = vshrl.u32 %v9996_v42, %v8542_v24 }
 0x46d   : > { %v8316_v60 = vsel %vm8314_vm12, %v8315_v63, %v14408_v4  ;;  %v8399_v17 = vand.u32 2147483647, %v8398_v28  ;;  %v8540_v52 = vshrl.u32 %v8539_v31, 5  ;;  %v8543_v38 = vshrl.u32 %v9992_v34, %v8542_v24 }
 0x46e   : > { %v8313_v9 = vsel %vm8311_vm11, %v14397_v46, %v8312_v6  ;;  %v8489_v51 = vsub.s32 0, %v14414_v0  ;;  %vm8761_vm7 = vcmp.eq.s32.totalorder %v14406_v41, 2  ;;  %v8556_v59 = vshll.u32 %v9996_v42, %v8541_v12 }
 0x46f   : > { %v8317_v27 = vsel %vm8310_vm10, %v8313_v9, %v8316_v60  ;;  %v8402_v11 = vmul.f32 %v8401_v19, %v8399_v17  ;;  %v8546_v3 = vor.u32 %v8545_v47, %v8544_v39  ;;  %v8549_v16 = vor.u32 %v8548_v23, %v8547_v14 }
 0x470   : > { %v8318_v48 = vsel %vm8307_vm2, nan, %v8317_v27  ;;  %v9488_v57 = vmin.u32 %v8489_v51, %v14414_v0  ;;  %v8552_v33 = vor.u32 %v8551_v7, %v8550_v22  ;;  %vm8757_vm13 = vcmp.lt.s32.totalorder %v14406_v41, 2 }
 0x471   : > { %v8639_v53 = vrot.slane %v8318_v48, 7  ;;  %v8635_v8 = vcombine.high %v8318_v48, %v8318_v48  ;;  %v8403_v1 = vxor.u32 2147483648, %v8402_v11  ;;  %v8555_v34 = vor.u32 %v8554_v36, %v8553_v18 }
 0x472   : > { %v8491_v40 = vclz %v9488_v57  ;;  %v8557_v35 = vshrl.u32 %v9997_v50, %v8542_v24  ;;  %vm8559_vm5 = vcmp.lt.s32.totalorder %v8540_v52, 1  ;;  %vm8560_vm15 = vcmp.lt.s32.totalorder %v8540_v52, 2 }
 0x473   : > { %8655 = vst [vmem:[%s10124_s26 + $0x1c0] sm:$0xe] %v8639_v53  ;;  %v8640_v43 = vrot.slane %v8635_v8, 7  ;;  %v8404_v20 = vsel %vm8321_vm0, %v8403_v1, %v8402_v11  ;;  %vm8561_vm3 = vcmp.lt.s32.totalorder %v8540_v52, 3  ;;  %vm8562_vm6 = vcmp.lt.s32.totalorder %v8540_v52, 4 }
 0x474   : > { %v8407_v45 = vsel %vm14386_vm1, %v14075_v13, %v8404_v20  ;;  %v9489_v61 = vadd.s32 4294967294, %v8491_v40  ;;  %v8558_v42 = vor.u32 %v8557_v35, %v8556_v59  ;;  %v8563_v31 = vsel %vm8559_vm5, %v8543_v38, %v8546_v3 }
 0x475   : > { %8656 = vst [vmem:[%s10124_s26 + $0x1c8] sm:$0xe] %v8640_v43  ;;  %9885 = vcosq.f32 %v8407_v45  ;;  %v8564_v54 = vsel %vm8562_vm6, %v8552_v33, 2102212464  ;;  %v8567_v5 = vsel %vm8559_vm5, %v8546_v3, %v8549_v16  ;;  %v8568_v15 = vsel %vm8562_vm6, %v8555_v34, 920167782 }
 0x476   : > { %9887 = vsinq.f32 %v8407_v45  ;;  %vm9490_vm14 = vcmp.lt.s32.totalorder %v9489_v61, 0  ;;  %v8565_v50 = vsel %vm8561_vm3, %v8549_v16, %v8564_v54  ;;  %v8571_v2 = vsel %vm8559_vm5, %v8549_v16, %v8552_v33 }
 0x477   : > { %v8494_v12 = vsel %vm9490_vm14, 0, %v9489_v61  ;;  %v8566_v24 = vsel %vm8560_vm15, %v8563_v31, %v8565_v50  ;;  %v8569_v10 = vsel %vm8561_vm3, %v8552_v33, %v8568_v15  ;;  %v8572_v28 = vsel %vm8562_vm6, %v8558_v42, 1326507024 }
 0x478   : > { %v8495_v62 = vsub.s32 32, %v8494_v12  ;;  %v8496_v55 = vshll.u32 %v14414_v0, %v8494_v12  ;;  %v8499_v29 = vsub.s32 4294967266, %v8494_v12  ;;  %v8760_v19 = vsel %vm8758_vm4, %v14397_v46, %v8312_v6 }
 0x479   : > { %v8570_v60 = vsel %vm8560_vm15, %v8567_v5, %v8569_v10  ;;  %v8573_v17 = vsel %vm8561_vm3, %v8555_v34, %v8572_v28  ;;  %v8763_v6 = vsel %vm8761_vm7, %v8315_v63, %v14408_v4  ;;  %v8413_v7 = vand.u32 3, %v14400_v21 }
 0x47a   : > { %v8497_v39 = vshrl.u32 %v14403_v58, %v8495_v62  ;;  %v8500_v14 = vadd.s32 127, %v8499_v29  ;;  %v8574_v0 = vsel %vm8560_vm15, %v8571_v2, %v8573_v17  ;;  %v8764_v27 = vsel %vm8757_vm13, %v8760_v19, %v8763_v6 }
 0x47b   : > { %v14463_v47 = vmul.u32.u64.low %v14411_v26, %v8570_v60  ;;  %v14464_v22 = vmul.u32.u64.high %v14411_v26, %v8570_v60, %v14463_v47  ;;  %v14473_v51 = vmul.u32.u64.low %v14411_v26, %v8574_v0  ;;  %v14474_v23 = vmul.u32.u64.high %v14411_v26, %v8574_v0, %v14473_v51 }
 0x47c   : > { %v8498_v58 = vor.u32 %v8497_v39, %v8496_v55  ;;  %v8501_v9 = vshll.u32 %v8500_v14, 23  ;;  %v8859_v11 = vand.u32 3, %v14392_v30  ;;  %v8582_v46 = vmul.u32 %v14411_v26, %v8566_v24 }
 0x47d   : > { %v8765_v4 = vsel %vm8307_vm2, nan, %v8764_v27  ;;  %v8585_v63 = vadd.s32 1, %v14464_v22  ;;  %vm8584_vm0 = vc.u32 %v14474_v23, %v14463_v47  ;;  %vm14489_vm9 = vcmp.le.f32.partialorder %v8423_v25, 0.7853982 }
 0x47e   : > { %v8502_v18 = vor.u32 4788187, %v8501_v9  ;;  %v8505_v36 = vcvt.s32.f32 %v8498_v58  ;;  %v9079_v48 = vcombine.low %v8765_v4, %v8765_v4  ;;  %9088 = vst [vmem:[%s10124_s26 + $0x1c8] sm:$0x70] %v8765_v4  ;;  %vm8425_vm8 = vcmp.lt.s32.totalorder %v14098_v49, 0 }
 0x47f   : > { %v8509_v30 = vsub.s32 4, %v14395_v32  ;;  %v8586_v56 = vsel %vm8584_vm0, %v8585_v63, %v14464_v22  ;;  %vm8418_vm1 = vcmp.eq.s32.totalorder %v8413_v7, 2  ;;  %vm8864_vm2 = vcmp.eq.s32.totalorder %v8859_v11, 2 }
 0x480   : > { %v8503_v57 = vand.u32 2147483647, %v8502_v18  ;;  %9087 = vst [vmem:[%s10124_s26 + $0x1c0] sm:$0x70] %v9079_v48  ;;  %v8587_v52 = vadd.s32 %v8586_v56, %v8582_v46  ;;  %vm8414_vm10 = vcmp.lt.s32.totalorder %v8413_v7, 2  ;;  %vm8415_vm11 = vcmp.eq.s32.totalorder %v8413_v7, 0 }
 0x481   : > { %vm8861_vm12 = vcmp.eq.s32.totalorder %v8859_v11, 0  ;;  %vm8860_vm4 = vcmp.lt.s32.totalorder %v8859_v11, 2  ;;  %vm8411_vm7 = vweird.f32 %v14075_v13  ;;  %v8510_v40 = vsel %vm8425_vm8, %v8509_v30, %v14395_v32 }
 0x482   : > { %v9886_v41 = vpop.eup %9885  ;;  %v8506_v26 = vmul.f32 %v8505_v36, %v8503_v57  ;;  %v8588_v1 = vadd.s32 536870912, %v8587_v52  ;;  %v8512_v61 = vsel %vm14489_vm9, 0, %v8510_v40  ;;  %v8583_v19 = vadd.s32 %v14463_v47, %v14474_v23 }
 0x483   : > { %v9888_v38 = vpop.eup %9887  ;;  %v8419_v53 = vxor.u32 2147483648, %v9886_v41  ;;  %v8516_v62 = vadd.s32 3, %v8512_v61  ;;  %v8962_v10 = vand.u32 3, %v8512_v61  ;;  %vm8515_vm14 = vweird.f32 %v14098_v49 }
 0x484   : > { %v8416_v25 = vxor.u32 2147483648, %v9888_v38  ;;  %v8507_v8 = vxor.u32 2147483648, %v8506_v26  ;;  %v14503_v43 = vshrl.u32 %v8588_v1, 30 }
 0x485   : > { %v8420_v59 = vsel %vm8418_vm1, %v8419_v53, %v9888_v38  ;;  %v8866_v3 = vsel %vm8864_vm2, %v8419_v53, %v9888_v38  ;;  %v8517_v2 = vand.u32 3, %v8516_v62  ;;  %vm8964_vm3 = vcmp.eq.s32.totalorder %v8962_v10, 0 }
 0x486   : > { %v8417_v16 = vsel %vm8415_vm11, %v9886_v41, %v8416_v25  ;;  %v8508_v33 = vsel %vm8425_vm8, %v8507_v8, %v8506_v26  ;;  %v8863_v20 = vsel %vm8861_vm12, %v9886_v41, %v8416_v25  ;;  %v8590_v42 = vshll.u32 %v14503_v43, 30 }
 0x487   : > { %v8421_v34 = vsel %vm8414_vm10, %v8417_v16, %v8420_v59  ;;  %v8511_v35 = vsel %vm14489_vm9, %v14098_v49, %v8508_v33  ;;  %v8867_v45 = vsel %vm8860_vm4, %v8863_v20, %v8866_v3  ;;  %vm8519_vm13 = vcmp.eq.s32.totalorder %v8517_v2, 0 }
 0x488   : > { %v8422_v32 = vsel %vm8411_vm7, nan, %v8421_v34  ;;  %9889 = vcosq.f32 %v8511_v35  ;;  %v8868_v12 = vsel %vm8411_vm7, nan, %v8867_v45  ;;  %v8591_v50 = vsub.s32 %v8587_v52, %v8590_v42 }
 0x489   : > { %v8641_v31 = vrot.slane %v8422_v32, 7  ;;  %v8636_v54 = vcombine.high %v8422_v32, %v8422_v32  ;;  %9891 = vsinq.f32 %v8511_v35  ;;  %v9080_v5 = vcombine.low %v8868_v12, %v8868_v12  ;;  %9090 = vst [vmem:[%s10124_s26 + $0x1d8] sm:$0x70] %v8868_v12 }
 0x48a   : > { %v8593_v55 = vsub.s32 0, %v8591_v50  ;;  %vm8522_vm15 = vcmp.eq.s32.totalorder %v8517_v2, 2  ;;  %vm8967_vm6 = vcmp.eq.s32.totalorder %v8962_v10, 2  ;;  %vm8518_vm0 = vcmp.lt.s32.totalorder %v8517_v2, 2 }
 0x48b   : > { %8657 = vst [vmem:[%s10124_s26 + $0x1d0] sm:$0xe] %v8641_v31  ;;  %v8642_v15 = vrot.slane %v8636_v54, 7  ;;  %9089 = vst [vmem:[%s10124_s26 + $0x1d0] sm:$0x70] %v9080_v5  ;;  %vm8963_vm9 = vcmp.lt.s32.totalorder %v8962_v10, 2 }
 0x48c   : > { %v9492_v29 = vmin.u32 %v8593_v55, %v8591_v50  ;;  %vm8529_vm8 = vcmp.lt.s32.totalorder %v14296_v37, 0  ;;  %v8613_v26 = vsub.s32 4, %v14503_v43  ;;  %vm8528_vm1 = vcmp.le.f32.partialorder %v8527_v44, 0.7853982 }
 0x48d   : > { %8658 = vst [vmem:[%s10124_s26 + $0x1d8] sm:$0xe] %v8642_v15 }
 0x48e   : > { %v8595_v24 = vclz %v9492_v29  ;;  %v8614_v53 = vsel %vm8529_vm8, %v8613_v26, %v14503_v43 }
 0x48f   : > { %v8616_v8 = vsel %vm8528_vm1, 0, %v8614_v53 }
 0x490   : > { %v9493_v28 = vadd.s32 4294967294, %v8595_v24  ;;  %v8620_v1 = vadd.s32 3, %v8616_v8  ;;  %v9065_v40 = vand.u32 3, %v8616_v8 }
 0x492   : > { %vm9494_vm5 = vcmp.lt.s32.totalorder %v9493_v28, 0  ;;  %v8621_v59 = vand.u32 3, %v8620_v1  ;;  %vm9070_vm10 = vcmp.eq.s32.totalorder %v9065_v40, 2  ;;  %vm9067_vm12 = vcmp.eq.s32.totalorder %v9065_v40, 0 }
 0x493   : > { %v8598_v39 = vsel %vm9494_vm5, 0, %v9493_v28  ;;  %vm9066_vm7 = vcmp.lt.s32.totalorder %v9065_v40, 2 }
 0x494   : > { %v8599_v17 = vsub.s32 32, %v8598_v39  ;;  %v8600_v0 = vshll.u32 %v8591_v50, %v8598_v39  ;;  %v8603_v22 = vsub.s32 4294967266, %v8598_v39  ;;  %vm8626_vm2 = vcmp.eq.s32.totalorder %v8621_v59, 2 }
 0x495   : > { %v9890_v13 = vpop.eup %9889  ;;  %vm8623_vm11 = vcmp.eq.s32.totalorder %v8621_v59, 0  ;;  %vm8622_vm4 = vcmp.lt.s32.totalorder %v8621_v59, 2 }
 0x496   : > { %v9892_v14 = vpop.eup %9891  ;;  %v8523_v60 = vxor.u32 2147483648, %v9890_v13  ;;  %v8601_v9 = vshrl.u32 %v8583_v19, %v8599_v17  ;;  %v8604_v47 = vadd.s32 127, %v8603_v22 }
 0x497   : > { %v8520_v6 = vxor.u32 2147483648, %v9892_v14 }
 0x498   : > { %v8524_v58 = vsel %vm8522_vm15, %v8523_v60, %v9892_v14  ;;  %v8969_v51 = vsel %vm8967_vm6, %v8523_v60, %v9892_v14  ;;  %v8602_v11 = vor.u32 %v8601_v9, %v8600_v0  ;;  %v8605_v18 = vshll.u32 %v8604_v47, 23 }
 0x499   : > { %v8521_v23 = vsel %vm8519_vm13, %v9890_v13, %v8520_v6  ;;  %v8966_v7 = vsel %vm8964_vm3, %v9890_v13, %v8520_v6  ;;  %vm8619_vm13 = vweird.f32 %v14296_v37 }
 0x49a   : > { %v8525_v27 = vsel %vm8518_vm0, %v8521_v23, %v8524_v58  ;;  %v8970_v36 = vsel %vm8963_vm9, %v8966_v7, %v8969_v51  ;;  %v8606_v48 = vor.u32 4788187, %v8605_v18  ;;  %v8609_v57 = vcvt.s32.f32 %v8602_v11 }
 0x49b   : > { %v8526_v49 = vsel %vm8515_vm14, nan, %v8525_v27  ;;  %v8971_v46 = vsel %vm8515_vm14, nan, %v8970_v36 }
 0x49c   : > { %v8643_v4 = vrot.slane %v8526_v49, 7  ;;  %v8637_v63 = vcombine.high %v8526_v49, %v8526_v49  ;;  %9092 = vst [vmem:[%s10124_s26 + $0x1e8] sm:$0x70] %v8971_v46  ;;  %v9081_v21 = vcombine.low %v8971_v46, %v8971_v46  ;;  %v8607_v56 = vand.u32 2147483647, %v8606_v48 }
 0x49e   : > { %8659 = vst [vmem:[%s10124_s26 + $0x1e0] sm:$0xe] %v8643_v4  ;;  %v8644_v30 = vrot.slane %v8637_v63, 7  ;;  %9091 = vst [vmem:[%s10124_s26 + $0x1e0] sm:$0x70] %v9081_v21  ;;  %v8610_v41 = vmul.f32 %v8609_v57, %v8607_v56 }
 0x4a0   : > { %8660 = vst [vmem:[%s10124_s26 + $0x1e8] sm:$0xe] %v8644_v30  ;;  %v8611_v52 = vxor.u32 2147483648, %v8610_v41 }
 0x4a2   : > { %v8612_v38 = vsel %vm8529_vm8, %v8611_v52, %v8610_v41 }
 0x4a3   : > { %v8615_v25 = vsel %vm8528_vm1, %v14296_v37, %v8612_v38 }
 0x4a4   : > { %9893 = vcosq.f32 %v8615_v25 }
 0x4a5   : > { %9895 = vsinq.f32 %v8615_v25 }
 0x4b1   : > { %v9894_v3 = vpop.eup %9893 }
 0x4b2   : > { %v9896_v16 = vpop.eup %9895  ;;  %v8627_v44 = vxor.u32 2147483648, %v9894_v3 }
 0x4b3   : > { %v8624_v33 = vxor.u32 2147483648, %v9896_v16 }
 0x4b4   : > { %v8628_v43 = vsel %vm8626_vm2, %v8627_v44, %v9896_v16  ;;  %v9072_v20 = vsel %vm9070_vm10, %v8627_v44, %v9896_v16 }
 0x4b5   : > { %v8625_v34 = vsel %vm8623_vm11, %v9894_v3, %v8624_v33  ;;  %v9069_v35 = vsel %vm9067_vm12, %v9894_v3, %v8624_v33 }
 0x4b6   : > { %v8629_v45 = vsel %vm8622_vm4, %v8625_v34, %v8628_v43  ;;  %v9073_v32 = vsel %vm9066_vm7, %v9069_v35, %v9072_v20 }
 0x4b7   : > { %v8630_v61 = vsel %vm8619_vm13, nan, %v8629_v45  ;;  %v9074_v42 = vsel %vm8619_vm13, nan, %v9073_v32 }
 0x4b8   : > { %v8645_v31 = vrot.slane %v8630_v61, 7  ;;  %v8638_v54 = vcombine.high %v8630_v61, %v8630_v61  ;;  %v9082_v12 = vcombine.low %v9074_v42, %v9074_v42  ;;  %9094 = vst [vmem:[%s10124_s26 + $0x1f8] sm:$0x70] %v9074_v42 }
 0x4ba   : > { %8661 = vst [vmem:[%s10124_s26 + $0x1f0] sm:$0xe] %v8645_v31  ;;  %v8646_v37 = vrot.slane %v8638_v54, 7  ;;  %9093 = vst [vmem:[%s10124_s26 + $0x1f0] sm:$0x70] %v9082_v12 }
 0x4bc   : > { %8662 = vst [vmem:[%s10124_s26 + $0x1f8] sm:$0xe] %v8646_v37 }
 0x4bd   : > { %9938 = shalt.err (!%p9935_p9)
}
 0x4be   : > { %s9939_s11 = scalar_lea.hbm %s14542_s30, 8192  ;;  %s9943_s16 = scalar_lea.hbm %s14590_s1, 24576 }
 0x4bf   : > { %p9940_p1 = scmp.ne.s32.totalorder %s14542_s30, %s9939_s11  ;;  %p9944_p5 = scmp.lt.s32.totalorder %s14542_s30, %s14590_s1 }
 0x4c0   : > { %p9945_p13 = scmp.lt.s32.totalorder %s9943_s16, %s9939_s11 }
 0x4c1   : > { %p9941_p3 = pnand %p9940_p1, %p14679_p11 }
 0x4c2   : > { %p9946_p6 = por %p9945_p13, %p9944_p5 }
 0x4c3   : > { %p9942_p4 = pneg %p9941_p3 }
 0x4c5   : > { %p9947_p10 = pnand %p9946_p6, %p9942_p4 }
 0x4c7   : > { %9950 = shalt.err (!%p9947_p10)
}
 0x4c8   : > { %s9999_s23 = smov 1024   ;;  %s10000_s24 = smov 3072  }
 0x4c9   : > { %s10001_s25 = smov 64  }
 0x4ca   : > { %9680 = dma.vmem_to_hbm [thread:$0]  (%p14679_p11), %s14544_s27, 8192, %s14542_s30, %s9096_s10, %s9999_s23, %s10000_s24, %s10001_s25  }
 0x4cb PF: > { %p9691_p12 = scmp.ge.s32.totalorder %s9989_s9, 2  ;;  %s9124_s26 = sand.u32 1, %s9977_s6  }
 0x4cc   : > { %p14680_p0 = scmp.ne.s32.totalorder %s14596_s19, 0  ;;  %s9125_s17 = scalar_lea.sflag [#allocation4], %s9124_s26 }
 0x4ce   : > { %p9687_p2 = pnand %p9691_p12, %p14680_p0 }
 0x4d0   : > { %p9688_p7 = pneg %p9687_p2 }
 0x4d2   : > { %9972 = dma.done.wait (%p9688_p7), %s9125_s17, 8192  }
 0x4d3   : > { %9974 = vsyncadd (%p9688_p7), %s9125_s17, 4294959104  ;;  %p14_p8 = scmp.ge.s32.totalorder %s10037_s12, 5   ;;  %s14681_s6 = smov %s9981_s7 }
 0x4d4   : > { %s14682_s7 = smov %s9985_s8  ;;  %s14683_s8 = smov %s10049_s15 }
 0x4d5   : > { %s14684_s9 = smov %s10037_s12  ;;  %16 = sbr.rel (!%p14_p8) target bundleno = 5 (0x5), region = 69 }
 0x4da   :  { %9130 = vsyncpa [#allocation3], 1 }
 0x4db   :  { %9132 = vsyncpa [#allocation3 + $0x1], 1 }
 0x4dc   :  { %9133 = vsyncpa [#allocation4], 1 }
 0x4dd   :  { %9135 = vsyncpa [#allocation4 + $0x1], 1 }

</bundles_post_ra>
